<compile_context>
chip_gen: v7x
topology: tpu7x:2x2x1
jax: 0.10.0
libtpu: 0.0.40
codegen_flags: <defaults>
</compile_context>

<pallas_src>
import functools

import jax
import jax.numpy as jnp
from jax.experimental import pallas as pl
from jax.experimental.pallas import tpu as pltpu


# ----------------------------- Pallas kernel -------------------------------
def _dsc_kernel(x_ref, w_ref, o_ref, *, Hb, W_out, K, row_blocks):
    # x_ref : (B, H+2P, W+2P, Cin)   zero-padded input, channel-last (bf16)
    # w_ref : (K*K*Cin, Cout)        folded depthwise*pointwise weight (bf16)
    # o_ref : (B, Hb*W_out, Cout)    lane-dense output block (f32)
    B = x_ref.shape[0]
    Cin = x_ref.shape[-1]

    if row_blocks == 1:
        row0 = 0                               # static slicing on the default path
    else:
        row0 = pl.program_id(0) * Hb           # v7x: this core's output-row offset

    # im2col: 9 shifted (B*Hb*W_out, Cin) views concatenated along lanes.
    cols = []
    for ki in range(K):
        xr = x_ref[:, pl.ds(row0 + ki, Hb), :, :]          # (B, Hb, W+2P, Cin)
        for kj in range(K):
            cols.append(xr[:, :, kj:kj + W_out, :].reshape(B * Hb * W_out, Cin))
    patches = jnp.concatenate(cols, axis=-1)               # (M, K*K*Cin)

    # Single MXU matmul: (M, 576) x (576, 128), f32 accumulate.
    out = jnp.dot(patches, w_ref[...], preferred_element_type=jnp.float32)
    o_ref[...] = out.reshape(B, Hb * W_out, -1).astype(o_ref.dtype)


# ------------------- one-time "module init" weight folding ------------------
def build_effective_weight(dw_w, pw_w, compute_dtype=jnp.bfloat16):
    """Fold depthwise (Cin,1,K,K) and pointwise (Cout,Cin,1,1) weights into
    W_eff of shape (K*K*Cin, Cout).  Do this once, outside the hot path."""
    Cin, _, K, _ = dw_w.shape
    dw = dw_w[:, 0].astype(jnp.float32)           # (Cin, K, K)
    pw = pw_w[:, :, 0, 0].astype(jnp.float32)     # (Cout, Cin)
    w_eff = jnp.einsum("ckl,oc->klco", dw, pw)    # (K, K, Cin, Cout)
    return w_eff.reshape(K * K * Cin, pw_w.shape[0]).astype(compute_dtype)


# --------------------------- module forward wrapper -------------------------
def depthwise_separable_conv_forward(x, w_eff, *, kernel_size=3, padding=1,
                                     stride=1, row_blocks=1,
                                     compute_dtype=jnp.bfloat16,
                                     return_nchw=True):
    """x: (B, Cin, H, W) NCHW; w_eff: (K*K*Cin, Cout) from build_effective_weight.
    Returns (B, Cout, H_out, W_out) to match the PyTorch module."""
    assert stride == 1, "only stride=1 (module default) is implemented"
    B, Cin, H, W = x.shape
    K, P = kernel_size, padding
    KKC, Cout = w_eff.shape
    assert KKC == K * K * Cin
    H_out = H + 2 * P - K + 1
    W_out = W + 2 * P - K + 1
    assert H_out % row_blocks == 0
    Hb = H_out // row_blocks
    Hp, Wp = H + 2 * P, W + 2 * P

    # One-time layout glue (fuses into surrounding jit): NCHW -> channel-last
    # (channels on the 128-lane axis), zero halo pad, bf16 operands.
    x_nhwc = jnp.transpose(x, (0, 2, 3, 1)).astype(compute_dtype)
    x_pad = jnp.pad(x_nhwc, ((0, 0), (P, P), (P, P), (0, 0)))

    out = pl.pallas_call(
        functools.partial(_dsc_kernel, Hb=Hb, W_out=W_out, K=K,
                          row_blocks=row_blocks),
        out_shape=jax.ShapeDtypeStruct((B, H_out * W_out, Cout), jnp.float32),
        grid=(row_blocks,),
        in_specs=[
            # Full padded image resident every step (83 KB; trivially fits VMEM).
            pl.BlockSpec((B, Hp, Wp, Cin), lambda g: (0, 0, 0, 0)),
            pl.BlockSpec((KKC, Cout), lambda g: (0, 0)),
        ],
        # Lane-dense (.., Cout=128) output, split along output rows across cores.
        out_specs=pl.BlockSpec((B, Hb * W_out, Cout), lambda g: (0, g, 0)),
        compiler_params=pltpu.CompilerParams(
            dimension_semantics=("parallel",)),
    )(x_pad, w_eff)

    out = out.reshape(B, H_out, W_out, Cout)
    if return_nchw:                     # PyTorch NCHW output layout (droppable
        out = jnp.transpose(out, (0, 3, 1, 2))   # if downstream accepts NHWC)
    return out


# --------------------------- pure-JAX f32 reference -------------------------
def _ref_forward(x, dw_w, pw_w, *, K=3, P=1):
    B, Cin, H, W = x.shape
    H_out = H + 2 * P - K + 1
    W_out = W + 2 * P - K + 1
    xp = jnp.pad(x.astype(jnp.float32), ((0, 0), (0, 0), (P, P), (P, P)))
    dw = dw_w[:, 0].astype(jnp.float32)                  # (Cin, K, K)
    acc = xp[:, :, 0:H_out, 0:W_out] * dw[:, 0, 0][None, :, None, None]
    for t in range(1, K * K):
        ki, kj = t // K, t % K
        acc = acc + xp[:, :, ki:ki + H_out, kj:kj + W_out] \
                  * dw[:, ki, kj][None, :, None, None]
    pw = pw_w[:, :, 0, 0].astype(jnp.float32)            # (Cout, Cin)
    return jnp.einsum("bchw,oc->bohw", acc, pw)


# ------------------------------------ main ----------------------------------
if __name__ == "__main__":
    # Module config: in_ch=64, out_ch=128, kernel 3x3, padding 1, stride 1, no bias.
    in_ch, out_ch = 64, 128
    B, H, W = 2, 16, 16
    K, P = 3, 1

    key = jax.random.PRNGKey(0)
    kx, kd, kp = jax.random.split(key, 3)
    x = jax.random.normal(kx, (B, in_ch, H, W), dtype=jnp.float32)
    dw_w = (jax.random.normal(kd, (in_ch, 1, K, K)) * 0.1).astype(jnp.float32)
    pw_w = (jax.random.normal(kp, (out_ch, in_ch, 1, 1)) * 0.1).astype(jnp.float32)

    # v7x has 2 TensorCores/chip -> 2-way "parallel" split over output rows;
    # v5e/v6e are single-TC -> collapse everything into one grid step.
    kind = jax.devices()[0].device_kind.lower()
    row_blocks = 2 if ("v7" in kind or "7x" in kind) else 1
    if (H + 2 * P - K + 1) % row_blocks != 0:
        row_blocks = 1

    # Hoisted one-time weight fold (module init, not per-forward).
    w_eff = build_effective_weight(dw_w, pw_w)

    fwd = jax.jit(functools.partial(
        depthwise_separable_conv_forward,
        kernel_size=K, padding=P, stride=1, row_blocks=row_blocks))
    out = jax.block_until_ready(fwd(x, w_eff))

    ref = _ref_forward(x, dw_w, pw_w, K=K, P=P)

    assert out.shape == (B, out_ch, H, W), out.shape
    # bf16 MXU operands (f32 accumulation) -> loosen tolerance from 1e-4 to 2e-2.
    max_err = float(jnp.max(jnp.abs(out - ref)))
    assert jnp.allclose(out, ref, atol=2e-2, rtol=2e-2), max_err

    print("KERNEL_OK")
</pallas_src>

<mosaic_0001>
module attributes {stable_mosaic.version = 11 : i64} {
  func.func @_dsc_kernel(%arg0: i32, %arg1: memref<2x18x18x64xbf16, #tpu.memory_space<vmem>>, %arg2: memref<576x128xbf16, #tpu.memory_space<vmem>>, %arg3: memref<2x256x128xf32, #tpu.memory_space<vmem>>) attributes {dimension_semantics = [#tpu.dimension_semantics<parallel>], iteration_bounds = array<i64: 1>, scalar_prefetch = 0 : i64, scratch_operands = 0 : i64, tpu.core_type = #tpu.core_type<tc>, window_params = [{pipeline_mode = #tpu.pipeline_mode<synchronous>, transform_indices = @transform_0, window_bounds = array<i64: 2, 18, 18, 64>}, {pipeline_mode = #tpu.pipeline_mode<synchronous>, transform_indices = @transform_1, window_bounds = array<i64: 576, 128>}, {transform_indices = @transform_2, window_bounds = array<i64: 2, 256, 128>}]} {
    %c0 = arith.constant 0 : index
    %c0_0 = arith.constant 0 : index
    %c0_1 = arith.constant 0 : index
    %c0_2 = arith.constant 0 : index
    %0 = vector.load %arg1[%c0, %c0_0, %c0_1, %c0_2] : memref<2x18x18x64xbf16, #tpu.memory_space<vmem>>, vector<2x16x18x64xbf16>
    %1 = vector.extract_strided_slice %0 {offsets = [0, 0, 0, 0], sizes = [2, 16, 16, 64], strides = [1, 1, 1, 1]} : vector<2x16x18x64xbf16> to vector<2x16x16x64xbf16>
    %2 = vector.shape_cast %1 : vector<2x16x16x64xbf16> to vector<512x64xbf16>
    %3 = vector.extract_strided_slice %0 {offsets = [0, 0, 1, 0], sizes = [2, 16, 16, 64], strides = [1, 1, 1, 1]} : vector<2x16x18x64xbf16> to vector<2x16x16x64xbf16>
    %4 = vector.shape_cast %3 : vector<2x16x16x64xbf16> to vector<512x64xbf16>
    %5 = vector.extract_strided_slice %0 {offsets = [0, 0, 2, 0], sizes = [2, 16, 16, 64], strides = [1, 1, 1, 1]} : vector<2x16x18x64xbf16> to vector<2x16x16x64xbf16>
    %6 = vector.shape_cast %5 : vector<2x16x16x64xbf16> to vector<512x64xbf16>
    %c0_3 = arith.constant 0 : index
    %c1 = arith.constant 1 : index
    %c0_4 = arith.constant 0 : index
    %c0_5 = arith.constant 0 : index
    %7 = vector.load %arg1[%c0_3, %c1, %c0_4, %c0_5] : memref<2x18x18x64xbf16, #tpu.memory_space<vmem>>, vector<2x16x18x64xbf16>
    %8 = vector.extract_strided_slice %7 {offsets = [0, 0, 0, 0], sizes = [2, 16, 16, 64], strides = [1, 1, 1, 1]} : vector<2x16x18x64xbf16> to vector<2x16x16x64xbf16>
    %9 = vector.shape_cast %8 : vector<2x16x16x64xbf16> to vector<512x64xbf16>
    %10 = vector.extract_strided_slice %7 {offsets = [0, 0, 1, 0], sizes = [2, 16, 16, 64], strides = [1, 1, 1, 1]} : vector<2x16x18x64xbf16> to vector<2x16x16x64xbf16>
    %11 = vector.shape_cast %10 : vector<2x16x16x64xbf16> to vector<512x64xbf16>
    %12 = vector.extract_strided_slice %7 {offsets = [0, 0, 2, 0], sizes = [2, 16, 16, 64], strides = [1, 1, 1, 1]} : vector<2x16x18x64xbf16> to vector<2x16x16x64xbf16>
    %13 = vector.shape_cast %12 : vector<2x16x16x64xbf16> to vector<512x64xbf16>
    %c0_6 = arith.constant 0 : index
    %c2 = arith.constant 2 : index
    %c0_7 = arith.constant 0 : index
    %c0_8 = arith.constant 0 : index
    %14 = vector.load %arg1[%c0_6, %c2, %c0_7, %c0_8] : memref<2x18x18x64xbf16, #tpu.memory_space<vmem>>, vector<2x16x18x64xbf16>
    %15 = vector.extract_strided_slice %14 {offsets = [0, 0, 0, 0], sizes = [2, 16, 16, 64], strides = [1, 1, 1, 1]} : vector<2x16x18x64xbf16> to vector<2x16x16x64xbf16>
    %16 = vector.shape_cast %15 : vector<2x16x16x64xbf16> to vector<512x64xbf16>
    %17 = vector.extract_strided_slice %14 {offsets = [0, 0, 1, 0], sizes = [2, 16, 16, 64], strides = [1, 1, 1, 1]} : vector<2x16x18x64xbf16> to vector<2x16x16x64xbf16>
    %18 = vector.shape_cast %17 : vector<2x16x16x64xbf16> to vector<512x64xbf16>
    %19 = vector.extract_strided_slice %14 {offsets = [0, 0, 2, 0], sizes = [2, 16, 16, 64], strides = [1, 1, 1, 1]} : vector<2x16x18x64xbf16> to vector<2x16x16x64xbf16>
    %20 = vector.shape_cast %19 : vector<2x16x16x64xbf16> to vector<512x64xbf16>
    %21 = tpu.concatenate %2, %4, %6, %9, %11, %13, %16, %18, %20 in 1 : vector<512x64xbf16>, vector<512x64xbf16>, vector<512x64xbf16>, vector<512x64xbf16>, vector<512x64xbf16>, vector<512x64xbf16>, vector<512x64xbf16>, vector<512x64xbf16>, vector<512x64xbf16> -> vector<512x576xbf16>
    %c0_9 = arith.constant 0 : index
    %c0_10 = arith.constant 0 : index
    %22 = vector.load %arg2[%c0_9, %c0_10] : memref<576x128xbf16, #tpu.memory_space<vmem>>, vector<576x128xbf16>
    %cst = arith.constant dense<0.000000e+00> : vector<512x128xf32>
    %23 = tpu.matmul %21, %22, %cst {dimension_numbers = #tpu.dot_dimension_numbers<[1], [0], [0], [1], [0, 0, 1, 1], [], []>} : vector<512x576xbf16>, vector<576x128xbf16>, vector<512x128xf32> -> vector<512x128xf32>
    %24 = vector.shape_cast %23 : vector<512x128xf32> to vector<2x256x128xf32>
    %c0_11 = arith.constant 0 : index
    %c0_12 = arith.constant 0 : index
    %c0_13 = arith.constant 0 : index
    %25 = vector.load %arg3[%c0_11, %c0_12, %c0_13] : memref<2x256x128xf32, #tpu.memory_space<vmem>>, vector<2x256x128xf32>
    tpu.vector_store %arg3[%c0_11, %c0_12, %c0_13], %24 {strides = array<i32>} : memref<2x256x128xf32, #tpu.memory_space<vmem>>, vector<2x256x128xf32>,
    return
  }
  func.func @transform_0(%arg0: i32) -> (i32, i32, i32, i32) {
    %c0_i32 = arith.constant 0 : i32
    %c0_i32_0 = arith.constant 0 : i32
    %c0_i32_1 = arith.constant 0 : i32
    %c0_i32_2 = arith.constant 0 : i32
    %c0_i32_3 = arith.constant 0 : i32
    return %c0_i32, %c0_i32_0, %c0_i32_1, %c0_i32_2 : i32, i32, i32, i32
  }
  func.func @transform_1(%arg0: i32) -> (i32, i32) {
    %c0_i32 = arith.constant 0 : i32
    %c0_i32_0 = arith.constant 0 : i32
    %c0_i32_1 = arith.constant 0 : i32
    return %c0_i32, %c0_i32_0 : i32, i32
  }
  func.func @transform_2(%arg0: i32) -> (i32, i32, i32) {
    %c0_i32 = arith.constant 0 : i32
    %c0_i32_0 = arith.constant 0 : i32
    %c0_i32_1 = arith.constant 0 : i32
    return %c0_i32, %arg0, %c0_i32_0 : i32, i32, i32
  }
}

</mosaic_0001>

<bundles_post_ra>
// kernel: depthwise_separable_conv_forward.1
= control target key start
LH: loop header
LB: loop body
LE: loop exit
PB: predicated region body
PF: predicated region fallthrough
CT: control target
= control target key end

     0   :  { %v12410_v4 = vmov 0   ;;  %s7819_s19 = smov 64   ;;  %vm109_vm0 = vsmask.f32 3328  ;;  %vm110_vm1 = vsmask.f32 7440  ;;  %s12407_s0 = inlined_call_operand.vmem [shape: bf16[2,18,18,64], index: 0, kind: input, shape index: {}]   ;;  %s12408_s1 = inlined_call_operand.vmem [shape: bf16[576,128], index: 1, kind: input, shape index: {}]   ;;  %s12409_s2 = inlined_call_operand.hbm [shape: f32[2,256,128], index: 2, kind: output, shape index: {}]  }
   0x1   :  { %v7841_v0 = vld [vmem:[%s12407_s0 + $0x6c] sm:$0xf]  ;;  %v7846_v1 = vld [vmem:[%s12407_s0 + $0x70] sm:$0xf]  ;;  %5590 = vmatprep.subr.bf16.mxu0 %v12410_v4  ;;  %7289 = vmatprep.subr.bf16.mxu1 %v12410_v4  ;;  %v7420_v5 = vld [vmem:[%s12408_s1] sm:$0xff]   ;;  %vm976_vm3 = vcmask 1042432  }
   0x2   :  { %v6929_v2 = vcombine.low %v7841_v0, %v7846_v1  ;;  %v7853_v3 = vld [vmem:[%s12407_s0 + $0xc] sm:$0xf]  ;;  %v7863_v6 = vld [vmem:[%s12407_s0 + $0x10] sm:$0xf]  ;;  %v37_v7 = vld [vmem:[%s12407_s0 + $0x60] sm:$0xf]  ;;  %5591 = vmatpush1.bf16.msra.mxu0 %v7420_v5  ;;  %7305 = vmatpush1.bf16.msra.mxu1 %v7420_v5 }
   0x3   :  { %v7422_v8 = vld [vmem:[%s12408_s1 + $0x8] sm:$0xff]   ;;  %v6921_v9 = vcombine.low %v7853_v3, %v7863_v6  ;;  %v38_v10 = vld [vmem:[%s12407_s0 + $0x64] sm:$0xf]  ;;  %5592 = vmatprep.subr.bf16.mxu0 %v12410_v4  ;;  %7290 = vmatprep.subr.bf16.mxu1 %v12410_v4  ;;  %v305_v12 = vshrl.u32 %v37_v7, 16  ;;  %v13_v13 = vld [vmem:[%s12407_s0] sm:$0xf] }
   0x4   :  { %4037 = vrot.lane.b32.xlu1 %v6929_v2, %s7819_s19  ;;  %v39_v11 = vld [vmem:[%s12407_s0 + $0x68] sm:$0x1]  ;;  %v308_v14 = vshll.u32 %v37_v7, 16  ;;  %v314_v15 = vshll.u32 %v38_v10, 16  ;;  %v318_v16 = vshrl.u32 %v38_v10, 16  ;;  %v7424_v18 = vld [vmem:[%s12408_s1 + $0x10] sm:$0xff]   ;;  %vm7904_vm2 = vmor %vm109_vm0, %vm110_vm1 }
   0x5   :  { %4021 = vrot.lane.b32.xlu0 %v6921_v9, %s7819_s19  ;;  %v14_v17 = vld [vmem:[%s12407_s0 + $0x4] sm:$0xf]  ;;  %v307_v19 = vrot.slane %v305_v12, 4  ;;  %v324_v20 = vshll.u32 %v39_v11, 16  ;;  %v15_v21 = vld [vmem:[%s12407_s0 + $0x8] sm:$0x1] }
   0x6   :  { %5593 = vmatpush1.bf16.msra.mxu0 %v7422_v8  ;;  %v113_v22 = vshrl.u32 %v13_v13, 16  ;;  %7306 = vmatpush1.bf16.msra.mxu1 %v7422_v8  ;;  %v310_v23 = vrot.slane %v308_v14, 5  ;;  %v316_v24 = vrot.slane %v314_v15, 5  ;;  %v320_v25 = vrot.slane %v318_v16, 4  ;;  %v7426_v35 = vld [vmem:[%s12408_s1 + $0x18] sm:$0xff]   ;;  %v7427_v56 = vld [vmem:[%s12408_s1 + $0x20] sm:$0xff]  }
   0x7   :  { %5594 = vmatprep.subr.bf16.mxu0 %v12410_v4  ;;  %v116_v26 = vshll.u32 %v13_v13, 16  ;;  %7291 = vmatprep.subr.bf16.mxu1 %v12410_v4  ;;  %v326_v27 = vrot.slane %v324_v20, 5  ;;  %v122_v29 = vshll.u32 %v14_v17, 16  ;;  %v126_v30 = vshrl.u32 %v14_v17, 16  ;;  %v16_v45 = vld [vmem:[%s12407_s0 + $0xc] sm:$0xf] }
   0x8   :  { %v115_v28 = vrot.slane %v113_v22, 4  ;;  %v311_v31 = vor.u32 %v310_v23, %v307_v19  ;;  %v321_v32 = vor.u32 %v320_v25, %v316_v24  ;;  %v132_v34 = vshll.u32 %v15_v21, 16  ;;  %v17_v50 = vld [vmem:[%s12407_s0 + $0x10] sm:$0xf]  ;;  %v18_v55 = vld [vmem:[%s12407_s0 + $0x14] sm:$0x1] }
   0x9   :  { %v118_v33 = vrot.slane %v116_v26, 5  ;;  %v1502_v36 = vshll.u32 %v7846_v1, 16  ;;  %v1506_v37 = vshrl.u32 %v7846_v1, 16  ;;  %v124_v39 = vrot.slane %v122_v29, 5  ;;  %v7939_v63 = vld [vmem:[%s12407_s0 + $0x18] sm:$0xf] }
   0xa   :  { %5595 = vmatpush1.bf16.msra.mxu0 %v7424_v18  ;;  %v128_v40 = vrot.slane %v126_v30, 4  ;;  %7307 = vmatpush1.bf16.msra.mxu1 %v7424_v18  ;;  %v1493_v41 = vshrl.u32 %v7841_v0, 16  ;;  %v312_v42 = vrot.slane %v311_v31, 4  ;;  %v322_v43 = vrot.slane %v321_v32, 4  ;;  %v7948_v5 = vld [vmem:[%s12407_s0 + $0x1c] sm:$0xf] }
   0xb   :  { %5596 = vmatprep.subr.bf16.mxu0 %v12410_v4  ;;  %v119_v44 = vor.u32 %v118_v33, %v115_v28  ;;  %7292 = vmatprep.subr.bf16.mxu1 %v12410_v4  ;;  %v1496_v46 = vshll.u32 %v7841_v0, 16  ;;  %v1301_v47 = vshrl.u32 %v7853_v3, 16  ;;  %v134_v49 = vrot.slane %v132_v34, 5  ;;  %v40_v14 = vld [vmem:[%s12407_s0 + $0x6c] sm:$0xf] }
   0xc   :  { %v129_v48 = vor.u32 %v128_v40, %v124_v39  ;;  %v1304_v51 = vshll.u32 %v7853_v3, 16  ;;  %v317_v52 = vsel %vm7904_vm2, %v312_v42, %v316_v24  ;;  %v327_v53 = vsel %vm7904_vm2, %v322_v43, %v326_v27  ;;  %v7429_v15 = vld [vmem:[%s12408_s1 + $0x28] sm:$0xff]   ;;  %v41_v20 = vld [vmem:[%s12407_s0 + $0x70] sm:$0xf]  ;;  %v42_v25 = vld [vmem:[%s12407_s0 + $0x74] sm:$0x1] }
   0xd   :  { %v120_v54 = vrot.slane %v119_v44, 4  ;;  %v7930_v57 = vrot.slane %v1502_v36, 5  ;;  %v6865_v58 = vcombine.low %v317_v52, %v327_v53  ;;  %v137_v60 = vshrl.u32 %v16_v45, 16  ;;  %v7986_v28 = vld [vmem:[%s12407_s0 + $0x7c] sm:$0xf] }
   0xe   :  { %5597 = vmatpush1.bf16.msra.mxu0 %v7426_v35  ;;  %v130_v59 = vrot.slane %v129_v48, 4  ;;  %7308 = vmatpush1.bf16.msra.mxu1 %v7426_v35  ;;  %v1310_v61 = vshll.u32 %v7863_v6, 16  ;;  %v140_v0 = vshll.u32 %v16_v45, 16  ;;  %v146_v1 = vshll.u32 %v17_v50, 16  ;;  %12482 = vst [vmem:[#allocation9_spill] sm:$0xff] %v7986_v28  ;;  %v7430_v35 = vld [vmem:[%s12408_s1 + $0x30] sm:$0xff]  }
   0xf   :  { %12478 = vst [vmem:[#allocation5_spill] sm:$0xff] %v7930_v57  ;;  %5598 = vmatprep.subr.bf16.mxu0 %v12410_v4  ;;  %v125_v62 = vsel %vm7904_vm2, %v120_v54, %v124_v39  ;;  %7293 = vmatprep.subr.bf16.mxu1 %v12410_v4  ;;  %v139_v7 = vrot.slane %v137_v60, 4  ;;  %v150_v8 = vshrl.u32 %v17_v50, 16  ;;  %v156_v9 = vshll.u32 %v18_v55, 16  ;;  %v8001_v45 = vld [vmem:[%s12407_s0 + $0x24] sm:$0xf] }
  0x10   :  { %3781 = vrot.lane.b32.xlu1 %v6865_v58, %s7819_s19  ;;  %v135_v2 = vsel %vm7904_vm2, %v130_v59, %v134_v49  ;;  %v7950_v10 = vrot.slane %v1506_v37, 4  ;;  %v142_v12 = vrot.slane %v140_v0, 5  ;;  %v148_v13 = vrot.slane %v146_v1, 5  ;;  %v19_v52 = vld [vmem:[%s12407_s0 + $0x18] sm:$0xf] }
  0x11   :  { %v6857_v11 = vcombine.low %v125_v62, %v135_v2  ;;  %v7958_v16 = vrot.slane %v1493_v41, 4  ;;  %v7960_v17 = vrot.slane %v1496_v46, 5  ;;  %v1314_v18 = vshrl.u32 %v7863_v6, 16  ;;  %v7977_v6 = vld [vmem:[%s12407_s0 + $0x78] sm:$0xf] }
  0x12   :  { %12479 = vst [vmem:[#allocation6_spill] sm:$0xff] %v7950_v10  ;;  %5599 = vmatpush1.bf16.msra.mxu0 %v7427_v56  ;;  %v152_v19 = vrot.slane %v150_v8, 4  ;;  %7309 = vmatpush1.bf16.msra.mxu1 %v7427_v56  ;;  %v7967_v21 = vrot.slane %v1310_v61, 5  ;;  %v7969_v22 = vrot.slane %v1301_v47, 4  ;;  %v6922_v23 = vcombine.low %v7939_v63, %v7948_v5  ;;  %v8006_v46 = vld [vmem:[%s12407_s0 + $0x28] sm:$0xf] }
  0x13   :  { %12480 = vst [vmem:[#allocation7_spill] sm:$0xff] %v7958_v16  ;;  %12481 = vst [vmem:[#allocation8_spill] sm:$0xff] %v7960_v17  ;;  %5600 = vmatprep.subr.bf16.mxu0 %v12410_v4  ;;  %3765 = vrot.lane.b32.xlu0 %v6857_v11, %s7819_s19  ;;  %v143_v24 = vor.u32 %v142_v12, %v139_v7  ;;  %v158_v27 = vrot.slane %v156_v9, 5  ;;  %v329_v29 = vshrl.u32 %v40_v14, 16  ;;  %v332_v30 = vshll.u32 %v40_v14, 16 }
  0x14   :  { %7294 = vmatprep.subr.bf16.mxu1 %v12410_v4  ;;  %v153_v26 = vor.u32 %v152_v19, %v148_v13  ;;  %v1325_v31 = vshrl.u32 %v7939_v63, 16  ;;  %v338_v33 = vshll.u32 %v41_v20, 16  ;;  %v342_v34 = vshrl.u32 %v41_v20, 16  ;;  %v20_v53 = vld [vmem:[%s12407_s0 + $0x1c] sm:$0xf]  ;;  %v7433_v20 = vld [vmem:[%s12408_s1 + $0x40] sm:$0xff]  }
  0x15   :  { %v144_v32 = vrot.slane %v143_v24, 4  ;;  %v331_v37 = vrot.slane %v329_v29, 4  ;;  %v334_v39 = vrot.slane %v332_v30, 5  ;;  %v348_v40 = vshll.u32 %v42_v25, 16  ;;  %v21_v3 = vld [vmem:[%s12407_s0 + $0x20] sm:$0x1] }
  0x16   :  { %5601 = vmatpush1.bf16.msra.mxu0 %v7429_v15  ;;  %v154_v36 = vrot.slane %v153_v26, 4  ;;  %7310 = vmatpush1.bf16.msra.mxu1 %v7429_v15  ;;  %v6930_v42 = vcombine.low %v7977_v6, %v7986_v28  ;;  %v340_v43 = vrot.slane %v338_v33, 5  ;;  %v344_v44 = vrot.slane %v342_v34, 4  ;;  %v8043_v11 = vld [vmem:[%s12407_s0 + $0x84] sm:$0xf] }
  0x17   :  { %5602 = vmatprep.subr.bf16.mxu0 %v12410_v4  ;;  %4023 = vrot.lane.b32.xlu0 %v6922_v23, %s7819_s19  ;;  %v149_v41 = vsel %vm7904_vm2, %v144_v32, %v148_v13  ;;  %v8009_v47 = vrot.slane %v1314_v18, 4  ;;  %v8013_v48 = vrot.slane %v1304_v51, 5  ;;  %v335_v50 = vor.u32 %v334_v39, %v331_v37  ;;  %v7432_v51 = vld [vmem:[%s12408_s1 + $0x38] sm:$0xff]   ;;  %v8048_v12 = vld [vmem:[%s12407_s0 + $0x88] sm:$0xf] }
  0x18   :  { %7295 = vmatprep.subr.bf16.mxu1 %v12410_v4  ;;  %v159_v49 = vsel %vm7904_vm2, %v154_v36, %v158_v27  ;;  %v1328_v54 = vshll.u32 %v7939_v63, 16  ;;  %v345_v56 = vor.u32 %v344_v44, %v340_v43  ;;  %v350_v58 = vrot.slane %v348_v40, 5  ;;  %12483 = vst [vmem:[#allocation10_spill] sm:$0xff] %v8048_v12  ;;  %v43_v19 = vld [vmem:[%s12407_s0 + $0x78] sm:$0xf] }
  0x19   :  { %v6858_v55 = vcombine.low %v149_v41, %v159_v49  ;;  %v8030_v59 = vrot.slane %v1325_v31, 4  ;;  %v1338_v60 = vshrl.u32 %v7948_v5, 16  ;;  %v336_v61 = vrot.slane %v335_v50, 4  ;;  %v44_v32 = vld [vmem:[%s12407_s0 + $0x7c] sm:$0xf] }
  0x1a   :  { %5603 = vmatpush1.bf16.msra.mxu0 %v7430_v35  ;;  %v6923_v62 = vcombine.low %v8001_v45, %v8006_v46  ;;  %7311 = vmatpush1.bf16.msra.mxu1 %v7430_v35  ;;  %v346_v63 = vrot.slane %v345_v56, 4  ;;  %v161_v0 = vshrl.u32 %v19_v52, 16  ;;  %v164_v1 = vshll.u32 %v19_v52, 16  ;;  %v8092_v56 = vld [vmem:[%s12407_s0 + $0x30] sm:$0xf] }
  0x1b   :  { %5604 = vmatprep.subr.bf16.mxu0 %v12410_v4  ;;  %3767 = vrot.lane.b32.xlu1 %v6858_v55, %s7819_s19  ;;  %v170_v2 = vshll.u32 %v20_v53, 16  ;;  %v341_v7 = vsel %vm7904_vm2, %v336_v61, %v340_v43  ;;  %v174_v8 = vshrl.u32 %v20_v53, 16  ;;  %v180_v9 = vshll.u32 %v21_v3, 16  ;;  %v22_v61 = vld [vmem:[%s12407_s0 + $0x24] sm:$0xf] }
  0x1c   :  { %4039 = vrot.lane.b32.xlu0 %v6930_v42, %s7819_s19  ;;  %7296 = vmatprep.subr.bf16.mxu1 %v12410_v4  ;;  %v351_v13 = vsel %vm7904_vm2, %v346_v63, %v350_v58  ;;  %v163_v14 = vrot.slane %v161_v0, 4  ;;  %v166_v15 = vrot.slane %v164_v1, 5  ;;  %v8059_v23 = vrot.slane %v1328_v54, 5  ;;  %v7435_v42 = vld [vmem:[%s12408_s1 + $0x48] sm:$0xff]  }
  0x1d   :  { %v172_v18 = vrot.slane %v170_v2, 5  ;;  %v6866_v25 = vcombine.low %v341_v7, %v351_v13  ;;  %v176_v26 = vrot.slane %v174_v8, 4  ;;  %v8063_v27 = vrot.slane %v1338_v60, 4  ;;  %v8100_v60 = vld [vmem:[%s12407_s0 + $0x34] sm:$0xf] }
  0x1e   :  { %5605 = vmatpush1.bf16.msra.mxu0 %v7432_v51  ;;  %7312 = vmatpush1.bf16.msra.mxu1 %v7432_v51  ;;  %v1517_v29 = vshrl.u32 %v7977_v6, 16  ;;  %v1520_v30 = vshll.u32 %v7977_v6, 16  ;;  %v167_v31 = vor.u32 %v166_v15, %v163_v14  ;;  %v182_v34 = vrot.slane %v180_v9, 5  ;;  %v45_v6 = vld [vmem:[%s12407_s0 + $0x80] sm:$0x1]  ;;  %v7436_v7 = vld [vmem:[%s12408_s1 + $0x50] sm:$0xff]  }
  0x1f   :  { %5606 = vmatprep.subr.bf16.mxu0 %v12410_v4  ;;  %7297 = vmatprep.subr.bf16.mxu1 %v12410_v4  ;;  %v177_v33 = vor.u32 %v176_v26, %v172_v18  ;;  %v6931_v35 = vcombine.low %v8043_v11, %v8048_v12  ;;  %v353_v36 = vshrl.u32 %v43_v19, 16  ;;  %v1530_v39 = vshrl.u32 %v7986_v28, 16  ;;  %v23_v2 = vld [vmem:[%s12407_s0 + $0x28] sm:$0xf]  ;;  %v24_v15 = vld [vmem:[%s12407_s0 + $0x2c] sm:$0x1] }
  0x20   :  { %4025 = vrot.lane.b32.xlu0 %v6923_v62, %s7819_s19  ;;  %3783 = vrot.lane.b32.xlu1 %v6866_v25, %s7819_s19  ;;  %v168_v40 = vrot.slane %v167_v31, 4  ;;  %v356_v41 = vshll.u32 %v43_v19, 16  ;;  %v362_v49 = vshll.u32 %v44_v32, 16  ;;  %v366_v50 = vshrl.u32 %v44_v32, 16 }
  0x21   :  { %v178_v43 = vrot.slane %v177_v33, 4  ;;  %v355_v44 = vrot.slane %v353_v36, 4  ;;  %v8084_v52 = vrot.slane %v1517_v29, 4  ;;  %v372_v55 = vshll.u32 %v45_v6, 16  ;;  %v7438_v6 = vld [vmem:[%s12408_s1 + $0x58] sm:$0xff]  }
  0x22   :  { %5607 = vmatpush1.bf16.msra.mxu0 %v7433_v20  ;;  %7313 = vmatpush1.bf16.msra.mxu1 %v7433_v20  ;;  %v173_v53 = vsel %vm7904_vm2, %v168_v40, %v172_v18  ;;  %v358_v54 = vrot.slane %v356_v41, 5  ;;  %v364_v3 = vrot.slane %v362_v49, 5  ;;  %v368_v51 = vrot.slane %v366_v50, 4  ;;  %v8142_v41 = vld [vmem:[%s12407_s0 + $0x94] sm:$0xf] }
  0x23   :  { %5608 = vmatprep.subr.bf16.mxu0 %v12410_v4  ;;  %12484 = vst [vmem:[#allocation11_spill] sm:$0xff] %v8084_v52  ;;  %7298 = vmatprep.subr.bf16.mxu1 %v12410_v4  ;;  %v183_v58 = vsel %vm7904_vm2, %v178_v43, %v182_v34  ;;  %v8105_v62 = vrot.slane %v1520_v30, 5  ;;  %v8107_v63 = vrot.slane %v1530_v39, 4  ;;  %v1349_v8 = vshrl.u32 %v8001_v45, 16  ;;  %12487 = vst [vmem:[#allocation14_spill] sm:$0xff] %v8142_v41 }
  0x24   :  { %4041 = vrot.lane.b32.xlu0 %v6931_v35, %s7819_s19  ;;  %v6859_v0 = vcombine.low %v173_v53, %v183_v58  ;;  %v359_v1 = vor.u32 %v358_v54, %v355_v44  ;;  %v1352_v9 = vshll.u32 %v8001_v45, 16  ;;  %v369_v13 = vor.u32 %v368_v51, %v364_v3  ;;  %v8132_v35 = vld [vmem:[%s12407_s0 + $0x90] sm:$0xf]  ;;  %v47_v53 = vld [vmem:[%s12407_s0 + $0x88] sm:$0xf] }
  0x25   :  { %12485 = vst [vmem:[#allocation12_spill] sm:$0xff] %v8105_v62  ;;  %12486 = vst [vmem:[#allocation13_spill] sm:$0xff] %v8107_v63  ;;  %v374_v14 = vrot.slane %v372_v55, 5  ;;  %v6924_v19 = vcombine.low %v8092_v56, %v8100_v60  ;;  %v185_v20 = vshrl.u32 %v22_v61, 16  ;;  %v188_v25 = vshll.u32 %v22_v61, 16 }
  0x26   :  { %5609 = vmatpush1.bf16.msra.mxu0 %v7435_v42  ;;  %7314 = vmatpush1.bf16.msra.mxu1 %v7435_v42  ;;  %v360_v18 = vrot.slane %v359_v1, 4  ;;  %v1362_v45 = vshrl.u32 %v8006_v46, 16  ;;  %v370_v26 = vrot.slane %v369_v13, 4  ;;  %v194_v29 = vshll.u32 %v23_v2, 16  ;;  %v46_v42 = vld [vmem:[%s12407_s0 + $0x84] sm:$0xf] }
  0x27   :  { %5610 = vmatprep.subr.bf16.mxu0 %v12410_v4  ;;  %3769 = vrot.lane.b32.xlu1 %v6859_v0, %s7819_s19  ;;  %v198_v30 = vshrl.u32 %v23_v2, 16  ;;  %v187_v32 = vrot.slane %v185_v20, 4  ;;  %v190_v33 = vrot.slane %v188_v25, 5  ;;  %v204_v34 = vshll.u32 %v24_v15, 16  ;;  %v48_v51 = vld [vmem:[%s12407_s0 + $0x8c] sm:$0x1] }
  0x28   :  { %7299 = vmatprep.subr.bf16.mxu1 %v12410_v4  ;;  %v365_v31 = vsel %vm7904_vm2, %v360_v18, %v364_v3  ;;  %4027 = vrot.lane.b32.xlu0 %v6924_v19, %s7819_s19  ;;  %v375_v36 = vsel %vm7904_vm2, %v370_v26, %v374_v14  ;;  %v196_v39 = vrot.slane %v194_v29, 5  ;;  %v8148_v43 = vrot.slane %v1349_v8, 4  ;;  %v8174_v20 = vld [vmem:[%s12407_s0 + $0x3c] sm:$0xf]  ;;  %v8185_v29 = vld [vmem:[%s12407_s0 + $0x40] sm:$0xf] }
  0x29   :  { %v200_v40 = vrot.slane %v198_v30, 4  ;;  %v6867_v49 = vcombine.low %v365_v31, %v375_v36  ;;  %v191_v50 = vor.u32 %v190_v33, %v187_v32  ;;  %v8155_v54 = vrot.slane %v1352_v9, 5  ;;  %12488 = vst [vmem:[#allocation15_spill] sm:$0xff] %v8185_v29  ;;  %v25_v30 = vld [vmem:[%s12407_s0 + $0x30] sm:$0xf] }
  0x2a   :  { %5611 = vmatpush1.bf16.msra.mxu0 %v7436_v7  ;;  %7315 = vmatpush1.bf16.msra.mxu1 %v7436_v7  ;;  %v8157_v55 = vrot.slane %v1362_v45, 4  ;;  %v206_v3 = vrot.slane %v204_v34, 5  ;;  %v1541_v61 = vshrl.u32 %v8043_v11, 16  ;;  %v6932_v1 = vcombine.low %v8132_v35, %v8142_v41  ;;  %v59_v63 = vld [vmem:[%s12407_s0 + $0xb8] sm:$0xf] }
  0x2b   :  { %5612 = vmatprep.subr.bf16.mxu0 %v12410_v4  ;;  %7300 = vmatprep.subr.bf16.mxu1 %v12410_v4  ;;  %v201_v58 = vor.u32 %v200_v40, %v196_v39  ;;  %v192_v0 = vrot.slane %v191_v50, 4  ;;  %v377_v2 = vshrl.u32 %v46_v42, 16  ;;  %v1544_v7 = vshll.u32 %v8043_v11, 16  ;;  %v7439_v11 = vld [vmem:[%s12408_s1 + $0x60] sm:$0xff]  }
  0x2c   :  { %3785 = vrot.lane.b32.xlu1 %v6867_v49, %s7819_s19  ;;  %v380_v9 = vshll.u32 %v46_v42, 16  ;;  %v386_v13 = vshll.u32 %v47_v53, 16  ;;  %4043 = vrot.lane.b32.xlu0 %v6932_v1, %s7819_s19  ;;  %v390_v18 = vshrl.u32 %v47_v53, 16  ;;  %v396_v19 = vshll.u32 %v48_v51, 16  ;;  %v27_v49 = vld [vmem:[%s12407_s0 + $0x38] sm:$0x1] }
  0x2d   :  { %v202_v8 = vrot.slane %v201_v58, 4  ;;  %v197_v14 = vsel %vm7904_vm2, %v192_v0, %v196_v39  ;;  %v379_v15 = vrot.slane %v377_v2, 4  ;;  %v1554_v32 = vshrl.u32 %v8048_v12, 16 }
  0x2e   :  { %5613 = vmatpush1.bf16.msra.mxu0 %v7438_v6  ;;  %7316 = vmatpush1.bf16.msra.mxu1 %v7438_v6  ;;  %v382_v45 = vrot.slane %v380_v9, 5  ;;  %v388_v26 = vrot.slane %v386_v13, 5  ;;  %v392_v34 = vrot.slane %v390_v18, 4  ;;  %v26_v6 = vld [vmem:[%s12407_s0 + $0x34] sm:$0xf]  ;;  %v8195_v36 = vrot.slane %v1541_v61, 4 }
  0x2f   :  { %5614 = vmatprep.subr.bf16.mxu0 %v12410_v4  ;;  %7301 = vmatprep.subr.bf16.mxu1 %v12410_v4  ;;  %v207_v25 = vsel %vm7904_vm2, %v202_v8, %v206_v3  ;;  %v8197_v39 = vrot.slane %v1544_v7, 5  ;;  %v1373_v40 = vshrl.u32 %v8092_v56, 16  ;;  %v398_v53 = vrot.slane %v396_v19, 5  ;;  %v8213_v13 = vld [vmem:[%s12407_s0 + $0x9c] sm:$0xf] }
  0x30   :  { %v6860_v33 = vcombine.low %v197_v14, %v207_v25  ;;  %12489 = vst [vmem:[#allocation16_spill] sm:$0xff] %v8195_v36  ;;  %v383_v42 = vor.u32 %v382_v45, %v379_v15  ;;  %v393_v50 = vor.u32 %v392_v34, %v388_v26  ;;  %v6925_v58 = vcombine.low %v8174_v20, %v8185_v29  ;;  %v8222_v19 = vld [vmem:[%s12407_s0 + $0xa0] sm:$0xf] }
  0x31   :  { %12490 = vst [vmem:[#allocation17_spill] sm:$0xff] %v8197_v39  ;;  %v209_v3 = vshrl.u32 %v25_v30, 16  ;;  %v1376_v51 = vshll.u32 %v8092_v56, 16  ;;  %v212_v0 = vshll.u32 %v25_v30, 16  ;;  %v218_v1 = vshll.u32 %v26_v6, 16  ;;  %12492 = vst [vmem:[#allocation19_spill] sm:$0xff] %v8222_v19 }
  0x32   :  { %5615 = vmatpush1.bf16.msra.mxu0 %v7439_v11  ;;  %7317 = vmatpush1.bf16.msra.mxu1 %v7439_v11  ;;  %v384_v61 = vrot.slane %v383_v42, 4  ;;  %v394_v2 = vrot.slane %v393_v50, 4  ;;  %v222_v8 = vshrl.u32 %v26_v6, 16  ;;  %v228_v9 = vshll.u32 %v27_v49, 16  ;;  %v7441_v11 = vld [vmem:[%s12408_s1 + $0x68] sm:$0xff]  }
  0x33   :  { %5616 = vmatprep.subr.bf16.mxu0 %v12410_v4  ;;  %3771 = vrot.lane.b32.xlu1 %v6860_v33, %s7819_s19  ;;  %v211_v7 = vrot.slane %v209_v3, 4  ;;  %v8215_v14 = vrot.slane %v1554_v32, 4  ;;  %v214_v56 = vrot.slane %v212_v0, 5  ;;  %v220_v18 = vrot.slane %v218_v1, 5  ;;  %v50_v32 = vld [vmem:[%s12407_s0 + $0x94] sm:$0xf] }
  0x34   :  { %7302 = vmatprep.subr.bf16.mxu1 %v12410_v4  ;;  %4029 = vrot.lane.b32.xlu0 %v6925_v58, %s7819_s19  ;;  %v389_v15 = vsel %vm7904_vm2, %v384_v61, %v388_v26  ;;  %v8227_v25 = vrot.slane %v1373_v40, 4  ;;  %v399_v45 = vsel %vm7904_vm2, %v394_v2, %v398_v53  ;;  %v224_v30 = vrot.slane %v222_v8, 4  ;;  %v49_v26 = vld [vmem:[%s12407_s0 + $0x90] sm:$0xf]  ;;  %v51_v40 = vld [vmem:[%s12407_s0 + $0x98] sm:$0x1] }
  0x35   :  { %12491 = vst [vmem:[#allocation18_spill] sm:$0xff] %v8215_v14  ;;  %v8237_v33 = vrot.slane %v1376_v51, 5  ;;  %v1386_v34 = vshrl.u32 %v8100_v60, 16  ;;  %v6868_v6 = vcombine.low %v389_v15, %v399_v45  ;;  %v215_v42 = vor.u32 %v214_v56, %v211_v7  ;;  %v53_v1 = vld [vmem:[%s12407_s0 + $0xa0] sm:$0xf] }
  0x36   :  { %5617 = vmatpush1.bf16.msra.mxu0 %v7441_v11  ;;  %7318 = vmatpush1.bf16.msra.mxu1 %v7441_v11  ;;  %v1565_v49 = vshrl.u32 %v8132_v35, 16  ;;  %v225_v50 = vor.u32 %v224_v30, %v220_v18  ;;  %v230_v53 = vrot.slane %v228_v9, 5  ;;  %v6933_v58 = vcombine.low %v8213_v13, %v8222_v19  ;;  %v8254_v9 = vld [vmem:[%s12407_s0 + $0x48] sm:$0xf]  ;;  %v8261_v30 = vld [vmem:[%s12407_s0 + $0x4c] sm:$0xf] }
  0x37   :  { %5618 = vmatprep.subr.bf16.mxu0 %v12410_v4  ;;  %7303 = vmatprep.subr.bf16.mxu1 %v12410_v4  ;;  %v216_v3 = vrot.slane %v215_v42, 4  ;;  %v401_v51 = vshrl.u32 %v49_v26, 16  ;;  %v404_v61 = vshll.u32 %v49_v26, 16  ;;  %v410_v0 = vshll.u32 %v50_v32, 16  ;;  %12493 = vst [vmem:[#allocation20_spill] sm:$0xff] %v8261_v30  ;;  %v7442_v26 = vld [vmem:[%s12408_s1 + $0x70] sm:$0xff]  }
  0x38   :  { %3787 = vrot.lane.b32.xlu1 %v6868_v6, %s7819_s19  ;;  %v226_v2 = vrot.slane %v225_v50, 4  ;;  %4045 = vrot.lane.b32.xlu0 %v6933_v58, %s7819_s19  ;;  %v414_v7 = vshrl.u32 %v50_v32, 16  ;;  %v420_v8 = vshll.u32 %v51_v40, 16  ;;  %v8266_v32 = vrot.slane %v1386_v34, 4  ;;  %v29_v40 = vld [vmem:[%s12407_s0 + $0x40] sm:$0xf] }
  0x39   :  { %v221_v15 = vsel %vm7904_vm2, %v216_v3, %v220_v18  ;;  %v403_v56 = vrot.slane %v401_v51, 4  ;;  %v406_v11 = vrot.slane %v404_v61, 5  ;;  %v412_v45 = vrot.slane %v410_v0, 5  ;;  %v28_v18 = vld [vmem:[%s12407_s0 + $0x3c] sm:$0xf] }
  0x3a   :  { %12494 = vst [vmem:[#allocation21_spill] sm:$0xff] %v8266_v32  ;;  %v231_v6 = vsel %vm7904_vm2, %v226_v2, %v230_v53  ;;  %v416_v42 = vrot.slane %v414_v7, 4  ;;  %v8276_v50 = vrot.slane %v1565_v49, 4  ;;  %v1568_v58 = vshll.u32 %v8132_v35, 16  ;;  %5619 = vmatpush1.bf16.msra.mxu0 %v7442_v26  ;;  %7319 = vmatpush1.bf16.msra.mxu1 %v7442_v26  ;;  %v30_v2 = vld [vmem:[%s12407_s0 + $0x44] sm:$0x1] }
  0x3b   :  { %v6861_v3 = vcombine.low %v221_v15, %v231_v6  ;;  %v407_v51 = vor.u32 %v406_v11, %v403_v56  ;;  %v422_v61 = vrot.slane %v420_v8, 5  ;;  %v6926_v0 = vcombine.low %v8254_v9, %v8261_v30  ;;  %5620 = vmatprep.subr.bf16.mxu0 %v12410_v4  ;;  %7304 = vmatprep.subr.bf16.mxu1 %v12410_v4  ;;  %v8294_v6 = vld [vmem:[%s12407_s0 + $0xa8] sm:$0xf] }
  0x3c   :  { %12495 = vst [vmem:[#allocation22_spill] sm:$0xff] %v8276_v50  ;;  %v417_v53 = vor.u32 %v416_v42, %v412_v45  ;;  %v1578_v35 = vshrl.u32 %v8142_v41, 16  ;;  %v233_v7 = vshrl.u32 %v28_v18, 16  ;;  %v236_v15 = vshll.u32 %v28_v18, 16  ;;  %v8301_v18 = vld [vmem:[%s12407_s0 + $0xac] sm:$0xf] }
  0x3d   :  { %3773 = vrot.lane.b32.xlu1 %v6861_v3, %s7819_s19  ;;  %v408_v49 = vrot.slane %v407_v51, 4  ;;  %v1397_v8 = vshrl.u32 %v8174_v20, 16  ;;  %4031 = vrot.lane.b32.xlu0 %v6926_v0, %s7819_s19  ;;  %v242_v11 = vshll.u32 %v29_v40, 16  ;;  %v246_v26 = vshrl.u32 %v29_v40, 16  ;;  %12496 = vst [vmem:[#allocation23_spill] sm:$0xff] %v8301_v18  ;;  %v7444_v40 = vld [vmem:[%s12408_s1 + $0x78] sm:$0xff]  }
  0x3e   :  { %v418_v56 = vrot.slane %v417_v53, 4  ;;  %v235_v34 = vrot.slane %v233_v7, 4  ;;  %v238_v3 = vrot.slane %v236_v15, 5  ;;  %v252_v51 = vshll.u32 %v30_v2, 16  ;;  %v52_v2 = vld [vmem:[%s12407_s0 + $0x9c] sm:$0xf]  ;;  %5621 = vmatpush1.bf16.msra.mxu0 %v7444_v40  ;;  %7320 = vmatpush1.bf16.msra.mxu1 %v7444_v40 }
  0x3f   :  { %v413_v42 = vsel %vm7904_vm2, %v408_v49, %v412_v45  ;;  %v244_v31 = vrot.slane %v242_v11, 5  ;;  %v248_v45 = vrot.slane %v246_v26, 4  ;;  %v8313_v49 = vrot.slane %v1568_v58, 5  ;;  %v54_v58 = vld [vmem:[%s12407_s0 + $0xa4] sm:$0x1]  ;;  %5879 = vmatprep.subr.bf16.mxu0 %v12410_v4 }
  0x40   :  { %v423_v0 = vsel %vm7904_vm2, %v418_v56, %v422_v61  ;;  %v8315_v7 = vrot.slane %v1578_v35, 4  ;;  %v239_v37 = vor.u32 %v238_v3, %v235_v34  ;;  %v8320_v53 = vrot.slane %v1397_v8, 4  ;;  %v8335_v40 = vld [vmem:[%s12407_s0 + $0x54] sm:$0xf] }
  0x41   :  { %12497 = vst [vmem:[#allocation24_spill] sm:$0xff] %v8313_v49  ;;  %v6869_v15 = vcombine.low %v413_v42, %v423_v0  ;;  %v1400_v61 = vshll.u32 %v8174_v20, 16  ;;  %v249_v56 = vor.u32 %v248_v45, %v244_v31  ;;  %v254_v11 = vrot.slane %v252_v51, 5  ;;  %v8340_v0 = vld [vmem:[%s12407_s0 + $0x58] sm:$0xf] }
  0x42   :  { %12498 = vst [vmem:[#allocation25_spill] sm:$0xff] %v8315_v7  ;;  %12499 = vst [vmem:[#allocation26_spill] sm:$0xff] %v8320_v53  ;;  %v240_v35 = vrot.slane %v239_v37, 4  ;;  %v6934_v26 = vcombine.low %v8294_v6, %v8301_v18  ;;  %v425_v8 = vshrl.u32 %v52_v2, 16  ;;  %v1410_v42 = vshrl.u32 %v8185_v29, 16 }
  0x43   :  { %3789 = vrot.lane.b32.xlu1 %v6869_v15, %s7819_s19  ;;  %v250_v20 = vrot.slane %v249_v56, 4  ;;  %v428_v3 = vshll.u32 %v52_v2, 16  ;;  %v434_v51 = vshll.u32 %v53_v1, 16  ;;  %12500 = vst [vmem:[#allocation27_spill] sm:$0xff] %v8340_v0  ;;  %v438_v15 = vshrl.u32 %v53_v1, 16 }
  0x44   :  { %v245_v37 = vsel %vm7904_vm2, %v240_v35, %v244_v31  ;;  %4047 = vrot.lane.b32.xlu0 %v6934_v26, %s7819_s19  ;;  %v427_v45 = vrot.slane %v425_v8, 4  ;;  %v444_v56 = vshll.u32 %v54_v58, 16  ;;  %v31_v2 = vld [vmem:[%s12407_s0 + $0x48] sm:$0xf]  ;;  %v1589_v34 = vshrl.u32 %v8213_v13, 16 }
  0x45   :  { %v255_v44 = vsel %vm7904_vm2, %v250_v20, %v254_v11  ;;  %v430_v24 = vrot.slane %v428_v3, 5  ;;  %v436_v4 = vrot.slane %v434_v51, 5  ;;  %v8353_v31 = vrot.slane %v1400_v61, 5  ;;  %v32_v1 = vld [vmem:[%s12407_s0 + $0x4c] sm:$0xf] }
  0x46   :  { %v6862_v35 = vcombine.low %v245_v37, %v255_v44  ;;  %v440_v26 = vrot.slane %v438_v15, 4  ;;  %v8358_v58 = vrot.slane %v1410_v42, 4  ;;  %v1592_v8 = vshll.u32 %v8213_v13, 16  ;;  %v33_v20 = vld [vmem:[%s12407_s0 + $0x50] sm:$0x1] }
  0x47   :  { %12501 = vst [vmem:[#allocation28_spill] sm:$0xff] %v8353_v31  ;;  %v1602_v41 = vshrl.u32 %v8222_v19, 16  ;;  %v431_v11 = vor.u32 %v430_v24, %v427_v45  ;;  %v446_v44 = vrot.slane %v444_v56, 5  ;;  %v6927_v3 = vcombine.low %v8335_v40, %v8340_v0  ;;  %v8373_v24 = vld [vmem:[%s12407_s0 + $0xb4] sm:$0xf] }
  0x48   :  { %12502 = vst [vmem:[#allocation29_spill] sm:$0xff] %v8358_v58  ;;  %3775 = vrot.lane.b32.xlu1 %v6862_v35, %s7819_s19  ;;  %v441_v61 = vor.u32 %v440_v26, %v436_v4  ;;  %v257_v51 = vshrl.u32 %v31_v2, 16  ;;  %v8368_v37 = vrot.slane %v1589_v34, 4  ;;  %v260_v15 = vshll.u32 %v31_v2, 16  ;;  %v8378_v45 = vld [vmem:[%s12407_s0 + $0xb8] sm:$0xf] }
  0x49   :  { %v432_v42 = vrot.slane %v431_v11, 4  ;;  %v266_v13 = vshll.u32 %v32_v1, 16  ;;  %12504 = vst [vmem:[#allocation31_spill] sm:$0xff] %v8378_v45  ;;  %4033 = vrot.lane.b32.xlu0 %v6927_v3, %s7819_s19  ;;  %v270_v26 = vshrl.u32 %v32_v1, 16  ;;  %v276_v34 = vshll.u32 %v33_v20, 16 }
  0x4a   :  { %12503 = vst [vmem:[#allocation30_spill] sm:$0xff] %v8368_v37  ;;  %v442_v56 = vrot.slane %v441_v61, 4  ;;  %v259_v35 = vrot.slane %v257_v51, 4  ;;  %v55_v2 = vld [vmem:[%s12407_s0 + $0xa8] sm:$0xf]  ;;  %v262_v37 = vrot.slane %v260_v15, 5 }
  0x4b   :  { %v437_v7 = vsel %vm7904_vm2, %v432_v42, %v436_v4  ;;  %v268_v49 = vrot.slane %v266_v13, 5  ;;  %v7446_v61 = vld [vmem:[%s12408_s1 + $0x100] sm:$0xff]   ;;  %v8390_v50 = vrot.slane %v1592_v8, 5  ;;  %v8392_v3 = vrot.slane %v1602_v41, 4  ;;  %v56_v51 = vld [vmem:[%s12407_s0 + $0xac] sm:$0xf] }
  0x4c   :  { %v447_v1 = vsel %vm7904_vm2, %v442_v56, %v446_v44  ;;  %v272_v20 = vrot.slane %v270_v26, 4  ;;  %v1421_v4 = vshrl.u32 %v8254_v9, 16  ;;  %v1424_v42 = vshll.u32 %v8254_v9, 16  ;;  %v57_v8 = vld [vmem:[%s12407_s0 + $0xb0] sm:$0x1]  ;;  %7217 = vmatprep.subr.bf16.mxu1 %v7446_v61 }
  0x4d   :  { %12505 = vst [vmem:[#allocation32_spill] sm:$0xff] %v8390_v50  ;;  %12506 = vst [vmem:[#allocation33_spill] sm:$0xff] %v8392_v3  ;;  %v6870_v15 = vcombine.low %v437_v7, %v447_v1  ;;  %v263_v13 = vor.u32 %v262_v37, %v259_v35  ;;  %v1434_v41 = vshrl.u32 %v8261_v30, 16  ;;  %v278_v44 = vrot.slane %v276_v34, 5  ;;  %v8411_v7 = vld [vmem:[%s12407_s0 + $0x60] sm:$0xf] }
  0x4e   :  { %v273_v11 = vor.u32 %v272_v20, %v268_v49  ;;  %v6935_v56 = vcombine.low %v8373_v24, %v8378_v45  ;;  %v449_v3 = vshrl.u32 %v55_v2, 16  ;;  %v452_v19 = vshll.u32 %v55_v2, 16  ;;  %v8420_v2 = vld [vmem:[%s12407_s0 + $0x64] sm:$0xf] }
  0x4f   :  { %3791 = vrot.lane.b32.xlu1 %v6870_v15, %s7819_s19  ;;  %v264_v26 = vrot.slane %v263_v13, 4  ;;  %v458_v9 = vshll.u32 %v56_v51, 16  ;;  %v462_v34 = vshrl.u32 %v56_v51, 16  ;;  %v468_v61 = vshll.u32 %v57_v8, 16  ;;  %12507 = vst [vmem:[#allocation34_spill] sm:$0xff] %v8420_v2 }
  0x50   :  { %v274_v35 = vrot.slane %v273_v11, 4  ;;  %4049 = vrot.lane.b32.xlu0 %v6935_v56, %s7819_s19  ;;  %v451_v20 = vrot.slane %v449_v3, 4  ;;  %v454_v15 = vrot.slane %v452_v19, 5  ;;  %v8422_v50 = vrot.slane %v1421_v4, 4  ;;  %v35_v4 = vld [vmem:[%s12407_s0 + $0x58] sm:$0xf] }
  0x51   :  { %v269_v1 = vsel %vm7904_vm2, %v264_v26, %v268_v49  ;;  %v460_v13 = vrot.slane %v458_v9, 5  ;;  %v8424_v14 = vrot.slane %v1424_v42, 5  ;;  %v464_v51 = vrot.slane %v462_v34, 4  ;;  %v34_v49 = vld [vmem:[%s12407_s0 + $0x54] sm:$0xf] }
  0x52   :  { %12508 = vst [vmem:[#allocation35_spill] sm:$0xff] %v8422_v50  ;;  %v279_v11 = vsel %vm7904_vm2, %v274_v35, %v278_v44  ;;  %v8431_v3 = vrot.slane %v1434_v41, 4  ;;  %v1613_v19 = vshrl.u32 %v8294_v6, 16  ;;  %v455_v56 = vor.u32 %v454_v15, %v451_v20  ;;  %v36_v42 = vld [vmem:[%s12407_s0 + $0x5c] sm:$0x1] }
  0x53   :  { %12509 = vst [vmem:[#allocation36_spill] sm:$0xff] %v8424_v14  ;;  %v6863_v8 = vcombine.low %v269_v1, %v279_v11  ;;  %v1616_v44 = vshll.u32 %v8294_v6, 16  ;;  %v465_v26 = vor.u32 %v464_v51, %v460_v13  ;;  %v470_v9 = vrot.slane %v468_v61, 5  ;;  %v8450_v6 = vld [vmem:[%s12407_s0 + $0xc0] sm:$0xf] }
  0x54   :  { %12510 = vst [vmem:[#allocation37_spill] sm:$0xff] %v8431_v3  ;;  %v6928_v41 = vcombine.low %v8411_v7, %v8420_v2  ;;  %v1626_v35 = vshrl.u32 %v8301_v18, 16  ;;  %v456_v34 = vrot.slane %v455_v56, 4  ;;  %v281_v1 = vshrl.u32 %v34_v49, 16  ;;  %v8455_v61 = vld [vmem:[%s12407_s0 + $0xc4] sm:$0xf] }
  0x55   :  { %3777 = vrot.lane.b32.xlu1 %v6863_v8, %s7819_s19  ;;  %v284_v20 = vshll.u32 %v34_v49, 16  ;;  %v1445_v15 = vshrl.u32 %v8335_v40, 16  ;;  %v466_v11 = vrot.slane %v465_v26, 4  ;;  %v290_v37 = vshll.u32 %v35_v4, 16  ;;  %12511 = vst [vmem:[#allocation38_spill] sm:$0xff] %v8455_v61 }
  0x56   :  { %4035 = vrot.lane.b32.xlu0 %v6928_v41, %s7819_s19  ;;  %v294_v12 = vshrl.u32 %v35_v4, 16  ;;  %v461_v51 = vsel %vm7904_vm2, %v456_v34, %v460_v13  ;;  %v283_v49 = vrot.slane %v281_v1, 4  ;;  %v300_v56 = vshll.u32 %v36_v42, 16  ;;  %v58_v4 = vld [vmem:[%s12407_s0 + $0xb4] sm:$0xf] }
  0x57   :  { %v286_v8 = vrot.slane %v284_v20, 5  ;;  %v8462_v26 = vrot.slane %v1613_v19, 4  ;;  %v471_v41 = vsel %vm7904_vm2, %v466_v11, %v470_v9  ;;  %v292_v39 = vrot.slane %v290_v37, 5  ;;  %v60_v19 = vld [vmem:[%s12407_s0 + $0xbc] sm:$0x1] }
  0x58   :  { %v296_v36 = vrot.slane %v294_v12, 4  ;;  %v8469_v28 = vrot.slane %v1616_v44, 5  ;;  %v6871_v42 = vcombine.low %v461_v51, %v471_v41  ;;  %v8475_v1 = vrot.slane %v1626_v35, 4  ;;  %v8907_v50 = vld [vmem:[%s12407_s0 + $0x120] sm:$0xf] }
  0x59   :  { %12512 = vst [vmem:[#allocation39_spill] sm:$0xff] %v8462_v26  ;;  %v287_v34 = vor.u32 %v286_v8, %v283_v49  ;;  %v1448_v9 = vshll.u32 %v8335_v40, 16  ;;  %v302_v12 = vrot.slane %v300_v56, 5  ;;  %v8478_v20 = vrot.slane %v1445_v15, 4  ;;  %v6697_v49 = vld [vmem:[%s12407_s0 + $0x18] sm:$0xf] }
  0x5a   :  { %12513 = vst [vmem:[#allocation40_spill] sm:$0xff] %v8469_v28  ;;  %12514 = vst [vmem:[#allocation41_spill] sm:$0xff] %v8475_v1  ;;  %v297_v37 = vor.u32 %v296_v36, %v292_v39  ;;  %3793 = vrot.lane.b32.xlu1 %v6871_v42, %s7819_s19  ;;  %v6936_v11 = vcombine.low %v8450_v6, %v8455_v61  ;;  %v473_v51 = vshrl.u32 %v58_v4, 16  ;;  %v1458_v35 = vshrl.u32 %v8340_v0, 16 }
  0x5b   :  { %12515 = vst [vmem:[#allocation42_spill] sm:$0xff] %v8478_v20  ;;  %v288_v44 = vrot.slane %v287_v34, 4  ;;  %v476_v41 = vshll.u32 %v58_v4, 16  ;;  %v482_v40 = vshll.u32 %v59_v63, 16  ;;  %v486_v56 = vshrl.u32 %v59_v63, 16  ;;  %12554 = vst [vmem:[#allocation79_spill] sm:$0xff] %v8907_v50 }
  0x5c   :  { %v298_v8 = vrot.slane %v297_v37, 4  ;;  %4051 = vrot.lane.b32.xlu0 %v6936_v11, %s7819_s19  ;;  %v475_v15 = vrot.slane %v473_v51, 4  ;;  %v492_v42 = vshll.u32 %v60_v19, 16  ;;  %v6698_v34 = vld [vmem:[%s12407_s0 + $0x1c] sm:$0xf]  ;;  %v1637_v37 = vshrl.u32 %v8373_v24, 16 }
  0x5d   :  { %v293_v36 = vsel %vm7904_vm2, %v288_v44, %v292_v39  ;;  %v478_v1 = vrot.slane %v476_v41, 5  ;;  %v484_v18 = vrot.slane %v482_v40, 5  ;;  %v8498_v4 = vld [vmem:[%s12407_s0 + $0x20] sm:$0x1]  ;;  %v2486_v39 = vshrl.u32 %v6697_v49, 16 }
  0x5e   :  { %v303_v13 = vsel %vm7904_vm2, %v298_v8, %v302_v12  ;;  %12516 = vst [vmem:[#allocation43_spill] sm:$0xff] %v8498_v4  ;;  %v488_v63 = vrot.slane %v486_v56, 4  ;;  %v2489_v19 = vshll.u32 %v6697_v49, 16  ;;  %v2495_v28 = vshll.u32 %v6698_v34, 16 }
  0x5f   :  { %v6864_v44 = vcombine.low %v293_v36, %v303_v13  ;;  %v479_v11 = vor.u32 %v478_v1, %v475_v15  ;;  %v2488_v51 = vrot.slane %v2486_v39, 4  ;;  %v2499_v26 = vshrl.u32 %v6698_v34, 16  ;;  %v8507_v13 = vld [vmem:[%s12407_s0 + $0xe4] sm:$0xf]  ;;  %v8512_v1 = vld [vmem:[%s12407_s0 + $0xe8] sm:$0xf] }
  0x60   :  { %v489_v12 = vor.u32 %v488_v63, %v484_v18  ;;  %v494_v8 = vrot.slane %v492_v42, 5  ;;  %v2491_v41 = vrot.slane %v2489_v19, 5  ;;  %v2505_v40 = vshll.u32 %v8498_v4, 16  ;;  %12517 = vst [vmem:[#allocation44_spill] sm:$0xff] %v8512_v1  ;;  %v62_v39 = vld [vmem:[%s12407_s0 + $0xdc] sm:$0xf] }
  0x61   :  { %3779 = vrot.lane.b32.xlu1 %v6864_v44, %s7819_s19  ;;  %v1640_v62 = vshll.u32 %v8373_v24, 16  ;;  %v480_v52 = vrot.slane %v479_v11, 4  ;;  %v2497_v57 = vrot.slane %v2495_v28, 5  ;;  %v2501_v10 = vrot.slane %v2499_v26, 4  ;;  %v8520_v28 = vld [vmem:[%s12407_s0 + $0x14] sm:$0x1] }
  0x62   :  { %v8514_v49 = vrot.slane %v1448_v9, 5  ;;  %v490_v15 = vrot.slane %v489_v12, 4  ;;  %v2492_v56 = vor.u32 %v2491_v41, %v2488_v51  ;;  %v8522_v24 = vrot.slane %v1458_v35, 4  ;;  %v61_v9 = vld [vmem:[%s12407_s0 + $0xd8] sm:$0xf] }
  0x63   :  { %v485_v26 = vsel %vm7904_vm2, %v480_v52, %v484_v18  ;;  %v2502_v42 = vor.u32 %v2501_v10, %v2497_v57  ;;  %v2507_v34 = vrot.slane %v2505_v40, 5  ;;  %v8532_v44 = vrot.slane %v1637_v37, 4  ;;  %v63_v12 = vld [vmem:[%s12407_s0 + $0xe0] sm:$0x1]  ;;  %v7538_v41 = vld [vmem:[%s12407_s0 + $0xc] sm:$0xf] }
  0x64   :  { %12518 = vst [vmem:[#allocation45_spill] sm:$0xff] %v8514_v49  ;;  %12519 = vst [vmem:[#allocation46_spill] sm:$0xff] %v8522_v24  ;;  %v495_v35 = vsel %vm7904_vm2, %v490_v15, %v494_v8  ;;  %v2493_v19 = vrot.slane %v2492_v56, 4  ;;  %v8537_v11 = vrot.slane %v1640_v62, 5  ;;  %v1650_v18 = vshrl.u32 %v8378_v45, 16 }
  0x65   :  { %12520 = vst [vmem:[#allocation47_spill] sm:$0xff] %v8532_v44  ;;  %v6872_v10 = vcombine.low %v485_v26, %v495_v35  ;;  %v2503_v52 = vrot.slane %v2502_v42, 4  ;;  %v6937_v37 = vcombine.low %v8507_v13, %v8512_v1  ;;  %vm977_vm4 = vcmask 1046532   ;;  %v8550_v62 = vld [vmem:[%s12407_s0 + $0x24] sm:$0xf] }
  0x66   :  { %12521 = vst [vmem:[#allocation48_spill] sm:$0xff] %v8537_v11  ;;  %v2498_v51 = vsel %vm7904_vm2, %v2493_v19, %v2497_v57  ;;  %12522 = vst [vmem:[#allocation49_spill] sm:$0xff] %v8550_v62  ;;  %v6665_v40 = vrot.slane %v7538_v41, 9  ;;  %v7539_v15 = vld [vmem:[%s12407_s0 + $0x10] sm:$0xf]  ;;  %v2169_v26 = vrot.slane %v8520_v28, 5 }
  0x67   :  { %3795 = vrot.lane.b32.xlu1 %v6872_v10, %s7819_s19  ;;  %v2508_v8 = vsel %vm7904_vm2, %v2503_v52, %v2507_v34  ;;  %vm8555_vm5 = vmor %vm976_vm3, %vm977_vm4  ;;  %v2166_v56 = vrot.slane %v7539_v15, 5  ;;  %v8569_v42 = vld [vmem:[%s12407_s0 + $0x28] sm:$0xf]  ;;  %v497_v35 = vshrl.u32 %v61_v9, 16  ;;  %v500_v19 = vshll.u32 %v61_v9, 16 }
  0x68   :  { %12525 = vst [vmem:[#allocation50_spill] sm:$0xff] %v8569_v42  ;;  %v7049_v34 = vcombine.low %v2498_v51, %v2508_v8  ;;  %v506_v10 = vshll.u32 %v62_v39, 16  ;;  %v8574_v52 = vld [vmem:[%s12407_s0 + $0x2c] sm:$0x1]  ;;  %v510_v63 = vshrl.u32 %v62_v39, 16  ;;  %v516_v36 = vshll.u32 %v63_v12, 16 }
  0x69   :  { %v2167_v41 = vsel %vm8555_vm5, %v6665_v40, %v2166_v56  ;;  %v2168_v15 = vrot.slane %v2166_v56, 4  ;;  %v499_v45 = vrot.slane %v497_v35, 4  ;;  %v502_v11 = vrot.slane %v500_v19, 5 }
  0x6a   :  { %4533 = vrot.lane.b32.xlu0 %v7049_v34, %s7819_s19  ;;  %v508_v44 = vrot.slane %v506_v10, 5  ;;  %v2510_v51 = vshrl.u32 %v8550_v62, 16  ;;  %v512_v8 = vrot.slane %v510_v63, 4  ;;  %v518_v16 = vrot.slane %v516_v36, 5 }
  0x6b   :  { %4053 = vrot.lane.b32.xlu1 %v6937_v37, %s7819_s19  ;;  %v2170_v9 = vsel %vm8555_vm5, %v2168_v15, %v2169_v26  ;;  %v2513_v17 = vshll.u32 %v8550_v62, 16  ;;  %v503_v56 = vor.u32 %v502_v11, %v499_v45  ;;  %v2519_v12 = vshll.u32 %v8569_v42, 16 }
  0x6c   :  { %v6985_v40 = vcombine.low %v2167_v41, %v2170_v9  ;;  %v2512_v39 = vrot.slane %v2510_v51, 4  ;;  %v513_v34 = vor.u32 %v512_v8, %v508_v44  ;;  %v2523_v19 = vshrl.u32 %v8569_v42, 16 }
  0x6d   :  { %v2515_v35 = vrot.slane %v2513_v17, 5  ;;  %v2529_v10 = vshll.u32 %v8574_v52, 16  ;;  %v1469_v37 = vshrl.u32 %v8411_v7, 16  ;;  %v1472_v24 = vshll.u32 %v8411_v7, 16  ;;  %v8601_v7 = vld [vmem:[%s12407_s0 + $0xf0] sm:$0xf] }
  0x6e   :  { %4277 = vrot.lane.b32.xlu0 %v6985_v40, %s7819_s19  ;;  %v504_v36 = vrot.slane %v503_v56, 4  ;;  %v2521_v63 = vrot.slane %v2519_v12, 5  ;;  %v1482_v26 = vshrl.u32 %v8420_v2, 16  ;;  %v514_v45 = vrot.slane %v513_v34, 4 }
  0x6f   :  { %v2516_v11 = vor.u32 %v2515_v35, %v2512_v39  ;;  %v2525_v41 = vrot.slane %v2523_v19, 4  ;;  %v8593_v15 = vrot.slane %v1650_v18, 4  ;;  %v1661_v51 = vshrl.u32 %v8450_v6, 16  ;;  %v8608_v18 = vld [vmem:[%s12407_s0 + $0xf4] sm:$0xf] }
  0x70   :  { %v509_v9 = vsel %vm7904_vm2, %v504_v36, %v508_v44  ;;  %v519_v8 = vsel %vm7904_vm2, %v514_v45, %v518_v16  ;;  %v2531_v39 = vrot.slane %v2529_v10, 5  ;;  %v8613_v44 = vld [vmem:[%s12407_s0 + $0x20] sm:$0x1]  ;;  %v8617_v34 = vrot.slane %v1469_v37, 4  ;;  %v64_v19 = vld [vmem:[%s12407_s0 + $0xe4] sm:$0xf] }
  0x71   :  { %12526 = vst [vmem:[#allocation51_spill] sm:$0xff] %v8593_v15  ;;  %v2517_v40 = vrot.slane %v2516_v11, 4  ;;  %v2526_v56 = vor.u32 %v2525_v41, %v2521_v63  ;;  %v6873_v35 = vcombine.low %v509_v9, %v519_v8  ;;  %v65_v10 = vld [vmem:[%s12407_s0 + $0xe8] sm:$0xf]  ;;  %v8626_v36 = vrot.slane %v1472_v24, 5 }
  0x72   :  { %12527 = vst [vmem:[#allocation52_spill] sm:$0xff] %v8617_v34  ;;  %v8628_v45 = vrot.slane %v1482_v26, 4  ;;  %v66_v41 = vld [vmem:[%s12407_s0 + $0xec] sm:$0x1]  ;;  %v8635_v9 = vrot.slane %v1661_v51, 4  ;;  %v1664_v8 = vshll.u32 %v8450_v6, 16  ;;  %v6938_v24 = vcombine.low %v8601_v7, %v8608_v18 }
  0x73   :  { %12528 = vst [vmem:[#allocation53_spill] sm:$0xff] %v8626_v36  ;;  %v2522_v11 = vsel %vm7904_vm2, %v2517_v40, %v2521_v63  ;;  %v2527_v37 = vrot.slane %v2526_v56, 4  ;;  %3797 = vrot.lane.b32.xlu1 %v6873_v35, %s7819_s19  ;;  %v1674_v26 = vshrl.u32 %v8455_v61, 16  ;;  %v7540_v40 = vld [vmem:[%s12407_s0 + $0x18] sm:$0xf]  ;;  %v2176_v12 = vrot.slane %v8613_v44, 5 }
  0x74   :  { %12529 = vst [vmem:[#allocation54_spill] sm:$0xff] %v8628_v45  ;;  %12530 = vst [vmem:[#allocation55_spill] sm:$0xff] %v8635_v9  ;;  %v6666_v51 = vrot.slane %v7540_v40, 9  ;;  %v7541_v6 = vld [vmem:[%s12407_s0 + $0x1c] sm:$0xf]  ;;  %v521_v17 = vshrl.u32 %v64_v19, 16 }
  0x75   :  { %v2532_v63 = vsel %vm7904_vm2, %v2527_v37, %v2531_v39  ;;  %v2173_v56 = vrot.slane %v7541_v6, 5  ;;  %v6703_v35 = vld [vmem:[%s12407_s0 + $0x30] sm:$0xf]  ;;  %v524_v61 = vshll.u32 %v64_v19, 16  ;;  %v530_v9 = vshll.u32 %v65_v10, 16 }
  0x76   :  { %v7050_v16 = vcombine.low %v2522_v11, %v2532_v63  ;;  %v534_v40 = vshrl.u32 %v65_v10, 16  ;;  %v523_v6 = vrot.slane %v521_v17, 4  ;;  %v540_v45 = vshll.u32 %v66_v41, 16  ;;  %v6704_v11 = vld [vmem:[%s12407_s0 + $0x34] sm:$0xf] }
  0x77   :  { %v2174_v39 = vsel %vm8555_vm5, %v6666_v51, %v2173_v56  ;;  %v2175_v37 = vrot.slane %v2173_v56, 4  ;;  %4055 = vrot.lane.b32.xlu1 %v6938_v24, %s7819_s19  ;;  %v526_v15 = vrot.slane %v524_v61, 5  ;;  %v2534_v63 = vshrl.u32 %v6703_v35, 16  ;;  %v8667_v10 = vld [vmem:[%s12407_s0 + $0x38] sm:$0x1] }
  0x78   :  { %4535 = vrot.lane.b32.xlu0 %v7050_v16, %s7819_s19  ;;  %v532_v2 = vrot.slane %v530_v9, 5  ;;  %v536_v51 = vrot.slane %v534_v40, 4  ;;  %12531 = vst [vmem:[#allocation56_spill] sm:$0xff] %v8667_v10  ;;  %v2537_v16 = vshll.u32 %v6703_v35, 16  ;;  %v542_v61 = vrot.slane %v540_v45, 5 }
  0x79   :  { %v2177_v19 = vsel %vm8555_vm5, %v2175_v37, %v2176_v12  ;;  %v527_v17 = vor.u32 %v526_v15, %v523_v6  ;;  %v2536_v41 = vrot.slane %v2534_v63, 4  ;;  %v2543_v34 = vshll.u32 %v6704_v11, 16  ;;  %v8676_v15 = vld [vmem:[%s12407_s0 + $0xfc] sm:$0xf]  ;;  %v8681_v45 = vld [vmem:[%s12407_s0 + $0x100] sm:$0xf] }
  0x7a   :  { %v6986_v24 = vcombine.low %v2174_v39, %v2177_v19  ;;  %v537_v56 = vor.u32 %v536_v51, %v532_v2  ;;  %v2539_v36 = vrot.slane %v2537_v16, 5  ;;  %v2547_v0 = vshrl.u32 %v6704_v11, 16  ;;  %12532 = vst [vmem:[#allocation57_spill] sm:$0xff] %v8676_v15  ;;  %12533 = vst [vmem:[#allocation58_spill] sm:$0xff] %v8681_v45 }
  0x7b   :  { %v1685_v49 = vshrl.u32 %v8507_v13, 16  ;;  %v12426_v12 = vrot.slane %v8569_v42, 5  ;;  %v528_v9 = vrot.slane %v527_v17, 4  ;;  %v2553_v37 = vshll.u32 %v8667_v10, 16 }
  0x7c   :  { %4279 = vrot.lane.b32.xlu0 %v6986_v24, %s7819_s19  ;;  %v538_v40 = vrot.slane %v537_v56, 4  ;;  %v2540_v20 = vor.u32 %v2539_v36, %v2536_v41  ;;  %v2545_v35 = vrot.slane %v2543_v34, 5  ;;  %v2549_v39 = vrot.slane %v2547_v0, 4  ;;  %v8693_v0 = vld [vmem:[%s12407_s0 + $0x2c] sm:$0x1] }
  0x7d   :  { %v8683_v6 = vrot.slane %v1664_v8, 5  ;;  %v8685_v11 = vrot.slane %v1674_v26, 4  ;;  %v533_v34 = vsel %vm7904_vm2, %v528_v9, %v532_v2  ;;  %v2555_v16 = vrot.slane %v2553_v37, 5  ;;  %v67_v2 = vld [vmem:[%s12407_s0 + $0xf0] sm:$0xf] }
  0x7e   :  { %v543_v36 = vsel %vm7904_vm2, %v538_v40, %v542_v61  ;;  %v2541_v19 = vrot.slane %v2540_v20, 4  ;;  %v2550_v51 = vor.u32 %v2549_v39, %v2545_v35  ;;  %v8697_v8 = vrot.slane %v1685_v49, 4  ;;  %v7542_v37 = vld [vmem:[%s12407_s0 + $0x24] sm:$0xf] }
  0x7f   :  { %12534 = vst [vmem:[#allocation59_spill] sm:$0xff] %v8683_v6  ;;  %12535 = vst [vmem:[#allocation60_spill] sm:$0xff] %v8685_v11  ;;  %v1688_v26 = vshll.u32 %v8507_v13, 16  ;;  %v6874_v17 = vcombine.low %v533_v34, %v543_v36  ;;  %v1698_v41 = vshrl.u32 %v8512_v1, 16  ;;  %v8707_v56 = vrot.slane %v12426_v12, 4 }
  0x80   :  { %12536 = vst [vmem:[#allocation61_spill] sm:$0xff] %v8697_v8  ;;  %v2546_v20 = vsel %vm7904_vm2, %v2541_v19, %v2545_v35  ;;  %v2551_v49 = vrot.slane %v2550_v51, 4  ;;  %v68_v13 = vld [vmem:[%s12407_s0 + $0xf4] sm:$0xf]  ;;  %v3361_v61 = vrot.slane %v8574_v52, 5  ;;  %v6939_v9 = vcombine.low %v8676_v15, %v8681_v45 }
  0x81   :  { %3799 = vrot.lane.b32.xlu1 %v6874_v17, %s7819_s19  ;;  %v6667_v40 = vrot.slane %v7542_v37, 9  ;;  %v7543_v35 = vld [vmem:[%s12407_s0 + $0x28] sm:$0xf]  ;;  %v69_v34 = vld [vmem:[%s12407_s0 + $0xf8] sm:$0x1]  ;;  %v2183_v36 = vrot.slane %v8693_v0, 5 }
  0x82   :  { %v2180_v39 = vrot.slane %v7543_v35, 5  ;;  %v2556_v52 = vsel %vm7904_vm2, %v2551_v49, %v2555_v16  ;;  %v545_v19 = vshrl.u32 %v67_v2, 16  ;;  %v548_v51 = vshll.u32 %v67_v2, 16  ;;  %v6706_v17 = vld [vmem:[%s12407_s0 + $0x3c] sm:$0xf] }
  0x83   :  { %v7051_v37 = vcombine.low %v2546_v20, %v2556_v52  ;;  %v554_v12 = vshll.u32 %v68_v13, 16  ;;  %v558_v42 = vshrl.u32 %v68_v13, 16  ;;  %v564_v1 = vshll.u32 %v69_v34, 16  ;;  %v6707_v16 = vld [vmem:[%s12407_s0 + $0x40] sm:$0xf] }
  0x84   :  { %v2181_v63 = vsel %vm8555_vm5, %v6667_v40, %v2180_v39  ;;  %v2182_v35 = vrot.slane %v2180_v39, 4  ;;  %v547_v24 = vrot.slane %v545_v19, 4  ;;  %v550_v4 = vrot.slane %v548_v51, 5  ;;  %v8745_v49 = vld [vmem:[%s12407_s0 + $0x44] sm:$0x1] }
  0x85   :  { %4537 = vrot.lane.b32.xlu0 %v7051_v37, %s7819_s19  ;;  %4057 = vrot.lane.b32.xlu1 %v6939_v9, %s7819_s19  ;;  %v556_v20 = vrot.slane %v554_v12, 5  ;;  %12537 = vst [vmem:[#allocation62_spill] sm:$0xff] %v8745_v49  ;;  %v2558_v40 = vshrl.u32 %v6706_v17, 16  ;;  %v2561_v13 = vshll.u32 %v6706_v17, 16  ;;  %v1709_v39 = vshrl.u32 %v8601_v7, 16 }
  0x86   :  { %v2184_v2 = vsel %vm8555_vm5, %v2182_v35, %v2183_v36  ;;  %v551_v52 = vor.u32 %v550_v4, %v547_v24  ;;  %v560_v19 = vrot.slane %v558_v42, 4  ;;  %v2567_v8 = vshll.u32 %v6707_v16, 16  ;;  %v8755_v4 = vld [vmem:[%s12407_s0 + $0x108] sm:$0xf]  ;;  %v8760_v42 = vld [vmem:[%s12407_s0 + $0x10c] sm:$0xf] }
  0x87   :  { %v6987_v34 = vcombine.low %v2181_v63, %v2184_v2  ;;  %v2560_v51 = vrot.slane %v2558_v40, 4  ;;  %v2563_v37 = vrot.slane %v2561_v13, 5  ;;  %v2571_v9 = vshrl.u32 %v6707_v16, 16  ;;  %12539 = vst [vmem:[#allocation64_spill] sm:$0xff] %v8755_v4  ;;  %12540 = vst [vmem:[#allocation65_spill] sm:$0xff] %v8760_v42 }
  0x88   :  { %v552_v11 = vrot.slane %v551_v52, 4  ;;  %v561_v6 = vor.u32 %v560_v19, %v556_v20  ;;  %v566_v36 = vrot.slane %v564_v1, 5  ;;  %v2577_v12 = vshll.u32 %v8745_v49, 16 }
  0x89   :  { %v8749_v35 = vrot.slane %v1688_v26, 5  ;;  %4281 = vrot.lane.b32.xlu0 %v6987_v34, %s7819_s19  ;;  %v2564_v3 = vor.u32 %v2563_v37, %v2560_v51  ;;  %v2569_v17 = vrot.slane %v2567_v8, 5  ;;  %v2573_v30 = vrot.slane %v2571_v9, 4  ;;  %v8770_v8 = vld [vmem:[%s12407_s0 + $0x38] sm:$0x1] }
  0x8a   :  { %v8762_v1 = vrot.slane %v1698_v41, 4  ;;  %v1712_v63 = vshll.u32 %v8601_v7, 16  ;;  %v557_v26 = vsel %vm7904_vm2, %v552_v11, %v556_v20  ;;  %v562_v24 = vrot.slane %v561_v6, 4  ;;  %12542 = vst [vmem:[#allocation67_spill] sm:$0xff] %v8770_v8  ;;  %v70_v41 = vld [vmem:[%s12407_s0 + $0xfc] sm:$0xf] }
  0x8b   :  { %12538 = vst [vmem:[#allocation63_spill] sm:$0xff] %v8749_v35  ;;  %v2565_v2 = vrot.slane %v2564_v3, 4  ;;  %v2574_v40 = vor.u32 %v2573_v30, %v2569_v17  ;;  %v2579_v13 = vrot.slane %v2577_v12, 5  ;;  %v8780_v6 = vsel %vm8555_vm5, %v8707_v56, %v3361_v61  ;;  %v71_v30 = vld [vmem:[%s12407_s0 + $0x100] sm:$0xf] }
  0x8c   :  { %12541 = vst [vmem:[#allocation66_spill] sm:$0xff] %v8762_v1  ;;  %12543 = vst [vmem:[#allocation68_spill] sm:$0xff] %v8780_v6  ;;  %v8782_v11 = vrot.slane %v1709_v39, 4  ;;  %v567_v20 = vsel %vm7904_vm2, %v562_v24, %v566_v36  ;;  %v72_v56 = vld [vmem:[%s12407_s0 + $0x104] sm:$0x1]  ;;  %v8795_v61 = vrot.slane %v1712_v63, 5  ;;  %v6940_v37 = vcombine.low %v8755_v4, %v8760_v42 }
  0x8d   :  { %v6875_v52 = vcombine.low %v557_v26, %v567_v20  ;;  %v2570_v19 = vsel %vm7904_vm2, %v2565_v2, %v2569_v17  ;;  %v2575_v51 = vrot.slane %v2574_v40, 4  ;;  %v1722_v39 = vshrl.u32 %v8608_v18, 16  ;;  %v7544_v9 = vld [vmem:[%s12407_s0 + $0x30] sm:$0xf]  ;;  %v6709_v12 = vld [vmem:[%s12407_s0 + $0x48] sm:$0xf] }
  0x8e   :  { %12544 = vst [vmem:[#allocation69_spill] sm:$0xff] %v8782_v11  ;;  %12545 = vst [vmem:[#allocation70_spill] sm:$0xff] %v8795_v61  ;;  %v6668_v36 = vrot.slane %v7544_v9, 9  ;;  %v7545_v63 = vld [vmem:[%s12407_s0 + $0x34] sm:$0xf]  ;;  %v2190_v24 = vrot.slane %v8770_v8, 5 }
  0x8f   :  { %3801 = vrot.lane.b32.xlu1 %v6875_v52, %s7819_s19  ;;  %v2580_v17 = vsel %vm7904_vm2, %v2575_v51, %v2579_v13  ;;  %v2187_v26 = vrot.slane %v7545_v63, 5  ;;  %v569_v2 = vshrl.u32 %v70_v41, 16  ;;  %v6710_v40 = vld [vmem:[%s12407_s0 + $0x4c] sm:$0xf]  ;;  %v572_v9 = vshll.u32 %v70_v41, 16 }
  0x90   :  { %v7052_v20 = vcombine.low %v2570_v19, %v2580_v17  ;;  %v578_v3 = vshll.u32 %v71_v30, 16  ;;  %v582_v34 = vshrl.u32 %v71_v30, 16  ;;  %v588_v16 = vshll.u32 %v72_v56, 16  ;;  %v8822_v6 = vld [vmem:[%s12407_s0 + $0x50] sm:$0x1] }
  0x91   :  { %v2188_v52 = vsel %vm8555_vm5, %v6668_v36, %v2187_v26  ;;  %v2189_v13 = vrot.slane %v2187_v26, 4  ;;  %v571_v51 = vrot.slane %v569_v2, 4  ;;  %v574_v63 = vrot.slane %v572_v9, 5  ;;  %12546 = vst [vmem:[#allocation71_spill] sm:$0xff] %v8822_v6 }
  0x92   :  { %4539 = vrot.lane.b32.xlu0 %v7052_v20, %s7819_s19  ;;  %v580_v61 = vrot.slane %v578_v3, 5  ;;  %v584_v11 = vrot.slane %v582_v34, 4  ;;  %v2582_v19 = vshrl.u32 %v6709_v12, 16  ;;  %v590_v30 = vrot.slane %v588_v16, 5  ;;  %v8834_v16 = vld [vmem:[%s12407_s0 + $0x114] sm:$0xf] }
  0x93   :  { %4059 = vrot.lane.b32.xlu1 %v6940_v37, %s7819_s19  ;;  %v2191_v41 = vsel %vm8555_vm5, %v2189_v13, %v2190_v24  ;;  %v2585_v36 = vshll.u32 %v6709_v12, 16  ;;  %v2591_v17 = vshll.u32 %v6710_v40, 16  ;;  %v575_v26 = vor.u32 %v574_v63, %v571_v51  ;;  %12547 = vst [vmem:[#allocation72_spill] sm:$0xff] %v8834_v16  ;;  %v6713_v12 = vld [vmem:[%s12407_s0 + $0x58] sm:$0xf] }
  0x94   :  { %v6988_v56 = vcombine.low %v2188_v52, %v2191_v41  ;;  %v585_v2 = vor.u32 %v584_v11, %v580_v61  ;;  %v2584_v20 = vrot.slane %v2582_v19, 4  ;;  %v2595_v9 = vshrl.u32 %v6710_v40, 16  ;;  %v8839_v11 = vld [vmem:[%s12407_s0 + $0x118] sm:$0xf] }
  0x95   :  { %v2587_v3 = vrot.slane %v2585_v36, 5  ;;  %v2593_v34 = vrot.slane %v2591_v17, 5  ;;  %v2601_v62 = vshll.u32 %v8822_v6, 16  ;;  %v1733_v1 = vshrl.u32 %v8676_v15, 16  ;;  %12548 = vst [vmem:[#allocation73_spill] sm:$0xff] %v8839_v11 }
  0x96   :  { %v1736_v35 = vshll.u32 %v8676_v15, 16  ;;  %4283 = vrot.lane.b32.xlu0 %v6988_v56, %s7819_s19  ;;  %v576_v37 = vrot.slane %v575_v26, 4  ;;  %v586_v24 = vrot.slane %v585_v2, 4  ;;  %v2597_v13 = vrot.slane %v2595_v9, 4  ;;  %v8853_v36 = vld [vmem:[%s12407_s0 + $0x44] sm:$0x1] }
  0x97   :  { %v2588_v52 = vor.u32 %v2587_v3, %v2584_v20  ;;  %v8843_v51 = vrot.slane %v1722_v39, 4  ;;  %12550 = vst [vmem:[#allocation75_spill] sm:$0xff] %v8853_v36  ;;  %v2603_v2 = vrot.slane %v2601_v62, 5  ;;  %v73_v39 = vld [vmem:[%s12407_s0 + $0x108] sm:$0xf]  ;;  %vm4693_vm6 = vcmask 523264  }
  0x98   :  { %v581_v19 = vsel %vm7904_vm2, %v576_v37, %v580_v61  ;;  %v591_v41 = vsel %vm7904_vm2, %v586_v24, %v590_v30  ;;  %v2598_v26 = vor.u32 %v2597_v13, %v2593_v34  ;;  %v74_v61 = vld [vmem:[%s12407_s0 + $0x10c] sm:$0xf]  ;;  %v8862_v30 = vrot.slane %v1733_v1, 4 }
  0x99   :  { %12549 = vst [vmem:[#allocation74_spill] sm:$0xff] %v8843_v51  ;;  %v6876_v17 = vcombine.low %v581_v19, %v591_v41  ;;  %v2589_v56 = vrot.slane %v2588_v52, 4  ;;  %v8864_v3 = vrot.slane %v1736_v35, 5  ;;  %v6941_v24 = vcombine.low %v8834_v16, %v8839_v11  ;;  %v7546_v52 = vld [vmem:[%s12407_s0 + $0x3c] sm:$0xf] }
  0x9a   :  { %12551 = vst [vmem:[#allocation76_spill] sm:$0xff] %v8862_v30  ;;  %v2599_v37 = vrot.slane %v2598_v26, 4  ;;  %v6669_v13 = vrot.slane %v7546_v52, 9  ;;  %v75_v35 = vld [vmem:[%s12407_s0 + $0x110] sm:$0x1]  ;;  %v1746_v1 = vshrl.u32 %v8681_v45, 16 }
  0x9b   :  { %12552 = vst [vmem:[#allocation77_spill] sm:$0xff] %v8864_v3  ;;  %3803 = vrot.lane.b32.xlu1 %v6876_v17, %s7819_s19  ;;  %v2594_v62 = vsel %vm7904_vm2, %v2589_v56, %v2593_v34  ;;  %v7547_v19 = vld [vmem:[%s12407_s0 + $0x40] sm:$0xf]  ;;  %v2197_v41 = vrot.slane %v8853_v36, 5  ;;  %v593_v17 = vshrl.u32 %v73_v39, 16  ;;  %v596_v52 = vshll.u32 %v73_v39, 16 }
  0x9c   :  { %v2194_v34 = vrot.slane %v7547_v19, 5  ;;  %v6712_v56 = vld [vmem:[%s12407_s0 + $0x54] sm:$0xf]  ;;  %v2604_v26 = vsel %vm7904_vm2, %v2599_v37, %v2603_v2  ;;  %v602_v20 = vshll.u32 %v74_v61, 16  ;;  %v606_v9 = vshrl.u32 %v74_v61, 16 }
  0x9d   :  { %v7053_v40 = vcombine.low %v2594_v62, %v2604_v26  ;;  %v595_v10 = vrot.slane %v593_v17, 4  ;;  %v598_v3 = vrot.slane %v596_v52, 5  ;;  %v612_v14 = vshll.u32 %v75_v35, 16  ;;  %v8900_v39 = vld [vmem:[%s12407_s0 + $0x5c] sm:$0x1] }
  0x9e   :  { %v2195_v19 = vsel %vm8555_vm5, %v6669_v13, %v2194_v34  ;;  %v2196_v63 = vrot.slane %v2194_v34, 4  ;;  %v604_v30 = vrot.slane %v602_v20, 5  ;;  %v608_v51 = vrot.slane %v606_v9, 4  ;;  %12553 = vst [vmem:[#allocation78_spill] sm:$0xff] %v8900_v39 }
  0x9f   :  { %4061 = vrot.lane.b32.xlu1 %v6941_v24, %s7819_s19  ;;  %4541 = vrot.lane.b32.xlu0 %v7053_v40, %s7819_s19  ;;  %v2606_v61 = vshrl.u32 %v6712_v56, 16  ;;  %v2609_v62 = vshll.u32 %v6712_v56, 16  ;;  %v2615_v37 = vshll.u32 %v6713_v12, 16  ;;  %v599_v34 = vor.u32 %v598_v3, %v595_v10 }
  0xa0   :  { %v2198_v2 = vsel %vm8555_vm5, %v2196_v63, %v2197_v41  ;;  %v609_v24 = vor.u32 %v608_v51, %v604_v30  ;;  %v614_v17 = vrot.slane %v612_v14, 5  ;;  %v2619_v26 = vshrl.u32 %v6713_v12, 16  ;;  %v8915_v12 = vld [vmem:[%s12407_s0 + $0x124] sm:$0xf] }
  0xa1   :  { %v6989_v13 = vcombine.low %v2195_v19, %v2198_v2  ;;  %v2608_v20 = vrot.slane %v2606_v61, 4  ;;  %v2611_v9 = vrot.slane %v2609_v62, 5  ;;  %v2617_v35 = vrot.slane %v2615_v37, 5  ;;  %12555 = vst [vmem:[#allocation80_spill] sm:$0xff] %v8915_v12 }
  0xa2   :  { %v1757_v40 = vshrl.u32 %v8755_v4, 16  ;;  %v600_v52 = vrot.slane %v599_v34, 4  ;;  %v610_v63 = vrot.slane %v609_v24, 4  ;;  %v2625_v41 = vshll.u32 %v8900_v39, 16  ;;  %v8927_v24 = vld [vmem:[%s12407_s0 + $0x50] sm:$0x1] }
  0xa3   :  { %v1760_v10 = vshll.u32 %v8755_v4, 16  ;;  %4285 = vrot.lane.b32.xlu0 %v6989_v13, %s7819_s19  ;;  %v2612_v14 = vor.u32 %v2611_v9, %v2608_v20  ;;  %v2621_v51 = vrot.slane %v2619_v26, 4  ;;  %v8917_v3 = vrot.slane %v1746_v1, 4  ;;  %12557 = vst [vmem:[#allocation82_spill] sm:$0xff] %v8927_v24  ;;  %v76_v1 = vld [vmem:[%s12407_s0 + $0x114] sm:$0xf] }
  0xa4   :  { %v605_v2 = vsel %vm7904_vm2, %v600_v52, %v604_v30  ;;  %v615_v61 = vsel %vm7904_vm2, %v610_v63, %v614_v17  ;;  %v2627_v34 = vrot.slane %v2625_v41, 5  ;;  %v8934_v9 = vrot.slane %v1757_v40, 4  ;;  %v77_v26 = vld [vmem:[%s12407_s0 + $0x118] sm:$0xf]  ;;  %v78_v40 = vld [vmem:[%s12407_s0 + $0x11c] sm:$0x1] }
  0xa5   :  { %12556 = vst [vmem:[#allocation81_spill] sm:$0xff] %v8917_v3  ;;  %v6877_v62 = vcombine.low %v605_v2, %v615_v61  ;;  %v2613_v37 = vrot.slane %v2612_v14, 4  ;;  %v2622_v13 = vor.u32 %v2621_v51, %v2617_v35  ;;  %v8940_v52 = vrot.slane %v1760_v10, 5  ;;  %v7548_v10 = vld [vmem:[%s12407_s0 + $0x48] sm:$0xf] }
  0xa6   :  { %12558 = vst [vmem:[#allocation83_spill] sm:$0xff] %v8934_v9  ;;  %v6942_v14 = vcombine.low %v8907_v50, %v8915_v12  ;;  %v1770_v51 = vshrl.u32 %v8760_v42, 16  ;;  %v6670_v2 = vrot.slane %v7548_v10, 9  ;;  %v7549_v61 = vld [vmem:[%s12407_s0 + $0x4c] sm:$0xf]  ;;  %v617_v17 = vshrl.u32 %v76_v1, 16 }
  0xa7   :  { %12559 = vst [vmem:[#allocation84_spill] sm:$0xff] %v8940_v52  ;;  %3805 = vrot.lane.b32.xlu1 %v6877_v62, %s7819_s19  ;;  %v2618_v63 = vsel %vm7904_vm2, %v2613_v37, %v2617_v35  ;;  %v2623_v41 = vrot.slane %v2622_v13, 4  ;;  %v2201_v35 = vrot.slane %v7549_v61, 5  ;;  %v2204_v62 = vrot.slane %v8927_v24, 5  ;;  %v6715_v37 = vld [vmem:[%s12407_s0 + $0x60] sm:$0xf] }
  0xa8   :  { %v620_v30 = vshll.u32 %v76_v1, 16  ;;  %v626_v56 = vshll.u32 %v77_v26, 16  ;;  %v630_v52 = vshrl.u32 %v77_v26, 16  ;;  %v6716_v61 = vld [vmem:[%s12407_s0 + $0x64] sm:$0xf]  ;;  %v619_v9 = vrot.slane %v617_v17, 4 }
  0xa9   :  { %v2628_v13 = vsel %vm7904_vm2, %v2623_v41, %v2627_v34  ;;  %v2202_v10 = vsel %vm8555_vm5, %v6670_v2, %v2201_v35  ;;  %v2203_v20 = vrot.slane %v2201_v35, 4  ;;  %v636_v58 = vshll.u32 %v78_v40, 16  ;;  %v8975_v26 = vld [vmem:[%s12407_s0 + $0x68] sm:$0x1] }
  0xaa   :  { %v7054_v19 = vcombine.low %v2618_v63, %v2628_v13  ;;  %v622_v3 = vrot.slane %v620_v30, 5  ;;  %v628_v49 = vrot.slane %v626_v56, 5  ;;  %v632_v1 = vrot.slane %v630_v52, 4  ;;  %12560 = vst [vmem:[#allocation85_spill] sm:$0xff] %v8975_v26 }
  0xab   :  { %4063 = vrot.lane.b32.xlu1 %v6942_v14, %s7819_s19  ;;  %v2205_v34 = vsel %vm8555_vm5, %v2203_v20, %v2204_v62  ;;  %v2630_v63 = vshrl.u32 %v6715_v37, 16  ;;  %v2633_v41 = vshll.u32 %v6715_v37, 16  ;;  %v638_v14 = vrot.slane %v636_v58, 5 }
  0xac   :  { %4543 = vrot.lane.b32.xlu0 %v7054_v19, %s7819_s19  ;;  %v6990_v2 = vcombine.low %v2202_v10, %v2205_v34  ;;  %v623_v35 = vor.u32 %v622_v3, %v619_v9  ;;  %v2639_v17 = vshll.u32 %v6716_v61, 16  ;;  %v633_v30 = vor.u32 %v632_v1, %v628_v49 }
  0xad   :  { %v2632_v56 = vrot.slane %v2630_v63, 4  ;;  %v2635_v40 = vrot.slane %v2633_v41, 5  ;;  %v2643_v13 = vshrl.u32 %v6716_v61, 16  ;;  %v1781_v19 = vshrl.u32 %v8834_v16, 16 }
  0xae   :  { %v624_v29 = vrot.slane %v623_v35, 4  ;;  %v2641_v20 = vrot.slane %v2639_v17, 5  ;;  %v2649_v52 = vshll.u32 %v8975_v26, 16  ;;  %v634_v31 = vrot.slane %v633_v30, 4  ;;  %v4038_v35 = vpop.permute.xlu1 %4037 }
  0xaf   :  { %v2636_v37 = vor.u32 %v2635_v40, %v2632_v56  ;;  %v2645_v10 = vrot.slane %v2643_v13, 4  ;;  %v8981_v3 = vrot.slane %v1770_v51, 4  ;;  %v8997_v51 = vld [vmem:[%s12407_s0 + $0x130] sm:$0xf]  ;;  %v9000_v17 = vrot.slane %v1781_v19, 4 }
  0xb0   :  { %4287 = vrot.lane.b32.xlu0 %v6990_v2, %s7819_s19  ;;  %v629_v61 = vsel %vm7904_vm2, %v624_v29, %v628_v49  ;;  %v639_v34 = vsel %vm7904_vm2, %v634_v31, %v638_v14  ;;  %v2651_v41 = vrot.slane %v2649_v52, 5  ;;  %v8992_v2 = vld [vmem:[%s12407_s0 + $0x12c] sm:$0xf]  ;;  %12563 = vst [vmem:[#allocation88_spill] sm:$0xff] %v8997_v51  ;;  %v9013_v13 = vld [vmem:[%s12407_s0] sm:$0xf]  ;;  %v4022_v14 = vpop.permute.xlu0 %4021 }
  0xb1   :  { %12561 = vst [vmem:[#allocation86_spill] sm:$0xff] %v8981_v3  ;;  %v2637_v1 = vrot.slane %v2636_v37, 4  ;;  %v2646_v63 = vor.u32 %v2645_v10, %v2641_v20  ;;  %12562 = vst [vmem:[#allocation87_spill] sm:$0xff] %v8992_v2  ;;  %v6878_v31 = vcombine.low %v629_v61, %v639_v34  ;;  %v6943_v40 = vcombine.low %v8992_v2, %v8997_v51  ;;  %v9019_v52 = vld [vmem:[%s12407_s0 + $0x4] sm:$0xf] }
  0xb2   :  { %12564 = vst [vmem:[#allocation89_spill] sm:$0xff] %v9000_v17  ;;  %v6537_v19 = vrot.slane %v9013_v13, 9  ;;  %v7552_v37 = vld [vmem:[%s12407_s0 + $0x8] sm:$0x1]  ;;  %v9028_v61 = vld [vmem:[%s12407_s0 + $0x5c] sm:$0x1] }
  0xb3   :  { %v2642_v30 = vsel %vm7904_vm2, %v2637_v1, %v2641_v20  ;;  %v2647_v56 = vrot.slane %v2646_v63, 4  ;;  %3807 = vrot.lane.b32.xlu1 %v6878_v31, %s7819_s19  ;;  %v981_v20 = vrot.slane %v9019_v52, 5  ;;  %v984_v10 = vrot.slane %v7552_v37, 5  ;;  %12565 = vst [vmem:[#allocation90_spill] sm:$0xff] %v9028_v61  ;;  %v7553_v63 = vld [vmem:[%s12407_s0 + $0x54] sm:$0xf] }
  0xb4   :  { %v6671_v31 = vrot.slane %v7553_v63, 9  ;;  %v79_v37 = vld [vmem:[%s12407_s0 + $0x120] sm:$0xf]  ;;  %v2211_v9 = vrot.slane %v9028_v61, 5 }
  0xb5   :  { %v2652_v1 = vsel %vm7904_vm2, %v2647_v56, %v2651_v41  ;;  %v982_v62 = vsel %vm8555_vm5, %v6537_v19, %v981_v20  ;;  %v983_v58 = vrot.slane %v981_v20, 4  ;;  %v7554_v41 = vld [vmem:[%s12407_s0 + $0x58] sm:$0xf]  ;;  %v7555_v63 = vld [vmem:[%s12407_s0 + $0x60] sm:$0xf]  ;;  %v641_v6 = vshrl.u32 %v79_v37, 16 }
  0xb6   :  { %v7055_v49 = vcombine.low %v2642_v30, %v2652_v1  ;;  %v2208_v56 = vrot.slane %v7554_v41, 5  ;;  %v6545_v34 = vrot.slane %v7555_v63, 9  ;;  %v7556_v30 = vld [vmem:[%s12407_s0 + $0x64] sm:$0xf]  ;;  %v7557_v19 = vld [vmem:[%s12407_s0 + $0x68] sm:$0x1] }
  0xb7   :  { %v1037_v1 = vrot.slane %v7556_v30, 5  ;;  %v1040_v20 = vrot.slane %v7557_v19, 5  ;;  %v80_v41 = vld [vmem:[%s12407_s0 + $0x124] sm:$0xf]  ;;  %4065 = vrot.lane.b32.xlu1 %v6943_v40, %s7819_s19  ;;  %v985_v29 = vsel %vm8555_vm5, %v983_v58, %v984_v10  ;;  %v644_v53 = vshll.u32 %v79_v37, 16 }
  0xb8   :  { %4545 = vrot.lane.b32.xlu0 %v7055_v49, %s7819_s19  ;;  %v2209_v17 = vsel %vm8555_vm5, %v6671_v31, %v2208_v56  ;;  %v2210_v3 = vrot.slane %v2208_v56, 4  ;;  %v6889_v4 = vcombine.low %v982_v62, %v985_v29  ;;  %v81_v49 = vld [vmem:[%s12407_s0 + $0x128] sm:$0x1]  ;;  %v6718_v40 = vld [vmem:[%s12407_s0 + $0x6c] sm:$0xf]  ;;  %v643_v10 = vrot.slane %v641_v6, 4 }
  0xb9   :  { %v1038_v19 = vsel %vm8555_vm5, %v6545_v34, %v1037_v1  ;;  %v1039_v42 = vrot.slane %v1037_v1, 4  ;;  %v650_v31 = vshll.u32 %v80_v41, 16  ;;  %v654_v56 = vshrl.u32 %v80_v41, 16  ;;  %v6719_v62 = vld [vmem:[%s12407_s0 + $0x70] sm:$0xf] }
  0xba   :  { %v2212_v58 = vsel %vm8555_vm5, %v2210_v3, %v2211_v9  ;;  %v4824_v29 = vsel %vm4693_vm6, %v6889_v4, %v4022_v14  ;;  %v646_v1 = vrot.slane %v644_v53, 5  ;;  %v660_v8 = vshll.u32 %v81_v49, 16  ;;  %v3782_v3 = vpop.permute.xlu1 %3781  ;;  %v9083_v41 = vld [vmem:[%s12407_s0 + $0x74] sm:$0x1]  ;;  %v7476_v53 = vld [vmem:[%s12408_s1 + $0x108] sm:$0xff]  }
  0xbb   :  { %v6991_v34 = vcombine.low %v2209_v17, %v2212_v58  ;;  %v1041_v37 = vsel %vm8555_vm5, %v1039_v42, %v1040_v20  ;;  %5622 = vmatprep.mubr.bf16.mxu0 %v4824_v29  ;;  %v652_v45 = vrot.slane %v650_v31, 5  ;;  %v656_v32 = vrot.slane %v654_v56, 4  ;;  %12566 = vst [vmem:[#allocation91_spill] sm:$0xff] %v9083_v41  ;;  %v3766_v31 = vpop.permute.xlu0 %3765 }
  0xbc   :  { %v6897_v15 = vcombine.low %v1038_v19, %v1041_v37  ;;  %v647_v6 = vor.u32 %v646_v1, %v643_v10  ;;  %v6833_v9 = vcombine.low %v7555_v63, %v7556_v30  ;;  %v2654_v4 = vshrl.u32 %v6718_v40, 16  ;;  %v7558_v37 = vld [vmem:[%s12408_s1 + $0x100] sm:$0xff]  }
  0xbd   :  { %4289 = vrot.lane.b32.xlu0 %v6991_v34, %s7819_s19  ;;  %v2657_v17 = vshll.u32 %v6718_v40, 16  ;;  %v657_v14 = vor.u32 %v656_v32, %v652_v45  ;;  %v662_v20 = vrot.slane %v660_v8, 5  ;;  %v2663_v19 = vshll.u32 %v6719_v62, 16 }
  0xbe   :  { %v4856_v42 = vsel %vm4693_vm6, %v6897_v15, %v4038_v35  ;;  %v648_v49 = vrot.slane %v647_v6, 4  ;;  %v4728_v63 = vsel %vm4693_vm6, %v6833_v9, %v3782_v3  ;;  %v2656_v30 = vrot.slane %v2654_v4, 4  ;;  %v7448_v35 = vld [vmem:[%s12408_s1 + $0x80] sm:$0xff]  }
  0xbf   :  { %5686 = vmatprep.mubr.bf16.mxu1 %v4856_v42  ;;  %v2659_v58 = vrot.slane %v2657_v17, 5  ;;  %v658_v10 = vrot.slane %v657_v14, 4  ;;  %v2665_v56 = vrot.slane %v2663_v19, 5  ;;  %v2667_v40 = vshrl.u32 %v6719_v62, 16  ;;  %v9105_v62 = vld [vmem:[%s12407_s0 + $0x138] sm:$0xf] }
  0xc0   :  { %5687 = vmatmul.mubr.bf16.vlgmr.msra.gmra.mrb[0].mxu1 %v4728_v63  ;;  %v2673_v29 = vshll.u32 %v9083_v41, 16  ;;  %v1808_v34 = vshll.u32 %v8907_v50, 16  ;;  %v653_v32 = vsel %vm7904_vm2, %v648_v49, %v652_v45  ;;  %v6825_v8 = vcombine.low %v9013_v13, %v9019_v52  ;;  %12567 = vst [vmem:[#allocation92_spill] sm:$0xff] %v9105_v62  ;;  %v9119_v42 = vld [vmem:[%s12407_s0 + $0x13c] sm:$0xf] }
  0xc1   :  { %v2660_v15 = vor.u32 %v2659_v58, %v2656_v30  ;;  %7218 = vmatpush3.bf16.msra.mxu1 %v7558_v37  ;;  %v12568_v45 = vshll.u32 %v8834_v16, 16  ;;  %v663_v52 = vsel %vm7904_vm2, %v658_v10, %v662_v20  ;;  %v2669_v3 = vrot.slane %v2667_v40, 4  ;;  %12570 = vst [vmem:[#allocation94_spill] sm:$0xff] %v9119_v42  ;;  %v9124_v14 = vld [vmem:[%s12407_s0 + $0x68] sm:$0x1] }
  0xc2   :  { %7219 = vmatprep.subr.bf16.mxu1 %v7476_v53  ;;  %v6879_v9 = vcombine.low %v653_v32, %v663_v52  ;;  %v4696_v17 = vsel %vm4693_vm6, %v6825_v8, %v3766_v31  ;;  %12571 = vst [vmem:[#allocation95_spill] sm:$0xff] %v9124_v14  ;;  %v12572_v20 = vshrl.u32 %v8839_v11, 16  ;;  %v2675_v30 = vrot.slane %v2673_v29, 5  ;;  %v7450_v58 = vld [vmem:[%s12408_s1 + $0x88] sm:$0xff]   ;;  %v84_v31 = vld [vmem:[%s12407_s0 + $0x134] sm:$0x1] }
  0xc3   :  { %v9109_v1 = vrot.slane %v12568_v45, 5  ;;  %v2661_v4 = vrot.slane %v2660_v15, 4  ;;  %v2670_v63 = vor.u32 %v2669_v3, %v2665_v56  ;;  %5623 = vmatmul.mubr.bf16.vlgmr.msra.gmra.mrb[0].mxu0 %v4696_v17  ;;  %v82_v10 = vld [vmem:[%s12407_s0 + $0x12c] sm:$0xf]  ;;  %v12574_v40 = vshrl.u32 %v8907_v50, 16 }
  0xc4   :  { %v9128_v19 = vrot.slane %v12572_v20, 4  ;;  %v9142_v15 = vrot.slane %v1808_v34, 5  ;;  %3809 = vrot.lane.b32.xlu1 %v6879_v9, %s7819_s19  ;;  %5880 = vmatpush1.bf16.msra.mxu0 %v7448_v35  ;;  %v6944_v52 = vcombine.low %v9105_v62, %v9119_v42  ;;  %v12577_v3 = vmov 0   ;;  %v7559_v34 = vld [vmem:[%s12407_s0 + $0x60] sm:$0xf] }
  0xc5   :  { %12569 = vst [vmem:[#allocation93_spill] sm:$0xff] %v9109_v1  ;;  %v9140_v32 = vrot.slane %v12574_v40, 4  ;;  %v2666_v37 = vsel %vm7904_vm2, %v2661_v4, %v2665_v56  ;;  %v2671_v45 = vrot.slane %v2670_v63, 4  ;;  %5881 = vmatprep.subr.bf16.mxu0 %v12577_v3  ;;  %7220 = vmatpush3.bf16.msra.mxu1 %v7476_v53  ;;  %v6672_v17 = vrot.slane %v7559_v34, 9  ;;  %v7560_v35 = vld [vmem:[%s12407_s0 + $0x64] sm:$0xf] }
  0xc6   :  { %12573 = vst [vmem:[#allocation96_spill] sm:$0xff] %v9128_v19  ;;  %12576 = vst [vmem:[#allocation98_spill] sm:$0xff] %v9142_v15  ;;  %v2215_v9 = vrot.slane %v7560_v35, 5  ;;  %v2218_v20 = vrot.slane %v9124_v14, 5  ;;  %v9162_v56 = vld [vmem:[%s12407_s0 + $0xc] sm:$0xf] }
  0xc7   :  { %12575 = vst [vmem:[#allocation97_spill] sm:$0xff] %v9140_v32  ;;  %v6538_v4 = vrot.slane %v9162_v56, 9  ;;  %v83_v53 = vld [vmem:[%s12407_s0 + $0x130] sm:$0xf]  ;;  %v2676_v63 = vsel %vm7904_vm2, %v2671_v45, %v2675_v30  ;;  %v7563_v35 = vld [vmem:[%s12407_s0 + $0x14] sm:$0x1] }
  0xc8   :  { %v9173_v40 = vld [vmem:[%s12407_s0 + $0x10] sm:$0xf]  ;;  %v991_v8 = vrot.slane %v7563_v35, 5  ;;  %v665_v13 = vshrl.u32 %v82_v10, 16  ;;  %v7056_v45 = vcombine.low %v2666_v37, %v2676_v63  ;;  %4067 = vrot.lane.b32.xlu1 %v6944_v52, %s7819_s19  ;;  %v2216_v6 = vsel %vm8555_vm5, %v6672_v17, %v2215_v9  ;;  %5882 = vmatpush1.bf16.msra.mxu0 %v7450_v58  ;;  %v6721_v35 = vld [vmem:[%s12407_s0 + $0x78] sm:$0xf] }
  0xc9   :  { %v988_v34 = vrot.slane %v9173_v40, 5  ;;  %v7452_v30 = vld [vmem:[%s12408_s1 + $0x90] sm:$0xff]   ;;  %v2217_v49 = vrot.slane %v2215_v9, 4  ;;  %v668_v29 = vshll.u32 %v82_v10, 16  ;;  %v674_v1 = vshll.u32 %v83_v53, 16  ;;  %5883 = vmatprep.subr.bf16.mxu0 %v12577_v3  ;;  %v4024_v9 = vpop.permute.xlu0 %4023 }
  0xca   :  { %v667_v19 = vrot.slane %v665_v13, 4  ;;  %4547 = vrot.lane.b32.xlu0 %v7056_v45, %s7819_s19  ;;  %v678_v58 = vshrl.u32 %v83_v53, 16  ;;  %v684_v10 = vshll.u32 %v84_v31, 16  ;;  %v6722_v17 = vld [vmem:[%s12407_s0 + $0x7c] sm:$0xf]  ;;  %v2678_v45 = vshrl.u32 %v6721_v35, 16 }
  0xcb   :  { %v989_v15 = vsel %vm8555_vm5, %v6538_v4, %v988_v34  ;;  %v990_v32 = vrot.slane %v988_v34, 4  ;;  %v2219_v37 = vsel %vm8555_vm5, %v2217_v49, %v2218_v20  ;;  %v670_v52 = vrot.slane %v668_v29, 5  ;;  %v9205_v34 = vld [vmem:[%s12407_s0 + $0x80] sm:$0x1]  ;;  %v7455_v53 = vld [vmem:[%s12408_s1 + $0x98] sm:$0xff]  }
  0xcc   :  { %v6992_v63 = vcombine.low %v2216_v6, %v2219_v37  ;;  %v676_v4 = vrot.slane %v674_v1, 5  ;;  %12578 = vst [vmem:[#allocation99_spill] sm:$0xff] %v9205_v34  ;;  %v680_v20 = vrot.slane %v678_v58, 4  ;;  %v686_v31 = vrot.slane %v684_v10, 5  ;;  %5884 = vmatpush1.bf16.msra.mxu0 %v7452_v30 }
  0xcd   :  { %v992_v13 = vsel %vm8555_vm5, %v990_v32, %v991_v8  ;;  %v671_v29 = vor.u32 %v670_v52, %v667_v19  ;;  %v2680_v6 = vrot.slane %v2678_v45, 4  ;;  %v2681_v37 = vshll.u32 %v6721_v35, 16  ;;  %5885 = vmatprep.subr.bf16.mxu0 %v12577_v3  ;;  %v3768_v52 = vpop.permute.xlu1 %3767 }
  0xce   :  { %v6890_v49 = vcombine.low %v989_v15, %v992_v13  ;;  %v2687_v39 = vshll.u32 %v6722_v17, 16  ;;  %v2691_v32 = vshrl.u32 %v6722_v17, 16  ;;  %4291 = vrot.lane.b32.xlu0 %v6992_v63, %s7819_s19  ;;  %v681_v15 = vor.u32 %v680_v20, %v676_v4 }
  0xcf   :  { %v672_v8 = vrot.slane %v671_v29, 4  ;;  %v2697_v19 = vshll.u32 %v9205_v34, 16  ;;  %v2683_v58 = vrot.slane %v2681_v37, 5  ;;  %v6826_v63 = vcombine.low %v9162_v56, %v9173_v40 }
  0xd0   :  { %v4828_v1 = vsel %vm4693_vm6, %v6890_v49, %v4024_v9  ;;  %v2689_v10 = vrot.slane %v2687_v39, 5  ;;  %v2693_v13 = vrot.slane %v2691_v32, 4  ;;  %v682_v17 = vrot.slane %v681_v15, 4  ;;  %5886 = vmatpush1.bf16.msra.mxu0 %v7455_v53  ;;  %v7457_v9 = vld [vmem:[%s12408_s1 + $0xa0] sm:$0xff]   ;;  %v7564_v39 = vld [vmem:[%s12407_s0 + $0x6c] sm:$0xf] }
  0xd1   :  { %5630 = vmatprep.mubr.bf16.mxu0 %v4828_v1  ;;  %v677_v35 = vsel %vm7904_vm2, %v672_v8, %v676_v4  ;;  %v2699_v45 = vrot.slane %v2697_v19, 5  ;;  %v2684_v49 = vor.u32 %v2683_v58, %v2680_v6  ;;  %v6546_v20 = vrot.slane %v7564_v39, 9  ;;  %v7565_v4 = vld [vmem:[%s12407_s0 + $0x70] sm:$0xf]  ;;  %5887 = vmatprep.subr.bf16.mxu0 %v12577_v3  ;;  %v7566_v6 = vld [vmem:[%s12407_s0 + $0x74] sm:$0x1] }
  0xd2   :  { %v2694_v29 = vor.u32 %v2693_v13, %v2689_v10  ;;  %v1044_v37 = vrot.slane %v7565_v4, 5  ;;  %v1829_v56 = vshrl.u32 %v8992_v2, 16  ;;  %v687_v40 = vsel %vm7904_vm2, %v682_v17, %v686_v31  ;;  %v9240_v58 = vld [vmem:[%s12407_s0 + $0x144] sm:$0xf] }
  0xd3   :  { %v4700_v53 = vsel %vm4693_vm6, %v6826_v63, %v3768_v52  ;;  %v1047_v32 = vrot.slane %v7566_v6, 5  ;;  %v1832_v1 = vshll.u32 %v8992_v2, 16  ;;  %v6880_v8 = vcombine.low %v677_v35, %v687_v40  ;;  %12579 = vst [vmem:[#allocation100_spill] sm:$0xff] %v9240_v58  ;;  %v9249_v35 = vld [vmem:[%s12407_s0 + $0x148] sm:$0xf]  ;;  %v3784_v40 = vpop.permute.xlu1 %3783 }
  0xd4   :  { %v2685_v15 = vrot.slane %v2684_v49, 4  ;;  %v2695_v19 = vrot.slane %v2694_v29, 4  ;;  %5631 = vmatmul.mubr.bf16.gmra.mrb[4].mxu0 %v4700_v53  ;;  %v1045_v13 = vsel %vm8555_vm5, %v6546_v20, %v1044_v37  ;;  %v1046_v17 = vrot.slane %v1044_v37, 4  ;;  %12580 = vst [vmem:[#allocation101_spill] sm:$0xff] %v9249_v35  ;;  %v7460_v63 = vld [vmem:[%s12408_s1 + $0xa8] sm:$0xff]  }
  0xd5   :  { %5888 = vmatpush1.bf16.msra.mxu0 %v7457_v9  ;;  %v12581_v49 = vshrl.u32 %v8915_v12, 16  ;;  %3811 = vrot.lane.b32.xlu1 %v6880_v8, %s7819_s19  ;;  %v9267_v9 = vld [vmem:[%s12407_s0 + $0x74] sm:$0x1]  ;;  %v9270_v53 = vrot.slane %v1829_v56, 4  ;;  %v6945_v6 = vcombine.low %v9240_v58, %v9249_v35  ;;  %v6834_v30 = vcombine.low %v7564_v39, %v7565_v4 }
  0xd6   :  { %v2690_v20 = vsel %vm7904_vm2, %v2685_v15, %v2689_v10  ;;  %v2700_v37 = vsel %vm7904_vm2, %v2695_v19, %v2699_v45  ;;  %12583 = vst [vmem:[#allocation103_spill] sm:$0xff] %v9267_v9  ;;  %5889 = vmatprep.subr.bf16.mxu0 %v12577_v3  ;;  %v1048_v10 = vsel %vm8555_vm5, %v1046_v17, %v1047_v32  ;;  %v85_v45 = vld [vmem:[%s12407_s0 + $0x138] sm:$0xf]  ;;  %v86_v15 = vld [vmem:[%s12407_s0 + $0x13c] sm:$0xf]  ;;  %v9281_v19 = vrot.slane %v1832_v1, 5 }
  0xd7   :  { %v9256_v29 = vrot.slane %v12581_v49, 4  ;;  %12584 = vst [vmem:[#allocation104_spill] sm:$0xff] %v9270_v53  ;;  %v4040_v49 = vpop.permute.xlu0 %4039  ;;  %v7057_v8 = vcombine.low %v2690_v20, %v2700_v37  ;;  %v6898_v56 = vcombine.low %v1045_v13, %v1048_v10  ;;  %v7462_v20 = vld [vmem:[%s12408_s1 + $0xb0] sm:$0xff]   ;;  %v7567_v17 = vld [vmem:[%s12407_s0 + $0x6c] sm:$0xf]  ;;  %v2225_v39 = vrot.slane %v9267_v9, 5 }
  0xd8   :  { %12585 = vst [vmem:[#allocation105_spill] sm:$0xff] %v9281_v19  ;;  %v6673_v37 = vrot.slane %v7567_v17, 9  ;;  %v7568_v1 = vld [vmem:[%s12407_s0 + $0x70] sm:$0xf]  ;;  %v4732_v10 = vsel %vm4693_vm6, %v6834_v30, %v3784_v40  ;;  %v689_v31 = vshrl.u32 %v85_v45, 16  ;;  %v692_v19 = vshll.u32 %v85_v45, 16 }
  0xd9   :  { %12582 = vst [vmem:[#allocation102_spill] sm:$0xff] %v9256_v29  ;;  %4549 = vrot.lane.b32.xlu0 %v7057_v8, %s7819_s19  ;;  %v2222_v13 = vrot.slane %v7568_v1, 5  ;;  %5890 = vmatpush1.bf16.msra.mxu0 %v7460_v63  ;;  %v4860_v4 = vsel %vm4693_vm6, %v6898_v56, %v4040_v49  ;;  %v9303_v8 = vld [vmem:[%s12407_s0 + $0x18] sm:$0xf]  ;;  %v9309_v1 = vld [vmem:[%s12407_s0 + $0x1c] sm:$0xf] }
  0xda   :  { %4069 = vrot.lane.b32.xlu1 %v6945_v6, %s7819_s19  ;;  %v6539_v17 = vrot.slane %v9303_v8, 9  ;;  %v995_v63 = vrot.slane %v9309_v1, 5  ;;  %v87_v6 = vld [vmem:[%s12407_s0 + $0x140] sm:$0x1]  ;;  %5891 = vmatprep.subr.bf16.mxu0 %v12577_v3  ;;  %v698_v53 = vshll.u32 %v86_v15, 16  ;;  %v702_v29 = vshrl.u32 %v86_v15, 16 }
  0xdb   :  { %5694 = vmatprep.mubr.bf16.mxu1 %v4860_v4  ;;  %v2223_v30 = vsel %vm8555_vm5, %v6673_v37, %v2222_v13  ;;  %v2224_v40 = vrot.slane %v2222_v13, 4  ;;  %v7571_v49 = vld [vmem:[%s12407_s0 + $0x20] sm:$0x1]  ;;  %v6724_v4 = vld [vmem:[%s12407_s0 + $0x84] sm:$0xf]  ;;  %v691_v13 = vrot.slane %v689_v31, 4 }
  0xdc   :  { %v998_v56 = vrot.slane %v7571_v49, 5  ;;  %5695 = vmatmul.mubr.bf16.gmra.mrb[4].mxu1 %v4732_v10  ;;  %v996_v52 = vsel %vm8555_vm5, %v6539_v17, %v995_v63  ;;  %v997_v32 = vrot.slane %v995_v63, 4  ;;  %v708_v26 = vshll.u32 %v87_v6, 16  ;;  %v6725_v10 = vld [vmem:[%s12407_s0 + $0x88] sm:$0xf]  ;;  %v7465_v45 = vld [vmem:[%s12408_s1 + $0xb8] sm:$0xff]   ;;  %v4026_v17 = vpop.permute.xlu0 %4025 }
  0xdd   :  { %v2226_v37 = vsel %vm8555_vm5, %v2224_v40, %v2225_v39  ;;  %5892 = vmatpush1.bf16.msra.mxu0 %v7462_v20  ;;  %v694_v50 = vrot.slane %v692_v19, 5  ;;  %v700_v12 = vrot.slane %v698_v53, 5  ;;  %v9339_v31 = vld [vmem:[%s12407_s0 + $0x8c] sm:$0x1] }
  0xde   :  { %v6993_v63 = vcombine.low %v2223_v30, %v2226_v37  ;;  %v999_v49 = vsel %vm8555_vm5, %v997_v32, %v998_v56  ;;  %12586 = vst [vmem:[#allocation106_spill] sm:$0xff] %v9339_v31  ;;  %5893 = vmatprep.subr.bf16.mxu0 %v12577_v3 }
  0xdf   :  { %7 = vsyncpa [#allocation3], 0  ;;  %v6891_v15 = vcombine.low %v996_v52, %v999_v49  ;;  %v704_v20 = vrot.slane %v702_v29, 4  ;;  %v710_v39 = vrot.slane %v708_v26, 5  ;;  %v2702_v6 = vshrl.u32 %v6724_v4, 16  ;;  %v7467_v52 = vld [vmem:[%s12408_s1 + $0xc0] sm:$0xff]   ;;  %v3770_v29 = vpop.permute.xlu1 %3769 }
  0xe0   :  { %4293 = vrot.lane.b32.xlu0 %v6993_v63, %s7819_s19  ;;  %v695_v30 = vor.u32 %v694_v50, %v691_v13  ;;  %v2705_v40 = vshll.u32 %v6724_v4, 16  ;;  %v2711_v37 = vshll.u32 %v6725_v10, 16  ;;  %v2715_v32 = vshrl.u32 %v6725_v10, 16  ;;  %v9471_v2 = vld [vmem:[%s12407_s0 + $0x98] sm:$0x1] }
  0xe1   :  { %v4832_v53 = vsel %vm4693_vm6, %v6891_v15, %v4026_v17  ;;  %v705_v19 = vor.u32 %v704_v20, %v700_v12  ;;  %v2704_v56 = vrot.slane %v2702_v6, 4  ;;  %v2721_v16 = vshll.u32 %v9339_v31, 16  ;;  %5894 = vmatpush1.bf16.msra.mxu0 %v7465_v45  ;;  %v7572_v6 = vld [vmem:[%s12407_s0 + $0x78] sm:$0xf]  ;;  %12594 = vst [vmem:[#allocation113_spill] sm:$0xff] %v9471_v2 }
  0xe2   :  { %5638 = vmatprep.mubr.bf16.mxu0 %v4832_v53  ;;  %v696_v26 = vrot.slane %v695_v30, 4  ;;  %v2707_v49 = vrot.slane %v2705_v40, 5  ;;  %v2713_v63 = vrot.slane %v2711_v37, 5  ;;  %v2717_v50 = vrot.slane %v2715_v32, 4  ;;  %5895 = vmatprep.subr.bf16.mxu0 %v12577_v3  ;;  %v7470_v32 = vld [vmem:[%s12408_s1 + $0xc8] sm:$0xff]  }
  0xe3   :  { %v1853_v4 = vshrl.u32 %v9105_v62, 16  ;;  %v706_v13 = vrot.slane %v705_v19, 4  ;;  %v2723_v10 = vrot.slane %v2721_v16, 5  ;;  %v6827_v17 = vcombine.low %v9303_v8, %v9309_v1  ;;  %v7573_v16 = vld [vmem:[%s12407_s0 + $0x7c] sm:$0xf] }
  0xe4   :  { %v701_v45 = vsel %vm7904_vm2, %v696_v26, %v700_v12  ;;  %v2708_v15 = vor.u32 %v2707_v49, %v2704_v56  ;;  %v2718_v20 = vor.u32 %v2717_v50, %v2713_v63  ;;  %v6547_v30 = vrot.slane %v7572_v6, 9  ;;  %v7574_v12 = vld [vmem:[%s12407_s0 + $0x80] sm:$0x1]  ;;  %v7579_v26 = vld [vmem:[%s12407_s0 + $0x2c] sm:$0x1] }
  0xe5   :  { %v711_v40 = vsel %vm7904_vm2, %v706_v13, %v710_v39  ;;  %v4704_v37 = vsel %vm4693_vm6, %v6827_v17, %v3770_v29  ;;  %v1051_v8 = vrot.slane %v7573_v16, 5  ;;  %v1054_v1 = vrot.slane %v7574_v12, 5  ;;  %5896 = vmatpush1.bf16.msra.mxu0 %v7467_v52  ;;  %v9373_v29 = vld [vmem:[%s12407_s0 + $0x150] sm:$0xf]  ;;  %v9383_v13 = vld [vmem:[%s12407_s0 + $0x154] sm:$0xf] }
  0xe6   :  { %v6881_v39 = vcombine.low %v701_v45, %v711_v40  ;;  %v2709_v19 = vrot.slane %v2708_v15, 4  ;;  %v2719_v56 = vrot.slane %v2718_v20, 4  ;;  %5639 = vmatmul.mubr.bf16.gmra.mrb[8].mxu0 %v4704_v37  ;;  %12587 = vst [vmem:[#allocation107_spill] sm:$0xff] %v9373_v29  ;;  %5897 = vmatprep.subr.bf16.mxu0 %v12577_v3  ;;  %v1856_v52 = vshll.u32 %v9105_v62, 16  ;;  %12588 = vst [vmem:[#allocation108_spill] sm:$0xff] %v9383_v13 }
  0xe7   :  { %v1052_v49 = vsel %vm8555_vm5, %v6547_v30, %v1051_v8  ;;  %v1053_v50 = vrot.slane %v1051_v8, 4  ;;  %v12589_v17 = vshrl.u32 %v8997_v51, 16  ;;  %v9396_v37 = vrot.slane %v1853_v4, 4  ;;  %v4042_v8 = vpop.permute.xlu0 %4041  ;;  %v9403_v53 = vld [vmem:[%s12407_s0 + $0x80] sm:$0x1]  ;;  %v7475_v4 = vld [vmem:[%s12408_s1 + $0xd8] sm:$0xff]  }
  0xe8   :  { %3813 = vrot.lane.b32.xlu1 %v6881_v39, %s7819_s19  ;;  %v2714_v20 = vsel %vm7904_vm2, %v2709_v19, %v2713_v63  ;;  %v2724_v30 = vsel %vm7904_vm2, %v2719_v56, %v2723_v10  ;;  %12592 = vst [vmem:[#allocation111_spill] sm:$0xff] %v9403_v53  ;;  %v7472_v63 = vld [vmem:[%s12408_s1 + $0xd0] sm:$0xff]   ;;  %v3786_v39 = vpop.permute.xlu1 %3785  ;;  %v6946_v56 = vcombine.low %v9373_v29, %v9383_v13  ;;  %v89_v10 = vld [vmem:[%s12407_s0 + $0x148] sm:$0xf]  ;;  %v1005_v15 = vrot.slane %v7579_v26, 5  ;;  %v7478_v51 = vld [vmem:[%s12408_s1 + $0xe0] sm:$0xff]  }
  0xe9   :  { %v9387_v45 = vrot.slane %v12589_v17, 4  ;;  %12591 = vst [vmem:[#allocation110_spill] sm:$0xff] %v9396_v37  ;;  %v7058_v12 = vcombine.low %v2714_v20, %v2724_v30  ;;  %v1055_v17 = vsel %vm8555_vm5, %v1053_v50, %v1054_v1  ;;  %5898 = vmatpush1.bf16.msra.mxu0 %v7470_v32  ;;  %v88_v1 = vld [vmem:[%s12407_s0 + $0x144] sm:$0xf]  ;;  %v9416_v32 = vrot.slane %v1856_v52, 5 }
  0xea   :  { %v6899_v19 = vcombine.low %v1052_v49, %v1055_v17  ;;  %5899 = vmatprep.subr.bf16.mxu0 %v12577_v3  ;;  %v6835_v50 = vcombine.low %v7572_v6, %v7573_v16  ;;  %v7575_v20 = vld [vmem:[%s12407_s0 + $0x78] sm:$0xf]  ;;  %v7576_v49 = vld [vmem:[%s12407_s0 + $0x7c] sm:$0xf]  ;;  %v2232_v6 = vrot.slane %v9403_v53, 5  ;;  %v1877_v61 = vshrl.u32 %v9240_v58, 16 }
  0xeb   :  { %12590 = vst [vmem:[#allocation109_spill] sm:$0xff] %v9387_v45  ;;  %12593 = vst [vmem:[#allocation112_spill] sm:$0xff] %v9416_v32  ;;  %4551 = vrot.lane.b32.xlu0 %v7058_v12, %s7819_s19  ;;  %v6674_v30 = vrot.slane %v7575_v20, 9  ;;  %v2229_v17 = vrot.slane %v7576_v49, 5  ;;  %v9434_v16 = vld [vmem:[%s12407_s0 + $0x24] sm:$0xf] }
  0xec   :  { %v4864_v52 = vsel %vm4693_vm6, %v6899_v19, %v4042_v8  ;;  %4071 = vrot.lane.b32.xlu1 %v6946_v56, %s7819_s19  ;;  %v6540_v12 = vrot.slane %v9434_v16, 9  ;;  %v9440_v20 = vld [vmem:[%s12407_s0 + $0x28] sm:$0xf]  ;;  %v90_v8 = vld [vmem:[%s12407_s0 + $0x14c] sm:$0x1]  ;;  %v4736_v19 = vsel %vm4693_vm6, %v6835_v50, %v3786_v39  ;;  %v713_v39 = vshrl.u32 %v88_v1, 16 }
  0xed   :  { %v1002_v49 = vrot.slane %v9440_v20, 5  ;;  %5702 = vmatprep.mubr.bf16.mxu1 %v4864_v52  ;;  %v2230_v56 = vsel %vm8555_vm5, %v6674_v30, %v2229_v17  ;;  %v2231_v40 = vrot.slane %v2229_v17, 4  ;;  %5900 = vmatpush1.bf16.msra.mxu0 %v7472_v63  ;;  %v716_v50 = vshll.u32 %v88_v1, 16  ;;  %v6727_v30 = vld [vmem:[%s12407_s0 + $0x90] sm:$0xf] }
  0xee   :  { %5703 = vmatmul.mubr.bf16.gmra.mrb[8].mxu1 %v4736_v19  ;;  %5901 = vmatprep.subr.bf16.mxu0 %v12577_v3  ;;  %v722_v63 = vshll.u32 %v89_v10, 16  ;;  %v726_v17 = vshrl.u32 %v89_v10, 16  ;;  %v732_v37 = vshll.u32 %v90_v8, 16  ;;  %v6728_v19 = vld [vmem:[%s12407_s0 + $0x94] sm:$0xf]  ;;  %v715_v45 = vrot.slane %v713_v39, 4 }
  0xef   :  { %v1003_v52 = vsel %vm8555_vm5, %v6540_v12, %v1002_v49  ;;  %v1004_v32 = vrot.slane %v1002_v49, 4  ;;  %v2233_v26 = vsel %vm8555_vm5, %v2231_v40, %v2232_v6  ;;  %v4028_v12 = vpop.permute.xlu0 %4027  ;;  %v718_v41 = vrot.slane %v716_v50, 5 }
  0xf0   :  { %v6994_v49 = vcombine.low %v2230_v56, %v2233_v26  ;;  %v724_v6 = vrot.slane %v722_v63, 5  ;;  %v728_v10 = vrot.slane %v726_v17, 4  ;;  %v734_v8 = vrot.slane %v732_v37, 5 }
  0xf1   :  { %v1006_v1 = vsel %vm8555_vm5, %v1004_v32, %v1005_v15  ;;  %5902 = vmatpush1.bf16.msra.mxu0 %v7475_v4  ;;  %v719_v56 = vor.u32 %v718_v41, %v715_v45  ;;  %v2726_v15 = vshrl.u32 %v6727_v30, 16  ;;  %v2729_v32 = vshll.u32 %v6727_v30, 16 }
  0xf2   :  { %v6892_v40 = vcombine.low %v1003_v52, %v1006_v1  ;;  %4295 = vrot.lane.b32.xlu0 %v6994_v49, %s7819_s19  ;;  %v2735_v39 = vshll.u32 %v6728_v19, 16  ;;  %5903 = vmatprep.subr.bf16.mxu0 %v12577_v3  ;;  %v729_v26 = vor.u32 %v728_v10, %v724_v6  ;;  %v2739_v52 = vshrl.u32 %v6728_v19, 16  ;;  %v3772_v49 = vpop.permute.xlu1 %3771 }
  0xf3   :  { %v2745_v63 = vshll.u32 %v9471_v2, 16  ;;  %v720_v37 = vrot.slane %v719_v56, 4  ;;  %v2728_v4 = vrot.slane %v2726_v15, 4  ;;  %v2731_v17 = vrot.slane %v2729_v32, 5  ;;  %v7481_v56 = vld [vmem:[%s12408_s1 + $0xe8] sm:$0xff]  }
  0xf4   :  { %v4836_v50 = vsel %vm4693_vm6, %v6892_v40, %v4028_v12  ;;  %v2737_v1 = vrot.slane %v2735_v39, 5  ;;  %v730_v41 = vrot.slane %v729_v26, 4  ;;  %v2741_v45 = vrot.slane %v2739_v52, 4  ;;  %v7580_v40 = vld [vmem:[%s12407_s0 + $0x84] sm:$0xf] }
  0xf5   :  { %5646 = vmatprep.mubr.bf16.mxu0 %v4836_v50  ;;  %v2747_v30 = vrot.slane %v2745_v63, 5  ;;  %5904 = vmatpush1.bf16.msra.mxu0 %v7478_v51  ;;  %v725_v11 = vsel %vm7904_vm2, %v720_v37, %v724_v6  ;;  %v2732_v12 = vor.u32 %v2731_v17, %v2728_v4  ;;  %v6828_v19 = vcombine.low %v9434_v16, %v9440_v20  ;;  %v7581_v6 = vld [vmem:[%s12407_s0 + $0x88] sm:$0xf]  ;;  %v7582_v20 = vld [vmem:[%s12407_s0 + $0x8c] sm:$0x1] }
  0xf6   :  { %v6548_v10 = vrot.slane %v7580_v40, 9  ;;  %5905 = vmatprep.subr.bf16.mxu0 %v12577_v3  ;;  %v735_v51 = vsel %vm7904_vm2, %v730_v41, %v734_v8  ;;  %v2742_v15 = vor.u32 %v2741_v45, %v2737_v1  ;;  %v1058_v16 = vrot.slane %v7581_v6, 5  ;;  %v9508_v17 = vld [vmem:[%s12407_s0 + $0x15c] sm:$0xf] }
  0xf7   :  { %v1061_v32 = vrot.slane %v7582_v20, 5  ;;  %v6882_v50 = vcombine.low %v725_v11, %v735_v51  ;;  %v2733_v26 = vrot.slane %v2732_v12, 4  ;;  %v4708_v52 = vsel %vm4693_vm6, %v6828_v19, %v3772_v49  ;;  %12595 = vst [vmem:[#allocation114_spill] sm:$0xff] %v9508_v17  ;;  %v9522_v19 = vld [vmem:[%s12407_s0 + $0x160] sm:$0xf] }
  0xf8   :  { %v2743_v8 = vrot.slane %v2742_v15, 4  ;;  %5647 = vmatmul.mubr.bf16.gmra.mrb[12].mxu0 %v4708_v52  ;;  %v1059_v37 = vsel %vm8555_vm5, %v6548_v10, %v1058_v16  ;;  %v1060_v4 = vrot.slane %v1058_v16, 4  ;;  %v12596_v41 = vshrl.u32 %v9119_v42, 16  ;;  %v7483_v10 = vld [vmem:[%s12408_s1 + $0xf0] sm:$0xff]   ;;  %v4044_v16 = vpop.permute.xlu0 %4043  ;;  %v7583_v49 = vld [vmem:[%s12407_s0 + $0x84] sm:$0xf] }
  0xf9   :  { %3815 = vrot.lane.b32.xlu1 %v6882_v50, %s7819_s19  ;;  %v2738_v12 = vsel %vm7904_vm2, %v2733_v26, %v2737_v1  ;;  %5906 = vmatpush1.bf16.msra.mxu0 %v7481_v56  ;;  %v9527_v51 = vrot.slane %v1877_v61, 4  ;;  %v9537_v50 = vld [vmem:[%s12407_s0 + $0x8c] sm:$0x1]  ;;  %v3788_v26 = vpop.permute.xlu1 %3787  ;;  %v6675_v56 = vrot.slane %v7583_v49, 9  ;;  %v6730_v11 = vld [vmem:[%s12407_s0 + $0x9c] sm:$0xf] }
  0xfa   :  { %v9512_v45 = vrot.slane %v12596_v41, 4  ;;  %v2748_v20 = vsel %vm7904_vm2, %v2743_v8, %v2747_v30  ;;  %v1062_v1 = vsel %vm8555_vm5, %v1060_v4, %v1061_v32  ;;  %5907 = vmatprep.subr.bf16.mxu0 %v12577_v3  ;;  %v91_v30 = vld [vmem:[%s12407_s0 + $0x150] sm:$0xf]  ;;  %v6947_v8 = vcombine.low %v9508_v17, %v9522_v19  ;;  %v7587_v32 = vld [vmem:[%s12407_s0 + $0x38] sm:$0x1] }
  0xfb   :  { %12598 = vst [vmem:[#allocation116_spill] sm:$0xff] %v9527_v51  ;;  %v7059_v52 = vcombine.low %v2738_v12, %v2748_v20  ;;  %v6900_v41 = vcombine.low %v1059_v37, %v1062_v1  ;;  %v6836_v4 = vcombine.low %v7580_v40, %v7581_v6  ;;  %v92_v12 = vld [vmem:[%s12407_s0 + $0x154] sm:$0xf]  ;;  %v7584_v20 = vld [vmem:[%s12407_s0 + $0x88] sm:$0xf]  ;;  %v2239_v40 = vrot.slane %v9537_v50, 5 }
  0xfc   :  { %12597 = vst [vmem:[#allocation115_spill] sm:$0xff] %v9512_v45  ;;  %v2236_v1 = vrot.slane %v7584_v20, 5  ;;  %v9563_v6 = vld [vmem:[%s12407_s0 + $0x30] sm:$0xf]  ;;  %v1012_v39 = vrot.slane %v7587_v32, 5  ;;  %v737_v63 = vshrl.u32 %v91_v30, 16  ;;  %v4030_v34 = vpop.permute.xlu0 %4029 }
  0xfd   :  { %4553 = vrot.lane.b32.xlu0 %v7059_v52, %s7819_s19  ;;  %v4868_v37 = vsel %vm4693_vm6, %v6900_v41, %v4044_v16  ;;  %v6541_v49 = vrot.slane %v9563_v6, 9  ;;  %5908 = vmatpush1.bf16.msra.mxu0 %v7483_v10  ;;  %v7486_v52 = vld [vmem:[%s12408_s1 + $0xf8] sm:$0xff]   ;;  %v4740_v16 = vsel %vm4693_vm6, %v6836_v4, %v3788_v26  ;;  %v7586_v41 = vld [vmem:[%s12407_s0 + $0x34] sm:$0xf]  ;;  %v740_v4 = vshll.u32 %v91_v30, 16  ;;  %v3774_v14 = vpop.permute.xlu1 %3773 }
  0xfe   :  { %5710 = vmatprep.mubr.bf16.mxu1 %v4868_v37  ;;  %4073 = vrot.lane.b32.xlu1 %v6947_v8, %s7819_s19  ;;  %v1009_v20 = vrot.slane %v7586_v41, 5  ;;  %v93_v10 = vld [vmem:[%s12407_s0 + $0x158] sm:$0x1]  ;;  %v2237_v8 = vsel %vm8555_vm5, %v6675_v56, %v2236_v1  ;;  %v2238_v26 = vrot.slane %v2236_v1, 4  ;;  %v746_v37 = vshll.u32 %v92_v12, 16 }
  0xff   :  { %5711 = vmatmul.mubr.bf16.gmra.mrb[12].mxu1 %v4740_v16  ;;  %5909 = vmatprep.subr.bf16.mxu0 %v12577_v3  ;;  %v739_v15 = vrot.slane %v737_v63, 4  ;;  %v750_v51 = vshrl.u32 %v92_v12, 16  ;;  %v742_v45 = vrot.slane %v740_v4, 5  ;;  %v756_v1 = vshll.u32 %v93_v10, 16  ;;  %v6731_v30 = vld [vmem:[%s12407_s0 + $0xa0] sm:$0xf] }
 0x100   :  { %v1010_v32 = vsel %vm8555_vm5, %v6541_v49, %v1009_v20  ;;  %v1011_v61 = vrot.slane %v1009_v20, 4  ;;  %v2240_v16 = vsel %vm8555_vm5, %v2238_v26, %v2239_v40  ;;  %v748_v56 = vrot.slane %v746_v37, 5  ;;  %v9598_v63 = vld [vmem:[%s12407_s0 + $0xa4] sm:$0x1] }
 0x101   :  { %5910 = vmatpush1.bf16.msra.mxu0 %v7486_v52  ;;  %v6995_v62 = vcombine.low %v2237_v8, %v2240_v16  ;;  %v752_v49 = vrot.slane %v750_v51, 4  ;;  %12599 = vst [vmem:[#allocation117_spill] sm:$0xff] %v9598_v63  ;;  %v2750_v12 = vshrl.u32 %v6730_v11, 16  ;;  %v743_v20 = vor.u32 %v742_v45, %v739_v15 }
 0x102   :  { %v1013_v3 = vsel %vm8555_vm5, %v1011_v61, %v1012_v39  ;;  %v758_v10 = vrot.slane %v756_v1, 5  ;;  %v2753_v26 = vshll.u32 %v6730_v11, 16  ;;  %v2759_v37 = vshll.u32 %v6731_v30, 16 }
 0x103   :  { %v6893_v40 = vcombine.low %v1010_v32, %v1013_v3  ;;  %4297 = vrot.lane.b32.xlu0 %v6995_v62, %s7819_s19  ;;  %v753_v4 = vor.u32 %v752_v49, %v748_v56  ;;  %v2752_v52 = vrot.slane %v2750_v12, 4  ;;  %v2763_v8 = vshrl.u32 %v6731_v30, 16  ;;  %v7588_v49 = vld [vmem:[%s12407_s0 + $0x90] sm:$0xf] }
 0x104   :  { %v744_v39 = vrot.slane %v743_v20, 4  ;;  %v2755_v51 = vrot.slane %v2753_v26, 5  ;;  %v2769_v61 = vshll.u32 %v9598_v63, 16  ;;  %v1901_v42 = vshrl.u32 %v9373_v29, 16 }
 0x105   :  { %v4840_v16 = vsel %vm4693_vm6, %v6893_v40, %v4030_v34  ;;  %v754_v32 = vrot.slane %v753_v4, 4  ;;  %v2761_v45 = vrot.slane %v2759_v37, 5  ;;  %v2765_v15 = vrot.slane %v2763_v8, 4  ;;  %v7589_v40 = vld [vmem:[%s12407_s0 + $0x94] sm:$0xf] }
 0x106   :  { %5654 = vmatprep.mubr.bf16.mxu0 %v4840_v16  ;;  %v749_v62 = vsel %vm7904_vm2, %v744_v39, %v748_v56  ;;  %v2756_v11 = vor.u32 %v2755_v51, %v2752_v52  ;;  %v2771_v1 = vrot.slane %v2769_v61, 5  ;;  %v6829_v30 = vcombine.low %v9563_v6, %v7586_v41  ;;  %v7590_v6 = vld [vmem:[%s12407_s0 + $0x98] sm:$0x1]  ;;  %v9625_v16 = vld [vmem:[%s12407_s0 + $0x168] sm:$0xf] }
 0x107   :  { %v759_v34 = vsel %vm7904_vm2, %v754_v32, %v758_v10  ;;  %v2766_v3 = vor.u32 %v2765_v15, %v2761_v45  ;;  %v6549_v12 = vrot.slane %v7588_v49, 9  ;;  %v1065_v20 = vrot.slane %v7589_v40, 5 }
 0x108   :  { %v6883_v26 = vcombine.low %v749_v62, %v759_v34  ;;  %v2757_v56 = vrot.slane %v2756_v11, 4  ;;  %v4712_v4 = vsel %vm4693_vm6, %v6829_v30, %v3774_v14  ;;  %v1068_v41 = vrot.slane %v7590_v6, 5  ;;  %v9642_v62 = vld [vmem:[%s12407_s0 + $0x16c] sm:$0xf]  ;;  %v7497_v11 = vld [vmem:[%s12408_s1 + $0x110] sm:$0xff]  }
 0x109   :  { %v1904_v10 = vshll.u32 %v9373_v29, 16  ;;  %v2767_v52 = vrot.slane %v2766_v3, 4  ;;  %5655 = vmatmul.mubr.bf16.gmra.mrb[16].mxu0 %v4712_v4  ;;  %v1066_v37 = vsel %vm8555_vm5, %v6549_v12, %v1065_v20  ;;  %v1067_v8 = vrot.slane %v1065_v20, 4  ;;  %v4046_v3 = vpop.permute.xlu0 %4045  ;;  %v9656_v20 = vld [vmem:[%s12407_s0 + $0x98] sm:$0x1]  ;;  %v3790_v4 = vpop.permute.xlu1 %3789  ;;  %7221 = vmatprep.subr.bf16.mxu1 %v7497_v11 }
 0x10a   :  { %v12600_v14 = vshll.u32 %v9240_v58, 16  ;;  %v12602_v51 = vshrl.u32 %v9249_v35, 16  ;;  %3817 = vrot.lane.b32.xlu1 %v6883_v26, %s7819_s19  ;;  %v2762_v15 = vsel %vm7904_vm2, %v2757_v56, %v2761_v45  ;;  %v9658_v26 = vrot.slane %v1901_v42, 4  ;;  %7222 = vmatpush3.bf16.msra.mxu1 %v7497_v11 }
 0x10b   :  { %v2772_v12 = vsel %vm7904_vm2, %v2767_v52, %v2771_v1  ;;  %v1069_v45 = vsel %vm8555_vm5, %v1067_v8, %v1068_v41  ;;  %v6948_v41 = vcombine.low %v9625_v16, %v9642_v62  ;;  %v6837_v52 = vcombine.low %v7588_v49, %v7589_v40  ;;  %v94_v8 = vld [vmem:[%s12407_s0 + $0x15c] sm:$0xf]  ;;  %v95_v40 = vld [vmem:[%s12407_s0 + $0x160] sm:$0xf] }
 0x10c   :  { %v9629_v39 = vrot.slane %v12600_v14, 5  ;;  %v9633_v61 = vrot.slane %v12602_v51, 4  ;;  %12604 = vst [vmem:[#allocation120_spill] sm:$0xff] %v9658_v26  ;;  %v7060_v6 = vcombine.low %v2762_v15, %v2772_v12  ;;  %v6901_v14 = vcombine.low %v1066_v37, %v1069_v45  ;;  %v7592_v15 = vld [vmem:[%s12407_s0 + $0x94] sm:$0xf] }
 0x10d   :  { %v9661_v51 = vrot.slane %v1904_v10, 5  ;;  %v7591_v10 = vld [vmem:[%s12407_s0 + $0x90] sm:$0xf]  ;;  %v2243_v12 = vrot.slane %v7592_v15, 5  ;;  %v2246_v49 = vrot.slane %v9656_v20, 5  ;;  %v4744_v11 = vsel %vm4693_vm6, %v6837_v52, %v3790_v4 }
 0x10e   :  { %12601 = vst [vmem:[#allocation118_spill] sm:$0xff] %v9629_v39  ;;  %12603 = vst [vmem:[#allocation119_spill] sm:$0xff] %v9633_v61  ;;  %4555 = vrot.lane.b32.xlu0 %v7060_v6, %s7819_s19  ;;  %v4872_v42 = vsel %vm4693_vm6, %v6901_v14, %v4046_v3  ;;  %v6676_v37 = vrot.slane %v7591_v10, 9  ;;  %4075 = vrot.lane.b32.xlu1 %v6948_v41, %s7819_s19  ;;  %v7593_v3 = vld [vmem:[%s12407_s0 + $0x3c] sm:$0xf]  ;;  %v764_v56 = vshll.u32 %v94_v8, 16 }
 0x10f   :  { %12605 = vst [vmem:[#allocation121_spill] sm:$0xff] %v9661_v51  ;;  %5718 = vmatprep.mubr.bf16.mxu1 %v4872_v42  ;;  %v6542_v45 = vrot.slane %v7593_v3, 9  ;;  %v7594_v6 = vld [vmem:[%s12407_s0 + $0x40] sm:$0xf]  ;;  %v7595_v10 = vld [vmem:[%s12407_s0 + $0x44] sm:$0x1] }
 0x110   :  { %v1016_v14 = vrot.slane %v7594_v6, 5  ;;  %v1019_v15 = vrot.slane %v7595_v10, 5  ;;  %v96_v41 = vld [vmem:[%s12407_s0 + $0x164] sm:$0x1]  ;;  %5719 = vmatmul.mubr.bf16.gmra.mrb[16].mxu1 %v4744_v11  ;;  %v2244_v4 = vsel %vm8555_vm5, %v6676_v37, %v2243_v12  ;;  %v2245_v52 = vrot.slane %v2243_v12, 4  ;;  %v4032_v37 = vpop.permute.xlu0 %4031 }
 0x111   :  { %v761_v42 = vshrl.u32 %v94_v8, 16  ;;  %v770_v30 = vshll.u32 %v95_v40, 16  ;;  %v774_v1 = vshrl.u32 %v95_v40, 16  ;;  %v6733_v10 = vld [vmem:[%s12407_s0 + $0xa8] sm:$0xf]  ;;  %v766_v26 = vrot.slane %v764_v56, 5 }
 0x112   :  { %v1017_v34 = vsel %vm8555_vm5, %v6542_v45, %v1016_v14  ;;  %v1018_v32 = vrot.slane %v1016_v14, 4  ;;  %v2247_v51 = vsel %vm8555_vm5, %v2245_v52, %v2246_v49  ;;  %v780_v61 = vshll.u32 %v96_v41, 16  ;;  %v6734_v8 = vld [vmem:[%s12407_s0 + $0xac] sm:$0xf]  ;;  %v9712_v39 = vld [vmem:[%s12407_s0 + $0xb0] sm:$0x1] }
 0x113   :  { %v763_v11 = vrot.slane %v761_v42, 4  ;;  %v6996_v12 = vcombine.low %v2244_v4, %v2247_v51  ;;  %v772_v40 = vrot.slane %v770_v30, 5  ;;  %v776_v14 = vrot.slane %v774_v1, 4  ;;  %12606 = vst [vmem:[#allocation122_spill] sm:$0xff] %v9712_v39 }
 0x114   :  { %v1020_v45 = vsel %vm8555_vm5, %v1018_v32, %v1019_v15  ;;  %v782_v56 = vrot.slane %v780_v61, 5  ;;  %v2774_v41 = vshrl.u32 %v6733_v10, 16  ;;  %v2777_v31 = vshll.u32 %v6733_v10, 16  ;;  %v3776_v15 = vpop.permute.xlu1 %3775 }
 0x115   :  { %v6894_v49 = vcombine.low %v1017_v34, %v1020_v45  ;;  %v767_v52 = vor.u32 %v766_v26, %v763_v11  ;;  %4299 = vrot.lane.b32.xlu0 %v6996_v12, %s7819_s19  ;;  %v777_v42 = vor.u32 %v776_v14, %v772_v40  ;;  %v2783_v58 = vshll.u32 %v6734_v8, 16  ;;  %v7596_v14 = vld [vmem:[%s12407_s0 + $0x9c] sm:$0xf] }
 0x116   :  { %v2787_v51 = vshrl.u32 %v6734_v8, 16  ;;  %v2776_v30 = vrot.slane %v2774_v41, 4  ;;  %v2793_v1 = vshll.u32 %v9712_v39, 16  ;;  %v2779_v9 = vrot.slane %v2777_v31, 5 }
 0x117   :  { %v4844_v4 = vsel %vm4693_vm6, %v6894_v49, %v4032_v37  ;;  %v768_v32 = vrot.slane %v767_v52, 4  ;;  %v778_v35 = vrot.slane %v777_v42, 4  ;;  %v2785_v34 = vrot.slane %v2783_v58, 5  ;;  %v7597_v52 = vld [vmem:[%s12407_s0 + $0xa0] sm:$0xf] }
 0x118   :  { %5662 = vmatprep.mubr.bf16.mxu0 %v4844_v4  ;;  %v2789_v26 = vrot.slane %v2787_v51, 4  ;;  %v1925_v61 = vshrl.u32 %v9508_v17, 16  ;;  %v2795_v10 = vrot.slane %v2793_v1, 5  ;;  %v6830_v12 = vcombine.low %v7593_v3, %v7594_v6  ;;  %v7598_v3 = vld [vmem:[%s12407_s0 + $0xa4] sm:$0x1] }
 0x119   :  { %v773_v11 = vsel %vm7904_vm2, %v768_v32, %v772_v40  ;;  %v783_v8 = vsel %vm7904_vm2, %v778_v35, %v782_v56  ;;  %v2780_v37 = vor.u32 %v2779_v9, %v2776_v30  ;;  %v6550_v49 = vrot.slane %v7596_v14, 9  ;;  %v9740_v51 = vld [vmem:[%s12407_s0 + $0x174] sm:$0xf] }
 0x11a   :  { %v2790_v45 = vor.u32 %v2789_v26, %v2785_v34  ;;  %v6884_v31 = vcombine.low %v773_v11, %v783_v8  ;;  %v4716_v58 = vsel %vm4693_vm6, %v6830_v12, %v3776_v15  ;;  %v1072_v40 = vrot.slane %v7597_v52, 5  ;;  %v9750_v15 = vld [vmem:[%s12407_s0 + $0x178] sm:$0xf] }
 0x11b   :  { %v1075_v35 = vrot.slane %v7598_v3, 5  ;;  %v12607_v9 = vshrl.u32 %v9383_v13, 16  ;;  %v2781_v41 = vrot.slane %v2780_v37, 4  ;;  %5663 = vmatmul.mubr.bf16.gmra.mrb[20].mxu0 %v4716_v58  ;;  %v1928_v32 = vshll.u32 %v9508_v17, 16  ;;  %v9761_v37 = vld [vmem:[%s12407_s0 + $0xa4] sm:$0x1]  ;;  %v3792_v58 = vpop.permute.xlu1 %3791 }
 0x11c   :  { %v2791_v42 = vrot.slane %v2790_v45, 4  ;;  %3819 = vrot.lane.b32.xlu1 %v6884_v31, %s7819_s19  ;;  %v1073_v30 = vsel %vm8555_vm5, %v6550_v49, %v1072_v40  ;;  %v1074_v1 = vrot.slane %v1072_v40, 4  ;;  %v9763_v45 = vrot.slane %v1925_v61, 4  ;;  %v4048_v31 = vpop.permute.xlu0 %4047  ;;  %v97_v61 = vld [vmem:[%s12407_s0 + $0x168] sm:$0xf] }
 0x11d   :  { %v9734_v6 = vrot.slane %v12607_v9, 4  ;;  %v2786_v12 = vsel %vm7904_vm2, %v2781_v41, %v2785_v34  ;;  %v6838_v41 = vcombine.low %v7596_v14, %v7597_v52  ;;  %v2253_v14 = vrot.slane %v9761_v37, 5  ;;  %v98_v52 = vld [vmem:[%s12407_s0 + $0x16c] sm:$0xf]  ;;  %v99_v49 = vld [vmem:[%s12407_s0 + $0x170] sm:$0x1] }
 0x11e   :  { %v2796_v8 = vsel %vm7904_vm2, %v2791_v42, %v2795_v10  ;;  %12609 = vst [vmem:[#allocation124_spill] sm:$0xff] %v9763_v45  ;;  %v1076_v3 = vsel %vm8555_vm5, %v1074_v1, %v1075_v35  ;;  %v6949_v10 = vcombine.low %v9740_v51, %v9750_v15  ;;  %v9774_v42 = vrot.slane %v1928_v32, 5 }
 0x11f   :  { %12608 = vst [vmem:[#allocation123_spill] sm:$0xff] %v9734_v6  ;;  %v7061_v40 = vcombine.low %v2786_v12, %v2796_v8  ;;  %v6902_v9 = vcombine.low %v1073_v30, %v1076_v3  ;;  %v7599_v12 = vld [vmem:[%s12407_s0 + $0x9c] sm:$0xf]  ;;  %v7600_v30 = vld [vmem:[%s12407_s0 + $0xa0] sm:$0xf]  ;;  %v4748_v8 = vsel %vm4693_vm6, %v6838_v41, %v3792_v58  ;;  %v785_v41 = vshrl.u32 %v97_v61, 16  ;;  %v3778_v2 = vpop.permute.xlu1 %3777 }
 0x120   :  { %12610 = vst [vmem:[#allocation125_spill] sm:$0xff] %v9774_v42  ;;  %v6677_v35 = vrot.slane %v7599_v12, 9  ;;  %v2250_v1 = vrot.slane %v7600_v30, 5  ;;  %4077 = vrot.lane.b32.xlu1 %v6949_v10, %s7819_s19  ;;  %v7602_v12 = vld [vmem:[%s12407_s0 + $0x4c] sm:$0xf]  ;;  %v788_v4 = vshll.u32 %v97_v61, 16 }
 0x121   :  { %4557 = vrot.lane.b32.xlu0 %v7061_v40, %s7819_s19  ;;  %v4876_v32 = vsel %vm4693_vm6, %v6902_v9, %v4048_v31  ;;  %v7601_v40 = vld [vmem:[%s12407_s0 + $0x48] sm:$0xf]  ;;  %v1023_v30 = vrot.slane %v7602_v12, 5  ;;  %v7603_v58 = vld [vmem:[%s12407_s0 + $0x50] sm:$0x1]  ;;  %v794_v26 = vshll.u32 %v98_v52, 16 }
 0x122   :  { %v6543_v3 = vrot.slane %v7601_v40, 9  ;;  %5726 = vmatprep.mubr.bf16.mxu1 %v4876_v32  ;;  %v2251_v31 = vsel %vm8555_vm5, %v6677_v35, %v2250_v1  ;;  %v2252_v9 = vrot.slane %v2250_v1, 4  ;;  %v1026_v10 = vrot.slane %v7603_v58, 5  ;;  %v6736_v32 = vld [vmem:[%s12407_s0 + $0xb4] sm:$0xf]  ;;  %v4034_v58 = vpop.permute.xlu0 %4033 }
 0x123   :  { %5727 = vmatmul.mubr.bf16.gmra.mrb[20].mxu1 %v4748_v8  ;;  %v1025_v56 = vrot.slane %v1023_v30, 4  ;;  %v787_v1 = vrot.slane %v785_v41, 4  ;;  %v798_v34 = vshrl.u32 %v98_v52, 16  ;;  %v804_v42 = vshll.u32 %v99_v49, 16  ;;  %v6737_v8 = vld [vmem:[%s12407_s0 + $0xb8] sm:$0xf] }
 0x124   :  { %v1024_v11 = vsel %vm8555_vm5, %v6543_v3, %v1023_v30  ;;  %v2254_v35 = vsel %vm8555_vm5, %v2252_v9, %v2253_v14  ;;  %v790_v3 = vrot.slane %v788_v4, 5  ;;  %v796_v30 = vrot.slane %v794_v26, 5  ;;  %v6738_v6 = vld [vmem:[%s12407_s0 + $0xbc] sm:$0x1] }
 0x125   :  { %v6997_v45 = vcombine.low %v2251_v31, %v2254_v35  ;;  %v1027_v61 = vsel %vm8555_vm5, %v1025_v56, %v1026_v10  ;;  %v800_v9 = vrot.slane %v798_v34, 4  ;;  %v806_v52 = vrot.slane %v804_v42, 5 }
 0x126   :  { %v6895_v14 = vcombine.low %v1024_v11, %v1027_v61  ;;  %v2798_v49 = vshrl.u32 %v6736_v32, 16  ;;  %v791_v41 = vor.u32 %v790_v3, %v787_v1  ;;  %v2801_v29 = vshll.u32 %v6736_v32, 16 }
 0x127   :  { %4301 = vrot.lane.b32.xlu0 %v6997_v45, %s7819_s19  ;;  %v2807_v13 = vshll.u32 %v6737_v8, 16  ;;  %v2811_v31 = vshrl.u32 %v6737_v8, 16  ;;  %v801_v56 = vor.u32 %v800_v9, %v796_v30  ;;  %v2817_v26 = vshll.u32 %v6738_v6, 16  ;;  %v7604_v8 = vld [vmem:[%s12407_s0 + $0xa8] sm:$0xf] }
 0x128   :  { %v4848_v35 = vsel %vm4693_vm6, %v6895_v14, %v4034_v58  ;;  %v2800_v4 = vrot.slane %v2798_v49, 4  ;;  %v792_v10 = vrot.slane %v791_v41, 4  ;;  %v2803_v53 = vrot.slane %v2801_v29, 5 }
 0x129   :  { %5670 = vmatprep.mubr.bf16.mxu0 %v4848_v35  ;;  %v2809_v24 = vrot.slane %v2807_v13, 5  ;;  %v2813_v36 = vrot.slane %v2811_v31, 4  ;;  %v802_v34 = vrot.slane %v801_v56, 4  ;;  %v2819_v42 = vrot.slane %v2817_v26, 5  ;;  %v3794_v13 = vpop.permute.xlu1 %3793  ;;  %v4050_v31 = vpop.permute.xlu0 %4049 }
 0x12a   :  { %v6831_v61 = vcombine.low %v7601_v40, %v7602_v12  ;;  %v797_v45 = vsel %vm7904_vm2, %v792_v10, %v796_v30  ;;  %v2804_v32 = vor.u32 %v2803_v53, %v2800_v4  ;;  %v6551_v6 = vrot.slane %v7604_v8, 9  ;;  %v7605_v40 = vld [vmem:[%s12407_s0 + $0xac] sm:$0xf]  ;;  %v9852_v4 = vld [vmem:[%s12407_s0 + $0x184] sm:$0xf] }
 0x12b   :  { %v2814_v1 = vor.u32 %v2813_v36, %v2809_v24  ;;  %v807_v29 = vsel %vm7904_vm2, %v802_v34, %v806_v52  ;;  %v1079_v12 = vrot.slane %v7605_v40, 5  ;;  %v7606_v36 = vld [vmem:[%s12407_s0 + $0xb0] sm:$0x1]  ;;  %v1949_v3 = vshrl.u32 %v9625_v16, 16 }
 0x12c   :  { %v4720_v58 = vsel %vm4693_vm6, %v6831_v61, %v3778_v2  ;;  %v1082_v53 = vrot.slane %v7606_v36, 5  ;;  %v6885_v30 = vcombine.low %v797_v45, %v807_v29  ;;  %v2805_v14 = vrot.slane %v2804_v32, 4  ;;  %v9840_v2 = vld [vmem:[%s12407_s0 + $0x180] sm:$0xf]  ;;  %v9868_v29 = vld [vmem:[%s12407_s0 + $0xb0] sm:$0x1] }
 0x12d   :  { %v2815_v9 = vrot.slane %v2814_v1, 4  ;;  %5671 = vmatmul.mubr.bf16.gmra.mrb[24].mxu0 %v4720_v58  ;;  %v12611_v52 = vshrl.u32 %v9522_v19, 16  ;;  %v1080_v35 = vsel %vm8555_vm5, %v6551_v6, %v1079_v12  ;;  %v1081_v56 = vrot.slane %v1079_v12, 4  ;;  %v100_v36 = vld [vmem:[%s12407_s0 + $0x174] sm:$0xf] }
 0x12e   :  { %3821 = vrot.lane.b32.xlu1 %v6885_v30, %s7819_s19  ;;  %v2810_v34 = vsel %vm7904_vm2, %v2805_v14, %v2809_v24  ;;  %v9870_v58 = vrot.slane %v1949_v3, 4  ;;  %v9880_v14 = vpop.permute.xlu1 %3779  ;;  %v7607_v3 = vld [vmem:[%s12407_s0 + $0xa8] sm:$0xf]  ;;  %v7611_v32 = vld [vmem:[%s12407_s0 + $0x5c] sm:$0x1]  ;;  %v809_v41 = vshrl.u32 %v100_v36, 16 }
 0x12f   :  { %v9844_v49 = vrot.slane %v12611_v52, 4  ;;  %v2820_v61 = vsel %vm7904_vm2, %v2815_v9, %v2819_v42  ;;  %v1083_v6 = vsel %vm8555_vm5, %v1081_v56, %v1082_v53  ;;  %v6950_v42 = vcombine.low %v9840_v2, %v9852_v4  ;;  %v7608_v52 = vld [vmem:[%s12407_s0 + $0xac] sm:$0xf]  ;;  %v101_v56 = vld [vmem:[%s12407_s0 + $0x178] sm:$0xf] }
 0x130   :  { %v7062_v1 = vcombine.low %v2810_v34, %v2820_v61  ;;  %12613 = vst [vmem:[#allocation127_spill] sm:$0xff] %v9870_v58  ;;  %v6903_v12 = vcombine.low %v1080_v35, %v1083_v6  ;;  %v6839_v53 = vcombine.low %v7604_v8, %v7605_v40  ;;  %v6678_v9 = vrot.slane %v7607_v3, 9  ;;  %v9897_v40 = vld [vmem:[%s12407_s0 + $0x54] sm:$0xf]  ;;  %v6741_v24 = vld [vmem:[%s12407_s0 + $0xc8] sm:$0x1] }
 0x131   :  { %12612 = vst [vmem:[#allocation126_spill] sm:$0xff] %v9844_v49  ;;  %v2257_v35 = vrot.slane %v7608_v52, 5  ;;  %v2260_v8 = vrot.slane %v9868_v29, 5  ;;  %v6544_v61 = vrot.slane %v9897_v40, 9  ;;  %v1033_v10 = vrot.slane %v7611_v32, 5 }
 0x132   :  { %4559 = vrot.lane.b32.xlu0 %v7062_v1, %s7819_s19  ;;  %v4880_v34 = vsel %vm4693_vm6, %v6903_v12, %v4050_v31  ;;  %4079 = vrot.lane.b32.xlu1 %v6950_v42, %s7819_s19  ;;  %v9903_v1 = vld [vmem:[%s12407_s0 + $0x58] sm:$0xf]  ;;  %v102_v31 = vld [vmem:[%s12407_s0 + $0x17c] sm:$0x1]  ;;  %v4752_v12 = vsel %vm4693_vm6, %v6839_v53, %v3794_v13  ;;  %v4036_v42 = vpop.permute.xlu0 %4035  ;;  %v812_v26 = vshll.u32 %v100_v36, 16  ;;  %v2841_v63 = vshll.u32 %v6741_v24, 16 }
 0x133   :  { %v1030_v6 = vrot.slane %v9903_v1, 5  ;;  %5734 = vmatprep.mubr.bf16.mxu1 %v4880_v34  ;;  %v2258_v3 = vsel %vm8555_vm5, %v6678_v9, %v2257_v35  ;;  %v2259_v52 = vrot.slane %v2257_v35, 4  ;;  %v6739_v13 = vld [vmem:[%s12407_s0 + $0xc0] sm:$0xf]  ;;  %v818_v9 = vshll.u32 %v101_v56, 16 }
 0x134   :  { %5735 = vmatmul.mubr.bf16.gmra.mrb[24].mxu1 %v4752_v12  ;;  %v822_v35 = vshrl.u32 %v101_v56, 16  ;;  %v828_v34 = vshll.u32 %v102_v31, 16  ;;  %v6740_v32 = vld [vmem:[%s12407_s0 + $0xc4] sm:$0xf]  ;;  %v814_v36 = vrot.slane %v812_v26, 5  ;;  %v9930_v56 = vpop.permute.xlu1 %3795  ;;  %v2822_v49 = vshrl.u32 %v6739_v13, 16 }
 0x135   :  { %v1031_v30 = vsel %vm8555_vm5, %v6544_v61, %v1030_v6  ;;  %v1032_v11 = vrot.slane %v1030_v6, 4  ;;  %v2261_v53 = vsel %vm8555_vm5, %v2259_v52, %v2260_v8  ;;  %v811_v6 = vrot.slane %v809_v41, 4 }
 0x136   :  { %v6998_v12 = vcombine.low %v2258_v3, %v2261_v53  ;;  %v820_v58 = vrot.slane %v818_v9, 5  ;;  %v824_v8 = vrot.slane %v822_v35, 4  ;;  %v830_v52 = vrot.slane %v828_v34, 5  ;;  %v4052_v26 = vpop.permute.xlu0 %4051 }
 0x137   :  { %v1034_v61 = vsel %vm8555_vm5, %v1032_v11, %v1033_v10  ;;  %v815_v31 = vor.u32 %v814_v36, %v811_v6  ;;  %v2825_v3 = vshll.u32 %v6739_v13, 16  ;;  %v2831_v53 = vshll.u32 %v6740_v32, 16 }
 0x138   :  { %v6896_v45 = vcombine.low %v1031_v30, %v1034_v61  ;;  %4303 = vrot.lane.b32.xlu0 %v6998_v12, %s7819_s19  ;;  %v825_v41 = vor.u32 %v824_v8, %v820_v58  ;;  %v2835_v10 = vshrl.u32 %v6740_v32, 16  ;;  %v2824_v30 = vrot.slane %v2822_v49, 4  ;;  %v7612_v49 = vld [vmem:[%s12407_s0 + $0xb4] sm:$0xf] }
 0x139   :  { %v816_v17 = vrot.slane %v815_v31, 4  ;;  %v2827_v9 = vrot.slane %v2825_v3, 5  ;;  %v2833_v35 = vrot.slane %v2831_v53, 5  ;;  %v12614_v34 = vshll.u32 %v9625_v16, 16 }
 0x13a   :  { %v4852_v11 = vsel %vm4693_vm6, %v6896_v45, %v4036_v42  ;;  %v826_v12 = vrot.slane %v825_v41, 4  ;;  %v2837_v6 = vrot.slane %v2835_v10, 4  ;;  %v2843_v36 = vrot.slane %v2841_v63, 5  ;;  %v7613_v63 = vld [vmem:[%s12407_s0 + $0xb8] sm:$0xf] }
 0x13b   :  { %5678 = vmatprep.mubr.bf16.mxu0 %v4852_v11  ;;  %v9936_v61 = vrot.slane %v12614_v34, 5  ;;  %v821_v13 = vsel %vm7904_vm2, %v816_v17, %v820_v58  ;;  %v2828_v45 = vor.u32 %v2827_v9, %v2824_v30  ;;  %v6832_v42 = vcombine.low %v9897_v40, %v9903_v1  ;;  %v7614_v17 = vld [vmem:[%s12407_s0 + $0xbc] sm:$0x1]  ;;  %v9953_v40 = vpop.permute.xlu1 %4053  ;;  %v9964_v9 = vld [vmem:[%s12407_s0 + $0x18c] sm:$0xf]  ;;  %v4534_v34 = vpop.permute.xlu0 %4533 }
 0x13c   :  { %v6552_v24 = vrot.slane %v7612_v49, 9  ;;  %v831_v32 = vsel %vm7904_vm2, %v826_v12, %v830_v52  ;;  %v2838_v8 = vor.u32 %v2837_v6, %v2833_v35  ;;  %v1086_v31 = vrot.slane %v7613_v63, 5 }
 0x13d   :  { %12615 = vst [vmem:[#allocation128_spill] sm:$0xff] %v9936_v61  ;;  %v1089_v58 = vrot.slane %v7614_v17, 5  ;;  %v1973_v1 = vshrl.u32 %v9740_v51, 16  ;;  %v6886_v3 = vcombine.low %v821_v13, %v831_v32  ;;  %v2829_v53 = vrot.slane %v2828_v45, 4  ;;  %v9989_v17 = vld [vmem:[%s12407_s0 + $0xbc] sm:$0x1] }
 0x13e   :  { %v4724_v52 = vsel %vm4693_vm6, %v6832_v42, %v9880_v14  ;;  %v1976_v11 = vshll.u32 %v9740_v51, 16  ;;  %v2839_v41 = vrot.slane %v2838_v8, 4  ;;  %v1087_v10 = vsel %vm8555_vm5, %v6552_v24, %v1086_v31  ;;  %v9978_v42 = vld [vmem:[%s12407_s0 + $0x190] sm:$0xf] }
 0x13f   :  { %5679 = vmatmul.mubr.bf16.gmra.mrb[28].mxu0 %v4724_v52  ;;  %v1088_v30 = vrot.slane %v1086_v31, 4  ;;  %v12616_v12 = vshrl.u32 %v9642_v62, 16  ;;  %3823 = vrot.lane.b32.xlu1 %v6886_v3, %s7819_s19  ;;  %v2834_v45 = vsel %vm7904_vm2, %v2829_v53, %v2833_v35  ;;  %v9991_v35 = vrot.slane %v1973_v1, 4  ;;  %v7615_v1 = vld [vmem:[%s12407_s0 + $0xb4] sm:$0xf]  ;;  %v4278_v3 = vpop.permute.xlu0 %4277 }
 0x140   :  { %v2844_v8 = vsel %vm7904_vm2, %v2839_v41, %v2843_v36  ;;  %v104_v36 = vld [vmem:[%s12407_s0 + $0x184] sm:$0xf]  ;;  %v6951_v41 = vcombine.low %v9964_v9, %v9978_v42  ;;  %v2267_v32 = vrot.slane %v9989_v17, 5 }
 0x141   :  { %v9968_v6 = vrot.slane %v12616_v12, 4  ;;  %v1090_v31 = vsel %vm8555_vm5, %v1088_v30, %v1089_v58  ;;  %12618 = vst [vmem:[#allocation130_spill] sm:$0xff] %v9991_v35  ;;  %v7063_v53 = vcombine.low %v2834_v45, %v2844_v8  ;;  %v103_v12 = vld [vmem:[%s12407_s0 + $0x180] sm:$0xf]  ;;  %v10000_v58 = vrot.slane %v1976_v11, 5 }
 0x142   :  { %v6904_v52 = vcombine.low %v1087_v10, %v1090_v31  ;;  %v6840_v30 = vcombine.low %v7612_v49, %v7613_v63  ;;  %v6679_v45 = vrot.slane %v7615_v1, 9  ;;  %v10007_v10 = vpop.permute.xlu1 %3797  ;;  %v7616_v11 = vld [vmem:[%s12407_s0 + $0xb8] sm:$0xf]  ;;  %v7618_v63 = vld [vmem:[%s12407_s0 + $0x1c] sm:$0xf]  ;;  %v842_v24 = vshll.u32 %v104_v36, 16 }
 0x143   :  { %12617 = vst [vmem:[#allocation129_spill] sm:$0xff] %v9968_v6  ;;  %12619 = vst [vmem:[#allocation131_spill] sm:$0xff] %v10000_v58  ;;  %4561 = vrot.lane.b32.xlu0 %v7063_v53, %s7819_s19  ;;  %v2264_v31 = vrot.slane %v7616_v11, 5  ;;  %v7617_v49 = vld [vmem:[%s12407_s0 + $0x18] sm:$0xf]  ;;  %4081 = vrot.lane.b32.xlu1 %v6951_v41, %s7819_s19  ;;  %v836_v11 = vshll.u32 %v103_v12, 16 }
 0x144   :  { %v4884_v8 = vsel %vm4693_vm6, %v6904_v52, %v4052_v26  ;;  %v7017_v1 = vcombine.low %v7617_v49, %v7618_v63  ;;  %v105_v26 = vld [vmem:[%s12407_s0 + $0x188] sm:$0x1]  ;;  %v4756_v53 = vsel %vm4693_vm6, %v6840_v30, %v9930_v56  ;;  %v833_v52 = vshrl.u32 %v103_v12, 16  ;;  %v10035_v12 = vld [vmem:[%s12407_s0 + $0xd8] sm:$0xf] }
 0x145   :  { %5742 = vmatprep.mubr.bf16.mxu1 %v4884_v8  ;;  %v2265_v14 = vsel %vm8555_vm5, %v6679_v45, %v2264_v31  ;;  %v2266_v13 = vrot.slane %v2264_v31, 4  ;;  %v846_v63 = vshrl.u32 %v104_v36, 16  ;;  %v838_v8 = vrot.slane %v836_v11, 5 }
 0x146   :  { %5743 = vmatmul.mubr.bf16.gmra.mrb[28].mxu1 %v4756_v53  ;;  %v5080_v49 = vsel %vm4693_vm6, %v7017_v1, %v4534_v34  ;;  %v835_v58 = vrot.slane %v833_v52, 4  ;;  %v844_v35 = vrot.slane %v842_v24, 5  ;;  %v852_v41 = vshll.u32 %v105_v26, 16  ;;  %v10041_v34 = vld [vmem:[%s12407_s0 + $0xdc] sm:$0xf]  ;;  %v10050_v53 = vpop.permute.xlu1 %4055 }
 0x147   :  { %5911 = vmatprep.mubr.bf16.mxu0 %v5080_v49  ;;  %v2268_v56 = vsel %vm8555_vm5, %v2266_v13, %v2267_v32  ;;  %v848_v30 = vrot.slane %v846_v63, 4  ;;  %v6553_v45 = vrot.slane %v10035_v12, 9  ;;  %v1093_v36 = vrot.slane %v10041_v34, 5  ;;  %v6742_v24 = vld [vmem:[%s12407_s0 + $0xcc] sm:$0xf] }
 0x148   :  { %v6999_v13 = vcombine.low %v2265_v14, %v2268_v56  ;;  %v839_v32 = vor.u32 %v838_v8, %v835_v58  ;;  %v854_v31 = vrot.slane %v852_v41, 5  ;;  %v7621_v1 = vld [vmem:[%s12407_s0 + $0xe0] sm:$0x1]  ;;  %v12620_v63 = vor.u32 %v8013_v48, %v7969_v22  ;;  %v6743_v14 = vld [vmem:[%s12407_s0 + $0xd0] sm:$0xf]  ;;  %v7510_v22 = vld [vmem:[%s12408_s1 + $0x118] sm:$0xff]  }
 0x149   :  { %v1096_v26 = vrot.slane %v7621_v1, 5  ;;  %v849_v52 = vor.u32 %v848_v30, %v844_v35  ;;  %v1094_v11 = vsel %vm8555_vm5, %v6553_v45, %v1093_v36  ;;  %v1095_v49 = vrot.slane %v1093_v36, 4  ;;  %v10066_v36 = vpop.permute.xlu0 %4535  ;;  %7223 = vmatprep.subr.bf16.mxu1 %v7510_v22 }
 0x14a   :  { %v1308_v6 = vrot.slane %v12620_v63, 4  ;;  %4305 = vrot.lane.b32.xlu0 %v6999_v13, %s7819_s19  ;;  %v840_v58 = vrot.slane %v839_v32, 4  ;;  %v12621_v8 = vor.u32 %v8009_v47, %v7967_v21  ;;  %v12622_v56 = vshll.u32 %v8520_v28, 16  ;;  %v6744_v47 = vld [vmem:[%s12407_s0 + $0xd4] sm:$0x1]  ;;  %7224 = vmatpush3.bf16.msra.mxu1 %v7510_v22 }
 0x14b   :  { %v2846_v45 = vshrl.u32 %v6742_v24, 16  ;;  %v850_v48 = vrot.slane %v849_v52, 4  ;;  %v1097_v1 = vsel %vm8555_vm5, %v1095_v49, %v1096_v26  ;;  %v2849_v28 = vshll.u32 %v6742_v24, 16 }
 0x14c   :  { %v1318_v41 = vrot.slane %v12621_v8, 4  ;;  %v1322_v30 = vrot.slane %v12622_v56, 5  ;;  %v1313_v13 = vsel %vm7904_vm2, %v1308_v6, %v7967_v21  ;;  %v845_v32 = vsel %vm7904_vm2, %v840_v58, %v844_v35  ;;  %v10087_v35 = vpop.permute.xlu1 %3799 }
 0x14d   :  { %v6905_v63 = vcombine.low %v1094_v11, %v1097_v1  ;;  %v2848_v52 = vrot.slane %v2846_v45, 4  ;;  %v855_v26 = vsel %vm7904_vm2, %v850_v48, %v854_v31  ;;  %v2851_v56 = vrot.slane %v2849_v28, 5  ;;  %v10094_v31 = vld [vmem:[%s12407_s0 + $0x198] sm:$0xf]  ;;  %v10105_v48 = vpop.permute.xlu0 %4279 }
 0x14e   :  { %v1323_v8 = vsel %vm7904_vm2, %v1318_v41, %v1322_v30  ;;  %v2855_v21 = vshll.u32 %v6743_v14, 16  ;;  %v6887_v6 = vcombine.low %v845_v32, %v855_v26  ;;  %v2859_v61 = vshrl.u32 %v6743_v14, 16  ;;  %v106_v32 = vld [vmem:[%s12407_s0 + $0x18c] sm:$0xf]  ;;  %v10118_v26 = vld [vmem:[%s12407_s0 + $0xc8] sm:$0x1] }
 0x14f   :  { %v6953_v49 = vcombine.low %v1313_v13, %v1323_v8  ;;  %v4888_v24 = vsel %vm4693_vm6, %v6905_v63, %v9953_v40  ;;  %v2865_v39 = vshll.u32 %v6744_v47, 16  ;;  %v2852_v41 = vor.u32 %v2851_v56, %v2848_v52  ;;  %v107_v56 = vld [vmem:[%s12407_s0 + $0x190] sm:$0xf]  ;;  %v12727_v40 = vld [vmem:[#allocation14_spill] sm:$0xff] }
 0x150   :  { %5750 = vmatprep.mubr.bf16.mxu1 %v4888_v24  ;;  %v2857_v30 = vrot.slane %v2855_v21, 5  ;;  %3825 = vrot.lane.b32.xlu1 %v6887_v6, %s7819_s19  ;;  %v2861_v22 = vrot.slane %v2859_v61, 4  ;;  %v6841_v6 = vcombine.low %v10035_v12, %v10041_v34  ;;  %v10137_v47 = vpop.permute.xlu1 %4057  ;;  %v2274_v34 = vrot.slane %v10118_v26, 5 }
 0x151   :  { %v4952_v58 = vsel %vm4693_vm6, %v6953_v49, %v4278_v3  ;;  %v10103_v3 = vld [vmem:[%s12407_s0 + $0x19c] sm:$0xf]  ;;  %v2853_v28 = vrot.slane %v2852_v41, 4  ;;  %v2867_v52 = vrot.slane %v2865_v39, 5  ;;  %v7622_v39 = vld [vmem:[%s12407_s0 + $0xc0] sm:$0xf]  ;;  %v10156_v14 = vpop.permute.xlu0 %4537 }
 0x152   :  { %5912 = vmatmul.mubr.bf16.vlgmr.msra.gmra.mrb[0].mxu0 %v4952_v58  ;;  %v2862_v8 = vor.u32 %v2861_v22, %v2857_v30  ;;  %v6952_v21 = vcombine.low %v10094_v31, %v10103_v3  ;;  %v6680_v41 = vrot.slane %v7622_v39, 9  ;;  %v7623_v22 = vld [vmem:[%s12407_s0 + $0xc4] sm:$0xf]  ;;  %v4760_v12 = vsel %vm4693_vm6, %v6841_v6, %v10007_v10  ;;  %v108_v39 = vld [vmem:[%s12407_s0 + $0x194] sm:$0x1] }
 0x153   :  { %v2858_v24 = vsel %vm7904_vm2, %v2853_v28, %v2857_v30  ;;  %v2271_v49 = vrot.slane %v7623_v22, 5  ;;  %v7624_v30 = vld [vmem:[%s12407_s0 + $0x24] sm:$0xf]  ;;  %v7625_v28 = vld [vmem:[%s12407_s0 + $0x28] sm:$0xf]  ;;  %v857_v22 = vshrl.u32 %v106_v32, 16  ;;  %5751 = vmatmul.mubr.bf16.gmra.mrb[32].mxu1 %v4760_v12 }
 0x154   :  { %v2863_v58 = vrot.slane %v2862_v8, 4  ;;  %4083 = vrot.lane.b32.xlu1 %v6952_v21, %s7819_s19  ;;  %v7018_v8 = vcombine.low %v7624_v30, %v7625_v28  ;;  %v860_v61 = vshll.u32 %v106_v32, 16  ;;  %v866_v63 = vshll.u32 %v107_v56, 16  ;;  %v7626_v32 = vld [vmem:[%s12407_s0 + $0xe4] sm:$0xf] }
 0x155   :  { %v2272_v10 = vsel %vm8555_vm5, %v6680_v41, %v2271_v49  ;;  %v2273_v6 = vrot.slane %v2271_v49, 4  ;;  %v859_v28 = vrot.slane %v857_v22, 4 }
 0x156   :  { %v2868_v21 = vsel %vm7904_vm2, %v2863_v58, %v2867_v52  ;;  %v5084_v30 = vsel %vm4693_vm6, %v7018_v8, %v10066_v36  ;;  %v862_v45 = vrot.slane %v860_v61, 5  ;;  %v870_v52 = vshrl.u32 %v107_v56, 16  ;;  %v7627_v36 = vld [vmem:[%s12407_s0 + $0xe8] sm:$0xf]  ;;  %v7628_v61 = vld [vmem:[%s12407_s0 + $0xec] sm:$0x1] }
 0x157   :  { %v7064_v1 = vcombine.low %v2858_v24, %v2868_v21  ;;  %v2275_v11 = vsel %vm8555_vm5, %v2273_v6, %v2274_v34  ;;  %5919 = vmatprep.mubr.bf16.mxu0 %v5084_v30  ;;  %v876_v58 = vshll.u32 %v108_v39, 16  ;;  %v868_v49 = vrot.slane %v866_v63, 5  ;;  %v10175_v63 = vpop.permute.xlu1 %3801 }
 0x158   :  { %v7000_v41 = vcombine.low %v2272_v10, %v2275_v11  ;;  %v6554_v24 = vrot.slane %v7626_v32, 9  ;;  %v1100_v12 = vrot.slane %v7627_v36, 5  ;;  %v863_v8 = vor.u32 %v862_v45, %v859_v28  ;;  %v6745_v11 = vld [vmem:[%s12407_s0 + $0xf0] sm:$0xf] }
 0x159   :  { %4563 = vrot.lane.b32.xlu0 %v7064_v1, %s7819_s19  ;;  %v872_v34 = vrot.slane %v870_v52, 4  ;;  %v878_v22 = vrot.slane %v876_v58, 5  ;;  %v1103_v1 = vrot.slane %v7628_v61, 5  ;;  %v1331_v45 = vor.u32 %v8059_v23, %v8030_v59  ;;  %v10185_v61 = vpop.permute.xlu0 %4281 }
 0x15a   :  { %v1101_v56 = vsel %vm8555_vm5, %v6554_v24, %v1100_v12  ;;  %v1102_v39 = vrot.slane %v1100_v12, 4  ;;  %v12623_v21 = vshll.u32 %v7948_v5, 16  ;;  %v864_v6 = vrot.slane %v863_v8, 4  ;;  %v6746_v5 = vld [vmem:[%s12407_s0 + $0xf4] sm:$0xf] }
 0x15b   :  { %v873_v30 = vor.u32 %v872_v34, %v868_v49  ;;  %v12624_v28 = vshll.u32 %v8613_v44, 16  ;;  %v6842_v58 = vcombine.low %v7626_v32, %v7627_v36  ;;  %v1332_v12 = vrot.slane %v1331_v45, 4 }
 0x15c   :  { %v1336_v10 = vrot.slane %v12623_v21, 5  ;;  %v1104_v24 = vsel %vm8555_vm5, %v1102_v39, %v1103_v1  ;;  %v2870_v59 = vshrl.u32 %v6745_v11, 16  ;;  %v869_v23 = vsel %vm7904_vm2, %v864_v6, %v868_v49  ;;  %v10207_v21 = vpop.permute.xlu1 %4059 }
 0x15d   :  { %v1346_v52 = vrot.slane %v12624_v28, 5  ;;  %4307 = vrot.lane.b32.xlu0 %v7000_v41, %s7819_s19  ;;  %v874_v44 = vrot.slane %v873_v30, 4  ;;  %v6906_v32 = vcombine.low %v1101_v56, %v1104_v24  ;;  %v4764_v36 = vsel %vm4693_vm6, %v6842_v58, %v10087_v35  ;;  %v6747_v41 = vld [vmem:[%s12407_s0 + $0xf8] sm:$0x1]  ;;  %v10217_v58 = vpop.permute.xlu0 %4539 }
 0x15e   :  { %v1341_v13 = vor.u32 %v8063_v27, %v1336_v10  ;;  %v1337_v27 = vsel %vm7904_vm2, %v1332_v12, %v1336_v10  ;;  %v2872_v34 = vrot.slane %v2870_v59, 4  ;;  %v2873_v1 = vshll.u32 %v6745_v11, 16 }
 0x15f   :  { %v879_v39 = vsel %vm7904_vm2, %v874_v44, %v878_v22  ;;  %v4892_v49 = vsel %vm4693_vm6, %v6906_v32, %v10050_v53  ;;  %v2879_v56 = vshll.u32 %v6746_v5, 16  ;;  %v2883_v45 = vshrl.u32 %v6746_v5, 16  ;;  %v7629_v5 = vld [vmem:[%s12407_s0 + $0xe4] sm:$0xf]  ;;  %v7630_v32 = vld [vmem:[%s12407_s0 + $0xe8] sm:$0xf] }
 0x160   :  { %v1342_v8 = vrot.slane %v1341_v13, 4  ;;  %v6888_v35 = vcombine.low %v869_v23, %v879_v39  ;;  %5758 = vmatprep.mubr.bf16.mxu1 %v4892_v49  ;;  %v2875_v30 = vrot.slane %v2873_v1, 5  ;;  %v2889_v10 = vshll.u32 %v6747_v41, 16  ;;  %v10214_v13 = vld [vmem:[%s12407_s0 + $0xec] sm:$0x1] }
 0x161   :  { %5759 = vmatmul.mubr.bf16.gmra.mrb[36].mxu1 %v4764_v36  ;;  %v2881_v53 = vrot.slane %v2879_v56, 5  ;;  %v2885_v28 = vrot.slane %v2883_v45, 4  ;;  %v6681_v59 = vrot.slane %v7629_v5, 9  ;;  %v2278_v36 = vrot.slane %v7630_v32, 5  ;;  %v7634_v49 = vld [vmem:[%s12407_s0 + $0xf4] sm:$0xf] }
 0x162   :  { %v1347_v6 = vsel %vm7904_vm2, %v1342_v8, %v1346_v52  ;;  %3827 = vrot.lane.b32.xlu1 %v6888_v35, %s7819_s19  ;;  %v2876_v24 = vor.u32 %v2875_v30, %v2872_v34  ;;  %v2891_v12 = vrot.slane %v2889_v10, 5  ;;  %v2281_v41 = vrot.slane %v10214_v13, 5  ;;  %v7631_v8 = vld [vmem:[%s12407_s0 + $0x30] sm:$0xf]  ;;  %v7632_v34 = vld [vmem:[%s12407_s0 + $0x34] sm:$0xf] }
 0x163   :  { %v6954_v11 = vcombine.low %v1337_v27, %v1347_v6  ;;  %v2886_v44 = vor.u32 %v2885_v28, %v2881_v53  ;;  %v7019_v1 = vcombine.low %v7631_v8, %v7632_v34  ;;  %v1107_v56 = vrot.slane %v7634_v49, 5  ;;  %v7635_v30 = vld [vmem:[%s12407_s0 + $0xf8] sm:$0x1]  ;;  %v10269_v8 = vpop.permute.xlu0 %4283 }
 0x164   :  { %v2877_v27 = vrot.slane %v2876_v24, 4  ;;  %v2279_v35 = vsel %vm8555_vm5, %v6681_v59, %v2278_v36  ;;  %v2280_v6 = vrot.slane %v2278_v36, 4  ;;  %v1110_v10 = vrot.slane %v7635_v30, 5 }
 0x165   :  { %v4956_v23 = vsel %vm4693_vm6, %v6954_v11, %v10105_v48  ;;  %v7633_v48 = vld [vmem:[%s12407_s0 + $0xf0] sm:$0xf]  ;;  %v2887_v45 = vrot.slane %v2886_v44, 4  ;;  %v10247_v11 = vpop.permute.xlu1 %3803  ;;  %v5088_v24 = vsel %vm4693_vm6, %v7019_v1, %v10156_v14  ;;  %v1355_v32 = vor.u32 %v8155_v54, %v8148_v43  ;;  %v6748_v14 = vld [vmem:[%s12407_s0 + $0xfc] sm:$0xf] }
 0x166   :  { %5920 = vmatmul.mubr.bf16.gmra.mrb[4].mxu0 %v4956_v23  ;;  %v6555_v39 = vrot.slane %v7633_v48, 9  ;;  %v2882_v28 = vsel %vm7904_vm2, %v2877_v27, %v2881_v53  ;;  %v1109_v23 = vrot.slane %v1107_v56, 4  ;;  %v2282_v44 = vsel %vm8555_vm5, %v2280_v6, %v2281_v41  ;;  %v6749_v27 = vld [vmem:[%s12407_s0 + $0x100] sm:$0xf] }
 0x167   :  { %v2892_v59 = vsel %vm7904_vm2, %v2887_v45, %v2891_v12  ;;  %5927 = vmatprep.mubr.bf16.mxu0 %v5088_v24  ;;  %v12625_v36 = vshll.u32 %v8006_v46, 16  ;;  %v7001_v34 = vcombine.low %v2279_v35, %v2282_v44  ;;  %v12626_v43 = vshll.u32 %v8693_v0, 16  ;;  %v6750_v45 = vld [vmem:[%s12407_s0 + $0x104] sm:$0x1] }
 0x168   :  { %v1108_v5 = vsel %vm8555_vm5, %v6555_v39, %v1107_v56  ;;  %v7065_v12 = vcombine.low %v2882_v28, %v2892_v59  ;;  %v1111_v41 = vsel %vm8555_vm5, %v1109_v23, %v1110_v10  ;;  %v1356_v1 = vrot.slane %v1355_v32, 4 }
 0x169   :  { %v1360_v53 = vrot.slane %v12625_v36, 5  ;;  %v1370_v54 = vrot.slane %v12626_v43, 5  ;;  %v6907_v46 = vcombine.low %v1108_v5, %v1111_v41  ;;  %v6843_v56 = vcombine.low %v7633_v48, %v7634_v49  ;;  %4309 = vrot.lane.b32.xlu1 %v7001_v34, %s7819_s19  ;;  %v6622_v49 = vld [vmem:[%s12407_s0 + $0xf8] sm:$0x1]  ;;  %v10290_v24 = vpop.permute.xlu1 %4061 }
 0x16a   :  { %4565 = vrot.lane.b32.xlu0 %v7065_v12, %s7819_s19  ;;  %v2894_v35 = vshrl.u32 %v6748_v14, 16  ;;  %v2897_v6 = vshll.u32 %v6748_v14, 16  ;;  %v2903_v30 = vshll.u32 %v6749_v27, 16  ;;  %v2907_v10 = vshrl.u32 %v6749_v27, 16  ;;  %v10302_v12 = vpop.permute.xlu0 %4541 }
 0x16b   :  { %v1365_v39 = vor.u32 %v8157_v55, %v1360_v53  ;;  %v4896_v0 = vsel %vm4693_vm6, %v6907_v46, %v10137_v47  ;;  %v1361_v28 = vsel %vm7904_vm2, %v1356_v1, %v1360_v53  ;;  %v4768_v48 = vsel %vm4693_vm6, %v6843_v56, %v10175_v63  ;;  %v7638_v56 = vld [vmem:[%s12407_s0 + $0xfc] sm:$0xf] }
 0x16c   :  { %5766 = vmatprep.mubr.bf16.mxu1 %v4896_v0  ;;  %v2896_v5 = vrot.slane %v2894_v35, 4  ;;  %v2899_v23 = vrot.slane %v2897_v6, 5  ;;  %v2905_v59 = vrot.slane %v2903_v30, 5  ;;  %v2909_v44 = vrot.slane %v2907_v10, 4  ;;  %v7639_v35 = vld [vmem:[%s12407_s0 + $0x100] sm:$0xf] }
 0x16d   :  { %v1366_v55 = vrot.slane %v1365_v39, 4  ;;  %5767 = vmatmul.mubr.bf16.gmra.mrb[40].mxu1 %v4768_v48  ;;  %v2913_v32 = vshll.u32 %v6750_v45, 16  ;;  %v12627_v36 = vrot.slane %v8608_v18, 5  ;;  %v12628_v63 = vrot.slane %v8601_v7, 9  ;;  %v7637_v7 = vld [vmem:[%s12407_s0 + $0x40] sm:$0xf] }
 0x16e   :  { %v2900_v41 = vor.u32 %v2899_v23, %v2896_v5  ;;  %v2910_v43 = vor.u32 %v2909_v44, %v2905_v59  ;;  %v2288_v46 = vrot.slane %v6622_v49, 5  ;;  %v6556_v45 = vrot.slane %v7638_v56, 9  ;;  %v6751_v23 = vld [vmem:[%s12407_s0 + $0x108] sm:$0xf]  ;;  %v10327_v44 = vpop.permute.xlu1 %3805 }
 0x16f   :  { %v1371_v47 = vsel %vm7904_vm2, %v1366_v55, %v1370_v54  ;;  %v2286_v53 = vsel %vm8555_vm5, %v12628_v63, %v12627_v36  ;;  %v12629_v14 = vmov %v12627_v36  ;;  %v2915_v1 = vrot.slane %v2913_v32, 5  ;;  %v7636_v54 = vld [vmem:[%s12407_s0 + $0x3c] sm:$0xf]  ;;  %v6752_v63 = vld [vmem:[%s12407_s0 + $0x10c] sm:$0xf] }
 0x170   :  { %v2287_v27 = vrot.slane %v12629_v14, 4  ;;  %v6955_v34 = vcombine.low %v1361_v28, %v1371_v47  ;;  %v7020_v39 = vcombine.low %v7636_v54, %v7637_v7  ;;  %v1114_v6 = vrot.slane %v7639_v35, 5 }
 0x171   :  { %v2901_v10 = vrot.slane %v2900_v41, 4  ;;  %v2911_v0 = vrot.slane %v2910_v43, 4  ;;  %v1379_v36 = vor.u32 %v8237_v33, %v8227_v25  ;;  %v6844_v43 = vcombine.low %v7638_v56, %v7639_v35  ;;  %v6753_v33 = vld [vmem:[%s12407_s0 + $0x110] sm:$0x1] }
 0x172   :  { %v4960_v30 = vsel %vm4693_vm6, %v6955_v34, %v10185_v61  ;;  %v2289_v28 = vsel %vm8555_vm5, %v2287_v27, %v2288_v46  ;;  %v5092_v48 = vsel %vm4693_vm6, %v7020_v39, %v10217_v58  ;;  %v1115_v49 = vsel %vm8555_vm5, %v6556_v45, %v1114_v6  ;;  %v7640_v58 = vld [vmem:[%s12407_s0 + $0x104] sm:$0x1]  ;;  %v12631_v27 = vld [vmem:[#allocation67_spill] sm:$0xff]  ;;  %v10346_v46 = vpop.permute.xlu0 %4285 }
 0x173   :  { %5928 = vmatmul.mubr.bf16.gmra.mrb[8].mxu0 %v4960_v30  ;;  %v7002_v55 = vcombine.low %v2286_v53, %v2289_v28  ;;  %v1116_v5 = vrot.slane %v1114_v6, 4  ;;  %v2906_v61 = vsel %vm7904_vm2, %v2901_v10, %v2905_v59  ;;  %v2916_v47 = vsel %vm7904_vm2, %v2911_v0, %v2915_v1  ;;  %v12633_v39 = vld [vmem:[#allocation21_spill] sm:$0xff] }
 0x174   :  { %5935 = vmatprep.mubr.bf16.mxu0 %v5092_v48  ;;  %v1117_v32 = vrot.slane %v7640_v58, 5  ;;  %v7066_v53 = vcombine.low %v2906_v61, %v2916_v47  ;;  %v12630_v59 = vshll.u32 %v8100_v60, 16  ;;  %v12632_v34 = vshll.u32 %v12631_v27, 16  ;;  %v6625_v28 = vld [vmem:[%s12407_s0 + $0x104] sm:$0x1]  ;;  %v12634_v47 = vld [vmem:[#allocation58_spill] sm:$0xff] }
 0x175   :  { %4311 = vrot.lane.b32.xlu1 %v7002_v55, %s7819_s19  ;;  %v1380_v25 = vrot.slane %v1379_v36, 4  ;;  %v2918_v54 = vshrl.u32 %v6751_v23, 16  ;;  %v2921_v7 = vshll.u32 %v6751_v23, 16  ;;  %v4772_v56 = vsel %vm4693_vm6, %v6844_v43, %v10247_v11  ;;  %v10364_v23 = vpop.permute.xlu1 %4063  ;;  %v7642_v43 = vld [vmem:[%s12407_s0 + $0x4c] sm:$0xf] }
 0x176   :  { %v1384_v14 = vrot.slane %v12630_v59, 5  ;;  %v1394_v41 = vrot.slane %v12632_v34, 5  ;;  %v1118_v1 = vsel %vm8555_vm5, %v1116_v5, %v1117_v32  ;;  %4567 = vrot.lane.b32.xlu0 %v7066_v53, %s7819_s19  ;;  %v2927_v35 = vshll.u32 %v6752_v63, 16  ;;  %v12636_v32 = vld [vmem:[#allocation57_spill] sm:$0xff]  ;;  %v7641_v34 = vld [vmem:[%s12407_s0 + $0x48] sm:$0xf] }
 0x177   :  { %v6908_v60 = vcombine.low %v1115_v49, %v1118_v1  ;;  %v2920_v30 = vrot.slane %v2918_v54, 4  ;;  %v2923_v10 = vrot.slane %v2921_v7, 5  ;;  %v2931_v0 = vshrl.u32 %v6752_v63, 16 }
 0x178   :  { %v1389_v45 = vor.u32 %v12633_v39, %v1384_v14  ;;  %v1385_v6 = vsel %vm7904_vm2, %v1380_v25, %v1384_v14  ;;  %v2929_v49 = vrot.slane %v2927_v35, 5  ;;  %v2937_v5 = vshll.u32 %v6753_v33, 16  ;;  %v10382_v25 = vpop.permute.xlu0 %4543 }
 0x179   :  { %v4900_v55 = vsel %vm4693_vm6, %v6908_v60, %v10207_v21  ;;  %v2924_v11 = vor.u32 %v2923_v10, %v2920_v30  ;;  %v2933_v61 = vrot.slane %v2931_v0, 4  ;;  %v12635_v58 = vrot.slane %v12634_v47, 5  ;;  %v6754_v10 = vld [vmem:[%s12407_s0 + $0x114] sm:$0xf] }
 0x17a   :  { %v1390_v48 = vrot.slane %v1389_v45, 4  ;;  %5774 = vmatprep.mubr.bf16.mxu1 %v4900_v55  ;;  %v12637_v36 = vrot.slane %v12636_v32, 9  ;;  %v2939_v14 = vrot.slane %v2937_v5, 5  ;;  %v2295_v27 = vrot.slane %v6625_v28, 5  ;;  %v12641_v32 = vld [vmem:[#allocation15_spill] sm:$0xff] }
 0x17b   :  { %v12638_v53 = vmov %v12635_v58  ;;  %5775 = vmatmul.mubr.bf16.gmra.mrb[44].mxu1 %v4772_v56  ;;  %v7021_v1 = vcombine.low %v7641_v34, %v7642_v43  ;;  %v2925_v54 = vrot.slane %v2924_v11, 4  ;;  %v2934_v7 = vor.u32 %v2933_v61, %v2929_v49  ;;  %v7644_v56 = vld [vmem:[%s12407_s0 + $0x10c] sm:$0xf]  ;;  %v12640_v61 = vld [vmem:[#allocation28_spill] sm:$0xff] }
 0x17c   :  { %v2293_v63 = vsel %vm8555_vm5, %v12637_v36, %v12635_v58  ;;  %v2294_v59 = vrot.slane %v12638_v53, 4  ;;  %v1395_v21 = vsel %vm7904_vm2, %v1390_v48, %v1394_v41  ;;  %v7643_v41 = vld [vmem:[%s12407_s0 + $0x108] sm:$0xf]  ;;  %v1121_v35 = vrot.slane %v7644_v56, 5  ;;  %v6755_v34 = vld [vmem:[%s12407_s0 + $0x118] sm:$0xf] }
 0x17d   :  { %v6956_v33 = vcombine.low %v1385_v6, %v1395_v21  ;;  %v6557_v60 = vrot.slane %v7643_v41, 9  ;;  %v5096_v45 = vsel %vm4693_vm6, %v7021_v1, %v10302_v12  ;;  %v7645_v6 = vld [vmem:[%s12407_s0 + $0x110] sm:$0x1]  ;;  %v2930_v12 = vsel %vm7904_vm2, %v2925_v54, %v2929_v49  ;;  %v12639_v11 = vld [vmem:[#allocation26_spill] sm:$0xff] }
 0x17e   :  { %v2296_v39 = vsel %vm8555_vm5, %v2294_v59, %v2295_v27  ;;  %v1124_v30 = vrot.slane %v7645_v6, 5  ;;  %v2935_v28 = vrot.slane %v2934_v7, 4  ;;  %v1123_v5 = vrot.slane %v1121_v35, 4  ;;  %v10410_v59 = vpop.permute.xlu1 %3807  ;;  %v12643_v49 = vld [vmem:[#allocation75_spill] sm:$0xff]  ;;  %v12645_v7 = vld [vmem:[#allocation29_spill] sm:$0xff] }
 0x17f   :  { %v4964_v0 = vsel %vm4693_vm6, %v6956_v33, %v10269_v8  ;;  %v7003_v55 = vcombine.low %v2293_v63, %v2296_v39  ;;  %v1122_v48 = vsel %vm8555_vm5, %v6557_v60, %v1121_v35  ;;  %v1403_v58 = vor.u32 %v12640_v61, %v12639_v11  ;;  %v10426_v39 = vpop.permute.xlu0 %4287 }
 0x180   :  { %5936 = vmatmul.mubr.bf16.gmra.mrb[12].mxu0 %v4964_v0  ;;  %v12642_v36 = vshll.u32 %v12641_v32, 16  ;;  %v2940_v8 = vsel %vm7904_vm2, %v2935_v28, %v2939_v14  ;;  %v12644_v63 = vshll.u32 %v12643_v49, 16  ;;  %v6845_v27 = vcombine.low %v7643_v41, %v7644_v56  ;;  %v6756_v14 = vld [vmem:[%s12407_s0 + $0x11c] sm:$0x1]  ;;  %v6628_v28 = vld [vmem:[%s12407_s0 + $0x110] sm:$0x1] }
 0x181   :  { %4313 = vrot.lane.b32.xlu1 %v7003_v55, %s7819_s19  ;;  %5943 = vmatprep.mubr.bf16.mxu0 %v5096_v45  ;;  %v2942_v43 = vshrl.u32 %v6754_v10, 16  ;;  %v7067_v1 = vcombine.low %v2930_v12, %v2940_v8  ;;  %v1125_v33 = vsel %vm8555_vm5, %v1123_v5, %v1124_v30  ;;  %v1404_v54 = vrot.slane %v1403_v58, 4 }
 0x182   :  { %v1408_v53 = vrot.slane %v12642_v36, 5  ;;  %v1418_v21 = vrot.slane %v12644_v63, 5  ;;  %v6909_v45 = vcombine.low %v1122_v48, %v1125_v33  ;;  %v4776_v41 = vsel %vm4693_vm6, %v6845_v27, %v10327_v44  ;;  %v12646_v44 = vld [vmem:[#allocation65_spill] sm:$0xff]  ;;  %v10448_v63 = vpop.permute.xlu1 %4065  ;;  %v7646_v33 = vld [vmem:[%s12407_s0 + $0x54] sm:$0xf] }
 0x183   :  { %v2944_v56 = vrot.slane %v2942_v43, 4  ;;  %v2945_v35 = vshll.u32 %v6754_v10, 16  ;;  %4569 = vrot.lane.b32.xlu0 %v7067_v1, %s7819_s19  ;;  %v2951_v0 = vshll.u32 %v6755_v34, 16  ;;  %v2955_v12 = vshrl.u32 %v6755_v34, 16  ;;  %v12648_v10 = vld [vmem:[#allocation64_spill] sm:$0xff] }
 0x184   :  { %v1413_v60 = vor.u32 %v12645_v7, %v1408_v53  ;;  %v1409_v6 = vsel %vm7904_vm2, %v1404_v54, %v1408_v53  ;;  %v4904_v55 = vsel %vm4693_vm6, %v6909_v45, %v10290_v24  ;;  %v2961_v5 = vshll.u32 %v6756_v14, 16  ;;  %v7648_v7 = vld [vmem:[%s12407_s0 + $0x114] sm:$0xf]  ;;  %v7649_v14 = vld [vmem:[%s12407_s0 + $0x118] sm:$0xf] }
 0x185   :  { %v2947_v48 = vrot.slane %v2945_v35, 5  ;;  %v12647_v11 = vrot.slane %v12646_v44, 5  ;;  %v12649_v61 = vrot.slane %v12648_v10, 9  ;;  %5782 = vmatprep.mubr.bf16.mxu1 %v4904_v55  ;;  %v2953_v36 = vrot.slane %v2951_v0, 5  ;;  %v12651_v10 = vld [vmem:[#allocation35_spill] sm:$0xff] }
 0x186   :  { %v1414_v30 = vrot.slane %v1413_v60, 4  ;;  %v2957_v53 = vrot.slane %v2955_v12, 4  ;;  %5783 = vmatmul.mubr.bf16.gmra.mrb[48].mxu1 %v4776_v41  ;;  %v2963_v34 = vrot.slane %v2961_v5, 5  ;;  %v2302_v43 = vrot.slane %v6628_v28, 5  ;;  %v10462_v41 = vpop.permute.xlu0 %4545  ;;  %v6757_v12 = vld [vmem:[%s12407_s0 + $0x120] sm:$0xf] }
 0x187   :  { %v2300_v58 = vsel %vm8555_vm5, %v12649_v61, %v12647_v11  ;;  %v12650_v8 = vmov %v12647_v11  ;;  %v2948_v27 = vor.u32 %v2947_v48, %v2944_v56  ;;  %v6558_v60 = vrot.slane %v7648_v7, 9  ;;  %v12652_v61 = vld [vmem:[#allocation36_spill] sm:$0xff] }
 0x188   :  { %v1419_v32 = vsel %vm7904_vm2, %v1414_v30, %v1418_v21  ;;  %v2301_v49 = vrot.slane %v12650_v8, 4  ;;  %v2958_v1 = vor.u32 %v2957_v53, %v2953_v36  ;;  %v7647_v21 = vld [vmem:[%s12407_s0 + $0x58] sm:$0xf]  ;;  %v1128_v45 = vrot.slane %v7649_v14, 5  ;;  %v7650_v30 = vld [vmem:[%s12407_s0 + $0x11c] sm:$0x1] }
 0x189   :  { %v6957_v24 = vcombine.low %v1409_v6, %v1419_v32  ;;  %v7022_v54 = vcombine.low %v7646_v33, %v7647_v21  ;;  %v2949_v35 = vrot.slane %v2948_v27, 4  ;;  %v1131_v0 = vrot.slane %v7650_v30, 5  ;;  %v12653_v53 = vld [vmem:[#allocation20_spill] sm:$0xff]  ;;  %v10492_v33 = vpop.permute.xlu1 %3809 }
 0x18a   :  { %v2303_v6 = vsel %vm8555_vm5, %v2301_v49, %v2302_v43  ;;  %v2959_v28 = vrot.slane %v2958_v1, 4  ;;  %v1130_v11 = vrot.slane %v1128_v45, 4  ;;  %v1427_v32 = vor.u32 %v12652_v61, %v12651_v10  ;;  %v10502_v30 = vpop.permute.xlu0 %4289  ;;  %v12660_v61 = vld [vmem:[#allocation72_spill] sm:$0xff] }
 0x18b   :  { %v4968_v56 = vsel %vm4693_vm6, %v6957_v24, %v10346_v46  ;;  %v7004_v55 = vcombine.low %v2300_v58, %v2303_v6  ;;  %v5100_v48 = vsel %vm4693_vm6, %v7022_v54, %v10382_v25  ;;  %v1129_v46 = vsel %vm8555_vm5, %v6558_v60, %v1128_v45  ;;  %v12655_v25 = vld [vmem:[#allocation82_spill] sm:$0xff]  ;;  %v12657_v45 = vld [vmem:[#allocation37_spill] sm:$0xff] }
 0x18c   :  { %5944 = vmatmul.mubr.bf16.gmra.mrb[16].mxu0 %v4968_v56  ;;  %v2954_v5 = vsel %vm7904_vm2, %v2949_v35, %v2953_v36  ;;  %v12654_v8 = vshll.u32 %v12653_v53, 16  ;;  %v2964_v58 = vsel %vm7904_vm2, %v2959_v28, %v2963_v34  ;;  %v12656_v24 = vshll.u32 %v12655_v25, 16  ;;  %v6758_v36 = vld [vmem:[%s12407_s0 + $0x124] sm:$0xf]  ;;  %v6759_v56 = vld [vmem:[%s12407_s0 + $0x128] sm:$0x1] }
 0x18d   :  { %5951 = vmatprep.mubr.bf16.mxu0 %v5100_v48  ;;  %4315 = vrot.lane.b32.xlu1 %v7004_v55, %s7819_s19  ;;  %v6846_v43 = vcombine.low %v7648_v7, %v7649_v14  ;;  %v2966_v1 = vshrl.u32 %v6757_v12, 16  ;;  %v7068_v21 = vcombine.low %v2954_v5, %v2964_v58  ;;  %v1132_v54 = vsel %vm8555_vm5, %v1130_v11, %v1131_v0  ;;  %v6631_v5 = vld [vmem:[%s12407_s0 + $0x11c] sm:$0x1] }
 0x18e   :  { %v1432_v49 = vrot.slane %v12654_v8, 5  ;;  %v1442_v27 = vrot.slane %v12656_v24, 5  ;;  %v1428_v60 = vrot.slane %v1427_v32, 4  ;;  %v6910_v35 = vcombine.low %v1129_v46, %v1132_v54 }
 0x18f   :  { %v4780_v7 = vsel %vm4693_vm6, %v6846_v43, %v10410_v59  ;;  %v2968_v14 = vrot.slane %v2966_v1, 4  ;;  %v2969_v6 = vshll.u32 %v6757_v12, 16  ;;  %4571 = vrot.lane.b32.xlu0 %v7068_v21, %s7819_s19  ;;  %v2975_v55 = vshll.u32 %v6758_v36, 16  ;;  %v12658_v12 = vld [vmem:[#allocation73_spill] sm:$0xff]  ;;  %v10522_v21 = vpop.permute.xlu1 %4067 }
 0x190   :  { %v1437_v34 = vor.u32 %v12657_v45, %v1432_v49  ;;  %v1433_v0 = vsel %vm7904_vm2, %v1428_v60, %v1432_v49  ;;  %v2979_v48 = vshrl.u32 %v6758_v36, 16  ;;  %v4908_v46 = vsel %vm4693_vm6, %v6910_v35, %v10364_v23  ;;  %v7651_v60 = vld [vmem:[%s12407_s0 + $0x60] sm:$0xf]  ;;  %v7654_v35 = vld [vmem:[%s12407_s0 + $0x124] sm:$0xf] }
 0x191   :  { %v2971_v59 = vrot.slane %v2969_v6, 5  ;;  %v2985_v11 = vshll.u32 %v6759_v56, 16  ;;  %v12659_v10 = vrot.slane %v12658_v12, 5  ;;  %v12661_v32 = vrot.slane %v12660_v61, 9  ;;  %5790 = vmatprep.mubr.bf16.mxu1 %v4908_v46 }
 0x192   :  { %v1438_v28 = vrot.slane %v1437_v34, 4  ;;  %v2977_v49 = vrot.slane %v2975_v55, 5  ;;  %v2981_v58 = vrot.slane %v2979_v48, 4  ;;  %5791 = vmatmul.mubr.bf16.gmra.mrb[52].mxu1 %v4780_v7  ;;  %v2309_v1 = vrot.slane %v6631_v5, 5  ;;  %v7653_v34 = vld [vmem:[%s12407_s0 + $0x120] sm:$0xf]  ;;  %v10543_v48 = vpop.permute.xlu0 %4547 }
 0x193   :  { %v2307_v53 = vsel %vm8555_vm5, %v12661_v32, %v12659_v10  ;;  %v12662_v25 = vmov %v12659_v10  ;;  %v2972_v23 = vor.u32 %v2971_v59, %v2968_v14  ;;  %v2987_v36 = vrot.slane %v2985_v11, 5  ;;  %v6760_v5 = vld [vmem:[%s12407_s0 + $0x12c] sm:$0xf] }
 0x194   :  { %v1443_v8 = vsel %vm7904_vm2, %v1438_v28, %v1442_v27  ;;  %v2308_v24 = vrot.slane %v12662_v25, 4  ;;  %v2982_v54 = vor.u32 %v2981_v58, %v2977_v49  ;;  %v7652_v27 = vld [vmem:[%s12407_s0 + $0x64] sm:$0xf]  ;;  %v6559_v56 = vrot.slane %v7653_v34, 9  ;;  %v7655_v28 = vld [vmem:[%s12407_s0 + $0x128] sm:$0x1] }
 0x195   :  { %v6958_v43 = vcombine.low %v1433_v0, %v1443_v8  ;;  %v7023_v45 = vcombine.low %v7651_v60, %v7652_v27  ;;  %v1135_v7 = vrot.slane %v7654_v35, 5  ;;  %v2973_v6 = vrot.slane %v2972_v23, 4  ;;  %v12663_v32 = vld [vmem:[#allocation42_spill] sm:$0xff]  ;;  %v12664_v8 = vld [vmem:[#allocation45_spill] sm:$0xff]  ;;  %v12665_v25 = vld [vmem:[#allocation27_spill] sm:$0xff] }
 0x196   :  { %v2310_v0 = vsel %vm8555_vm5, %v2308_v24, %v2309_v1  ;;  %v1138_v55 = vrot.slane %v7655_v28, 5  ;;  %v2983_v46 = vrot.slane %v2982_v54, 4  ;;  %v1451_v58 = vor.u32 %v12664_v8, %v12663_v32 }
 0x197   :  { %v4972_v14 = vsel %vm4693_vm6, %v6958_v43, %v10426_v39  ;;  %v7005_v59 = vcombine.low %v2307_v53, %v2310_v0  ;;  %v5104_v39 = vsel %vm4693_vm6, %v7023_v45, %v10462_v41  ;;  %v1136_v11 = vsel %vm8555_vm5, %v6559_v56, %v1135_v7  ;;  %v12667_v41 = vld [vmem:[#allocation90_spill] sm:$0xff] }
 0x198   :  { %5952 = vmatmul.mubr.bf16.gmra.mrb[20].mxu0 %v4972_v14  ;;  %v2978_v10 = vsel %vm7904_vm2, %v2973_v6, %v2977_v49  ;;  %v1137_v61 = vrot.slane %v1135_v7, 4  ;;  %v12666_v24 = vshll.u32 %v12665_v25, 16  ;;  %v2988_v53 = vsel %vm7904_vm2, %v2983_v46, %v2987_v36  ;;  %v6761_v49 = vld [vmem:[%s12407_s0 + $0x130] sm:$0xf]  ;;  %v12669_v7 = vld [vmem:[#allocation46_spill] sm:$0xff]  ;;  %v10572_v6 = vpop.permute.xlu1 %3811 }
 0x199   :  { %5959 = vmatprep.mubr.bf16.mxu0 %v5104_v39  ;;  %4317 = vrot.lane.b32.xlu1 %v7005_v59, %s7819_s19  ;;  %v12668_v23 = vshll.u32 %v12667_v41, 16  ;;  %v6847_v54 = vcombine.low %v7653_v34, %v7654_v35  ;;  %v2990_v60 = vshrl.u32 %v6760_v5, 16  ;;  %v7069_v27 = vcombine.low %v2978_v10, %v2988_v53  ;;  %v6762_v36 = vld [vmem:[%s12407_s0 + $0x134] sm:$0x1]  ;;  %v6634_v10 = vld [vmem:[%s12407_s0 + $0x128] sm:$0x1] }
 0x19a   :  { %v1456_v43 = vrot.slane %v12666_v24, 5  ;;  %v1139_v45 = vsel %vm8555_vm5, %v1137_v61, %v1138_v55  ;;  %v1452_v56 = vrot.slane %v1451_v58, 4  ;;  %v2993_v28 = vshll.u32 %v6760_v5, 16  ;;  %v10582_v61 = vpop.permute.xlu0 %4291  ;;  %v12670_v5 = vld [vmem:[#allocation80_spill] sm:$0xff]  ;;  %v12672_v58 = vld [vmem:[#allocation79_spill] sm:$0xff] }
 0x19b   :  { %v1466_v1 = vrot.slane %v12668_v23, 5  ;;  %v6911_v0 = vcombine.low %v1136_v11, %v1139_v45  ;;  %v4784_v34 = vsel %vm4693_vm6, %v6847_v54, %v10492_v33  ;;  %v2992_v35 = vrot.slane %v2990_v60, 4  ;;  %4573 = vrot.lane.b32.xlu0 %v7069_v27, %s7819_s19 }
 0x19c   :  { %v1461_v14 = vor.u32 %v12669_v7, %v1456_v43  ;;  %v1457_v55 = vsel %vm7904_vm2, %v1452_v56, %v1456_v43  ;;  %v2999_v59 = vshll.u32 %v6761_v49, 16  ;;  %v3003_v39 = vshrl.u32 %v6761_v49, 16  ;;  %v7656_v56 = vld [vmem:[%s12407_s0 + $0x6c] sm:$0xf]  ;;  %v7657_v7 = vld [vmem:[%s12407_s0 + $0x70] sm:$0xf] }
 0x19d   :  { %v4912_v11 = vsel %vm4693_vm6, %v6911_v0, %v10448_v63  ;;  %v2995_v33 = vrot.slane %v2993_v28, 5  ;;  %v3009_v32 = vshll.u32 %v6762_v36, 16  ;;  %v12671_v8 = vrot.slane %v12670_v5, 5  ;;  %v7659_v0 = vld [vmem:[%s12407_s0 + $0x130] sm:$0xf] }
 0x19e   :  { %v1462_v46 = vrot.slane %v1461_v14, 4  ;;  %v12673_v25 = vrot.slane %v12672_v58, 9  ;;  %5798 = vmatprep.mubr.bf16.mxu1 %v4912_v11  ;;  %v3001_v53 = vrot.slane %v2999_v59, 5  ;;  %v3005_v41 = vrot.slane %v3003_v39, 4  ;;  %v7658_v14 = vld [vmem:[%s12407_s0 + $0x12c] sm:$0xf]  ;;  %v10626_v58 = vpop.permute.xlu0 %4549 }
 0x19f   :  { %v12674_v23 = vmov %v12671_v8  ;;  %5799 = vmatmul.mubr.bf16.gmra.mrb[56].mxu1 %v4784_v34  ;;  %v2996_v63 = vor.u32 %v2995_v33, %v2992_v35  ;;  %v3011_v60 = vrot.slane %v3009_v32, 5  ;;  %v2316_v27 = vrot.slane %v6634_v10, 5  ;;  %v10608_v35 = vpop.permute.xlu1 %4069  ;;  %v7660_v59 = vld [vmem:[%s12407_s0 + $0x134] sm:$0x1]  ;;  %v6763_v10 = vld [vmem:[%s12407_s0 + $0x138] sm:$0xf] }
 0x1a0   :  { %v2314_v24 = vsel %vm8555_vm5, %v12673_v25, %v12671_v8  ;;  %v1467_v43 = vsel %vm7904_vm2, %v1462_v46, %v1466_v1  ;;  %v2315_v54 = vrot.slane %v12674_v23, 4  ;;  %v3006_v45 = vor.u32 %v3005_v41, %v3001_v53  ;;  %v10620_v11 = vpop.f32.mrb[0].mxu1  ;;  %v12675_v23 = vld [vmem:[#allocation52_spill] sm:$0xff] }
 0x1a1   :  { %v6959_v49 = vcombine.low %v1457_v55, %v1467_v43  ;;  %v7024_v1 = vcombine.low %v7656_v56, %v7657_v7  ;;  %v6560_v36 = vrot.slane %v7658_v14, 9  ;;  %v1142_v34 = vrot.slane %v7659_v0, 5  ;;  %v5690_v25 = vpop.f32.mrb[1].mxu1  ;;  %v12679_v56 = vld [vmem:[#allocation95_spill] sm:$0xff] }
 0x1a2   :  { %v2997_v55 = vrot.slane %v2996_v63, 4  ;;  %v2317_v46 = vsel %vm8555_vm5, %v2315_v54, %v2316_v27  ;;  %v1145_v39 = vrot.slane %v7660_v59, 5  ;;  %v3007_v33 = vrot.slane %v3006_v45, 4  ;;  %v12676_v54 = vld [vmem:[#allocation53_spill] sm:$0xff]  ;;  %v12677_v63 = vld [vmem:[#allocation34_spill] sm:$0xff]  ;;  %v10634_v45 = vpop.f32.mrb[2].mxu1 }
 0x1a3   :  { %v4976_v28 = vsel %vm4693_vm6, %v6959_v49, %v10502_v30  ;;  %v7006_v32 = vcombine.low %v2314_v24, %v2317_v46  ;;  %v5108_v30 = vsel %vm4693_vm6, %v7024_v1, %v10543_v48  ;;  %v1143_v8 = vsel %vm8555_vm5, %v6560_v36, %v1142_v34 }
 0x1a4   :  { %5960 = vmatmul.mubr.bf16.gmra.mrb[24].mxu0 %v4976_v28  ;;  %v3002_v43 = vsel %vm7904_vm2, %v2997_v55, %v3001_v53  ;;  %v1144_v41 = vrot.slane %v1142_v34, 4  ;;  %v1475_v49 = vor.u32 %v12676_v54, %v12675_v23  ;;  %v12678_v27 = vshll.u32 %v12677_v63, 16  ;;  %v6764_v53 = vld [vmem:[%s12407_s0 + $0x13c] sm:$0xf]  ;;  %v5693_v28 = vpop.f32.mrb[3].mxu1  ;;  %v10652_v23 = vpop.permute.xlu1 %3813 }
 0x1a5   :  { %5967 = vmatprep.mubr.bf16.mxu0 %v5108_v30  ;;  %v3012_v48 = vsel %vm7904_vm2, %v3007_v33, %v3011_v60  ;;  %4319 = vrot.lane.b32.xlu1 %v7006_v32, %s7819_s19  ;;  %v12680_v7 = vshll.u32 %v12679_v56, 16  ;;  %v6848_v36 = vcombine.low %v7658_v14, %v7659_v0  ;;  %v3014_v34 = vshrl.u32 %v6763_v10, 16  ;;  %v12681_v30 = vld [vmem:[#allocation54_spill] sm:$0xff]  ;;  %v6765_v60 = vld [vmem:[%s12407_s0 + $0x140] sm:$0x1] }
 0x1a6   :  { %v1480_v24 = vrot.slane %v12678_v27, 5  ;;  %v7070_v55 = vcombine.low %v3002_v43, %v3012_v48  ;;  %v1146_v46 = vsel %vm8555_vm5, %v1144_v41, %v1145_v39  ;;  %v1476_v59 = vrot.slane %v1475_v49, 4  ;;  %v6637_v49 = vld [vmem:[%s12407_s0 + $0x134] sm:$0x1] }
 0x1a7   :  { %v1490_v1 = vrot.slane %v12680_v7, 5  ;;  %v6912_v33 = vcombine.low %v1143_v8, %v1146_v46  ;;  %v4788_v14 = vsel %vm4693_vm6, %v6848_v36, %v10572_v6  ;;  %v3016_v0 = vrot.slane %v3014_v34, 4  ;;  %v12684_v48 = vld [vmem:[#allocation87_spill] sm:$0xff] }
 0x1a8   :  { %v1485_v25 = vor.u32 %v12681_v30, %v1480_v24  ;;  %v3017_v32 = vshll.u32 %v6763_v10, 16  ;;  %4575 = vrot.lane.b32.xlu0 %v7070_v55, %s7819_s19  ;;  %v1481_v39 = vsel %vm7904_vm2, %v1476_v59, %v1480_v24  ;;  %v3023_v41 = vshll.u32 %v6764_v53, 16  ;;  %v12682_v10 = vld [vmem:[#allocation88_spill] sm:$0xff]  ;;  %v10668_v24 = vpop.permute.xlu0 %4293 }
 0x1a9   :  { %v3027_v54 = vshrl.u32 %v6764_v53, 16  ;;  %v4916_v8 = vsel %vm4693_vm6, %v6912_v33, %v10522_v21  ;;  %v3033_v63 = vshll.u32 %v6765_v60, 16  ;;  %v12683_v27 = vrot.slane %v12682_v10, 5  ;;  %v7661_v60 = vld [vmem:[%s12407_s0 + $0x78] sm:$0xf] }
 0x1aa   :  { %v1486_v43 = vrot.slane %v1485_v25, 4  ;;  %v3019_v6 = vrot.slane %v3017_v32, 5  ;;  %v12685_v56 = vrot.slane %v12684_v48, 9  ;;  %5806 = vmatprep.mubr.bf16.mxu1 %v4916_v8  ;;  %v3025_v53 = vrot.slane %v3023_v41, 5  ;;  %v7662_v33 = vld [vmem:[%s12407_s0 + $0x7c] sm:$0xf] }
 0x1ab   :  { %v3029_v34 = vrot.slane %v3027_v54, 4  ;;  %v12686_v28 = vmov %v12683_v27  ;;  %5807 = vmatmul.mubr.bf16.gmra.mrb[60].mxu1 %v4788_v14  ;;  %v3035_v59 = vrot.slane %v3033_v63, 5  ;;  %v2323_v30 = vrot.slane %v6637_v49, 5  ;;  %v7663_v32 = vld [vmem:[%s12407_s0 + $0x138] sm:$0xf] }
 0x1ac   :  { %v2321_v7 = vsel %vm8555_vm5, %v12685_v56, %v12683_v27  ;;  %v1491_v36 = vsel %vm7904_vm2, %v1486_v43, %v1490_v1  ;;  %v2322_v21 = vrot.slane %v12686_v28, 4  ;;  %v3020_v46 = vor.u32 %v3019_v6, %v3016_v0  ;;  %v7664_v14 = vld [vmem:[%s12407_s0 + $0x13c] sm:$0xf]  ;;  %v7665_v49 = vld [vmem:[%s12407_s0 + $0x140] sm:$0x1]  ;;  %v10693_v6 = vpop.permute.xlu1 %4071 }
 0x1ad   :  { %v6960_v55 = vcombine.low %v1481_v39, %v1491_v36  ;;  %v3030_v25 = vor.u32 %v3029_v34, %v3025_v53  ;;  %v7025_v1 = vcombine.low %v7661_v60, %v7662_v33  ;;  %v6561_v43 = vrot.slane %v7663_v32, 9  ;;  %v6766_v63 = vld [vmem:[%s12407_s0 + $0x144] sm:$0xf]  ;;  %v12687_v28 = vld [vmem:[#allocation8_spill] sm:$0xff] }
 0x1ae   :  { %v1149_v0 = vrot.slane %v7664_v14, 5  ;;  %v3021_v41 = vrot.slane %v3020_v46, 4  ;;  %v2324_v54 = vsel %vm8555_vm5, %v2322_v21, %v2323_v30  ;;  %v1152_v8 = vrot.slane %v7665_v49, 5  ;;  %v12688_v21 = vld [vmem:[#allocation7_spill] sm:$0xff]  ;;  %v12690_v30 = vld [vmem:[#allocation6_spill] sm:$0xff]  ;;  %v12691_v60 = vld [vmem:[#allocation5_spill] sm:$0xff] }
 0x1af   :  { %v4980_v39 = vsel %vm4693_vm6, %v6960_v55, %v10582_v61  ;;  %v3031_v27 = vrot.slane %v3030_v25, 4  ;;  %v7007_v48 = vcombine.low %v2321_v7, %v2324_v54  ;;  %v5112_v61 = vsel %vm4693_vm6, %v7025_v1, %v10626_v58  ;;  %v4552_v7 = vpop.permute.xlu0 %4551  ;;  %v12693_v1 = vld [vmem:[#allocation103_spill] sm:$0xff]  ;;  %v10718_v54 = vpop.f32.mrb[4].mxu1 }
 0x1b0   :  { %5968 = vmatmul.mubr.bf16.gmra.mrb[28].mxu0 %v4980_v39  ;;  %v1150_v56 = vsel %vm8555_vm5, %v6561_v43, %v1149_v0  ;;  %v3026_v36 = vsel %vm7904_vm2, %v3021_v41, %v3025_v53  ;;  %v1151_v34 = vrot.slane %v1149_v0, 4  ;;  %v12689_v55 = vor.u32 %v12687_v28, %v12688_v21  ;;  %v6767_v0 = vld [vmem:[%s12407_s0 + $0x148] sm:$0xf] }
 0x1b1   :  { %5975 = vmatprep.mubr.bf16.mxu0 %v5112_v61  ;;  %v12692_v33 = vor.u32 %v12690_v30, %v12691_v60  ;;  %v3036_v58 = vsel %vm7904_vm2, %v3031_v27, %v3035_v59  ;;  %4321 = vrot.lane.b32.xlu1 %v7007_v48, %s7819_s19  ;;  %v12694_v43 = vshll.u32 %v12693_v1, 16  ;;  %v6849_v53 = vcombine.low %v7663_v32, %v7664_v14  ;;  %v6768_v27 = vld [vmem:[%s12407_s0 + $0x14c] sm:$0x1]  ;;  %v5698_v14 = vpop.f32.mrb[5].mxu1  ;;  %v12697_v1 = vld [vmem:[#allocation92_spill] sm:$0xff] }
 0x1b2   :  { %v1500_v46 = vrot.slane %v12689_v55, 4  ;;  %v3038_v41 = vshrl.u32 %v6766_v63, 16  ;;  %v7071_v49 = vcombine.low %v3026_v36, %v3036_v58  ;;  %v1153_v61 = vsel %vm8555_vm5, %v1151_v34, %v1152_v8  ;;  %v10732_v55 = vpop.f32.mrb[6].mxu1  ;;  %v7666_v14 = vld [vmem:[%s12407_s0 + $0x84] sm:$0xf] }
 0x1b3   :  { %v1510_v25 = vrot.slane %v12692_v33, 4  ;;  %v1514_v39 = vrot.slane %v12694_v43, 5  ;;  %v3041_v32 = vshll.u32 %v6766_v63, 16  ;;  %v6913_v48 = vcombine.low %v1150_v56, %v1153_v61  ;;  %v6640_v63 = vld [vmem:[%s12407_s0 + $0x140] sm:$0x1]  ;;  %v3816_v56 = vpop.permute.xlu1 %3815 }
 0x1b4   :  { %v1505_v59 = vsel %vm7904_vm2, %v1500_v46, %v12691_v60  ;;  %v4792_v36 = vsel %vm4693_vm6, %v6849_v53, %v10652_v23  ;;  %v3040_v21 = vrot.slane %v3038_v41, 4  ;;  %4577 = vrot.lane.b32.xlu0 %v7071_v49, %s7819_s19  ;;  %v3047_v46 = vshll.u32 %v6767_v0, 16  ;;  %v5701_v60 = vpop.f32.mrb[7].mxu1  ;;  %v12695_v23 = vld [vmem:[#allocation94_spill] sm:$0xff] }
 0x1b5   :  { %v1515_v28 = vsel %vm7904_vm2, %v1510_v25, %v1514_v39  ;;  %v3043_v34 = vrot.slane %v3041_v32, 5  ;;  %v3051_v30 = vshrl.u32 %v6767_v0, 16  ;;  %v4920_v33 = vsel %vm4693_vm6, %v6913_v48, %v10608_v35  ;;  %v10750_v32 = vpop.permute.xlu0 %4295  ;;  %v7667_v48 = vld [vmem:[%s12407_s0 + $0x88] sm:$0xf] }
 0x1b6   :  { %v6961_v8 = vcombine.low %v1505_v59, %v1515_v28  ;;  %v3057_v25 = vshll.u32 %v6768_v27, 16  ;;  %v12696_v58 = vrot.slane %v12695_v23, 5  ;;  %v12698_v43 = vrot.slane %v12697_v1, 9  ;;  %5814 = vmatprep.mubr.bf16.mxu1 %v4920_v33 }
 0x1b7   :  { %v3044_v49 = vor.u32 %v3043_v34, %v3040_v21  ;;  %v3049_v61 = vrot.slane %v3047_v46, 5  ;;  %v3053_v59 = vrot.slane %v3051_v30, 4  ;;  %5815 = vmatmul.mubr.bf16.gmra.mrb[64].mxu1 %v4792_v36  ;;  %v2330_v27 = vrot.slane %v6640_v63, 5  ;;  %v7669_v36 = vld [vmem:[%s12407_s0 + $0x148] sm:$0xf] }
 0x1b8   :  { %v2328_v39 = vsel %vm8555_vm5, %v12698_v43, %v12696_v58  ;;  %v12699_v53 = vmov %v12696_v58  ;;  %v4984_v41 = vsel %vm4693_vm6, %v6961_v8, %v10668_v24  ;;  %v3059_v35 = vrot.slane %v3057_v25, 5  ;;  %v7668_v24 = vld [vmem:[%s12407_s0 + $0x144] sm:$0xf]  ;;  %v7670_v30 = vld [vmem:[%s12407_s0 + $0x14c] sm:$0x1]  ;;  %v12700_v25 = vld [vmem:[#allocation11_spill] sm:$0xff] }
 0x1b9   :  { %v2329_v0 = vrot.slane %v12699_v53, 4  ;;  %5976 = vmatmul.mubr.bf16.gmra.mrb[32].mxu0 %v4984_v41  ;;  %v7026_v28 = vcombine.low %v7666_v14, %v7667_v48  ;;  %v6562_v21 = vrot.slane %v7668_v24, 9  ;;  %v3045_v8 = vrot.slane %v3044_v49, 4  ;;  %v12701_v58 = vld [vmem:[#allocation12_spill] sm:$0xff]  ;;  %v12702_v43 = vld [vmem:[#allocation9_spill] sm:$0xff] }
 0x1ba   :  { %v3054_v34 = vor.u32 %v3053_v59, %v3049_v61  ;;  %v1156_v46 = vrot.slane %v7669_v36, 5  ;;  %v1159_v63 = vrot.slane %v7670_v30, 5  ;;  %v1523_v1 = vor.u32 %v12701_v58, %v12700_v25  ;;  %v6769_v49 = vld [vmem:[%s12407_s0 + $0x150] sm:$0xf]  ;;  %v12704_v30 = vld [vmem:[#allocation13_spill] sm:$0xff] }
 0x1bb   :  { %v2331_v60 = vsel %vm8555_vm5, %v2329_v0, %v2330_v27  ;;  %v5116_v33 = vsel %vm4693_vm6, %v7026_v28, %v4552_v7  ;;  %v12703_v53 = vshll.u32 %v12702_v43, 16  ;;  %v3050_v59 = vsel %vm7904_vm2, %v3045_v8, %v3049_v61  ;;  %v10781_v7 = vpop.permute.xlu1 %4073  ;;  %v12705_v58 = vld [vmem:[#allocation111_spill] sm:$0xff]  ;;  %v6771_v8 = vld [vmem:[%s12407_s0 + $0x158] sm:$0x1] }
 0x1bc   :  { %v3055_v14 = vrot.slane %v3054_v34, 4  ;;  %v7008_v48 = vcombine.low %v2328_v39, %v2331_v60  ;;  %5983 = vmatprep.mubr.bf16.mxu0 %v5116_v33  ;;  %v1157_v0 = vsel %vm8555_vm5, %v6562_v21, %v1156_v46  ;;  %v1158_v27 = vrot.slane %v1156_v46, 4  ;;  %v4554_v39 = vpop.permute.xlu0 %4553  ;;  %v6770_v21 = vld [vmem:[%s12407_s0 + $0x154] sm:$0xf] }
 0x1bd   :  { %v1528_v41 = vrot.slane %v12703_v53, 5  ;;  %v1524_v28 = vrot.slane %v1523_v1, 4  ;;  %v12706_v43 = vshll.u32 %v12705_v58, 16  ;;  %v6850_v61 = vcombine.low %v7668_v24, %v7669_v36 }
 0x1be   :  { %v3060_v52 = vsel %vm7904_vm2, %v3055_v14, %v3059_v35  ;;  %4323 = vrot.lane.b32.xlu1 %v7008_v48, %s7819_s19  ;;  %v3062_v34 = vshrl.u32 %v6769_v49, 16  ;;  %v3065_v46 = vshll.u32 %v6769_v49, 16  ;;  %v1160_v33 = vsel %vm8555_vm5, %v1158_v27, %v1159_v63  ;;  %v6643_v63 = vld [vmem:[%s12407_s0 + $0x14c] sm:$0x1] }
 0x1bf   :  { %v1533_v25 = vor.u32 %v12704_v30, %v1528_v41  ;;  %v1538_v53 = vrot.slane %v12706_v43, 5  ;;  %v7072_v60 = vcombine.low %v3050_v59, %v3060_v52  ;;  %v1529_v35 = vsel %vm7904_vm2, %v1524_v28, %v1528_v41  ;;  %v12709_v28 = vld [vmem:[#allocation100_spill] sm:$0xff] }
 0x1c0   :  { %v6914_v24 = vcombine.low %v1157_v0, %v1160_v33  ;;  %v4796_v36 = vsel %vm4693_vm6, %v6850_v61, %v3816_v56  ;;  %v3064_v14 = vrot.slane %v3062_v34, 4  ;;  %v3067_v48 = vrot.slane %v3065_v46, 5  ;;  %v12707_v56 = vld [vmem:[#allocation101_spill] sm:$0xff] }
 0x1c1   :  { %v1534_v1 = vrot.slane %v1533_v25, 4  ;;  %4579 = vrot.lane.b32.xlu0 %v7072_v60, %s7819_s19  ;;  %v3071_v58 = vshll.u32 %v6770_v21, 16  ;;  %v3075_v49 = vshrl.u32 %v6770_v21, 16  ;;  %v3081_v52 = vshll.u32 %v6771_v8, 16 }
 0x1c2   :  { %v4924_v41 = vsel %vm4693_vm6, %v6914_v24, %v10693_v6  ;;  %v3068_v0 = vor.u32 %v3067_v48, %v3064_v14  ;;  %v12708_v27 = vrot.slane %v12707_v56, 5  ;;  %v12710_v25 = vrot.slane %v12709_v28, 9  ;;  %v10824_v14 = vpop.permute.xlu0 %4297  ;;  %v12714_v28 = vld [vmem:[#allocation17_spill] sm:$0xff] }
 0x1c3   :  { %v1539_v30 = vsel %vm7904_vm2, %v1534_v1, %v1538_v53  ;;  %v3818_v53 = vpop.permute.xlu1 %3817  ;;  %5822 = vmatprep.mubr.bf16.mxu1 %v4924_v41  ;;  %v3073_v61 = vrot.slane %v3071_v58, 5  ;;  %v3077_v21 = vrot.slane %v3075_v49, 4  ;;  %v3083_v8 = vrot.slane %v3081_v52, 5  ;;  %v7672_v1 = vld [vmem:[%s12407_s0 + $0x94] sm:$0xf] }
 0x1c4   :  { %v6962_v59 = vcombine.low %v1529_v35, %v1539_v30  ;;  %v2335_v43 = vsel %vm8555_vm5, %v12710_v25, %v12708_v27  ;;  %v12711_v34 = vmov %v12708_v27  ;;  %5823 = vmatmul.mubr.bf16.gmra.mrb[68].mxu1 %v4796_v36  ;;  %v3069_v60 = vrot.slane %v3068_v0, 4  ;;  %v7671_v35 = vld [vmem:[%s12407_s0 + $0x90] sm:$0xf]  ;;  %v7674_v30 = vld [vmem:[%s12407_s0 + $0x154] sm:$0xf]  ;;  %v12713_v27 = vld [vmem:[#allocation16_spill] sm:$0xff] }
 0x1c5   :  { %v2336_v46 = vrot.slane %v12711_v34, 4  ;;  %v2337_v33 = vrot.slane %v6643_v63, 5  ;;  %v7027_v24 = vcombine.low %v7671_v35, %v7672_v1  ;;  %v3078_v48 = vor.u32 %v3077_v21, %v3073_v61  ;;  %v7675_v49 = vld [vmem:[%s12407_s0 + $0x158] sm:$0x1]  ;;  %v10835_v63 = vpop.f32.mrb[8].mxu1 }
 0x1c6   :  { %v4988_v6 = vsel %vm4693_vm6, %v6962_v59, %v10750_v32  ;;  %v7673_v32 = vld [vmem:[%s12407_s0 + $0x150] sm:$0xf]  ;;  %v1163_v58 = vrot.slane %v7674_v30, 5  ;;  %v1166_v52 = vrot.slane %v7675_v49, 5  ;;  %12712 = vst [vmem:[#allocation67_spill] sm:$0xff] %v10835_v63  ;;  %v3074_v41 = vsel %vm7904_vm2, %v3069_v60, %v3073_v61  ;;  %v5706_v34 = vpop.f32.mrb[9].mxu1 }
 0x1c7   :  { %5984 = vmatmul.mubr.bf16.gmra.mrb[36].mxu0 %v4988_v6  ;;  %v6563_v36 = vrot.slane %v7673_v32, 9  ;;  %v2338_v59 = vsel %vm8555_vm5, %v2336_v46, %v2337_v33  ;;  %v5120_v0 = vsel %vm4693_vm6, %v7027_v24, %v4554_v39  ;;  %v1547_v25 = vor.u32 %v12714_v28, %v12713_v27  ;;  %v6772_v21 = vld [vmem:[%s12407_s0 + $0x15c] sm:$0xf]  ;;  %v10849_v60 = vpop.f32.mrb[10].mxu1  ;;  %v12716_v33 = vld [vmem:[#allocation10_spill] sm:$0xff]  ;;  %v10855_v22 = vpop.permute.xlu1 %4075 }
 0x1c8   :  { %v3079_v6 = vrot.slane %v3078_v48, 4  ;;  %v7009_v35 = vcombine.low %v2335_v43, %v2338_v59  ;;  %5991 = vmatprep.mubr.bf16.mxu0 %v5120_v0  ;;  %v1165_v61 = vrot.slane %v1163_v58, 4  ;;  %12715 = vst [vmem:[#allocation21_spill] sm:$0xff] %v10849_v60  ;;  %v12717_v39 = vshll.u32 %v12716_v33, 16  ;;  %v6773_v43 = vld [vmem:[%s12407_s0 + $0x160] sm:$0xf] }
 0x1c9   :  { %v1164_v1 = vsel %vm8555_vm5, %v6563_v36, %v1163_v58  ;;  %v1548_v46 = vrot.slane %v1547_v25, 4  ;;  %v12718_v49 = vshll.u32 %v9537_v50, 16  ;;  %v6851_v28 = vcombine.low %v7673_v32, %v7674_v30  ;;  %v5709_v48 = vpop.f32.mrb[11].mxu1  ;;  %v6774_v50 = vld [vmem:[%s12407_s0 + $0x164] sm:$0x1]  ;;  %v12719_v34 = vld [vmem:[#allocation18_spill] sm:$0xff] }
 0x1ca   :  { %v1552_v24 = vrot.slane %v12717_v39, 5  ;;  %v3084_v36 = vsel %vm7904_vm2, %v3079_v6, %v3083_v8  ;;  %4325 = vrot.lane.b32.xlu1 %v7009_v35, %s7819_s19  ;;  %v1167_v58 = vsel %vm8555_vm5, %v1165_v61, %v1166_v52  ;;  %v3086_v32 = vshrl.u32 %v6772_v21, 16  ;;  %v4556_v39 = vpop.permute.xlu0 %4555  ;;  %v6646_v52 = vld [vmem:[%s12407_s0 + $0x158] sm:$0x1] }
 0x1cb   :  { %v1562_v27 = vrot.slane %v12718_v49, 5  ;;  %v3089_v30 = vshll.u32 %v6772_v21, 16  ;;  %v7073_v59 = vcombine.low %v3074_v41, %v3084_v36  ;;  %v6915_v0 = vcombine.low %v1164_v1, %v1167_v58  ;;  %v12720_v48 = vld [vmem:[#allocation108_spill] sm:$0xff] }
 0x1cc   :  { %v1553_v25 = vsel %vm7904_vm2, %v1548_v46, %v1552_v24  ;;  %v1557_v33 = vor.u32 %v12719_v34, %v1552_v24  ;;  %v4800_v8 = vsel %vm4693_vm6, %v6851_v28, %v3818_v53  ;;  %v3088_v6 = vrot.slane %v3086_v32, 4  ;;  %v12722_v28 = vld [vmem:[#allocation107_spill] sm:$0xff] }
 0x1cd   :  { %v3091_v35 = vrot.slane %v3089_v30, 5  ;;  %v3095_v49 = vshll.u32 %v6773_v43, 16  ;;  %4581 = vrot.lane.b32.xlu0 %v7073_v59, %s7819_s19  ;;  %v4928_v41 = vsel %vm4693_vm6, %v6915_v0, %v10781_v7  ;;  %v3099_v1 = vshrl.u32 %v6773_v43, 16  ;;  %v3820_v0 = vpop.permute.xlu1 %3819 }
 0x1ce   :  { %v1558_v21 = vrot.slane %v1557_v33, 4  ;;  %v3105_v61 = vshll.u32 %v6774_v50, 16  ;;  %5830 = vmatprep.mubr.bf16.mxu1 %v4928_v41  ;;  %v12721_v53 = vrot.slane %v12720_v48, 5  ;;  %v12723_v36 = vrot.slane %v12722_v28, 9 }
 0x1cf   :  { %v3092_v46 = vor.u32 %v3091_v35, %v3088_v6  ;;  %v3097_v24 = vrot.slane %v3095_v49, 5  ;;  %5831 = vmatmul.mubr.bf16.gmra.mrb[72].mxu1 %v4800_v8  ;;  %v3101_v7 = vrot.slane %v3099_v1, 4  ;;  %v2344_v50 = vrot.slane %v6646_v52, 5  ;;  %v7676_v6 = vld [vmem:[%s12407_s0 + $0x9c] sm:$0xf] }
 0x1d0   :  { %v2342_v58 = vsel %vm8555_vm5, %v12723_v36, %v12721_v53  ;;  %v12724_v32 = vmov %v12721_v53  ;;  %v1563_v59 = vsel %vm7904_vm2, %v1558_v21, %v1562_v27  ;;  %v3107_v43 = vrot.slane %v3105_v61, 5  ;;  %v7677_v35 = vld [vmem:[%s12407_s0 + $0xa0] sm:$0xf]  ;;  %v7678_v27 = vld [vmem:[%s12407_s0 + $0x15c] sm:$0xf] }
 0x1d1   :  { %v2343_v30 = vrot.slane %v12724_v32, 4  ;;  %v6963_v34 = vcombine.low %v1553_v25, %v1563_v59  ;;  %v3093_v33 = vrot.slane %v3092_v46, 4  ;;  %v7028_v49 = vcombine.low %v7676_v6, %v7677_v35  ;;  %v7679_v25 = vld [vmem:[%s12407_s0 + $0x160] sm:$0xf]  ;;  %v7680_v1 = vld [vmem:[%s12407_s0 + $0x164] sm:$0x1]  ;;  %v10905_v46 = vpop.permute.xlu0 %4299 }
 0x1d2   :  { %v6564_v8 = vrot.slane %v7678_v27, 9  ;;  %v3102_v41 = vor.u32 %v3101_v7, %v3097_v24  ;;  %v1170_v21 = vrot.slane %v7679_v25, 5  ;;  %v1173_v61 = vrot.slane %v7680_v1, 5  ;;  %v6775_v53 = vld [vmem:[%s12407_s0 + $0x168] sm:$0xf]  ;;  %v12726_v35 = vld [vmem:[#allocation24_spill] sm:$0xff] }
 0x1d3   :  { %v2345_v52 = vsel %vm8555_vm5, %v2343_v30, %v2344_v50  ;;  %v4992_v28 = vsel %vm4693_vm6, %v6963_v34, %v10824_v14  ;;  %v3098_v36 = vsel %vm7904_vm2, %v3093_v33, %v3097_v24  ;;  %v5124_v30 = vsel %vm4693_vm6, %v7028_v49, %v4556_v39  ;;  %v12725_v6 = vld [vmem:[#allocation22_spill] sm:$0xff] }
 0x1d4   :  { %v7010_v32 = vcombine.low %v2342_v58, %v2345_v52  ;;  %5992 = vmatmul.mubr.bf16.gmra.mrb[40].mxu0 %v4992_v28  ;;  %v3103_v59 = vrot.slane %v3102_v41, 4  ;;  %v1171_v7 = vsel %vm8555_vm5, %v6564_v8, %v1170_v21  ;;  %v1172_v50 = vrot.slane %v1170_v21, 4  ;;  %v6776_v39 = vld [vmem:[%s12407_s0 + $0x16c] sm:$0xf]  ;;  %v10931_v21 = vpop.permute.xlu1 %4077  ;;  %v12730_v28 = vld [vmem:[#allocation25_spill] sm:$0xff] }
 0x1d5   :  { %v1571_v1 = vor.u32 %v12726_v35, %v12725_v6  ;;  %5999 = vmatprep.mubr.bf16.mxu0 %v5124_v30  ;;  %v12728_v14 = vshll.u32 %v12727_v40, 16  ;;  %v12729_v24 = vshll.u32 %v9656_v20, 16  ;;  %v6852_v33 = vcombine.low %v7678_v27, %v7679_v25  ;;  %v6777_v20 = vld [vmem:[%s12407_s0 + $0x170] sm:$0x1]  ;;  %v6649_v35 = vld [vmem:[%s12407_s0 + $0x164] sm:$0x1] }
 0x1d6   :  { %4327 = vrot.lane.b32.xlu1 %v7010_v32, %s7819_s19  ;;  %v3110_v49 = vshrl.u32 %v6775_v53, 16  ;;  %v3108_v8 = vsel %vm7904_vm2, %v3103_v59, %v3107_v43  ;;  %v1174_v41 = vsel %vm8555_vm5, %v1172_v50, %v1173_v61  ;;  %v3113_v40 = vshll.u32 %v6775_v53, 16  ;;  %v4558_v59 = vpop.permute.xlu0 %4557 }
 0x1d7   :  { %v1576_v34 = vrot.slane %v12728_v14, 5  ;;  %v1586_v58 = vrot.slane %v12729_v24, 5  ;;  %v1572_v52 = vrot.slane %v1571_v1, 4  ;;  %v7074_v27 = vcombine.low %v3098_v36, %v3108_v8 }
 0x1d8   :  { %v6916_v25 = vcombine.low %v1171_v7, %v1174_v41  ;;  %v4804_v30 = vsel %vm4693_vm6, %v6852_v33, %v3820_v0  ;;  %v3112_v6 = vrot.slane %v3110_v49, 4  ;;  %v3115_v61 = vrot.slane %v3113_v40, 5  ;;  %v10946_v0 = vpop.f32.mrb[12].mxu1  ;;  %v12733_v33 = vld [vmem:[#allocation114_spill] sm:$0xff] }
 0x1d9   :  { %v1581_v32 = vor.u32 %v12730_v28, %v1576_v34  ;;  %v1577_v43 = vsel %vm7904_vm2, %v1572_v52, %v1576_v34  ;;  %v3119_v50 = vshll.u32 %v6776_v39, 16  ;;  %4583 = vrot.lane.b32.xlu0 %v7074_v27, %s7819_s19  ;;  %v3123_v7 = vshrl.u32 %v6776_v39, 16  ;;  %12731 = vst [vmem:[#allocation58_spill] sm:$0xff] %v10946_v0  ;;  %v5714_v40 = vpop.f32.mrb[13].mxu1 }
 0x1da   :  { %v4932_v53 = vsel %vm4693_vm6, %v6916_v25, %v10855_v22  ;;  %v3129_v1 = vshll.u32 %v6777_v20, 16  ;;  %v3116_v14 = vor.u32 %v3115_v61, %v3112_v6  ;;  %v12732_v24 = vrot.slane %v9522_v19, 5  ;;  %v10958_v25 = vpop.f32.mrb[14].mxu1  ;;  %v10963_v6 = vld [vmem:[%s12407_s0 + $0xa8] sm:$0xf] }
 0x1db   :  { %v1582_v36 = vrot.slane %v1581_v32, 4  ;;  %5838 = vmatprep.mubr.bf16.mxu1 %v4932_v53  ;;  %v3121_v34 = vrot.slane %v3119_v50, 5  ;;  %v12734_v49 = vrot.slane %v12733_v33, 9  ;;  %v3125_v39 = vrot.slane %v3123_v7, 4  ;;  %12736 = vst [vmem:[#allocation57_spill] sm:$0xff] %v10958_v25  ;;  %v12738_v25 = vld [vmem:[#allocation32_spill] sm:$0xff] }
 0x1dc   :  { %v12735_v41 = vmov %v12732_v24  ;;  %5839 = vmatmul.mubr.bf16.gmra.mrb[76].mxu1 %v4804_v30  ;;  %v3131_v20 = vrot.slane %v3129_v1, 5  ;;  %v2351_v27 = vrot.slane %v6649_v35, 5  ;;  %v3117_v32 = vrot.slane %v3116_v14, 4  ;;  %v10968_v61 = vld [vmem:[%s12407_s0 + $0xac] sm:$0xf]  ;;  %v5717_v35 = vpop.f32.mrb[15].mxu1 }
 0x1dd   :  { %v2349_v8 = vsel %vm8555_vm5, %v12734_v49, %v12732_v24  ;;  %v2350_v52 = vrot.slane %v12735_v41, 4  ;;  %v1587_v22 = vsel %vm7904_vm2, %v1582_v36, %v1586_v58  ;;  %v7029_v58 = vcombine.low %v10963_v6, %v10968_v61  ;;  %v7683_v30 = vld [vmem:[%s12407_s0 + $0x168] sm:$0xf]  ;;  %v7684_v7 = vld [vmem:[%s12407_s0 + $0x16c] sm:$0xf] }
 0x1de   :  { %v6964_v28 = vcombine.low %v1577_v43, %v1587_v22  ;;  %v6565_v50 = vrot.slane %v7683_v30, 9  ;;  %v3822_v43 = vpop.permute.xlu1 %3821  ;;  %v3126_v53 = vor.u32 %v3125_v39, %v3121_v34  ;;  %v1177_v1 = vrot.slane %v7684_v7, 5  ;;  %v7685_v14 = vld [vmem:[%s12407_s0 + $0x170] sm:$0x1]  ;;  %v6778_v33 = vld [vmem:[%s12407_s0 + $0x174] sm:$0xf]  ;;  %v4302_v22 = vpop.permute.xlu0 %4301 }
 0x1df   :  { %v2352_v36 = vsel %vm8555_vm5, %v2350_v52, %v2351_v27  ;;  %v1180_v24 = vrot.slane %v7685_v14, 5  ;;  %v3122_v41 = vsel %vm7904_vm2, %v3117_v32, %v3121_v34  ;;  %v5128_v40 = vsel %vm4693_vm6, %v7029_v58, %v4558_v59  ;;  %v12737_v14 = vld [vmem:[#allocation30_spill] sm:$0xff]  ;;  %v6779_v32 = vld [vmem:[%s12407_s0 + $0x178] sm:$0xf] }
 0x1e0   :  { %v4996_v49 = vsel %vm4693_vm6, %v6964_v28, %v10905_v46  ;;  %v7011_v52 = vcombine.low %v2349_v8, %v2352_v36  ;;  %v3127_v39 = vrot.slane %v3126_v53, 4  ;;  %v1178_v27 = vsel %vm8555_vm5, %v6565_v50, %v1177_v1  ;;  %v12739_v46 = vld [vmem:[#allocation19_spill] sm:$0xff]  ;;  %v6780_v36 = vld [vmem:[%s12407_s0 + $0x17c] sm:$0x1] }
 0x1e1   :  { %6000 = vmatmul.mubr.bf16.gmra.mrb[44].mxu0 %v4996_v49  ;;  %v1179_v35 = vrot.slane %v1177_v1, 4  ;;  %v1595_v0 = vor.u32 %v12738_v25, %v12737_v14  ;;  %v12740_v28 = vshll.u32 %v12739_v46, 16  ;;  %v12741_v34 = vshll.u32 %v9761_v37, 16 }
 0x1e2   :  { %4329 = vrot.lane.b32.xlu1 %v7011_v52, %s7819_s19  ;;  %6007 = vmatprep.mubr.bf16.mxu0 %v5128_v40  ;;  %v6853_v59 = vcombine.low %v7683_v30, %v7684_v7  ;;  %v3134_v58 = vshrl.u32 %v6778_v33, 16  ;;  %v3132_v50 = vsel %vm7904_vm2, %v3127_v39, %v3131_v20  ;;  %v3137_v1 = vshll.u32 %v6778_v33, 16  ;;  %v12742_v30 = vld [vmem:[#allocation33_spill] sm:$0xff]  ;;  %v11012_v40 = vpop.permute.xlu1 %4079 }
 0x1e3   :  { %v1600_v60 = vrot.slane %v12740_v28, 5  ;;  %v1610_v8 = vrot.slane %v12741_v34, 5  ;;  %v1181_v25 = vsel %vm8555_vm5, %v1179_v35, %v1180_v24  ;;  %v1596_v53 = vrot.slane %v1595_v0, 4  ;;  %v6652_v0 = vld [vmem:[%s12407_s0 + $0x170] sm:$0x1] }
 0x1e4   :  { %v7075_v37 = vcombine.low %v3122_v41, %v3132_v50  ;;  %v6917_v49 = vcombine.low %v1178_v27, %v1181_v25  ;;  %v4808_v52 = vsel %vm4693_vm6, %v6853_v59, %v3822_v43  ;;  %v3136_v39 = vrot.slane %v3134_v58, 4  ;;  %v4560_v27 = vpop.permute.xlu0 %4559 }
 0x1e5   :  { %v1605_v7 = vor.u32 %v12742_v30, %v1600_v60  ;;  %v1601_v20 = vsel %vm7904_vm2, %v1596_v53, %v1600_v60  ;;  %v3139_v14 = vrot.slane %v3137_v1, 5  ;;  %v3143_v24 = vshll.u32 %v6779_v32, 16 }
 0x1e6   :  { %4585 = vrot.lane.b32.xlu0 %v7075_v37, %s7819_s19  ;;  %v4936_v33 = vsel %vm4693_vm6, %v6917_v49, %v10931_v21  ;;  %v3147_v43 = vshrl.u32 %v6779_v32, 16  ;;  %v3153_v35 = vshll.u32 %v6780_v36, 16  ;;  %v12743_v60 = vrot.slane %v9642_v62, 5  ;;  %v11035_v37 = vld [vmem:[%s12407_s0 + $0xb4] sm:$0xf] }
 0x1e7   :  { %v1606_v41 = vrot.slane %v1605_v7, 4  ;;  %5846 = vmatprep.mubr.bf16.mxu1 %v4936_v33  ;;  %v3140_v46 = vor.u32 %v3139_v14, %v3136_v39  ;;  %v3145_v28 = vrot.slane %v3143_v24, 5  ;;  %v12744_v34 = vrot.slane %v9625_v16, 9  ;;  %v11040_v16 = vld [vmem:[%s12407_s0 + $0xb8] sm:$0xf] }
 0x1e8   :  { %v12745_v58 = vmov %v12743_v60  ;;  %5847 = vmatmul.mubr.bf16.gmra.mrb[80].mxu1 %v4808_v52  ;;  %v3149_v25 = vrot.slane %v3147_v43, 4  ;;  %v3155_v32 = vrot.slane %v3153_v35, 5  ;;  %v2358_v53 = vrot.slane %v6652_v0, 5  ;;  %v7690_v14 = vld [vmem:[%s12407_s0 + $0x17c] sm:$0x1]  ;;  %v3824_v0 = vpop.permute.xlu1 %3823 }
 0x1e9   :  { %v2356_v59 = vsel %vm8555_vm5, %v12744_v34, %v12743_v60  ;;  %v2357_v50 = vrot.slane %v12745_v58, 4  ;;  %v1611_v21 = vsel %vm7904_vm2, %v1606_v41, %v1610_v8  ;;  %v3141_v1 = vrot.slane %v3140_v46, 4  ;;  %v7688_v8 = vld [vmem:[%s12407_s0 + $0x174] sm:$0xf]  ;;  %v6781_v33 = vld [vmem:[%s12407_s0 + $0x180] sm:$0xf] }
 0x1ea   :  { %v6965_v36 = vcombine.low %v1601_v20, %v1611_v21  ;;  %v7030_v49 = vcombine.low %v11035_v37, %v11040_v16  ;;  %v6566_v30 = vrot.slane %v7688_v8, 9  ;;  %v3150_v7 = vor.u32 %v3149_v25, %v3145_v28  ;;  %v7689_v20 = vld [vmem:[%s12407_s0 + $0x178] sm:$0xf]  ;;  %v12746_v21 = vld [vmem:[#allocation39_spill] sm:$0xff] }
 0x1eb   :  { %v2359_v52 = vsel %vm8555_vm5, %v2357_v50, %v2358_v53  ;;  %v1184_v39 = vrot.slane %v7689_v20, 5  ;;  %v1187_v24 = vrot.slane %v7690_v14, 5  ;;  %v3146_v43 = vsel %vm7904_vm2, %v3141_v1, %v3145_v28  ;;  %v4304_v50 = vpop.permute.xlu0 %4303  ;;  %v12747_v25 = vld [vmem:[#allocation40_spill] sm:$0xff]  ;;  %v6782_v1 = vld [vmem:[%s12407_s0 + $0x184] sm:$0xf] }
 0x1ec   :  { %v5000_v41 = vsel %vm4693_vm6, %v6965_v36, %v4302_v22  ;;  %v7012_v35 = vcombine.low %v2356_v59, %v2359_v52  ;;  %v5132_v46 = vsel %vm4693_vm6, %v7030_v49, %v4560_v27  ;;  %v3151_v60 = vrot.slane %v3150_v7, 4  ;;  %v12748_v22 = vld [vmem:[#allocation23_spill] sm:$0xff] }
 0x1ed   :  { %6008 = vmatmul.mubr.bf16.gmra.mrb[48].mxu0 %v5000_v41  ;;  %v1185_v34 = vsel %vm8555_vm5, %v6566_v30, %v1184_v39  ;;  %v1186_v58 = vrot.slane %v1184_v39, 4  ;;  %v1619_v53 = vor.u32 %v12747_v25, %v12746_v21  ;;  %v12749_v36 = vshll.u32 %v12748_v22, 16  ;;  %v11074_v30 = vpop.f32.mrb[16].mxu1 }
 0x1ee   :  { %4331 = vrot.lane.b32.xlu1 %v7012_v35, %s7819_s19  ;;  %6015 = vmatprep.mubr.bf16.mxu0 %v5132_v46  ;;  %v12750_v28 = vshll.u32 %v9868_v29, 16  ;;  %v6854_v27 = vcombine.low %v7688_v8, %v7689_v20  ;;  %v3158_v49 = vshrl.u32 %v6781_v33, 16  ;;  %12751 = vst [vmem:[#allocation26_spill] sm:$0xff] %v11074_v30  ;;  %v3156_v7 = vsel %vm7904_vm2, %v3151_v60, %v3155_v32  ;;  %v6783_v29 = vld [vmem:[%s12407_s0 + $0x188] sm:$0x1]  ;;  %v5722_v8 = vpop.f32.mrb[17].mxu1  ;;  %v11089_v60 = vpop.permute.xlu1 %4081 }
 0x1ef   :  { %v1624_v14 = vrot.slane %v12749_v36, 5  ;;  %v1188_v52 = vsel %vm8555_vm5, %v1186_v58, %v1187_v24  ;;  %v1620_v39 = vrot.slane %v1619_v53, 4  ;;  %v3161_v41 = vshll.u32 %v6781_v33, 16  ;;  %v12752_v46 = vld [vmem:[#allocation41_spill] sm:$0xff]  ;;  %v11085_v22 = vpop.f32.mrb[18].mxu1 }
 0x1f0   :  { %v1634_v59 = vrot.slane %v12750_v28, 5  ;;  %v7076_v20 = vcombine.low %v3146_v43, %v3156_v7  ;;  %v6918_v35 = vcombine.low %v1185_v34, %v1188_v52  ;;  %v4812_v25 = vsel %vm4693_vm6, %v6854_v27, %v3824_v0  ;;  %12753 = vst [vmem:[#allocation28_spill] sm:$0xff] %v11085_v22  ;;  %v6655_v33 = vld [vmem:[%s12407_s0 + $0x17c] sm:$0x1]  ;;  %v5725_v43 = vpop.f32.mrb[19].mxu1 }
 0x1f1   :  { %v1629_v21 = vor.u32 %v12752_v46, %v1624_v14  ;;  %v1625_v32 = vsel %vm7904_vm2, %v1620_v39, %v1624_v14  ;;  %v3160_v24 = vrot.slane %v3158_v49, 4  ;;  %v3163_v58 = vrot.slane %v3161_v41, 5  ;;  %v4562_v14 = vpop.permute.xlu0 %4561  ;;  %v7695_v43 = vld [vmem:[%s12407_s0 + $0x188] sm:$0x1] }
 0x1f2   :  { %v3167_v53 = vshll.u32 %v6782_v1, 16  ;;  %4587 = vrot.lane.b32.xlu0 %v7076_v20, %s7819_s19  ;;  %v4940_v0 = vsel %vm4693_vm6, %v6918_v35, %v11012_v40  ;;  %v3171_v36 = vshrl.u32 %v6782_v1, 16  ;;  %v3177_v28 = vshll.u32 %v6783_v29, 16 }
 0x1f3   :  { %v1630_v34 = vrot.slane %v1629_v21, 4  ;;  %5854 = vmatprep.mubr.bf16.mxu1 %v4940_v0  ;;  %v3164_v27 = vor.u32 %v3163_v58, %v3160_v24  ;;  %v12754_v49 = vrot.slane %v9750_v15, 5  ;;  %v12755_v52 = vrot.slane %v9740_v51, 9  ;;  %v11110_v21 = vld [vmem:[%s12407_s0 + $0xc0] sm:$0xf] }
 0x1f4   :  { %v3169_v7 = vrot.slane %v3167_v53, 5  ;;  %5855 = vmatmul.mubr.bf16.gmra.mrb[84].mxu1 %v4812_v25  ;;  %v3173_v1 = vrot.slane %v3171_v36, 4  ;;  %v3179_v29 = vrot.slane %v3177_v28, 5  ;;  %v2365_v20 = vrot.slane %v6655_v33, 5  ;;  %v11115_v51 = vld [vmem:[%s12407_s0 + $0xc4] sm:$0xf] }
 0x1f5   :  { %v2363_v39 = vsel %vm8555_vm5, %v12755_v52, %v12754_v49  ;;  %v12756_v41 = vmov %v12754_v49  ;;  %v1635_v40 = vsel %vm7904_vm2, %v1630_v34, %v1634_v59  ;;  %v3165_v46 = vrot.slane %v3164_v27, 4  ;;  %v7693_v59 = vld [vmem:[%s12407_s0 + $0x180] sm:$0xf]  ;;  %v7694_v53 = vld [vmem:[%s12407_s0 + $0x184] sm:$0xf]  ;;  %v3826_v52 = vpop.permute.xlu1 %3825 }
 0x1f6   :  { %v2364_v8 = vrot.slane %v12756_v41, 4  ;;  %v6966_v35 = vcombine.low %v1625_v32, %v1635_v40  ;;  %v7031_v24 = vcombine.low %v11110_v21, %v11115_v51  ;;  %v6567_v25 = vrot.slane %v7693_v59, 9  ;;  %v6784_v34 = vld [vmem:[%s12407_s0 + $0x18c] sm:$0xf] }
 0x1f7   :  { %v3174_v32 = vor.u32 %v3173_v1, %v3169_v7  ;;  %v1191_v33 = vrot.slane %v7694_v53, 5  ;;  %v1194_v0 = vrot.slane %v7695_v43, 5  ;;  %v3170_v28 = vsel %vm7904_vm2, %v3165_v46, %v3169_v7  ;;  %v12757_v1 = vld [vmem:[#allocation47_spill] sm:$0xff] }
 0x1f8   :  { %v2366_v58 = vsel %vm8555_vm5, %v2364_v8, %v2365_v20  ;;  %v5004_v36 = vsel %vm4693_vm6, %v6966_v35, %v4304_v50  ;;  %v5136_v49 = vsel %vm4693_vm6, %v7031_v24, %v4562_v14  ;;  %v12758_v20 = vld [vmem:[#allocation48_spill] sm:$0xff]  ;;  %v4306_v50 = vpop.permute.xlu0 %4305  ;;  %v12759_v35 = vld [vmem:[#allocation31_spill] sm:$0xff]  ;;  %v6855_v46 = vcombine.low %v7693_v59, %v7694_v53 }
 0x1f9   :  { %v7013_v27 = vcombine.low %v2363_v39, %v2366_v58  ;;  %6016 = vmatmul.mubr.bf16.gmra.mrb[52].mxu0 %v5004_v36  ;;  %v3175_v41 = vrot.slane %v3174_v32, 4  ;;  %v1192_v8 = vsel %vm8555_vm5, %v6567_v25, %v1191_v33  ;;  %v1193_v40 = vrot.slane %v1191_v33, 4  ;;  %v6785_v24 = vld [vmem:[%s12407_s0 + $0x190] sm:$0xf] }
 0x1fa   :  { %v1643_v43 = vor.u32 %v12758_v20, %v12757_v1  ;;  %6023 = vmatprep.mubr.bf16.mxu0 %v5136_v49  ;;  %v12760_v22 = vshll.u32 %v12759_v35, 16  ;;  %v12761_v39 = vshll.u32 %v9989_v17, 16  ;;  %v3182_v25 = vshrl.u32 %v6784_v34, 16  ;;  %v12762_v59 = vld [vmem:[#allocation51_spill] sm:$0xff] }
 0x1fb   :  { %4333 = vrot.lane.b32.xlu1 %v7013_v27, %s7819_s19  ;;  %v3180_v32 = vsel %vm7904_vm2, %v3175_v41, %v3179_v29  ;;  %v1195_v58 = vsel %vm8555_vm5, %v1193_v40, %v1194_v0  ;;  %v3185_v36 = vshll.u32 %v6784_v34, 16  ;;  %v4816_v49 = vsel %vm4693_vm6, %v6855_v46, %v3826_v52  ;;  %v6658_v0 = vld [vmem:[%s12407_s0 + $0x188] sm:$0x1] }
 0x1fc   :  { %v1648_v7 = vrot.slane %v12760_v22, 5  ;;  %v1658_v14 = vrot.slane %v12761_v39, 5  ;;  %v1644_v33 = vrot.slane %v1643_v43, 4  ;;  %v6786_v22 = vld [vmem:[%s12407_s0 + $0x194] sm:$0x1]  ;;  %v7077_v17 = vcombine.low %v3170_v28, %v3180_v32 }
 0x1fd   :  { %v6919_v27 = vcombine.low %v1192_v8, %v1195_v58  ;;  %v3184_v20 = vrot.slane %v3182_v25, 4  ;;  %v3187_v29 = vrot.slane %v3185_v36, 5  ;;  %v3191_v41 = vshll.u32 %v6785_v24, 16  ;;  %v11166_v8 = vpop.permute.xlu1 %4083  ;;  %v4564_v58 = vpop.permute.xlu0 %4563 }
 0x1fe   :  { %v1653_v53 = vor.u32 %v12762_v59, %v1648_v7  ;;  %v1649_v1 = vsel %vm7904_vm2, %v1644_v33, %v1648_v7  ;;  %4589 = vrot.lane.b32.xlu0 %v7077_v17, %s7819_s19  ;;  %v3195_v40 = vshrl.u32 %v6785_v24, 16  ;;  %v3201_v52 = vshll.u32 %v6786_v22, 16 }
 0x1ff   :  { %v4944_v34 = vsel %vm4693_vm6, %v6919_v27, %v11089_v60  ;;  %v3188_v43 = vor.u32 %v3187_v29, %v3184_v20  ;;  %v3193_v35 = vrot.slane %v3191_v41, 5  ;;  %v12763_v7 = vrot.slane %v9852_v4, 5  ;;  %v11186_v4 = vld [vmem:[%s12407_s0 + $0xd0] sm:$0xf]  ;;  %v7698_v27 = vld [vmem:[%s12407_s0 + $0x18c] sm:$0xf] }
 0x200   :  { %v1654_v28 = vrot.slane %v1653_v53, 4  ;;  %5862 = vmatprep.mubr.bf16.mxu1 %v4944_v34  ;;  %v12764_v39 = vrot.slane %v9840_v2, 9  ;;  %v3197_v24 = vrot.slane %v3195_v40, 4  ;;  %v3203_v33 = vrot.slane %v3201_v52, 5  ;;  %v11181_v2 = vld [vmem:[%s12407_s0 + $0xcc] sm:$0xf] }
 0x201   :  { %v12765_v25 = vmov %v12763_v7  ;;  %5863 = vmatmul.mubr.bf16.gmra.mrb[88].mxu1 %v4816_v49  ;;  %v2372_v22 = vrot.slane %v6658_v0, 5  ;;  %v3189_v17 = vrot.slane %v3188_v43, 4  ;;  %v6568_v59 = vrot.slane %v7698_v27, 9  ;;  %v7700_v29 = vld [vmem:[%s12407_s0 + $0x194] sm:$0x1]  ;;  %v11204_v34 = vpop.f32.mrb[20].mxu1 }
 0x202   :  { %v2370_v46 = vsel %vm8555_vm5, %v12764_v39, %v12763_v7  ;;  %v2371_v32 = vrot.slane %v12765_v25, 4  ;;  %v1659_v60 = vsel %vm7904_vm2, %v1654_v28, %v1658_v14  ;;  %v7032_v14 = vcombine.low %v11181_v2, %v11186_v4  ;;  %v6787_v0 = vld [vmem:[%s12407_s0 + $0x198] sm:$0xf]  ;;  %12766 = vst [vmem:[#allocation15_spill] sm:$0xff] %v11204_v34  ;;  %v5730_v7 = vpop.f32.mrb[21].mxu1 }
 0x203   :  { %v6967_v36 = vcombine.low %v1649_v1, %v1659_v60  ;;  %v3198_v53 = vor.u32 %v3197_v24, %v3193_v35  ;;  %v7699_v1 = vld [vmem:[%s12407_s0 + $0x190] sm:$0xf]  ;;  %v1201_v41 = vrot.slane %v7700_v29, 5  ;;  %v3194_v40 = vsel %vm7904_vm2, %v3189_v17, %v3193_v35  ;;  %v3828_v60 = vpop.permute.xlu1 %3827  ;;  %v11214_v34 = vpop.f32.mrb[22].mxu1  ;;  %v12773_v7 = vld [vmem:[#allocation60_spill] sm:$0xff] }
 0x204   :  { %v2373_v49 = vsel %vm8555_vm5, %v2371_v32, %v2372_v22  ;;  %v1198_v20 = vrot.slane %v7699_v1, 5  ;;  %v5140_v43 = vsel %vm4693_vm6, %v7032_v14, %v4564_v58  ;;  %v12767_v24 = vld [vmem:[#allocation55_spill] sm:$0xff]  ;;  %12769 = vst [vmem:[#allocation75_spill] sm:$0xff] %v11214_v34  ;;  %v12772_v58 = vshll.u32 %v10118_v26, 16  ;;  %v6788_v14 = vld [vmem:[%s12407_s0 + $0x19c] sm:$0xf] }
 0x205   :  { %v5008_v28 = vsel %vm4693_vm6, %v6967_v36, %v4306_v50  ;;  %v7014_v52 = vcombine.low %v2370_v46, %v2373_v49  ;;  %v3199_v39 = vrot.slane %v3198_v53, 4  ;;  %v12768_v22 = vld [vmem:[#allocation59_spill] sm:$0xff]  ;;  %v12770_v50 = vld [vmem:[#allocation38_spill] sm:$0xff]  ;;  %v6856_v17 = vcombine.low %v7698_v27, %v7699_v1  ;;  %v5733_v53 = vpop.f32.mrb[23].mxu1  ;;  %v4308_v1 = vpop.permute.xlu0 %4307 }
 0x206   :  { %6024 = vmatmul.mubr.bf16.gmra.mrb[56].mxu0 %v5008_v28  ;;  %v1199_v25 = vsel %vm8555_vm5, %v6568_v59, %v1198_v20  ;;  %v1200_v32 = vrot.slane %v1198_v20, 4  ;;  %v1667_v29 = vor.u32 %v12768_v22, %v12767_v24  ;;  %v12771_v35 = vshll.u32 %v12770_v50, 16 }
 0x207   :  { %4335 = vrot.lane.b32.xlu1 %v7014_v52, %s7819_s19  ;;  %6031 = vmatprep.mubr.bf16.mxu0 %v5140_v43  ;;  %v1682_v36 = vrot.slane %v12772_v58, 5  ;;  %v3206_v59 = vshrl.u32 %v6787_v0, 16  ;;  %v3204_v49 = vsel %vm7904_vm2, %v3199_v39, %v3203_v33  ;;  %v6789_v52 = vld [vmem:[%s12407_s0 + $0x1a0] sm:$0x1]  ;;  %v3209_v26 = vshll.u32 %v6787_v0, 16 }
 0x208   :  { %v1672_v46 = vrot.slane %v12771_v35, 5  ;;  %v1202_v20 = vsel %vm8555_vm5, %v1200_v32, %v1201_v41  ;;  %v1668_v28 = vrot.slane %v1667_v29, 4  ;;  %v7078_v43 = vcombine.low %v3194_v40, %v3204_v49  ;;  %v6661_v41 = vld [vmem:[%s12407_s0 + $0x194] sm:$0x1] }
 0x209   :  { %v6920_v27 = vcombine.low %v1199_v25, %v1202_v20  ;;  %v4820_v22 = vsel %vm4693_vm6, %v6856_v17, %v3828_v60  ;;  %v3208_v33 = vrot.slane %v3206_v59, 4  ;;  %v3211_v39 = vrot.slane %v3209_v26, 5 }
 0x20a   :  { %v1677_v24 = vor.u32 %v12773_v7, %v1672_v46  ;;  %v1673_v50 = vsel %vm7904_vm2, %v1668_v28, %v1672_v46  ;;  %v3215_v35 = vshll.u32 %v6788_v14, 16  ;;  %4591 = vrot.lane.b32.xlu0 %v7078_v43, %s7819_s19  ;;  %v3219_v25 = vshrl.u32 %v6788_v14, 16  ;;  %v4566_v28 = vpop.permute.xlu0 %4565  ;;  %v12777_v43 = vld [vmem:[#allocation61_spill] sm:$0xff] }
 0x20b   :  { %v4948_v0 = vsel %vm4693_vm6, %v6920_v27, %v11166_v8  ;;  %v3225_v32 = vshll.u32 %v6789_v52, 16  ;;  %v3212_v60 = vor.u32 %v3211_v39, %v3208_v33  ;;  %v12774_v46 = vrot.slane %v9978_v42, 5  ;;  %v11259_v42 = vld [vmem:[%s12407_s0 + $0xf4] sm:$0xf] }
 0x20c   :  { %v1678_v40 = vrot.slane %v1677_v24, 4  ;;  %5870 = vmatprep.mubr.bf16.mxu1 %v4948_v0  ;;  %v3217_v29 = vrot.slane %v3215_v35, 5  ;;  %v12775_v58 = vrot.slane %v9964_v9, 9  ;;  %v3221_v8 = vrot.slane %v3219_v25, 4  ;;  %v11254_v9 = vld [vmem:[%s12407_s0 + $0xf0] sm:$0xf] }
 0x20d   :  { %v12776_v59 = vmov %v12774_v46  ;;  %5871 = vmatmul.mubr.bf16.gmra.mrb[92].mxu1 %v4820_v22  ;;  %v3227_v14 = vrot.slane %v3225_v32, 5  ;;  %v2379_v20 = vrot.slane %v6661_v41, 5  ;;  %v3213_v26 = vrot.slane %v3212_v60, 4  ;;  %v12778_v27 = vld [vmem:[#allocation63_spill] sm:$0xff]  ;;  %v6790_v0 = vld [vmem:[%s12407_s0 + $0x1a4] sm:$0xf] }
 0x20e   :  { %v2377_v17 = vsel %vm8555_vm5, %v12775_v58, %v12774_v46  ;;  %v2378_v53 = vrot.slane %v12776_v59, 4  ;;  %v1683_v49 = vsel %vm7904_vm2, %v1678_v40, %v1682_v36  ;;  %v7033_v36 = vcombine.low %v11254_v9, %v11259_v42  ;;  %v12782_v59 = vld [vmem:[#allocation66_spill] sm:$0xff] }
 0x20f   :  { %v6968_v52 = vcombine.low %v1673_v50, %v1683_v49  ;;  %v1691_v7 = vor.u32 %v12778_v27, %v12777_v43  ;;  %v3222_v24 = vor.u32 %v3221_v8, %v3217_v29  ;;  %v12779_v50 = vld [vmem:[#allocation44_spill] sm:$0xff]  ;;  %v12781_v35 = vshll.u32 %v10214_v13, 16 }
 0x210   :  { %v2380_v22 = vsel %vm8555_vm5, %v2378_v53, %v2379_v20  ;;  %v12780_v33 = vshll.u32 %v12779_v50, 16  ;;  %v3218_v25 = vsel %vm7904_vm2, %v3213_v26, %v3217_v29  ;;  %v5144_v60 = vsel %vm4693_vm6, %v7033_v36, %v4566_v28  ;;  %v7703_v13 = vld [vmem:[%s12407_s0 + $0x18] sm:$0xf]  ;;  %v12785_v20 = vld [vmem:[#allocation49_spill] sm:$0xff]  ;;  %v6791_v26 = vld [vmem:[%s12407_s0 + $0x1a8] sm:$0xf] }
 0x211   :  { %v1706_v41 = vrot.slane %v12781_v35, 5  ;;  %v5012_v40 = vsel %vm4693_vm6, %v6968_v52, %v4308_v1  ;;  %v7015_v32 = vcombine.low %v2377_v17, %v2380_v22  ;;  %v3223_v46 = vrot.slane %v3222_v24, 4  ;;  %v7704_v1 = vld [vmem:[%s12407_s0 + $0x1c] sm:$0xf]  ;;  %v12783_v17 = vld [vmem:[#allocation50_spill] sm:$0xff] }
 0x212   :  { %v1696_v39 = vrot.slane %v12780_v33, 5  ;;  %6032 = vmatmul.mubr.bf16.gmra.mrb[60].mxu0 %v5012_v40  ;;  %v1692_v58 = vrot.slane %v1691_v7, 4  ;;  %v6793_v49 = vrot.slane %v7703_v13, 9  ;;  %v3351_v29 = vrot.slane %v7704_v1, 5  ;;  %v12787_v22 = vld [vmem:[#allocation68_spill] sm:$0xff] }
 0x213   :  { %4337 = vrot.lane.b32.xlu1 %v7015_v32, %s7819_s19  ;;  %6039 = vmatprep.mubr.bf16.mxu0 %v5144_v60  ;;  %v12784_v8 = vrot.slane %v12783_v17, 5  ;;  %v12786_v28 = vrot.slane %v12785_v20, 9  ;;  %v3230_v36 = vshrl.u32 %v6790_v0, 16  ;;  %v3233_v43 = vshll.u32 %v6790_v0, 16  ;;  %v6792_v33 = vld [vmem:[%s12407_s0 + $0x1ac] sm:$0x1]  ;;  %v4310_v0 = vpop.permute.xlu1 %4309 }
 0x214   :  { %v1701_v53 = vor.u32 %v12782_v59, %v1696_v39  ;;  %v3228_v27 = vsel %vm7904_vm2, %v3223_v46, %v3227_v14  ;;  %v1697_v7 = vsel %vm7904_vm2, %v1692_v58, %v1696_v39  ;;  %v3352_v40 = vsel %vm8555_vm5, %v6793_v49, %v3351_v29  ;;  %v11310_v58 = vld [vmem:[%s12407_s0 + $0x1a0] sm:$0x1] }
 0x215   :  { %v3359_v52 = vsel %vm8555_vm5, %v12786_v28, %v12784_v8  ;;  %v7079_v35 = vcombine.low %v3218_v25, %v3228_v27  ;;  %v3353_v32 = vrot.slane %v3351_v29, 4  ;;  %v3232_v60 = vrot.slane %v3230_v36, 4  ;;  %v11323_v8 = vpop.f32.mrb[24].mxu1 }
 0x216   :  { %v1702_v24 = vrot.slane %v1701_v53, 4  ;;  %v7082_v50 = vcombine.low %v3359_v52, %v12787_v22  ;;  %v3235_v46 = vrot.slane %v3233_v43, 5  ;;  %v3239_v59 = vshll.u32 %v6791_v26, 16  ;;  %v12788_v53 = vld [vmem:[#allocation43_spill] sm:$0xff]  ;;  %12792 = vst [vmem:[#allocation29_spill] sm:$0xff] %v11323_v8  ;;  %v5738_v36 = vpop.f32.mrb[25].mxu1 }
 0x217   :  { %v3243_v39 = vshrl.u32 %v6791_v26, 16  ;;  %4593 = vrot.lane.b32.xlu0 %v7079_v35, %s7819_s19  ;;  %v12789_v13 = vrot.slane %v12788_v53, 5  ;;  %v3249_v1 = vshll.u32 %v6792_v33, 16  ;;  %v12790_v29 = vrot.slane %v10103_v3, 5  ;;  %v4568_v33 = vpop.permute.xlu0 %4567  ;;  %v11340_v3 = vld [vmem:[%s12407_s0 + $0x100] sm:$0xf] }
 0x218   :  { %v1707_v14 = vsel %vm7904_vm2, %v1702_v24, %v1706_v41  ;;  %v12791_v41 = vrot.slane %v10094_v31, 9  ;;  %v3236_v28 = vor.u32 %v3235_v46, %v3232_v60  ;;  %v3241_v52 = vrot.slane %v3239_v59, 5  ;;  %v11329_v31 = vpop.f32.mrb[26].mxu1  ;;  %v11578_v8 = vld [vmem:[%s12407_s0 + $0x180] sm:$0xf] }
 0x219   :  { %v6969_v25 = vcombine.low %v1697_v7, %v1707_v14  ;;  %v3355_v49 = vsel %vm8555_vm5, %v3353_v32, %v12789_v13  ;;  %v3245_v26 = vrot.slane %v3243_v39, 4  ;;  %v3251_v27 = vrot.slane %v3249_v1, 5  ;;  %12794 = vst [vmem:[#allocation65_spill] sm:$0xff] %v11329_v31  ;;  %v11335_v32 = vld [vmem:[%s12407_s0 + $0xfc] sm:$0xf]  ;;  %v12796_v14 = vld [vmem:[#allocation70_spill] sm:$0xff] }
 0x21a   :  { %v2384_v17 = vsel %vm8555_vm5, %v12791_v41, %v12790_v29  ;;  %v7081_v20 = vcombine.low %v3352_v40, %v3355_v49  ;;  %v12793_v7 = vmov %v12790_v29  ;;  %v2386_v22 = vrot.slane %v11310_v58, 5  ;;  %v5741_v59 = vpop.f32.mrb[27].mxu1  ;;  %v7707_v13 = vld [vmem:[%s12407_s0 + $0xf8] sm:$0x1]  ;;  %v7708_v1 = vld [vmem:[%s12407_s0 + $0x30] sm:$0xf] }
 0x21b   :  { %v5016_v43 = vsel %vm4693_vm6, %v6969_v25, %v4310_v0  ;;  %v2385_v24 = vrot.slane %v12793_v7, 4  ;;  %v3237_v35 = vrot.slane %v3236_v28, 4  ;;  %v3246_v40 = vor.u32 %v3245_v26, %v3241_v52  ;;  %v12795_v0 = vld [vmem:[#allocation69_spill] sm:$0xff]  ;;  %v12798_v26 = vld [vmem:[#allocation74_spill] sm:$0xff]  ;;  %v7709_v7 = vld [vmem:[%s12407_s0 + $0x34] sm:$0xf] }
 0x21c   :  { %6040 = vmatmul.mubr.bf16.gmra.mrb[64].mxu0 %v5016_v43  ;;  %7225 = vmatprep.mubr.msk.bf16.mxu1 %vm4693_vm6, %v7081_v20  ;;  %v7034_v60 = vcombine.low %v11335_v32, %v11340_v3  ;;  %v1715_v46 = vor.u32 %v12796_v14, %v12795_v0  ;;  %v12797_v25 = vshll.u32 %v8608_v18, 16  ;;  %v1728_v49 = vshll.u32 %v7707_v13, 16 }
 0x21d   :  { %7226 = vmatmul.mubr.msk.bf16.vlgmr.msra.gmra.mrb[96].mxu1 %vm4693_vm6, %v7082_v50  ;;  %v2387_v39 = vsel %vm8555_vm5, %v2385_v24, %v2386_v22  ;;  %v6795_v29 = vrot.slane %v7708_v1, 9  ;;  %v3242_v41 = vsel %vm7904_vm2, %v3237_v35, %v3241_v52  ;;  %v3247_v50 = vrot.slane %v3246_v40, 4  ;;  %v4570_v22 = vpop.permute.xlu0 %4569  ;;  %v11376_v40 = vld [vmem:[%s12407_s0 + $0x108] sm:$0xf] }
 0x21e   :  { %v1720_v53 = vrot.slane %v12797_v25, 5  ;;  %v7016_v20 = vcombine.low %v2384_v17, %v2387_v39  ;;  %v5148_v28 = vsel %vm4693_vm6, %v7034_v60, %v4568_v33  ;;  %v1716_v18 = vrot.slane %v1715_v46, 4  ;;  %v7710_v17 = vld [vmem:[%s12407_s0 + $0x3c] sm:$0xf]  ;;  %v7711_v33 = vld [vmem:[%s12407_s0 + $0x40] sm:$0xf] }
 0x21f   :  { %6047 = vmatprep.mubr.bf16.mxu0 %v5148_v28  ;;  %v1730_v43 = vrot.slane %v1728_v49, 5  ;;  %v3365_v24 = vrot.slane %v7709_v7, 5  ;;  %v3252_v0 = vsel %vm7904_vm2, %v3247_v50, %v3251_v27  ;;  %v6796_v52 = vrot.slane %v7710_v17, 9  ;;  %v11381_v27 = vld [vmem:[%s12407_s0 + $0x10c] sm:$0xf]  ;;  %v4312_v50 = vpop.permute.xlu1 %4311  ;;  %v12800_v28 = vld [vmem:[#allocation77_spill] sm:$0xff] }
 0x220   :  { %v1725_v36 = vor.u32 %v12798_v26, %v1720_v53  ;;  %4339 = vrot.lane.b32.xlu1 %v7016_v20, %s7819_s19  ;;  %v3372_v35 = vrot.slane %v7711_v33, 5  ;;  %v7035_v60 = vcombine.low %v11376_v40, %v11381_v27  ;;  %v7080_v14 = vcombine.low %v3242_v41, %v3252_v0  ;;  %v12799_v20 = vld [vmem:[#allocation76_spill] sm:$0xff]  ;;  %v12804_v17 = vld [vmem:[#allocation62_spill] sm:$0xff] }
 0x221   :  { %v1721_v46 = vsel %vm7904_vm2, %v1716_v18, %v1720_v53  ;;  %v3366_v39 = vsel %vm8555_vm5, %v6795_v29, %v3365_v24  ;;  %v3367_v25 = vrot.slane %v3365_v24, 4  ;;  %v1739_v53 = vor.u32 %v12800_v28, %v12799_v20  ;;  %v7714_v29 = vld [vmem:[%s12407_s0 + $0x104] sm:$0x1]  ;;  %v12802_v24 = vld [vmem:[#allocation56_spill] sm:$0xff] }
 0x222   :  { %v1726_v59 = vrot.slane %v1725_v36, 4  ;;  %v3373_v13 = vsel %vm8555_vm5, %v6796_v52, %v3372_v35  ;;  %v3374_v49 = vrot.slane %v3372_v35, 4  ;;  %v5152_v1 = vsel %vm4693_vm6, %v7035_v60, %v4570_v22  ;;  %4595 = vrot.lane.b32.xlu0 %v7080_v14, %s7819_s19 }
 0x223   :  { %v12801_v18 = vshll.u32 %v12634_v47, 16  ;;  %v1752_v36 = vshll.u32 %v7714_v29, 16  ;;  %v12803_v22 = vrot.slane %v12802_v24, 5  ;;  %v12805_v52 = vrot.slane %v12804_v17, 5  ;;  %v7715_v47 = vld [vmem:[%s12407_s0 + $0x48] sm:$0xf]  ;;  %v4572_v29 = vpop.permute.xlu0 %4571 }
 0x224   :  { %v1731_v41 = vsel %vm7904_vm2, %v1726_v59, %v1730_v43  ;;  %v6797_v33 = vrot.slane %v7715_v47, 9  ;;  %v1740_v14 = vrot.slane %v1739_v53, 4  ;;  %v12806_v59 = vld [vmem:[#allocation81_spill] sm:$0xff]  ;;  %v12808_v17 = vld [vmem:[#allocation84_spill] sm:$0xff] }
 0x225   :  { %v1744_v26 = vrot.slane %v12801_v18, 5  ;;  %v6970_v7 = vcombine.low %v1721_v46, %v1731_v41  ;;  %v3369_v0 = vsel %vm8555_vm5, %v3367_v25, %v12803_v22  ;;  %v3376_v43 = vsel %vm8555_vm5, %v3374_v49, %v12805_v52  ;;  %v7716_v25 = vld [vmem:[%s12407_s0 + $0x4c] sm:$0xf]  ;;  %v7717_v49 = vld [vmem:[%s12407_s0 + $0x54] sm:$0xf] }
 0x226   :  { %v7083_v35 = vcombine.low %v3366_v39, %v3369_v0  ;;  %v7084_v60 = vcombine.low %v3373_v13, %v3376_v43  ;;  %v1754_v20 = vrot.slane %v1752_v36, 5  ;;  %v3379_v28 = vrot.slane %v7716_v25, 5  ;;  %v11430_v36 = vld [vmem:[%s12407_s0 + $0x114] sm:$0xf] }
 0x227   :  { %v1749_v46 = vor.u32 %v12806_v59, %v1744_v26  ;;  %v5020_v41 = vsel %vm4693_vm6, %v6970_v7, %v4312_v50  ;;  %v6798_v18 = vrot.slane %v7717_v49, 9  ;;  %v1745_v39 = vsel %vm7904_vm2, %v1740_v14, %v1744_v26  ;;  %v7718_v50 = vld [vmem:[%s12407_s0 + $0x58] sm:$0xf]  ;;  %v12807_v0 = vld [vmem:[#allocation83_spill] sm:$0xff]  ;;  %v12812_v49 = vld [vmem:[#allocation86_spill] sm:$0xff] }
 0x228   :  { %6048 = vmatmul.mubr.bf16.gmra.mrb[68].mxu0 %v5020_v41  ;;  %7229 = vmatprep.mubr.msk.bf16.mxu1 %vm4693_vm6, %v7083_v35  ;;  %v3386_v53 = vrot.slane %v7718_v50, 5  ;;  %v11435_v7 = vld [vmem:[%s12407_s0 + $0x118] sm:$0xf]  ;;  %v3380_v26 = vsel %vm8555_vm5, %v6797_v33, %v3379_v28  ;;  %v3381_v22 = vrot.slane %v3379_v28, 4  ;;  %v1763_v52 = vor.u32 %v12808_v17, %v12807_v0  ;;  %v4314_v35 = vpop.permute.xlu1 %4313  ;;  %v12810_v41 = vld [vmem:[#allocation71_spill] sm:$0xff]  ;;  %v12813_v0 = vld [vmem:[#allocation78_spill] sm:$0xff] }
 0x229   :  { %v1750_v13 = vrot.slane %v1749_v46, 4  ;;  %v7036_v24 = vcombine.low %v11430_v36, %v11435_v7  ;;  %7230 = vmatmul.mubr.msk.bf16.gmra.mrb[100].mxu1 %vm4693_vm6, %v7084_v60  ;;  %6055 = vmatprep.mubr.bf16.mxu0 %v5152_v1  ;;  %v12809_v43 = vshll.u32 %v12646_v44, 16  ;;  %v12811_v33 = vrot.slane %v12810_v41, 5 }
 0x22a   :  { %v3387_v59 = vsel %vm8555_vm5, %v6798_v18, %v3386_v53  ;;  %v3388_v46 = vrot.slane %v3386_v53, 4  ;;  %v1764_v28 = vrot.slane %v1763_v52, 4  ;;  %v12814_v17 = vrot.slane %v12813_v0, 5  ;;  %v7721_v18 = vld [vmem:[%s12407_s0 + $0x110] sm:$0x1]  ;;  %v11466_v53 = vpop.f32.mrb[28].mxu1 }
 0x22b   :  { %v1768_v47 = vrot.slane %v12809_v43, 5  ;;  %v1755_v14 = vsel %vm7904_vm2, %v1750_v13, %v1754_v20  ;;  %v5156_v1 = vsel %vm4693_vm6, %v7036_v24, %v4572_v29  ;;  %v3383_v25 = vsel %vm8555_vm5, %v3381_v22, %v12811_v33  ;;  %12815 = vst [vmem:[#allocation64_spill] sm:$0xff] %v11466_v53  ;;  %v5746_v43 = vpop.f32.mrb[29].mxu1  ;;  %v7724_v33 = vld [vmem:[%s12407_s0 + $0x6c] sm:$0xf] }
 0x22c   :  { %v6971_v60 = vcombine.low %v1745_v39, %v1755_v14  ;;  %v7085_v50 = vcombine.low %v3380_v26, %v3383_v25  ;;  %v3390_v20 = vsel %vm8555_vm5, %v3388_v46, %v12814_v17  ;;  %v1776_v29 = vshll.u32 %v7721_v18, 16  ;;  %v7722_v39 = vld [vmem:[%s12407_s0 + $0x60] sm:$0xf]  ;;  %v7723_v46 = vld [vmem:[%s12407_s0 + $0x64] sm:$0xf] }
 0x22d   :  { %v1773_v44 = vor.u32 %v12812_v49, %v1768_v47  ;;  %v6799_v13 = vrot.slane %v7722_v39, 9  ;;  %v7086_v26 = vcombine.low %v3387_v59, %v3390_v20  ;;  %v1769_v22 = vsel %vm7904_vm2, %v1764_v28, %v1768_v47  ;;  %v11481_v59 = vpop.f32.mrb[30].mxu1  ;;  %v11491_v28 = vld [vmem:[%s12407_s0 + $0x124] sm:$0xf]  ;;  %v7728_v18 = vld [vmem:[%s12407_s0 + $0x11c] sm:$0x1] }
 0x22e   :  { %v5024_v24 = vsel %vm4693_vm6, %v6971_v60, %v4314_v35  ;;  %7233 = vmatprep.mubr.msk.bf16.mxu1 %vm4693_vm6, %v7085_v50  ;;  %v1778_v14 = vrot.slane %v1776_v29, 5  ;;  %v3393_v41 = vrot.slane %v7723_v46, 5  ;;  %v6800_v25 = vrot.slane %v7724_v33, 9  ;;  %v7725_v35 = vld [vmem:[%s12407_s0 + $0x70] sm:$0xf]  ;;  %12816 = vst [vmem:[#allocation35_spill] sm:$0xff] %v11481_v59 }
 0x22f   :  { %v1774_v52 = vrot.slane %v1773_v44, 4  ;;  %v3400_v47 = vrot.slane %v7725_v35, 5  ;;  %v11486_v60 = vld [vmem:[%s12407_s0 + $0x120] sm:$0xf]  ;;  %v12819_v17 = vshll.u32 %v12658_v12, 16  ;;  %v1800_v29 = vshll.u32 %v7728_v18, 16  ;;  %v4574_v12 = vpop.permute.xlu0 %4573 }
 0x230   :  { %v7037_v49 = vcombine.low %v11486_v60, %v11491_v28  ;;  %v12817_v44 = vld [vmem:[#allocation89_spill] sm:$0xff]  ;;  %v5749_v39 = vpop.f32.mrb[31].mxu1  ;;  %v12820_v43 = vshrl.u32 %v9750_v15, 16  ;;  %6056 = vmatmul.mubr.bf16.gmra.mrb[72].mxu0 %v5024_v24  ;;  %v3394_v35 = vsel %vm8555_vm5, %v6799_v13, %v3393_v41 }
 0x231   :  { %v12818_v50 = vld [vmem:[#allocation93_spill] sm:$0xff]  ;;  %v1792_v20 = vrot.slane %v12819_v17, 5  ;;  %v1779_v33 = vsel %vm7904_vm2, %v1774_v52, %v1778_v14  ;;  %7234 = vmatmul.mubr.msk.bf16.gmra.mrb[104].mxu1 %vm4693_vm6, %v7086_v26  ;;  %6063 = vmatprep.mubr.bf16.mxu0 %v5156_v1  ;;  %v3401_v18 = vsel %vm8555_vm5, %v6800_v25, %v3400_v47  ;;  %v3402_v39 = vrot.slane %v3400_v47, 4  ;;  %v12823_v14 = vld [vmem:[#allocation96_spill] sm:$0xff] }
 0x232   :  { %v1787_v0 = vor.u32 %v12818_v50, %v12817_v44  ;;  %v11504_v46 = vrot.slane %v12820_v43, 4  ;;  %v3395_v44 = vrot.slane %v3393_v41, 4  ;;  %v4316_v50 = vpop.permute.xlu1 %4315  ;;  %v6972_v17 = vcombine.low %v1769_v22, %v1779_v33  ;;  %v12821_v59 = vld [vmem:[#allocation85_spill] sm:$0xff]  ;;  %v7729_v26 = vld [vmem:[%s12407_s0 + $0x78] sm:$0xf]  ;;  %v12824_v22 = vld [vmem:[#allocation91_spill] sm:$0xff] }
 0x233   :  { %v12822_v24 = vrot.slane %v12821_v59, 5  ;;  %v1797_v53 = vor.u32 %v12823_v14, %v1792_v20  ;;  %v1802_v13 = vrot.slane %v1800_v29, 5  ;;  %v6801_v41 = vrot.slane %v7729_v26, 9 }
 0x234   :  { %v1788_v43 = vrot.slane %v1787_v0, 4  ;;  %v12825_v33 = vrot.slane %v12824_v22, 5  ;;  %v5160_v47 = vsel %vm4693_vm6, %v7037_v49, %v4574_v12  ;;  %v5028_v0 = vsel %vm4693_vm6, %v6972_v17, %v4316_v50  ;;  %v7732_v49 = vld [vmem:[%s12407_s0 + $0x88] sm:$0xf]  ;;  %v12826_v12 = vld [vmem:[#allocation97_spill] sm:$0xff] }
 0x235   :  { %v3397_v52 = vsel %vm8555_vm5, %v3395_v44, %v12822_v24  ;;  %v1798_v29 = vrot.slane %v1797_v53, 4  ;;  %v7730_v24 = vld [vmem:[%s12407_s0 + $0x7c] sm:$0xf]  ;;  %v12827_v50 = vld [vmem:[#allocation98_spill] sm:$0xff]  ;;  %v12828_v17 = vshll.u32 %v12670_v5, 16 }
 0x236   :  { %v7087_v1 = vcombine.low %v3394_v35, %v3397_v52  ;;  %v3404_v25 = vsel %vm8555_vm5, %v3402_v39, %v12825_v33  ;;  %v1793_v59 = vsel %vm7904_vm2, %v1788_v43, %v1792_v20  ;;  %v3407_v14 = vrot.slane %v7730_v24, 5  ;;  %v7731_v35 = vld [vmem:[%s12407_s0 + $0x84] sm:$0xf]  ;;  %v11553_v33 = vld [vmem:[%s12407_s0 + $0xbc] sm:$0x1] }
 0x237   :  { %v7088_v44 = vcombine.low %v3401_v18, %v3404_v25  ;;  %v6802_v39 = vrot.slane %v7731_v35, 9  ;;  %v3414_v20 = vrot.slane %v7732_v49, 5  ;;  %v1811_v53 = vor.u32 %v12827_v50, %v12826_v12  ;;  %v4318_v25 = vpop.permute.xlu1 %4317  ;;  %v12830_v49 = vld [vmem:[#allocation99_spill] sm:$0xff]  ;;  %v4576_v50 = vpop.permute.xlu0 %4575 }
 0x238   :  { %7237 = vmatprep.mubr.msk.bf16.mxu1 %vm4693_vm6, %v7087_v1  ;;  %v1816_v18 = vrot.slane %v12828_v17, 5  ;;  %v1803_v43 = vsel %vm7904_vm2, %v1798_v29, %v1802_v13  ;;  %v3408_v52 = vsel %vm8555_vm5, %v6801_v41, %v3407_v14  ;;  %v3409_v26 = vrot.slane %v3407_v14, 4  ;;  %v7733_v1 = vld [vmem:[%s12407_s0 + $0x128] sm:$0x1]  ;;  %v11559_v13 = vld [vmem:[%s12407_s0 + $0x12c] sm:$0xf]  ;;  %6064 = vmatmul.mubr.bf16.gmra.mrb[76].mxu0 %v5028_v0 }
 0x239   :  { %v1824_v22 = vshll.u32 %v7733_v1, 16  ;;  %v6973_v24 = vcombine.low %v1793_v59, %v1803_v43  ;;  %v3416_v35 = vrot.slane %v3414_v20, 4  ;;  %v11564_v41 = vld [vmem:[%s12407_s0 + $0x130] sm:$0xf]  ;;  %v11568_v14 = vpop.f32.mrb[0].mxu0  ;;  %v12831_v12 = vrot.slane %v12830_v49, 5  ;;  %7238 = vmatmul.mubr.msk.bf16.gmra.mrb[108].mxu1 %vm4693_vm6, %v7088_v44  ;;  %6071 = vmatprep.mubr.bf16.mxu0 %v5160_v47 }
 0x23a   :  { %v7038_v29 = vcombine.low %v11559_v13, %v11564_v41  ;;  %12829 = vst [vmem:[#allocation36_spill] sm:$0xff] %v11568_v14  ;;  %v1812_v17 = vrot.slane %v1811_v53, 4  ;;  %v12832_v43 = vld [vmem:[#allocation102_spill] sm:$0xff]  ;;  %v5915_v31 = vpop.f32.mrb[1].mxu0  ;;  %v7738_v53 = vld [vmem:[%s12407_s0 + $0x90] sm:$0xf] }
 0x23b   :  { %v3411_v59 = vsel %vm8555_vm5, %v3409_v26, %v12831_v12  ;;  %v1821_v1 = vor.u32 %v12832_v43, %v1816_v18  ;;  %v1826_v5 = vrot.slane %v1824_v22, 5  ;;  %v3415_v26 = vsel %vm8555_vm5, %v6802_v39, %v3414_v20  ;;  %v11587_v31 = vpop.f32.mrb[2].mxu0  ;;  %v12834_v49 = vld [vmem:[#allocation106_spill] sm:$0xff]  ;;  %v7739_v39 = vld [vmem:[%s12407_s0 + $0x94] sm:$0xf] }
 0x23c   :  { %v7089_v0 = vcombine.low %v3408_v52, %v3411_v59  ;;  %v6803_v22 = vrot.slane %v7738_v53, 9  ;;  %12833 = vst [vmem:[#allocation20_spill] sm:$0xff] %v11587_v31  ;;  %v12835_v12 = vrot.slane %v12834_v49, 5  ;;  %v1817_v44 = vsel %vm7904_vm2, %v1812_v17, %v1816_v18  ;;  %v5918_v52 = vpop.f32.mrb[3].mxu0  ;;  %v12837_v18 = vld [vmem:[#allocation105_spill] sm:$0xff]  ;;  %v11615_v31 = vpop.f32.mrb[32].mxu1 }
 0x23d   :  { %v1822_v47 = vrot.slane %v1821_v1, 4  ;;  %v3421_v20 = vrot.slane %v7739_v39, 5  ;;  %v5032_v59 = vsel %vm4693_vm6, %v6973_v24, %v4318_v25  ;;  %v5164_v53 = vsel %vm4693_vm6, %v7038_v29, %v4576_v50  ;;  %v7741_v50 = vld [vmem:[%s12407_s0 + $0x9c] sm:$0xf]  ;;  %12839 = vst [vmem:[#allocation82_spill] sm:$0xff] %v11615_v31 }
 0x23e   :  { %v3418_v43 = vsel %vm8555_vm5, %v3416_v35, %v12835_v12  ;;  %7241 = vmatprep.mubr.msk.bf16.mxu1 %vm4693_vm6, %v7089_v0  ;;  %v7740_v35 = vld [vmem:[%s12407_s0 + $0xa0] sm:$0xf]  ;;  %v12836_v12 = vld [vmem:[#allocation104_spill] sm:$0xff]  ;;  %v12838_v25 = vshll.u32 %v12682_v10, 16  ;;  %v7742_v10 = vld [vmem:[%s12407_s0 + $0x134] sm:$0x1] }
 0x23f   :  { %v3428_v49 = vrot.slane %v7740_v35, 5  ;;  %v1835_v17 = vor.u32 %v12837_v18, %v12836_v12  ;;  %v1827_v1 = vsel %vm7904_vm2, %v1822_v47, %v1826_v5  ;;  %v3422_v39 = vsel %vm8555_vm5, %v6803_v22, %v3421_v20  ;;  %v12840_v12 = vld [vmem:[#allocation113_spill] sm:$0xff] }
 0x240   :  { %v3423_v52 = vrot.slane %v3421_v20, 4  ;;  %v1840_v24 = vrot.slane %v12838_v25, 5  ;;  %v7090_v0 = vcombine.low %v3415_v26, %v3418_v43  ;;  %v6974_v29 = vcombine.low %v1817_v44, %v1827_v1  ;;  %v12842_v47 = vld [vmem:[#allocation109_spill] sm:$0xff]  ;;  %v5754_v43 = vpop.f32.mrb[33].mxu1  ;;  %6072 = vmatmul.mubr.bf16.gmra.mrb[80].mxu0 %v5032_v59  ;;  %v4320_v59 = vpop.permute.xlu1 %4319 }
 0x241   :  { %v6804_v35 = vrot.slane %v7741_v50, 9  ;;  %v3430_v34 = vrot.slane %v3428_v49, 4  ;;  %v12841_v18 = vrot.slane %v12840_v12, 5  ;;  %v1836_v22 = vrot.slane %v1835_v17, 4  ;;  %v11629_v1 = vld [vmem:[%s12407_s0 + $0x184] sm:$0xf]  ;;  %6079 = vmatprep.mubr.bf16.mxu0 %v5164_v53 }
 0x242   :  { %v1845_v20 = vor.u32 %v12842_v47, %v1840_v24  ;;  %v1848_v26 = vshll.u32 %v7742_v10, 16  ;;  %v6805_v17 = vrot.slane %v10963_v6, 9  ;;  %v11638_v12 = vld [vmem:[%s12407_s0 + $0x138] sm:$0xf]  ;;  %7242 = vmatmul.mubr.msk.bf16.gmra.mrb[112].mxu1 %vm4693_vm6, %v7090_v0  ;;  %v12844_v25 = vld [vmem:[#allocation117_spill] sm:$0xff]  ;;  %v3435_v31 = vrot.slane %v10968_v61, 5 }
 0x243   :  { %v3425_v5 = vsel %vm8555_vm5, %v3423_v52, %v12841_v18  ;;  %v11633_v52 = vpop.f32.mrb[34].mxu1  ;;  %v11643_v18 = vld [vmem:[%s12407_s0 + $0x13c] sm:$0xf]  ;;  %v3429_v43 = vsel %vm8555_vm5, %v6804_v35, %v3428_v49  ;;  %v12845_v44 = vrot.slane %v12844_v25, 5  ;;  %v12848_v49 = vshll.u32 %v12695_v23, 16 }
 0x244   :  { %v7091_v50 = vcombine.low %v3422_v39, %v3425_v5  ;;  %12843 = vst [vmem:[#allocation37_spill] sm:$0xff] %v11633_v52  ;;  %v7039_v47 = vcombine.low %v11638_v12, %v11643_v18  ;;  %v1841_v39 = vsel %vm7904_vm2, %v1836_v22, %v1840_v24  ;;  %v1846_v6 = vrot.slane %v1845_v20, 4  ;;  %v5757_v10 = vpop.f32.mrb[35].mxu1  ;;  %v4578_v52 = vpop.permute.xlu0 %4577  ;;  %v12846_v22 = vld [vmem:[#allocation110_spill] sm:$0xff]  ;;  %v12847_v53 = vld [vmem:[#allocation112_spill] sm:$0xff] }
 0x245   :  { %v1850_v5 = vrot.slane %v1848_v26, 5  ;;  %v3432_v14 = vsel %vm8555_vm5, %v3430_v34, %v12845_v44  ;;  %v3442_v24 = vrot.slane %v11040_v16, 5  ;;  %v1859_v20 = vor.u32 %v12847_v53, %v12846_v22  ;;  %v7746_v34 = vld [vmem:[%s12407_s0 + $0x140] sm:$0x1]  ;;  %v12850_v10 = vld [vmem:[#allocation115_spill] sm:$0xff] }
 0x246   :  { %7245 = vmatprep.mubr.msk.bf16.mxu1 %vm4693_vm6, %v7091_v50  ;;  %v1864_v35 = vrot.slane %v12848_v49, 5  ;;  %v1872_v26 = vshll.u32 %v7746_v34, 16  ;;  %v12849_v61 = vshrl.u32 %v11578_v8, 16  ;;  %v3436_v25 = vsel %vm8555_vm5, %v6805_v17, %v3435_v31  ;;  %v12851_v49 = vld [vmem:[#allocation122_spill] sm:$0xff] }
 0x247   :  { %v1851_v0 = vsel %vm7904_vm2, %v1846_v6, %v1850_v5  ;;  %v3437_v50 = vrot.slane %v3435_v31, 4  ;;  %v5036_v6 = vsel %vm4693_vm6, %v6974_v29, %v4320_v59  ;;  %v5168_v5 = vsel %vm4693_vm6, %v7039_v47, %v4578_v52  ;;  %v11698_v59 = vld [vmem:[%s12407_s0 + $0x148] sm:$0xf] }
 0x248   :  { %v11670_v44 = vrot.slane %v12849_v61, 4  ;;  %v6975_v16 = vcombine.low %v1841_v39, %v1851_v0  ;;  %v1860_v23 = vrot.slane %v1859_v20, 4  ;;  %v1869_v22 = vor.u32 %v12850_v10, %v1864_v35  ;;  %6080 = vmatmul.mubr.bf16.gmra.mrb[84].mxu0 %v5036_v6 }
 0x249   :  { %v7092_v53 = vcombine.low %v3429_v43, %v3432_v14  ;;  %v12852_v30 = vrot.slane %v12851_v49, 5  ;;  %v6806_v61 = vrot.slane %v11035_v37, 9  ;;  %v1874_v39 = vrot.slane %v1872_v26, 5  ;;  %v7747_v14 = vld [vmem:[%s12407_s0 + $0xc8] sm:$0x1]  ;;  %6087 = vmatprep.mubr.bf16.mxu0 %v5168_v5  ;;  %v11714_v49 = vpop.f32.mrb[36].mxu1 }
 0x24a   :  { %v3444_v63 = vrot.slane %v3442_v24, 4  ;;  %v1865_v31 = vsel %vm7904_vm2, %v1860_v23, %v1864_v35  ;;  %v1870_v29 = vrot.slane %v1869_v22, 4  ;;  %v3452_v52 = vrot.slane %v7747_v14, 5  ;;  %v11693_v37 = vld [vmem:[%s12407_s0 + $0x144] sm:$0xf]  ;;  %v12854_v35 = vld [vmem:[#allocation118_spill] sm:$0xff]  ;;  %v4580_v14 = vpop.permute.xlu0 %4579 }
 0x24b   :  { %v3439_v34 = vsel %vm8555_vm5, %v3437_v50, %v12852_v30  ;;  %v6807_v47 = vrot.slane %v11110_v21, 9  ;;  %v3449_v30 = vrot.slane %v11115_v51, 5  ;;  %v7040_v43 = vcombine.low %v11693_v37, %v11698_v59  ;;  %v12853_v21 = vld [vmem:[#allocation116_spill] sm:$0xff]  ;;  %7246 = vmatmul.mubr.msk.bf16.gmra.mrb[116].mxu1 %vm4693_vm6, %v7092_v53  ;;  %v4322_v50 = vpop.permute.xlu1 %4321 }
 0x24c   :  { %v7093_v0 = vcombine.low %v3436_v25, %v3439_v34  ;;  %v1875_v20 = vsel %vm7904_vm2, %v1870_v29, %v1874_v39  ;;  %v1883_v51 = vor.u32 %v12854_v35, %v12853_v21  ;;  %v12855_v26 = vshll.u32 %v12707_v56, 16  ;;  %v12857_v39 = vld [vmem:[#allocation119_spill] sm:$0xff] }
 0x24d   :  { %v3443_v6 = vsel %vm8555_vm5, %v6806_v61, %v3442_v24  ;;  %v11711_v23 = vcombine.low %v1865_v31, %v1875_v20  ;;  %v3451_v10 = vrot.slane %v3449_v30, 4  ;;  %v3456_v22 = vrot.slane %v11186_v4, 5  ;;  %v7750_v24 = vld [vmem:[%s12407_s0 + $0x14c] sm:$0x1]  ;;  %v5762_v31 = vpop.f32.mrb[37].mxu1 }
 0x24e   :  { %v1888_v25 = vrot.slane %v12855_v26, 5  ;;  %7249 = vmatprep.mubr.msk.bf16.mxu1 %vm4693_vm6, %v7093_v0  ;;  %v12856_v34 = vrot.slane %v11553_v33, 5  ;;  %v1884_v53 = vrot.slane %v1883_v51, 4  ;;  %v1896_v61 = vshll.u32 %v7750_v24, 16  ;;  %v7751_v33 = vld [vmem:[%s12407_s0 + $0xd4] sm:$0x1] }
 0x24f   :  { %v12858_v4 = vshll.u32 %v11578_v8, 16  ;;  %v3459_v0 = vrot.slane %v7751_v33, 5  ;;  %v3453_v20 = vsel %vm8555_vm5, %v3451_v10, %v3452_v52  ;;  %v11736_v21 = vpop.f32.mrb[38].mxu1  ;;  %v5040_v35 = vsel %vm4693_vm6, %v6975_v16, %v4322_v50  ;;  %v12859_v50 = vld [vmem:[#allocation120_spill] sm:$0xff] }
 0x250   :  { %v3446_v56 = vsel %vm8555_vm5, %v3444_v63, %v12856_v34  ;;  %v1893_v5 = vor.u32 %v12857_v39, %v1888_v25  ;;  %v3450_v63 = vsel %vm8555_vm5, %v6807_v47, %v3449_v30  ;;  %v6808_v8 = vrot.slane %v11181_v2, 9  ;;  %v11742_v34 = vpop.f32.mrb[4].mxu0  ;;  %v5765_v39 = vpop.f32.mrb[39].mxu1  ;;  %v12860_v2 = vld [vmem:[#allocation121_spill] sm:$0xff]  ;;  %6088 = vmatmul.mubr.bf16.gmra.mrb[88].mxu0 %v5040_v35 }
 0x251   :  { %v11727_v29 = vrot.slane %v12858_v4, 5  ;;  %v1889_v51 = vsel %vm7904_vm2, %v1884_v53, %v1888_v25  ;;  %v7094_v24 = vcombine.low %v3443_v6, %v3446_v56  ;;  %v3458_v31 = vrot.slane %v3456_v22, 4  ;;  %v5923_v30 = vpop.f32.mrb[5].mxu0  ;;  %v7752_v25 = vld [vmem:[%s12407_s0 + $0xf8] sm:$0x1]  ;;  %v4324_v35 = vpop.permute.xlu1 %4323  ;;  %v12862_v39 = vld [vmem:[#allocation123_spill] sm:$0xff] }
 0x252   :  { %v1894_v26 = vrot.slane %v1893_v5, 4  ;;  %v1898_v4 = vrot.slane %v1896_v61, 5  ;;  %v3463_v47 = vrot.slane %v11259_v42, 5  ;;  %v5172_v52 = vsel %vm4693_vm6, %v7040_v43, %v4580_v14  ;;  %v11749_v17 = vpop.f32.mrb[6].mxu0  ;;  %v11763_v61 = vld [vmem:[%s12407_s0 + $0x150] sm:$0xf] }
 0x253   :  { %v7095_v10 = vcombine.low %v3450_v63, %v3453_v20  ;;  %v6809_v16 = vrot.slane %v11254_v9, 9  ;;  %v1907_v33 = vor.u32 %v12860_v2, %v12859_v50  ;;  %v3466_v6 = vrot.slane %v7752_v25, 5  ;;  %v5926_v5 = vpop.f32.mrb[7].mxu0  ;;  %v11768_v14 = vld [vmem:[%s12407_s0 + $0x154] sm:$0xf]  ;;  %7250 = vmatmul.mubr.msk.bf16.gmra.mrb[120].mxu1 %vm4693_vm6, %v7094_v24  ;;  %6095 = vmatprep.mubr.bf16.mxu0 %v5172_v52 }
 0x254   :  { %v1899_v56 = vsel %vm7904_vm2, %v1894_v26, %v1898_v4  ;;  %v3465_v42 = vrot.slane %v3463_v47, 4  ;;  %v12861_v53 = vshll.u32 %v12720_v48, 16  ;;  %v3457_v9 = vsel %vm8555_vm5, %v6808_v8, %v3456_v22  ;;  %v4582_v8 = vpop.permute.xlu0 %4581  ;;  %v7755_v30 = vld [vmem:[%s12407_s0 + $0x158] sm:$0x1]  ;;  %v11789_v24 = vld [vmem:[%s12407_s0 + $0x18c] sm:$0xf] }
 0x255   :  { %v7041_v63 = vcombine.low %v11763_v61, %v11768_v14  ;;  %v11772_v48 = vcombine.low %v1889_v51, %v1899_v56  ;;  %v1908_v20 = vrot.slane %v1907_v33, 4  ;;  %v3460_v22 = vsel %vm8555_vm5, %v3458_v31, %v3459_v0  ;;  %7253 = vmatprep.mubr.msk.bf16.mxu1 %vm4693_vm6, %v7095_v10 }
 0x256   :  { %v1912_v43 = vrot.slane %v12861_v53, 5  ;;  %v3470_v26 = vrot.slane %v11340_v3, 5  ;;  %v1920_v50 = vshll.u32 %v7755_v30, 16  ;;  %v12863_v51 = vshrl.u32 %v11629_v1, 16 }
 0x257   :  { %v2021_v0 = vshrl.u32 %v11789_v24, 16  ;;  %v3464_v3 = vsel %vm8555_vm5, %v6809_v16, %v3463_v47  ;;  %v3467_v52 = vsel %vm8555_vm5, %v3465_v42, %v3466_v6  ;;  %v3477_v56 = vrot.slane %v11381_v27, 5  ;;  %v7757_v47 = vld [vmem:[%s12407_s0 + $0x104] sm:$0x1]  ;;  %v11810_v27 = vpop.f32.mrb[40].mxu1 }
 0x258   :  { %v1917_v4 = vor.u32 %v12862_v39, %v1912_v43  ;;  %v11784_v2 = vrot.slane %v12863_v51, 4  ;;  %v1913_v31 = vsel %vm7904_vm2, %v1908_v20, %v1912_v43  ;;  %v1922_v25 = vrot.slane %v1920_v50, 5  ;;  %v5770_v20 = vpop.f32.mrb[41].mxu1  ;;  %v7759_v51 = vld [vmem:[%s12407_s0 + $0x164] sm:$0x1] }
 0x259   :  { %v5044_v53 = vsel %vm4693_vm6, %v11711_v23, %v4324_v35  ;;  %v7096_v5 = vcombine.low %v3457_v9, %v3460_v22  ;;  %v5176_v39 = vsel %vm4693_vm6, %v7041_v63, %v4582_v8  ;;  %v6810_v10 = vrot.slane %v11335_v32, 9  ;;  %v7758_v32 = vld [vmem:[%s12407_s0 + $0x110] sm:$0x1]  ;;  %v12864_v22 = vld [vmem:[#allocation124_spill] sm:$0xff]  ;;  %v12865_v8 = vld [vmem:[#allocation125_spill] sm:$0xff] }
 0x25a   :  { %v1918_v33 = vrot.slane %v1917_v4, 4  ;;  %v3472_v30 = vrot.slane %v3470_v26, 4  ;;  %v3473_v16 = vrot.slane %v7757_v47, 5  ;;  %v6811_v42 = vrot.slane %v11376_v40, 9  ;;  %6096 = vmatmul.mubr.bf16.gmra.mrb[92].mxu0 %v5044_v53  ;;  %v12867_v20 = vld [vmem:[#allocation126_spill] sm:$0xff] }
 0x25b   :  { %v7097_v43 = vcombine.low %v3464_v3, %v3467_v52  ;;  %v3480_v9 = vrot.slane %v7758_v32, 5  ;;  %v3484_v63 = vrot.slane %v11435_v7, 5  ;;  %v3479_v35 = vrot.slane %v3477_v56, 4  ;;  %7254 = vmatmul.mubr.msk.bf16.gmra.mrb[124].mxu1 %vm4693_vm6, %v7096_v5  ;;  %6103 = vmatprep.mubr.bf16.mxu0 %v5176_v39  ;;  %v7762_v5 = vld [vmem:[%s12407_s0 + $0x11c] sm:$0x1] }
 0x25c   :  { %v1923_v6 = vsel %vm7904_vm2, %v1918_v33, %v1922_v25  ;;  %v1931_v4 = vor.u32 %v12865_v8, %v12864_v22  ;;  %v12866_v50 = vshll.u32 %v9522_v19, 16  ;;  %v1944_v3 = vshll.u32 %v7759_v51, 16  ;;  %v4326_v33 = vpop.permute.xlu1 %4325  ;;  %v11833_v25 = vld [vmem:[%s12407_s0 + $0x15c] sm:$0xf]  ;;  %v11838_v19 = vld [vmem:[%s12407_s0 + $0x160] sm:$0xf] }
 0x25d   :  { %v11812_v23 = vcombine.low %v1913_v31, %v1923_v6  ;;  %v11825_v31 = vpop.f32.mrb[42].mxu1  ;;  %v2024_v52 = vshll.u32 %v11789_v24, 16  ;;  %v3471_v7 = vsel %vm8555_vm5, %v6810_v10, %v3470_v26  ;;  %v7042_v47 = vcombine.low %v11833_v25, %v11838_v19  ;;  %v4584_v10 = vpop.permute.xlu0 %4583  ;;  %7257 = vmatprep.mubr.msk.bf16.mxu1 %vm4693_vm6, %v7097_v43 }
 0x25e   :  { %v1936_v40 = vrot.slane %v12866_v50, 5  ;;  %v6812_v6 = vrot.slane %v11430_v36, 9  ;;  %v5773_v53 = vpop.f32.mrb[43].mxu1  ;;  %v3474_v26 = vsel %vm8555_vm5, %v3472_v30, %v3473_v16  ;;  %v1932_v32 = vrot.slane %v1931_v4, 4  ;;  %v11847_v50 = vpop.f32.mrb[8].mxu0 }
 0x25f   :  { %v1946_v8 = vrot.slane %v1944_v3, 5  ;;  %v11849_v51 = vrot.slane %v2021_v0, 4  ;;  %v3478_v36 = vsel %vm8555_vm5, %v6811_v42, %v3477_v56  ;;  %v3486_v53 = vrot.slane %v3484_v63, 4  ;;  %v5931_v30 = vpop.f32.mrb[9].mxu0 }
 0x260   :  { %v1941_v22 = vor.u32 %v12867_v20, %v1936_v40  ;;  %v3487_v39 = vrot.slane %v7762_v5, 5  ;;  %v3481_v16 = vsel %vm8555_vm5, %v3479_v35, %v3480_v9  ;;  %v1937_v4 = vsel %vm7904_vm2, %v1932_v32, %v1936_v40  ;;  %v11862_v43 = vpop.f32.mrb[10].mxu0  ;;  %v12868_v35 = vld [vmem:[#allocation127_spill] sm:$0xff]  ;;  %v12869_v40 = vld [vmem:[#allocation128_spill] sm:$0xff] }
 0x261   :  { %v3491_v3 = vrot.slane %v11491_v28, 5  ;;  %v5048_v56 = vsel %vm4693_vm6, %v11772_v48, %v4326_v33  ;;  %v7098_v42 = vcombine.low %v3471_v7, %v3474_v26  ;;  %v5180_v20 = vsel %vm4693_vm6, %v7042_v47, %v4584_v10  ;;  %v5934_v30 = vpop.f32.mrb[11].mxu0  ;;  %v7763_v48 = vld [vmem:[%s12407_s0 + $0x170] sm:$0x1]  ;;  %v4328_v7 = vpop.permute.xlu1 %4327 }
 0x262   :  { %v1942_v0 = vrot.slane %v1941_v22, 4  ;;  %v11869_v5 = vsel %vm8555_vm5, %v6812_v6, %v3484_v63  ;;  %v1955_v32 = vor.u32 %v12869_v40, %v12868_v35  ;;  %v12870_v28 = vshll.u32 %v9642_v62, 16  ;;  %v7764_v62 = vld [vmem:[%s12407_s0 + $0x128] sm:$0x1]  ;;  %v12871_v30 = vld [vmem:[#allocation129_spill] sm:$0xff]  ;;  %6104 = vmatmul.mubr.bf16.gmra.mrb[96].mxu0 %v5048_v56 }
 0x263   :  { %v1968_v33 = vshll.u32 %v7763_v48, 16  ;;  %v7099_v47 = vcombine.low %v3478_v36, %v3481_v16  ;;  %v11882_v63 = vsel %vm8555_vm5, %v3486_v53, %v3487_v39  ;;  %v6813_v26 = vrot.slane %v11486_v60, 9  ;;  %v11894_v36 = vld [vmem:[%s12407_s0 + $0x190] sm:$0xf]  ;;  %v11900_v60 = vld [vmem:[%s12407_s0 + $0x168] sm:$0xf]  ;;  %7258 = vmatmul.mubr.msk.bf16.gmra.mrb[128].mxu1 %vm4693_vm6, %v7098_v42  ;;  %6111 = vmatprep.mubr.bf16.mxu0 %v5180_v20 }
 0x264   :  { %v1947_v9 = vsel %vm7904_vm2, %v1942_v0, %v1946_v8  ;;  %v1960_v22 = vrot.slane %v12870_v28, 5  ;;  %v3493_v10 = vrot.slane %v3491_v3, 4  ;;  %v3494_v8 = vrot.slane %v7764_v62, 5  ;;  %v11905_v39 = vld [vmem:[%s12407_s0 + $0x16c] sm:$0xf]  ;;  %v11916_v48 = vpop.f32.mrb[44].mxu1 }
 0x265   :  { %v11884_v6 = vcombine.low %v1937_v4, %v1947_v9  ;;  %v1956_v0 = vrot.slane %v1955_v32, 4  ;;  %v2034_v53 = vshrl.u32 %v11894_v36, 16  ;;  %v7043_v16 = vcombine.low %v11900_v60, %v11905_v39  ;;  %12872 = vst [vmem:[#allocation73_spill] sm:$0xff] %v11916_v48  ;;  %7261 = vmatprep.mubr.msk.bf16.mxu1 %vm4693_vm6, %v7099_v47  ;;  %v12873_v62 = vld [vmem:[#allocation130_spill] sm:$0xff]  ;;  %v4330_v48 = vpop.permute.xlu1 %4329 }
 0x266   :  { %v1965_v35 = vor.u32 %v12871_v30, %v1960_v22  ;;  %v3498_v4 = vrot.slane %v11564_v41, 5  ;;  %v1970_v9 = vrot.slane %v1968_v33, 5  ;;  %v5052_v56 = vsel %vm4693_vm6, %v11812_v23, %v4328_v7  ;;  %v7768_v23 = vld [vmem:[%s12407_s0 + $0x134] sm:$0x1]  ;;  %v5778_v33 = vpop.f32.mrb[45].mxu1  ;;  %v4586_v7 = vpop.permute.xlu0 %4585 }
 0x267   :  { %v1961_v40 = vsel %vm7904_vm2, %v1956_v0, %v1960_v22  ;;  %v3505_v28 = vrot.slane %v11643_v18, 5  ;;  %v7100_v41 = vcombine.low %v11869_v5, %v11882_v63  ;;  %v3492_v42 = vsel %vm8555_vm5, %v6813_v26, %v3491_v3  ;;  %v12874_v5 = vld [vmem:[#allocation131_spill] sm:$0xff] }
 0x268   :  { %v1966_v32 = vrot.slane %v1965_v35, 4  ;;  %v6814_v20 = vrot.slane %v11559_v13, 9  ;;  %v3501_v22 = vrot.slane %v7768_v23, 5  ;;  %v3495_v18 = vsel %vm8555_vm5, %v3493_v10, %v3494_v8  ;;  %v11935_v13 = vpop.f32.mrb[46].mxu1  ;;  %v7769_v10 = vld [vmem:[%s12407_s0 + $0x140] sm:$0x1] }
 0x269   :  { %v1979_v63 = vor.u32 %v12874_v5, %v12873_v62  ;;  %v12875_v3 = vshll.u32 %v9750_v15, 16  ;;  %12876 = vst [vmem:[#allocation72_spill] sm:$0xff] %v11935_v13  ;;  %v3500_v0 = vrot.slane %v3498_v4, 4  ;;  %v6815_v35 = vrot.slane %v11638_v12, 9  ;;  %v5781_v23 = vpop.f32.mrb[47].mxu1  ;;  %v11947_v5 = vpop.f32.mrb[12].mxu0 }
 0x26a   :  { %v1971_v47 = vsel %vm7904_vm2, %v1966_v32, %v1970_v9  ;;  %v3508_v8 = vrot.slane %v7769_v10, 5  ;;  %v3507_v9 = vrot.slane %v3505_v28, 4  ;;  %v7770_v15 = vld [vmem:[%s12407_s0 + $0x17c] sm:$0x1]  ;;  %v11951_v12 = vrot.slane %v2024_v52, 5  ;;  %v5939_v10 = vpop.f32.mrb[13].mxu0  ;;  %6112 = vmatmul.mubr.bf16.gmra.mrb[100].mxu0 %v5052_v56 }
 0x26b   :  { %v1984_v26 = vrot.slane %v12875_v3, 5  ;;  %v11937_v30 = vcombine.low %v1961_v40, %v1971_v47  ;;  %v1980_v32 = vrot.slane %v1979_v63, 4  ;;  %v1992_v62 = vshll.u32 %v7770_v15, 16  ;;  %v11959_v15 = vpop.f32.mrb[14].mxu0  ;;  %7262 = vmatmul.mubr.msk.bf16.gmra.mrb[132].mxu1 %vm4693_vm6, %v7100_v41 }
 0x26c   :  { %v2030_v40 = vshll.u32 %v11894_v36, 16  ;;  %v5184_v47 = vsel %vm4693_vm6, %v7043_v16, %v4586_v7  ;;  %v7101_v3 = vcombine.low %v3492_v42, %v3495_v18  ;;  %v11955_v63 = vrot.slane %v2034_v53, 4  ;;  %v11968_v53 = vld [vmem:[%s12407_s0 + $0x174] sm:$0xf]  ;;  %v11973_v16 = vld [vmem:[%s12407_s0 + $0x178] sm:$0xf] }
 0x26d   :  { %v1989_v33 = vor.u32 %v11504_v46, %v1984_v26  ;;  %v1985_v46 = vsel %vm7904_vm2, %v1980_v32, %v1984_v26  ;;  %v1994_v13 = vrot.slane %v1992_v62, 5  ;;  %v3499_v24 = vsel %vm8555_vm5, %v6814_v20, %v3498_v4  ;;  %v5942_v7 = vpop.f32.mrb[15].mxu0  ;;  %v11981_v4 = vld [vmem:[%s12407_s0 + $0x198] sm:$0xf]  ;;  %6119 = vmatprep.mubr.bf16.mxu0 %v5184_v47 }
 0x26e   :  { %v3502_v52 = vsel %vm8555_vm5, %v3500_v0, %v3501_v22  ;;  %v7044_v56 = vcombine.low %v11968_v53, %v11973_v16  ;;  %v3512_v42 = vrot.slane %v11698_v59, 5  ;;  %v2045_v20 = vshrl.u32 %v11981_v4, 16  ;;  %7265 = vmatprep.mubr.msk.bf16.mxu1 %vm4693_vm6, %v7101_v3  ;;  %v12009_v3 = vpop.f32.mrb[48].mxu1 }
 0x26f   :  { %v1990_v23 = vrot.slane %v1989_v33, 4  ;;  %v3506_v22 = vsel %vm8555_vm5, %v6815_v35, %v3505_v28  ;;  %v3509_v18 = vsel %vm8555_vm5, %v3507_v9, %v3508_v8  ;;  %v3519_v0 = vrot.slane %v11768_v14, 5  ;;  %v4588_v8 = vpop.permute.xlu0 %4587 }
 0x270   :  { %v2003_v32 = vor.u32 %v11727_v29, %v11670_v44  ;;  %v12877_v41 = vshll.u32 %v11629_v1, 16  ;;  %v5056_v28 = vsel %vm4693_vm6, %v11884_v6, %v4330_v48  ;;  %v7102_v35 = vcombine.low %v3499_v24, %v3502_v52  ;;  %v7775_v44 = vld [vmem:[%s12407_s0 + $0x14c] sm:$0x1] }
 0x271   :  { %v1995_v59 = vsel %vm7904_vm2, %v1990_v23, %v1994_v13  ;;  %v6816_v9 = vrot.slane %v11693_v37, 9  ;;  %v7774_v13 = vld [vmem:[%s12407_s0 + $0x188] sm:$0x1]  ;;  %v3514_v47 = vrot.slane %v3512_v42, 4  ;;  %v3515_v29 = vrot.slane %v7775_v44, 5  ;;  %v5786_v23 = vpop.f32.mrb[49].mxu1 }
 0x272   :  { %v11992_v26 = vcombine.low %v1985_v46, %v1995_v59  ;;  %v2008_v33 = vrot.slane %v12877_v41, 5  ;;  %v2016_v62 = vshll.u32 %v7774_v13, 16  ;;  %v2004_v1 = vrot.slane %v2003_v32, 4  ;;  %v7776_v37 = vld [vmem:[%s12407_s0 + $0x158] sm:$0x1]  ;;  %v12024_v13 = vpop.f32.mrb[16].mxu0  ;;  %6120 = vmatmul.mubr.bf16.gmra.mrb[104].mxu0 %v5056_v28 }
 0x273   :  { %v7103_v6 = vcombine.low %v3506_v22, %v3509_v18  ;;  %v6817_v48 = vrot.slane %v11763_v61, 9  ;;  %v3522_v10 = vrot.slane %v7776_v37, 5  ;;  %v5188_v24 = vsel %vm4693_vm6, %v7044_v56, %v4588_v8  ;;  %v7777_v61 = vld [vmem:[%s12407_s0 + $0x19c] sm:$0xf]  ;;  %v5947_v8 = vpop.f32.mrb[17].mxu0  ;;  %7266 = vmatmul.mubr.msk.bf16.gmra.mrb[136].mxu1 %vm4693_vm6, %v7102_v35 }
 0x274   :  { %v2013_v14 = vor.u32 %v11784_v2, %v2008_v33  ;;  %v2018_v46 = vrot.slane %v2016_v62, 5  ;;  %v3521_v52 = vrot.slane %v3519_v0, 4  ;;  %v2009_v7 = vsel %vm7904_vm2, %v2004_v1, %v2008_v33  ;;  %v12018_v2 = vpop.f32.mrb[50].mxu1  ;;  %6127 = vmatprep.mubr.bf16.mxu0 %v5188_v24  ;;  %v12042_v1 = vpop.f32.mrb[18].mxu0  ;;  %v7778_v35 = vld [vmem:[%s12407_s0 + $0x194] sm:$0x1] }
 0x275   :  { %v2047_v32 = vrot.slane %v2045_v20, 4  ;;  %v2048_v22 = vshll.u32 %v11981_v4, 16  ;;  %v2054_v18 = vshll.u32 %v7777_v61, 16  ;;  %v2058_v41 = vshrl.u32 %v7777_v61, 16  ;;  %v5789_v62 = vpop.f32.mrb[51].mxu1  ;;  %7269 = vmatprep.mubr.msk.bf16.mxu1 %vm4693_vm6, %v7103_v6  ;;  %v4590_v61 = vpop.permute.xlu0 %4589 }
 0x276   :  { %v2014_v59 = vrot.slane %v2013_v14, 4  ;;  %v3513_v56 = vsel %vm8555_vm5, %v6816_v9, %v3512_v42  ;;  %v2027_v20 = vor.u32 %v11951_v12, %v11849_v51  ;;  %v2032_v4 = vrot.slane %v2030_v40, 5  ;;  %v4332_v51 = vpop.permute.xlu1 %4331  ;;  %v12054_v14 = vld [vmem:[%s12407_s0 + $0x180] sm:$0xf]  ;;  %v12059_v6 = vld [vmem:[%s12407_s0 + $0x184] sm:$0xf] }
 0x277   :  { %v3516_v44 = vsel %vm8555_vm5, %v3514_v47, %v3515_v29  ;;  %v3520_v28 = vsel %vm8555_vm5, %v6817_v48, %v3519_v0  ;;  %v3526_v42 = vrot.slane %v11838_v19, 5  ;;  %v3523_v36 = vsel %vm8555_vm5, %v3521_v52, %v3522_v10  ;;  %v5950_v47 = vpop.f32.mrb[19].mxu0  ;;  %v7782_v62 = vld [vmem:[%s12407_s0 + $0x170] sm:$0x1]  ;;  %v12081_v8 = vpop.f32.mrb[52].mxu1 }
 0x278   :  { %v2019_v33 = vsel %vm7904_vm2, %v2014_v59, %v2018_v46  ;;  %v2028_v12 = vrot.slane %v2027_v20, 4  ;;  %v2037_v40 = vor.u32 %v11955_v63, %v2032_v4  ;;  %v2040_v0 = vshll.u32 %v7778_v35, 16  ;;  %v7781_v59 = vld [vmem:[%s12407_s0 + $0x164] sm:$0x1]  ;;  %v12095_v47 = vpop.f32.mrb[20].mxu0 }
 0x279   :  { %v12040_v9 = vcombine.low %v2009_v7, %v2019_v33  ;;  %v2050_v19 = vrot.slane %v2048_v22, 5  ;;  %v2060_v29 = vrot.slane %v2058_v41, 4  ;;  %v7045_v63 = vcombine.low %v12054_v14, %v12059_v6 }
 0x27a   :  { %v3533_v48 = vrot.slane %v11905_v39, 5  ;;  %v7104_v37 = vcombine.low %v3513_v56, %v3516_v44  ;;  %v2033_v10 = vsel %vm7904_vm2, %v2028_v12, %v2032_v4  ;;  %v2038_v46 = vrot.slane %v2037_v40, 4 }
 0x27b   :  { %v2042_v23 = vrot.slane %v2040_v0, 5  ;;  %v5060_v24 = vsel %vm4693_vm6, %v11937_v30, %v4332_v51  ;;  %v7105_v52 = vcombine.low %v3520_v28, %v3523_v36  ;;  %v6818_v7 = vrot.slane %v11833_v25, 9  ;;  %v5794_v28 = vpop.f32.mrb[53].mxu1 }
 0x27c   :  { %v3529_v22 = vrot.slane %v7781_v59, 5  ;;  %v3528_v41 = vrot.slane %v3526_v42, 4  ;;  %v6819_v39 = vrot.slane %v11900_v60, 9  ;;  %v3536_v56 = vrot.slane %v7782_v62, 5  ;;  %6128 = vmatmul.mubr.bf16.gmra.mrb[108].mxu0 %v5060_v24  ;;  %7270 = vmatmul.mubr.msk.bf16.gmra.mrb[140].mxu1 %vm4693_vm6, %v7104_v37  ;;  %v4334_v60 = vpop.permute.xlu1 %4333  ;;  %v12087_v40 = vpop.f32.mrb[54].mxu1 }
 0x27d   :  { %v2043_v30 = vsel %vm7904_vm2, %v2038_v46, %v2042_v23  ;;  %v5192_v33 = vsel %vm4693_vm6, %v7045_v63, %v4590_v61  ;;  %v3535_v25 = vrot.slane %v3533_v48, 4  ;;  %v2051_v4 = vor.u32 %v2050_v19, %v2047_v32  ;;  %7273 = vmatprep.mubr.msk.bf16.mxu1 %vm4693_vm6, %v7105_v52  ;;  %v5797_v19 = vpop.f32.mrb[55].mxu1  ;;  %v7785_v61 = vld [vmem:[%s12407_s0 + $0x17c] sm:$0x1] }
 0x27e   :  { %v12079_v20 = vcombine.low %v2033_v10, %v2043_v30  ;;  %v2056_v44 = vrot.slane %v2054_v18, 5  ;;  %6135 = vmatprep.mubr.bf16.mxu0 %v5192_v33  ;;  %v3527_v51 = vsel %vm8555_vm5, %v6818_v7, %v3526_v42  ;;  %v2064_v12 = vshll.u32 %v11310_v58, 16  ;;  %v5955_v10 = vpop.f32.mrb[21].mxu0  ;;  %v4592_v33 = vpop.permute.xlu0 %4591 }
 0x27f   :  { %v2052_v36 = vrot.slane %v2051_v4, 4  ;;  %v3530_v32 = vsel %vm8555_vm5, %v3528_v41, %v3529_v22  ;;  %v3534_v18 = vsel %vm8555_vm5, %v6819_v39, %v3533_v48  ;;  %v3540_v35 = vrot.slane %v11973_v16, 5  ;;  %v12102_v23 = vpop.f32.mrb[22].mxu0  ;;  %v7783_v48 = vld [vmem:[%s12407_s0 + $0x18c] sm:$0xf]  ;;  %v12131_v28 = vpop.f32.mrb[56].mxu1 }
 0x280   :  { %v2061_v0 = vor.u32 %v2060_v29, %v2056_v44  ;;  %v3537_v42 = vsel %vm8555_vm5, %v3535_v25, %v3536_v56  ;;  %v3547_v58 = vrot.slane %v12059_v6, 5  ;;  %v2066_v37 = vrot.slane %v2064_v12, 5  ;;  %v7784_v6 = vld [vmem:[%s12407_s0 + $0x190] sm:$0xf]  ;;  %v5958_v7 = vpop.f32.mrb[23].mxu0  ;;  %v4336_v25 = vpop.permute.xlu1 %4335 }
 0x281   :  { %v2057_v63 = vsel %vm7904_vm2, %v2052_v36, %v2056_v44  ;;  %v5064_v16 = vsel %vm4693_vm6, %v11992_v26, %v4334_v60  ;;  %v7106_v29 = vcombine.low %v3527_v51, %v3530_v32  ;;  %v7046_v24 = vcombine.low %v7783_v48, %v7784_v6  ;;  %v7786_v56 = vld [vmem:[%s12407_s0 + $0x188] sm:$0x1]  ;;  %v7787_v36 = vld [vmem:[%s12407_s0 + $0x19c] sm:$0xf]  ;;  %v5802_v32 = vpop.f32.mrb[57].mxu1  ;;  %v12144_v19 = vpop.f32.mrb[24].mxu0 }
 0x282   :  { %v2062_v46 = vrot.slane %v2061_v0, 4  ;;  %v6820_v52 = vrot.slane %v11968_v53, 9  ;;  %v7107_v59 = vcombine.low %v3534_v18, %v3537_v42  ;;  %v3542_v22 = vrot.slane %v3540_v35, 4  ;;  %v12140_v18 = vpop.f32.mrb[58].mxu1  ;;  %v7788_v10 = vld [vmem:[%s12407_s0 + $0x194] sm:$0x1] }
 0x283   :  { %v3543_v26 = vrot.slane %v7785_v61, 5  ;;  %v6821_v39 = vrot.slane %v12054_v14, 9  ;;  %v3549_v62 = vrot.slane %v3547_v58, 4  ;;  %v3550_v30 = vrot.slane %v7786_v56, 5  ;;  %v5805_v42 = vpop.f32.mrb[59].mxu1 }
 0x284   :  { %v2067_v41 = vsel %vm7904_vm2, %v2062_v46, %v2066_v37  ;;  %6136 = vmatmul.mubr.bf16.gmra.mrb[112].mxu0 %v5064_v16  ;;  %7274 = vmatmul.mubr.msk.bf16.gmra.mrb[144].mxu1 %vm4693_vm6, %v7106_v29  ;;  %v5196_v4 = vsel %vm4693_vm6, %v7046_v24, %v4592_v33  ;;  %v3541_v38 = vsel %vm8555_vm5, %v6820_v52, %v3540_v35  ;;  %v3554_v44 = vrot.slane %v7784_v6, 5  ;;  %v5963_v16 = vpop.f32.mrb[25].mxu0  ;;  %v7789_v29 = vld [vmem:[%s12407_s0 + $0x198] sm:$0xf] }
 0x285   :  { %v12122_v53 = vcombine.low %v2057_v63, %v2067_v41  ;;  %7277 = vmatprep.mubr.msk.bf16.mxu1 %vm4693_vm6, %v7107_v59  ;;  %v3544_v14 = vsel %vm8555_vm5, %v3542_v22, %v3543_v26  ;;  %6143 = vmatprep.mubr.bf16.mxu0 %v5196_v4  ;;  %v3548_v60 = vsel %vm8555_vm5, %v6821_v39, %v3547_v58  ;;  %v3561_v12 = vrot.slane %v7787_v36, 5  ;;  %v12155_v7 = vpop.f32.mrb[26].mxu0  ;;  %v4338_v22 = vpop.permute.xlu1 %4337  ;;  %v7791_v41 = vld [vmem:[%s12407_s0 + $0x1a8] sm:$0xf] }
 0x286   :  { %v3551_v51 = vsel %vm8555_vm5, %v3549_v62, %v3550_v30  ;;  %v5068_v35 = vsel %vm4693_vm6, %v12040_v9, %v4336_v25  ;;  %v7108_v0 = vcombine.low %v3541_v38, %v3544_v14  ;;  %v6822_v58 = vrot.slane %v7783_v48, 9  ;;  %v7790_v9 = vld [vmem:[%s12407_s0 + $0x1a0] sm:$0x1]  ;;  %v5966_v48 = vpop.f32.mrb[27].mxu0  ;;  %v12173_v38 = vpop.f32.mrb[60].mxu1 }
 0x287   :  { %v7109_v63 = vcombine.low %v3548_v60, %v3551_v51  ;;  %v3556_v37 = vrot.slane %v3554_v44, 4  ;;  %v3557_v46 = vrot.slane %v7788_v10, 5  ;;  %v6823_v6 = vrot.slane %v7789_v29, 9  ;;  %v5810_v32 = vpop.f32.mrb[61].mxu1 }
 0x288   :  { %v3563_v24 = vrot.slane %v3561_v12, 4  ;;  %v3564_v52 = vrot.slane %v7790_v9, 5  ;;  %v7047_v59 = vcombine.low %v7789_v29, %v7787_v36  ;;  %v3555_v61 = vsel %vm8555_vm5, %v6822_v58, %v3554_v44  ;;  %v7792_v44 = vld [vmem:[%s12407_s0 + $0x1a4] sm:$0xf]  ;;  %v7793_v36 = vld [vmem:[%s12407_s0 + $0x1ac] sm:$0x1] }
 0x289   :  { %v3558_v26 = vsel %vm8555_vm5, %v3556_v37, %v3557_v46  ;;  %v3568_v39 = vrot.slane %v7791_v41, 5  ;;  %v3562_v62 = vsel %vm8555_vm5, %v6823_v6, %v3561_v12  ;;  %v4594_v30 = vpop.permute.xlu0 %4593  ;;  %v5072_v25 = vsel %vm4693_vm6, %v12079_v20, %v4338_v22  ;;  %v12183_v20 = vpop.f32.mrb[28].mxu0  ;;  %s7820_s0 = smov [#allocation2]  }
 0x28a   :  { %v3565_v56 = vsel %vm8555_vm5, %v3563_v24, %v3564_v52  ;;  %v5200_v33 = vsel %vm4693_vm6, %v7047_v59, %v4594_v30  ;;  %v7110_v4 = vcombine.low %v3555_v61, %v3558_v26  ;;  %v6824_v60 = vrot.slane %v7792_v44, 9  ;;  %v5971_v42 = vpop.f32.mrb[29].mxu0  ;;  %s6526_s11 = sshll.u32 %s7820_s0, 4  ;;  %s6527_s11 = int_to_ptr.vmem [resolvable:$true] %s6526_s11 }
 0x28b   :  { %v7111_v14 = vcombine.low %v3562_v62, %v3565_v56  ;;  %v3570_v51 = vrot.slane %v3568_v39, 4  ;;  %v3571_v12 = vrot.slane %v7793_v36, 5  ;;  %v12191_v37 = vpop.f32.mrb[30].mxu0  ;;  %v7048_v46 = vcombine.low %v7792_v44, %v7791_v41  ;;  %s7794_s12 = scalar_lea.vmem %s6527_s11, 8192  ;;  %p7799_p1 = scmp.lt.s32.totalorder %s6527_s11, %s6527_s11 }
 0x28c   :  { %6144 = vmatmul.mubr.bf16.gmra.mrb[116].mxu0 %v5068_v35  ;;  %7278 = vmatmul.mubr.msk.bf16.gmra.mrb[148].mxu1 %vm4693_vm6, %v7108_v0  ;;  %v12181_v35 = vpop.f32.mrb[62].mxu1  ;;  %v5974_v16 = vpop.f32.mrb[31].mxu0  ;;  %p7795_p0 = scmp.ne.s32.totalorder %s6527_s11, %s7794_s12  ;;  %p7800_p2 = scmp.lt.s32.totalorder %s7794_s12, %s7794_s12 }
 0x28d   :  { %7281 = vmatprep.mubr.msk.bf16.mxu1 %vm4693_vm6, %v7109_v63  ;;  %6151 = vmatprep.mubr.bf16.mxu0 %v5200_v33  ;;  %v5813_v0 = vpop.f32.mrb[63].mxu1  ;;  %v3569_v63 = vsel %vm8555_vm5, %v6824_v60, %v3568_v39  ;;  %v3572_v58 = vsel %vm8555_vm5, %v3570_v51, %v3571_v12  ;;  %v5977_v52 = vpop.f32.mrb[32].mxu0 }
 0x28e   :  { %v7112_v29 = vcombine.low %v3569_v63, %v3572_v58  ;;  %v12196_v48 = vpop.f32.mrb[64].mxu1  ;;  %v12200_v57 = vadd.f32 %v5977_v52, %v10620_v11  ;;  %v5979_v59 = vpop.f32.mrb[33].mxu0  ;;  %v12879_v0 = vld [vmem:[#allocation67_spill] sm:$0xff]  ;;  %v12880_v58 = vld [vmem:[#allocation21_spill] sm:$0xff]  ;;  %p7801_p3 = por %p7800_p2, %p7799_p1 }
 0x28f   :  { %v5818_v22 = vpop.f32.mrb[65].mxu1  ;;  %v5980_v61 = vpop.f32.mrb[34].mxu0 }
 0x290   :  { %v12202_v26 = vpop.f32.mrb[66].mxu1  ;;  %v12205_v41 = vadd.f32 %v5980_v61, %v10634_v45  ;;  %v12884_v61 = vld [vmem:[#allocation57_spill] sm:$0xff]  ;;  %p7802_p4 = pnand %p7801_p3, %p7795_p0 }
 0x291   :  { %v5821_v39 = vpop.f32.mrb[67].mxu1 }
 0x292   :  { %v4340_v10 = vpop.permute.xlu1 %4339 }
 0x293   :  { %v5076_v24 = vsel %vm4693_vm6, %v12122_v53, %v4340_v10  ;;  %v5982_v53 = vpop.f32.mrb[35].mxu0 }
 0x294   :  { %6152 = vmatmul.mubr.bf16.gmra.mrb[120].mxu0 %v5072_v25  ;;  %7282 = vmatmul.mubr.msk.bf16.gmra.mrb[152].mxu1 %vm4693_vm6, %v7110_v4  ;;  %v4596_v6 = vpop.permute.xlu0 %4595 }
 0x295   :  { %7285 = vmatprep.mubr.msk.bf16.mxu1 %vm4693_vm6, %v7111_v14  ;;  %v5204_v9 = vsel %vm4693_vm6, %v7048_v46, %v4596_v6 }
 0x296   :  { %6159 = vmatprep.mubr.bf16.mxu0 %v5204_v9  ;;  %v12883_v9 = vld [vmem:[#allocation58_spill] sm:$0xff] }
 0x297   :  { %v12207_v62 = vpop.f32.mrb[68].mxu1 }
 0x298   :  { %v5826_v30 = vpop.f32.mrb[69].mxu1 }
 0x299   :  { %v12212_v11 = vpop.f32.mrb[70].mxu1 }
 0x29a   :  { %v5985_v56 = vpop.f32.mrb[36].mxu0  ;;  %v5829_v14 = vpop.f32.mrb[71].mxu1 }
 0x29b   :  { %v12210_v33 = vadd.f32 %v5985_v56, %v10718_v54  ;;  %v5987_v25 = vpop.f32.mrb[37].mxu0 }
 0x29c   :  { %6160 = vmatmul.mubr.bf16.gmra.mrb[124].mxu0 %v5076_v24  ;;  %7286 = vmatmul.mubr.msk.bf16.gmra.mrb[156].mxu1 %vm4693_vm6, %v7112_v29  ;;  %v5988_v4 = vpop.f32.mrb[38].mxu0 }
 0x29d   :  { %v12215_v44 = vadd.f32 %v5988_v4, %v10732_v55  ;;  %v5990_v60 = vpop.f32.mrb[39].mxu0 }
 0x29e   :  { %v12887_v60 = vld [vmem:[#allocation26_spill] sm:$0xff] }
 0x2a2   :  { %v12217_v45 = vpop.f32.mrb[72].mxu1 }
 0x2a3   :  { %v5834_v51 = vpop.f32.mrb[73].mxu1 }
 0x2a4   :  { %v12219_v36 = vpop.f32.mrb[74].mxu1 }
 0x2a5   :  { %12878 = vst [vmem:[#allocation42_spill] sm:$0xff] %v12219_v36  ;;  %v5837_v12 = vpop.f32.mrb[75].mxu1 }
 0x2a7   :  { %v5993_v32 = vpop.f32.mrb[40].mxu0 }
 0x2a8   :  { %v12222_v42 = vadd.f32 %v5993_v32, %v12879_v0  ;;  %v5995_v54 = vpop.f32.mrb[41].mxu0  ;;  %v12888_v0 = vld [vmem:[#allocation28_spill] sm:$0xff] }
 0x2a9   :  { %v5996_v63 = vpop.f32.mrb[42].mxu0 }
 0x2aa   :  { %v12225_v10 = vadd.f32 %v5996_v63, %v12880_v58  ;;  %v5998_v46 = vpop.f32.mrb[43].mxu0 }
 0x2af   :  { %v12227_v16 = vpop.f32.mrb[76].mxu1 }
 0x2b0   :  { %12881 = vst [vmem:[#allocation45_spill] sm:$0xff] %v12227_v16  ;;  %v5842_v55 = vpop.f32.mrb[77].mxu1 }
 0x2b1   :  { %v12229_v29 = vpop.f32.mrb[78].mxu1 }
 0x2b2   :  { %12882 = vst [vmem:[#allocation27_spill] sm:$0xff] %v12229_v29  ;;  %v5845_v6 = vpop.f32.mrb[79].mxu1  ;;  %v12902_v29 = vld [vmem:[#allocation37_spill] sm:$0xff] }
 0x2b4   :  { %v6001_v24 = vpop.f32.mrb[44].mxu0 }
 0x2b5   :  { %v12232_v52 = vadd.f32 %v6001_v24, %v12883_v9  ;;  %v6003_v59 = vpop.f32.mrb[45].mxu0  ;;  %v12891_v9 = vld [vmem:[#allocation15_spill] sm:$0xff] }
 0x2b6   :  { %v6004_v22 = vpop.f32.mrb[46].mxu0 }
 0x2b7   :  { %v12235_v53 = vadd.f32 %v6004_v22, %v12884_v61  ;;  %v6006_v39 = vpop.f32.mrb[47].mxu0 }
 0x2b8   :  { %v12892_v39 = vld [vmem:[#allocation75_spill] sm:$0xff] }
 0x2bb   :  { %v12237_v56 = vpop.f32.mrb[80].mxu1 }
 0x2bc   :  { %12885 = vst [vmem:[#allocation90_spill] sm:$0xff] %v12237_v56  ;;  %v5850_v30 = vpop.f32.mrb[81].mxu1 }
 0x2bd   :  { %v12239_v25 = vpop.f32.mrb[82].mxu1 }
 0x2be   :  { %12886 = vst [vmem:[#allocation46_spill] sm:$0xff] %v12239_v25  ;;  %v5853_v4 = vpop.f32.mrb[83].mxu1 }
 0x2c0   :  { %v6009_v14 = vpop.f32.mrb[48].mxu0 }
 0x2c1   :  { %v12242_v51 = vadd.f32 %v6009_v14, %v12887_v60  ;;  %v6011_v12 = vpop.f32.mrb[49].mxu0 }
 0x2c2   :  { %v6012_v32 = vpop.f32.mrb[50].mxu0 }
 0x2c3   :  { %v12245_v54 = vadd.f32 %v6012_v32, %v12888_v0  ;;  %v6014_v63 = vpop.f32.mrb[51].mxu0 }
 0x2c4   :  { %v12895_v63 = vld [vmem:[#allocation29_spill] sm:$0xff] }
 0x2c7   :  { %v12247_v58 = vpop.f32.mrb[84].mxu1 }
 0x2c8   :  { %12889 = vst [vmem:[#allocation80_spill] sm:$0xff] %v12247_v58  ;;  %v5858_v46 = vpop.f32.mrb[85].mxu1 }
 0x2c9   :  { %v12249_v55 = vpop.f32.mrb[86].mxu1 }
 0x2ca   :  { %12890 = vst [vmem:[#allocation79_spill] sm:$0xff] %v12249_v55  ;;  %v5861_v6 = vpop.f32.mrb[87].mxu1 }
 0x2cc   :  { %v6017_v24 = vpop.f32.mrb[52].mxu0 }
 0x2cd   :  { %v12252_v59 = vadd.f32 %v6017_v24, %v12891_v9  ;;  %v6019_v22 = vpop.f32.mrb[53].mxu0  ;;  %v12896_v24 = vld [vmem:[#allocation65_spill] sm:$0xff] }
 0x2ce   :  { %v6020_v61 = vpop.f32.mrb[54].mxu0 }
 0x2cf   :  { %v12255_v30 = vadd.f32 %v6020_v61, %v12892_v39  ;;  %v6022_v4 = vpop.f32.mrb[55].mxu0 }
 0x2d4   :  { %v12257_v14 = vpop.f32.mrb[88].mxu1 }
 0x2d5   :  { %12893 = vst [vmem:[#allocation52_spill] sm:$0xff] %v12257_v14  ;;  %v5866_v60 = vpop.f32.mrb[89].mxu1  ;;  %v12899_v14 = vld [vmem:[#allocation64_spill] sm:$0xff] }
 0x2d6   :  { %v12259_v12 = vpop.f32.mrb[90].mxu1 }
 0x2d7   :  { %12894 = vst [vmem:[#allocation53_spill] sm:$0xff] %v12259_v12  ;;  %v5869_v32 = vpop.f32.mrb[91].mxu1 }
 0x2d9   :  { %v6025_v0 = vpop.f32.mrb[56].mxu0 }
 0x2da   :  { %v12262_v46 = vadd.f32 %v6025_v0, %v12895_v63  ;;  %v6027_v6 = vpop.f32.mrb[57].mxu0  ;;  %v12900_v0 = vld [vmem:[#allocation35_spill] sm:$0xff] }
 0x2db   :  { %v6028_v55 = vpop.f32.mrb[58].mxu0 }
 0x2dc   :  { %v12265_v9 = vadd.f32 %v6028_v55, %v12896_v24  ;;  %v6030_v22 = vpop.f32.mrb[59].mxu0  ;;  %v12901_v55 = vld [vmem:[#allocation82_spill] sm:$0xff] }
 0x2e0   :  { %v12267_v58 = vpop.f32.mrb[92].mxu1 }
 0x2e1   :  { %12897 = vst [vmem:[#allocation34_spill] sm:$0xff] %v12267_v58  ;;  %v5874_v61 = vpop.f32.mrb[93].mxu1 }
 0x2e2   :  { %v12269_v39 = vpop.f32.mrb[94].mxu1 }
 0x2e3   :  { %12898 = vst [vmem:[#allocation95_spill] sm:$0xff] %v12269_v39  ;;  %v5877_v4 = vpop.f32.mrb[95].mxu1 }
 0x2e5   :  { %v6033_v60 = vpop.f32.mrb[60].mxu0 }
 0x2e6   :  { %v12272_v12 = vadd.f32 %v6033_v60, %v12899_v14  ;;  %v6035_v32 = vpop.f32.mrb[61].mxu0  ;;  %v12903_v14 = vld [vmem:[#allocation36_spill] sm:$0xff] }
 0x2e7   :  { %v6036_v25 = vpop.f32.mrb[62].mxu0 }
 0x2e8   :  { %v12275_v63 = vadd.f32 %v6036_v25, %v12900_v0  ;;  %v6038_v6 = vpop.f32.mrb[63].mxu0 }
 0x2ef   :  { %v6041_v56 = vpop.f32.mrb[64].mxu0 }
 0x2f0   :  { %v12278_v24 = vadd.f32 %v6041_v56, %v12901_v55  ;;  %v6043_v22 = vpop.f32.mrb[65].mxu0  ;;  %v7227_v58 = vpop.f32.mrb[96].mxu1  ;;  %v12904_v56 = vld [vmem:[#allocation20_spill] sm:$0xff] }
 0x2f1   :  { %v6211_v61 = vadd.f32 %v7227_v58, %v11742_v34  ;;  %v6044_v39 = vpop.f32.mrb[66].mxu0  ;;  %v6202_v4 = vpop.f32.mrb[97].mxu1 }
 0x2f2   :  { %v12282_v16 = vadd.f32 %v6044_v39, %v12902_v29  ;;  %v6203_v60 = vadd.f32 %v6202_v4, %v12903_v14  ;;  %v6046_v32 = vpop.f32.mrb[67].mxu0  ;;  %v7228_v36 = vpop.f32.mrb[98].mxu1 }
 0x2f3   :  { %6459 = vst [vmem:[#allocation2 + $0x10] sm:$0xff] %v6211_v61  ;;  %v6214_v25 = vadd.f32 %v7228_v36, %v11749_v17  ;;  %v6205_v0 = vpop.f32.mrb[99].mxu1 }
 0x2f4   :  { %6457 = vst [vmem:[#allocation2] sm:$0xff] %v6203_v60  ;;  %v6206_v6 = vadd.f32 %v6205_v0, %v12904_v56 }
 0x2f5   :  { %6460 = vst [vmem:[#allocation2 + $0x18] sm:$0xff] %v6214_v25 }
 0x2f6   :  { %6458 = vst [vmem:[#allocation2 + $0x8] sm:$0xff] %v6206_v6 }
 0x2fb   :  { %v6049_v55 = vpop.f32.mrb[68].mxu0 }
 0x2fc   :  { %v12288_v34 = vadd.f32 %v6049_v55, %v11714_v49  ;;  %v6051_v58 = vpop.f32.mrb[69].mxu0  ;;  %v7231_v29 = vpop.f32.mrb[100].mxu1 }
 0x2fd   :  { %v6227_v39 = vadd.f32 %v7231_v29, %v11947_v5  ;;  %v6052_v22 = vpop.f32.mrb[70].mxu0  ;;  %v6218_v4 = vpop.f32.mrb[101].mxu1 }
 0x2fe   :  { %v12292_v61 = vadd.f32 %v6052_v22, %v11736_v21  ;;  %v6219_v17 = vadd.f32 %v6218_v4, %v11847_v50  ;;  %v6054_v36 = vpop.f32.mrb[71].mxu0  ;;  %v7232_v14 = vpop.f32.mrb[102].mxu1 }
 0x2ff   :  { %6463 = vst [vmem:[#allocation2 + $0x30] sm:$0xff] %v6227_v39  ;;  %v6230_v60 = vadd.f32 %v7232_v14, %v11959_v15  ;;  %v6221_v32 = vpop.f32.mrb[103].mxu1 }
 0x300   :  { %6461 = vst [vmem:[#allocation2 + $0x20] sm:$0xff] %v6219_v17  ;;  %v6222_v49 = vadd.f32 %v6221_v32, %v11862_v43 }
 0x301   :  { %6464 = vst [vmem:[#allocation2 + $0x38] sm:$0xff] %v6230_v60  ;;  %v12906_v60 = vld [vmem:[#allocation72_spill] sm:$0xff] }
 0x302   :  { %6462 = vst [vmem:[#allocation2 + $0x28] sm:$0xff] %v6222_v49 }
 0x303   :  { %v6057_v25 = vpop.f32.mrb[72].mxu0 }
 0x304   :  { %v12298_v5 = vadd.f32 %v6057_v25, %v11810_v27  ;;  %v6059_v0 = vpop.f32.mrb[73].mxu0  ;;  %v7235_v21 = vpop.f32.mrb[104].mxu1 }
 0x305   :  { %v6243_v56 = vadd.f32 %v7235_v21, %v12095_v47  ;;  %v6060_v50 = vpop.f32.mrb[74].mxu0  ;;  %v6234_v6 = vpop.f32.mrb[105].mxu1  ;;  %v12905_v47 = vld [vmem:[#allocation73_spill] sm:$0xff] }
 0x306   :  { %v12302_v55 = vadd.f32 %v6060_v50, %v11825_v31  ;;  %v6235_v15 = vadd.f32 %v6234_v6, %v12024_v13  ;;  %v6062_v58 = vpop.f32.mrb[75].mxu0  ;;  %v7236_v29 = vpop.f32.mrb[106].mxu1 }
 0x307   :  { %6467 = vst [vmem:[#allocation2 + $0x50] sm:$0xff] %v6243_v56  ;;  %v6246_v43 = vadd.f32 %v7236_v29, %v12102_v23  ;;  %v6237_v39 = vpop.f32.mrb[107].mxu1 }
 0x308   :  { %6465 = vst [vmem:[#allocation2 + $0x40] sm:$0xff] %v6235_v15  ;;  %v6238_v27 = vadd.f32 %v6237_v39, %v12042_v1 }
 0x309   :  { %6468 = vst [vmem:[#allocation2 + $0x58] sm:$0xff] %v6246_v43 }
 0x30a   :  { %6466 = vst [vmem:[#allocation2 + $0x48] sm:$0xff] %v6238_v27 }
 0x30b   :  { %v6065_v22 = vpop.f32.mrb[76].mxu0 }
 0x30c   :  { %v12308_v4 = vadd.f32 %v6065_v22, %v12905_v47  ;;  %v6067_v17 = vpop.f32.mrb[77].mxu0  ;;  %v7239_v31 = vpop.f32.mrb[108].mxu1 }
 0x30d   :  { %v6259_v36 = vadd.f32 %v7239_v31, %v12183_v20  ;;  %v6068_v13 = vpop.f32.mrb[78].mxu0  ;;  %v6250_v14 = vpop.f32.mrb[109].mxu1 }
 0x30e   :  { %v12312_v32 = vadd.f32 %v6068_v13, %v12906_v60  ;;  %v6251_v23 = vadd.f32 %v6250_v14, %v12144_v19  ;;  %v6070_v49 = vpop.f32.mrb[79].mxu0  ;;  %v7240_v25 = vpop.f32.mrb[110].mxu1 }
 0x30f   :  { %6471 = vst [vmem:[#allocation2 + $0x70] sm:$0xff] %v6259_v36  ;;  %v6262_v1 = vadd.f32 %v7240_v25, %v12191_v37  ;;  %v6253_v0 = vpop.f32.mrb[111].mxu1 }
 0x310   :  { %6469 = vst [vmem:[#allocation2 + $0x60] sm:$0xff] %v6251_v23  ;;  %v6254_v21 = vadd.f32 %v6253_v0, %v12155_v7 }
 0x311   :  { %6472 = vst [vmem:[#allocation2 + $0x78] sm:$0xff] %v6262_v1 }
 0x312   :  { %6470 = vst [vmem:[#allocation2 + $0x68] sm:$0xff] %v6254_v21 }
 0x313   :  { %v6073_v56 = vpop.f32.mrb[80].mxu0 }
 0x314   :  { %v12318_v20 = vadd.f32 %v6073_v56, %v12009_v3  ;;  %v6075_v50 = vpop.f32.mrb[81].mxu0 }
 0x315   :  { %v7243_v6 = vpop.f32.mrb[112].mxu1  ;;  %v6076_v19 = vpop.f32.mrb[82].mxu0 }
 0x316   :  { %v6275_v15 = vadd.f32 %v7243_v6, %v12210_v33  ;;  %v6266_v58 = vpop.f32.mrb[113].mxu1  ;;  %v12322_v29 = vadd.f32 %v6076_v19, %v12018_v2  ;;  %v6078_v43 = vpop.f32.mrb[83].mxu0 }
 0x317   :  { %v6267_v37 = vadd.f32 %v6266_v58, %v12200_v57  ;;  %v7244_v39 = vpop.f32.mrb[114].mxu1 }
 0x318   :  { %6475 = vst [vmem:[#allocation2 + $0x90] sm:$0xff] %v6275_v15  ;;  %v6278_v7 = vadd.f32 %v7244_v39, %v12215_v44  ;;  %v6269_v27 = vpop.f32.mrb[115].mxu1 }
 0x319   :  { %6473 = vst [vmem:[#allocation2 + $0x80] sm:$0xff] %v6267_v37  ;;  %v6270_v3 = vadd.f32 %v6269_v27, %v12205_v41 }
 0x31a   :  { %6476 = vst [vmem:[#allocation2 + $0x98] sm:$0xff] %v6278_v7 }
 0x31b   :  { %6474 = vst [vmem:[#allocation2 + $0x88] sm:$0xff] %v6270_v3  ;;  %v6081_v22 = vpop.f32.mrb[84].mxu0 }
 0x31c   :  { %v12328_v33 = vadd.f32 %v6081_v22, %v12081_v8  ;;  %v6083_v47 = vpop.f32.mrb[85].mxu0 }
 0x31d   :  { %v6084_v57 = vpop.f32.mrb[86].mxu0 }
 0x31e   :  { %v7247_v2 = vpop.f32.mrb[116].mxu1  ;;  %v12332_v36 = vadd.f32 %v6084_v57, %v12087_v40  ;;  %v6086_v13 = vpop.f32.mrb[87].mxu0 }
 0x31f   :  { %v6291_v17 = vadd.f32 %v7247_v2, %v12232_v52  ;;  %v6282_v31 = vpop.f32.mrb[117].mxu1 }
 0x320   :  { %v6283_v44 = vadd.f32 %v6282_v31, %v12222_v42  ;;  %v7248_v14 = vpop.f32.mrb[118].mxu1 }
 0x321   :  { %6479 = vst [vmem:[#allocation2 + $0xb0] sm:$0xff] %v6291_v17  ;;  %v6294_v41 = vadd.f32 %v7248_v14, %v12235_v53  ;;  %v6285_v60 = vpop.f32.mrb[119].mxu1 }
 0x322   :  { %6477 = vst [vmem:[#allocation2 + $0xa0] sm:$0xff] %v6283_v44  ;;  %v6286_v8 = vadd.f32 %v6285_v60, %v12225_v10 }
 0x323   :  { %6480 = vst [vmem:[#allocation2 + $0xb8] sm:$0xff] %v6294_v41  ;;  %v6089_v23 = vpop.f32.mrb[88].mxu0 }
 0x324   :  { %6478 = vst [vmem:[#allocation2 + $0xa8] sm:$0xff] %v6286_v8  ;;  %v12338_v52 = vadd.f32 %v6089_v23, %v12131_v28  ;;  %v6091_v49 = vpop.f32.mrb[89].mxu0 }
 0x325   :  { %v6092_v42 = vpop.f32.mrb[90].mxu0 }
 0x326   :  { %v7251_v40 = vpop.f32.mrb[120].mxu1  ;;  %v12342_v0 = vadd.f32 %v6092_v42, %v12140_v18  ;;  %v6094_v21 = vpop.f32.mrb[91].mxu0 }
 0x327   :  { %v6307_v25 = vadd.f32 %v7251_v40, %v12252_v59  ;;  %v6298_v1 = vpop.f32.mrb[121].mxu1 }
 0x328   :  { %v6299_v53 = vadd.f32 %v6298_v1, %v12242_v51  ;;  %v7252_v56 = vpop.f32.mrb[122].mxu1 }
 0x329   :  { %6483 = vst [vmem:[#allocation2 + $0xd0] sm:$0xff] %v6307_v25  ;;  %v6310_v10 = vadd.f32 %v7252_v56, %v12255_v30  ;;  %v6301_v50 = vpop.f32.mrb[123].mxu1 }
 0x32a   :  { %6481 = vst [vmem:[#allocation2 + $0xc0] sm:$0xff] %v6299_v53  ;;  %v6302_v28 = vadd.f32 %v6301_v50, %v12245_v54  ;;  %v12907_v53 = vld [vmem:[#allocation42_spill] sm:$0xff] }
 0x32b   :  { %6484 = vst [vmem:[#allocation2 + $0xd8] sm:$0xff] %v6310_v10 }
 0x32c   :  { %6482 = vst [vmem:[#allocation2 + $0xc8] sm:$0xff] %v6302_v28 }
 0x32d   :  { %v6097_v6 = vpop.f32.mrb[92].mxu0 }
 0x32e   :  { %v12348_v59 = vadd.f32 %v6097_v6, %v12173_v38  ;;  %v6099_v15 = vpop.f32.mrb[93].mxu0  ;;  %v7255_v18 = vpop.f32.mrb[124].mxu1  ;;  %v12908_v6 = vld [vmem:[#allocation45_spill] sm:$0xff] }
 0x32f   :  { %v6323_v19 = vadd.f32 %v7255_v18, %v12272_v12  ;;  %v6100_v51 = vpop.f32.mrb[94].mxu0  ;;  %v6314_v58 = vpop.f32.mrb[125].mxu1 }
 0x330   :  { %v12352_v37 = vadd.f32 %v6100_v51, %v12181_v35  ;;  %v6315_v30 = vadd.f32 %v6314_v58, %v12262_v46  ;;  %v6102_v43 = vpop.f32.mrb[95].mxu0  ;;  %v7256_v39 = vpop.f32.mrb[126].mxu1  ;;  %v12909_v58 = vld [vmem:[#allocation27_spill] sm:$0xff] }
 0x331   :  { %6487 = vst [vmem:[#allocation2 + $0xf0] sm:$0xff] %v6323_v19  ;;  %v6326_v54 = vadd.f32 %v7256_v39, %v12275_v63  ;;  %v6317_v7 = vpop.f32.mrb[127].mxu1 }
 0x332   :  { %6485 = vst [vmem:[#allocation2 + $0xe0] sm:$0xff] %v6315_v30  ;;  %v6318_v38 = vadd.f32 %v6317_v7, %v12265_v9 }
 0x333   :  { %6488 = vst [vmem:[#allocation2 + $0xf8] sm:$0xff] %v6326_v54 }
 0x334   :  { %6486 = vst [vmem:[#allocation2 + $0xe8] sm:$0xff] %v6318_v38 }
 0x335   :  { %v6105_v27 = vpop.f32.mrb[96].mxu0 }
 0x336   :  { %v12358_v12 = vadd.f32 %v6105_v27, %v12196_v48  ;;  %v6107_v3 = vpop.f32.mrb[97].mxu0  ;;  %v7259_v35 = vpop.f32.mrb[128].mxu1  ;;  %v12910_v27 = vld [vmem:[#allocation90_spill] sm:$0xff] }
 0x337   :  { %v6339_v22 = vadd.f32 %v7259_v35, %v12288_v34  ;;  %v6108_v46 = vpop.f32.mrb[98].mxu0  ;;  %v6330_v47 = vpop.f32.mrb[129].mxu1 }
 0x338   :  { %v12362_v2 = vadd.f32 %v6108_v46, %v12202_v26  ;;  %v6331_v63 = vadd.f32 %v6330_v47, %v12278_v24  ;;  %v6110_v17 = vpop.f32.mrb[99].mxu0  ;;  %v7260_v57 = vpop.f32.mrb[130].mxu1 }
 0x339   :  { %6491 = vst [vmem:[#allocation2 + $0x110] sm:$0xff] %v6339_v22  ;;  %v6342_v9 = vadd.f32 %v7260_v57, %v12292_v61  ;;  %v6333_v31 = vpop.f32.mrb[131].mxu1 }
 0x33a   :  { %6489 = vst [vmem:[#allocation2 + $0x100] sm:$0xff] %v6331_v63  ;;  %v6334_v48 = vadd.f32 %v6333_v31, %v12282_v16 }
 0x33b   :  { %6492 = vst [vmem:[#allocation2 + $0x118] sm:$0xff] %v6342_v9 }
 0x33c   :  { %6490 = vst [vmem:[#allocation2 + $0x108] sm:$0xff] %v6334_v48 }
 0x33d   :  { %v6113_v44 = vpop.f32.mrb[100].mxu0 }
 0x33e   :  { %v6114_v34 = vadd.f32 %v6113_v44, %v12207_v62  ;;  %v6115_v13 = vpop.f32.mrb[101].mxu0  ;;  %v7263_v14 = vpop.f32.mrb[132].mxu1  ;;  %v12912_v44 = vld [vmem:[#allocation80_spill] sm:$0xff] }
 0x33f   :  { %v6355_v26 = vadd.f32 %v7263_v14, %v12308_v4  ;;  %v6116_v41 = vpop.f32.mrb[102].mxu0  ;;  %v6346_v24 = vpop.f32.mrb[133].mxu1 }
 0x340   :  { %v6117_v60 = vadd.f32 %v6116_v41, %v12212_v11  ;;  %v6347_v8 = vadd.f32 %v6346_v24, %v12298_v5  ;;  %v6118_v61 = vpop.f32.mrb[103].mxu0  ;;  %v7264_v23 = vpop.f32.mrb[134].mxu1 }
 0x341   :  { %6495 = vst [vmem:[#allocation2 + $0x130] sm:$0xff] %v6355_v26  ;;  %v6358_v16 = vadd.f32 %v7264_v23, %v12312_v32  ;;  %v6349_v49 = vpop.f32.mrb[135].mxu1 }
 0x342   :  { %6493 = vst [vmem:[#allocation2 + $0x120] sm:$0xff] %v6347_v8  ;;  %v6350_v40 = vadd.f32 %v6349_v49, %v12302_v55  ;;  %v12913_v8 = vld [vmem:[#allocation79_spill] sm:$0xff] }
 0x343   :  { %6496 = vst [vmem:[#allocation2 + $0x138] sm:$0xff] %v6358_v16 }
 0x344   :  { %6494 = vst [vmem:[#allocation2 + $0x128] sm:$0xff] %v6350_v40 }
 0x345   :  { %v6121_v62 = vpop.f32.mrb[104].mxu0 }
 0x346   :  { %v6122_v4 = vadd.f32 %v6121_v62, %v12217_v45  ;;  %v6123_v25 = vpop.f32.mrb[105].mxu0  ;;  %v7267_v42 = vpop.f32.mrb[136].mxu1  ;;  %v12914_v62 = vld [vmem:[#allocation52_spill] sm:$0xff] }
 0x347   :  { %v6371_v11 = vadd.f32 %v7267_v42, %v12328_v33  ;;  %v6124_v1 = vpop.f32.mrb[106].mxu0  ;;  %v6362_v5 = vpop.f32.mrb[137].mxu1 }
 0x348   :  { %v6125_v21 = vadd.f32 %v6124_v1, %v12907_v53  ;;  %v6363_v56 = vadd.f32 %v6362_v5, %v12318_v20  ;;  %v6126_v32 = vpop.f32.mrb[107].mxu0  ;;  %v7268_v10 = vpop.f32.mrb[138].mxu1 }
 0x349   :  { %6499 = vst [vmem:[#allocation2 + $0x150] sm:$0xff] %v6371_v11  ;;  %v6374_v55 = vadd.f32 %v7268_v10, %v12332_v36  ;;  %v6365_v50 = vpop.f32.mrb[139].mxu1 }
 0x34a   :  { %6497 = vst [vmem:[#allocation2 + $0x140] sm:$0xff] %v6363_v56  ;;  %v6366_v28 = vadd.f32 %v6365_v50, %v12322_v29  ;;  %v12915_v56 = vld [vmem:[#allocation53_spill] sm:$0xff] }
 0x34b   :  { %6500 = vst [vmem:[#allocation2 + $0x158] sm:$0xff] %v6374_v55 }
 0x34c   :  { %6498 = vst [vmem:[#allocation2 + $0x148] sm:$0xff] %v6366_v28 }
 0x34f   :  { %v6129_v45 = vpop.f32.mrb[108].mxu0  ;;  %v7271_v18 = vpop.f32.mrb[140].mxu1 }
 0x350   :  { %v6130_v33 = vadd.f32 %v6129_v45, %v12908_v6  ;;  %v6131_v15 = vpop.f32.mrb[109].mxu0  ;;  %v6387_v19 = vadd.f32 %v7271_v18, %v12348_v59  ;;  %v6378_v20 = vpop.f32.mrb[141].mxu1 }
 0x351   :  { %v6132_v51 = vpop.f32.mrb[110].mxu0  ;;  %v6379_v43 = vadd.f32 %v6378_v20, %v12338_v52  ;;  %v7272_v39 = vpop.f32.mrb[142].mxu1  ;;  %v12911_v52 = vld [vmem:[#allocation46_spill] sm:$0xff] }
 0x352   :  { %v6133_v30 = vadd.f32 %v6132_v51, %v12909_v58  ;;  %v6134_v36 = vpop.f32.mrb[111].mxu0  ;;  %6503 = vst [vmem:[#allocation2 + $0x170] sm:$0xff] %v6387_v19  ;;  %v6390_v29 = vadd.f32 %v7272_v39, %v12352_v37  ;;  %v6381_v54 = vpop.f32.mrb[143].mxu1 }
 0x353   :  { %6501 = vst [vmem:[#allocation2 + $0x160] sm:$0xff] %v6379_v43  ;;  %v6382_v7 = vadd.f32 %v6381_v54, %v12342_v0  ;;  %v12917_v43 = vld [vmem:[#allocation95_spill] sm:$0xff] }
 0x354   :  { %6504 = vst [vmem:[#allocation2 + $0x178] sm:$0xff] %v6390_v29 }
 0x355   :  { %6502 = vst [vmem:[#allocation2 + $0x168] sm:$0xff] %v6382_v7 }
 0x357   :  { %v6137_v38 = vpop.f32.mrb[112].mxu0  ;;  %v7275_v35 = vpop.f32.mrb[144].mxu1 }
 0x358   :  { %v6138_v59 = vadd.f32 %v6137_v38, %v12910_v27  ;;  %v6139_v3 = vpop.f32.mrb[113].mxu0  ;;  %v6403_v22 = vadd.f32 %v7275_v35, %v6114_v34  ;;  %v6394_v47 = vpop.f32.mrb[145].mxu1 }
 0x359   :  { %v6140_v46 = vpop.f32.mrb[114].mxu0  ;;  %v6395_v17 = vadd.f32 %v6394_v47, %v12358_v12  ;;  %v7276_v37 = vpop.f32.mrb[146].mxu1 }
 0x35a   :  { %v6141_v63 = vadd.f32 %v6140_v46, %v12911_v52  ;;  %v6142_v57 = vpop.f32.mrb[115].mxu0  ;;  %6507 = vst [vmem:[#allocation2 + $0x190] sm:$0xff] %v6403_v22  ;;  %v6406_v9 = vadd.f32 %v7276_v37, %v6117_v60  ;;  %v6397_v31 = vpop.f32.mrb[147].mxu1 }
 0x35b   :  { %6505 = vst [vmem:[#allocation2 + $0x180] sm:$0xff] %v6395_v17  ;;  %v6398_v0 = vadd.f32 %v6397_v31, %v12362_v2 }
 0x35c   :  { %6508 = vst [vmem:[#allocation2 + $0x198] sm:$0xff] %v6406_v9 }
 0x35d   :  { %6506 = vst [vmem:[#allocation2 + $0x188] sm:$0xff] %v6398_v0 }
 0x35f   :  { %v6145_v48 = vpop.f32.mrb[116].mxu0  ;;  %v7279_v14 = vpop.f32.mrb[148].mxu1 }
 0x360   :  { %v6146_v13 = vadd.f32 %v6145_v48, %v12912_v44  ;;  %v6147_v34 = vpop.f32.mrb[117].mxu0  ;;  %v6419_v26 = vadd.f32 %v7279_v14, %v6130_v33  ;;  %v6410_v24 = vpop.f32.mrb[149].mxu1  ;;  %v12916_v33 = vld [vmem:[#allocation34_spill] sm:$0xff] }
 0x361   :  { %v6148_v41 = vpop.f32.mrb[118].mxu0  ;;  %v6411_v61 = vadd.f32 %v6410_v24, %v6122_v4  ;;  %v7280_v16 = vpop.f32.mrb[150].mxu1 }
 0x362   :  { %v6149_v12 = vadd.f32 %v6148_v41, %v12913_v8  ;;  %v6150_v23 = vpop.f32.mrb[119].mxu0  ;;  %6511 = vst [vmem:[#allocation2 + $0x1b0] sm:$0xff] %v6419_v26  ;;  %v6422_v60 = vadd.f32 %v7280_v16, %v6133_v30  ;;  %v6413_v49 = vpop.f32.mrb[151].mxu1 }
 0x363   :  { %6509 = vst [vmem:[#allocation2 + $0x1a0] sm:$0xff] %v6411_v61  ;;  %v6414_v2 = vadd.f32 %v6413_v49, %v6125_v21 }
 0x364   :  { %6512 = vst [vmem:[#allocation2 + $0x1b8] sm:$0xff] %v6422_v60 }
 0x365   :  { %6510 = vst [vmem:[#allocation2 + $0x1a8] sm:$0xff] %v6414_v2 }
 0x367   :  { %v6153_v40 = vpop.f32.mrb[120].mxu0  ;;  %v7283_v11 = vpop.f32.mrb[152].mxu1 }
 0x368   :  { %v6154_v25 = vadd.f32 %v6153_v40, %v12914_v62  ;;  %v6155_v42 = vpop.f32.mrb[121].mxu0  ;;  %v6435_v1 = vadd.f32 %v7283_v11, %v6146_v13  ;;  %v6426_v53 = vpop.f32.mrb[153].mxu1 }
 0x369   :  { %v6156_v5 = vpop.f32.mrb[122].mxu0  ;;  %v6427_v4 = vadd.f32 %v6426_v53, %v6138_v59  ;;  %v7284_v55 = vpop.f32.mrb[154].mxu1 }
 0x36a   :  { %v6157_v32 = vadd.f32 %v6156_v5, %v12915_v56  ;;  %v6158_v10 = vpop.f32.mrb[123].mxu0  ;;  %6515 = vst [vmem:[#allocation2 + $0x1d0] sm:$0xff] %v6435_v1  ;;  %v6438_v50 = vadd.f32 %v7284_v55, %v6149_v12  ;;  %v6429_v28 = vpop.f32.mrb[155].mxu1 }
 0x36b   :  { %6513 = vst [vmem:[#allocation2 + $0x1c0] sm:$0xff] %v6427_v4  ;;  %v6430_v21 = vadd.f32 %v6429_v28, %v6141_v63 }
 0x36c   :  { %6516 = vst [vmem:[#allocation2 + $0x1d8] sm:$0xff] %v6438_v50 }
 0x36d   :  { %6514 = vst [vmem:[#allocation2 + $0x1c8] sm:$0xff] %v6430_v21 }
 0x36f   :  { %v6161_v45 = vpop.f32.mrb[124].mxu0  ;;  %v7287_v6 = vpop.f32.mrb[156].mxu1 }
 0x370   :  { %v6162_v15 = vadd.f32 %v6161_v45, %v12916_v33  ;;  %v6163_v18 = vpop.f32.mrb[125].mxu0  ;;  %v6442_v19 = vpop.f32.mrb[157].mxu1 }
 0x371   :  { %v6164_v51 = vpop.f32.mrb[126].mxu0  ;;  %v6443_v20 = vadd.f32 %v6442_v19, %v6154_v25  ;;  %v7288_v58 = vpop.f32.mrb[158].mxu1 }
 0x372   :  { %v6451_v30 = vadd.f32 %v7287_v6, %v6162_v15  ;;  %v6165_v36 = vadd.f32 %v6164_v51, %v12917_v43  ;;  %v6166_v39 = vpop.f32.mrb[127].mxu0  ;;  %v6445_v29 = vpop.f32.mrb[159].mxu1 }
 0x373   :  { %6517 = vst [vmem:[#allocation2 + $0x1e0] sm:$0xff] %v6443_v20  ;;  %v6446_v54 = vadd.f32 %v6445_v29, %v6157_v32 }
 0x374   :  { %6519 = vst [vmem:[#allocation2 + $0x1f0] sm:$0xff] %v6451_v30  ;;  %v6454_v7 = vadd.f32 %v7288_v58, %v6165_v36 }
 0x375   :  { %6518 = vst [vmem:[#allocation2 + $0x1e8] sm:$0xff] %v6446_v54 }
 0x376   :  { %6520 = vst [vmem:[#allocation2 + $0x1f8] sm:$0xff] %v6454_v7 }
 0x377   :  { %7805 = shalt.err (!%p7802_p4)
}
 0x378   :  { %s7806_s15 = scalar_lea.hbm %s12409_s2, 8192 }
 0x379   :  { %p7807_p5 = scmp.ne.s32.totalorder %s12409_s2, %s7806_s15  ;;  %p7810_p6 = scmp.lt.u32.totalorder %s7806_s15, %s12409_s2 }
 0x37b   :  { %p7812_p7 = pnand %p7810_p6, %p7807_p5 }
 0x37d   :  { %7815 = shalt.err (!%p7812_p7)
}
 0x37e   :  { %s7821_s21 = smov 128   ;;  %s7822_s22 = smov 8  }
 0x37f   :  { %6532 = dma.vmem_to_hbm [thread:$0]  %s6527_s11, 8192, %s12409_s2, [#allocation3], %s7821_s21, %s7821_s21, %s7822_s22  }
 0x380   :  { %7816 = dma.done.wait [#allocation3], 8192  }
 0x381   :  { %7817 = vsyncadd [#allocation3], 4294959104 }
 0x382   :  { %6536 = vsyncpa [#allocation3], 1 }

</bundles_post_ra>
